<compile_context>
chip_gen: v6e
topology: v6e:2x2x1
jax: 0.10.0
libtpu: 0.0.40
codegen_flags: <defaults>
</compile_context>

<pallas_src>
import functools

import jax
import jax.numpy as jnp
from jax.experimental import pallas as pl
from jax.experimental.pallas import tpu as pltpu


def _round_up(x, m):
    return (x + m - 1) // m * m


@functools.lru_cache(maxsize=None)
def _vmem_limit_bytes():
    # v5e/v6e: 128 MiB physical VMEM -> allow a large scoped limit.
    # v7x (64 MiB physical) / unknown: stay conservative.
    try:
        kind = jax.devices()[0].device_kind.lower()
    except Exception:
        kind = ""
    if "v5" in kind or "v6" in kind:
        return 64 * 1024 * 1024
    return 48 * 1024 * 1024


def _compiler_params(sems):
    return pltpu.CompilerParams(dimension_semantics=sems,
                                vmem_limit_bytes=_vmem_limit_bytes())


# --------------------------------------------------------------------------
# Pallas kernels
# --------------------------------------------------------------------------
def _conv_taps_kernel(x_ref, w_ref, s_ref, b_ref, o_ref, *,
                      taps, kw, row_stride, out_len, cin, relu):
    """Stride-1 Conv2d + folded BN + ReLU via in-kernel shifted-window im2col.

    x_ref: (1, Hp*S, Cin)   padded input image, rows flattened with stride S
    w_ref: (taps, Cin, Cout_tile)  per-tap weight slices (tap = dr*kw + dc)
    s_ref, b_ref: (1, Cout_tile)   folded BatchNorm scale / bias (f32)
    o_ref: (1, out_len, Cout_tile) out_len = H*S; columns >= W are junk and are
                                   sliced away by the caller.
    Because the accumulator index k = h*S + w and the tap input index is
    k + dr*S + dc, every tap is a plain contiguous 2-D slice -> no in-kernel
    reshapes, just `taps` small matmuls into an f32 accumulator.
    """
    acc = None
    for t in range(taps):
        dr, dc = divmod(t, kw)
        start = dr * row_stride + dc
        xt = x_ref[0, start:start + out_len, :]          # (out_len, Cin)
        wt = w_ref[t]                                     # (Cin, Cout_tile)
        if cin == 1:
            # K=1 contraction: a broadcast multiply on the VPU beats a
            # degenerate MXU matmul.
            term = xt.astype(jnp.float32) * wt.astype(jnp.float32)
        else:
            term = jnp.dot(xt, wt, preferred_element_type=jnp.float32)
        acc = term if acc is None else acc + term
    out = acc * s_ref[...] + b_ref[...]
    if relu:
        out = jnp.maximum(out, 0.0)
    o_ref[0] = out.astype(o_ref.dtype)                    # bf16 writeback


def _sfeb_conv_kernel(x_ref, w_ref, s_ref, b_ref, o_ref, *, kw, sw, wo, cin, relu):
    """(1,kw) conv with stride (1,sw) + folded BN + ReLU via the "phase" trick.

    The caller regroups the waveform as (Wn//sw, sw*Cin) so every stride-sw
    window becomes a stride-1 row window; tap t reads rows [t//sw, t//sw+Wo)
    and the channel slot t%sw.  No HBM patch matrix is ever materialised.
    """
    acc = None
    for t in range(kw):
        row, phase = divmod(t, sw)
        xt = x_ref[0, row:row + wo, phase * cin:(phase + 1) * cin]   # (Wo, Cin)
        wt = w_ref[t]                                                 # (Cin, Cout)
        if cin == 1:
            term = xt * wt
        else:
            term = jnp.dot(xt, wt, preferred_element_type=jnp.float32)
        acc = term if acc is None else acc + term
    out = acc * s_ref[...] + b_ref[...]
    if relu:
        out = jnp.maximum(out, 0.0)
    o_ref[0] = out


def _linear_softmax_kernel(x_ref, w_ref, b_ref, o_ref, *, n_valid):
    # Fused Linear (+bias) and row softmax; exact reciprocal (free at this size).
    logits = jnp.dot(x_ref[...], w_ref[...], preferred_element_type=jnp.float32)
    logits = logits + b_ref[...]
    lane = jax.lax.broadcasted_iota(jnp.int32, logits.shape, 1)
    valid = lane < n_valid
    logits = jnp.where(valid, logits, -jnp.inf)
    m = jnp.max(logits, axis=-1, keepdims=True)
    e = jnp.where(valid, jnp.exp(logits - m), 0.0)
    s = jnp.sum(e, axis=-1, keepdims=True)
    o_ref[...] = e * pl.reciprocal(s, approx=False)


# --------------------------------------------------------------------------
# Layer wrappers (pallas_call plumbing)
# --------------------------------------------------------------------------
def conv_bn_relu(x, layer, relu=True):
    """Conv2d(stride 1) + BN + ReLU on NHWC bf16.  In-kernel im2col, bf16 out."""
    B, H, W, Cin = x.shape
    kh, kw = layer['kh'], layer['kw']
    ph, pw = layer['pad']
    Cout = layer['cout']
    assert layer['stride'] == (1, 1)

    S = W + 2 * pw                              # row stride of the padded image
    Hp = H + kh - 1 + (1 if kw > 1 else 0)      # extra zero row keeps tap slices in-bounds
    L = H * S                                   # flat output length (cols >= W are junk)

    if Hp != H or S != W:
        x = jnp.pad(x, ((0, 0), (ph, Hp - H - ph), (pw, S - W - pw), (0, 0)))
    xf = x.reshape(B, Hp * S, Cin)              # free reshape (row-major NHWC)

    # Split Cout so deep layers still expose >=2 parallel grid points (v7x).
    if Cout >= 512 and Cout % 256 == 0:
        co_t = 256
    elif Cout >= 256 and Cout % 128 == 0:
        co_t = 128
    else:
        co_t = Cout

    out = pl.pallas_call(
        functools.partial(_conv_taps_kernel, taps=kh * kw, kw=kw, row_stride=S,
                          out_len=L, cin=Cin, relu=relu),
        out_shape=jax.ShapeDtypeStruct((B, L, Cout), jnp.bfloat16),
        grid=(B, Cout // co_t),
        in_specs=[
            pl.BlockSpec((1, Hp * S, Cin), lambda b, j: (b, 0, 0)),
            pl.BlockSpec((kh * kw, Cin, co_t), lambda b, j: (0, 0, j)),
            pl.BlockSpec((1, co_t), lambda b, j: (0, j)),
            pl.BlockSpec((1, co_t), lambda b, j: (0, j)),
        ],
        out_specs=pl.BlockSpec((1, L, co_t), lambda b, j: (b, 0, j)),
        compiler_params=_compiler_params(("parallel", "parallel")),
    )(xf, layer['w'], layer['scale'], layer['bias'])

    out = out.reshape(B, H, S, Cout)
    if S != W:
        # Junk-column slice; XLA fuses it into the consumer (pool / next pad),
        # so activations make a single HBM round trip per layer.
        out = out[:, :, :W, :]
    return out


def sfeb_conv_bn_relu(x, layer, relu=True):
    """x: (B, Win, Cin) f32 -> (B, Wo, Cout) f32.  (1,kw) conv, stride (1,sw)."""
    B, Win, Cin = x.shape
    kw = layer['kw']
    sw = layer['stride'][1]
    Cout = layer['cout']
    Wo = (Win - kw) // sw + 1
    need = sw * (Wo - 1) + kw
    Wn = ((need + sw - 1) // sw) * sw
    if Wn > Win:
        x = jnp.pad(x, ((0, 0), (0, Wn - Win), (0, 0)))
    elif Wn < Win:
        x = x[:, :Wn, :]
    x2 = x.reshape(B, Wn // sw, sw * Cin)       # free reshape (phase regrouping)

    return pl.pallas_call(
        functools.partial(_sfeb_conv_kernel, kw=kw, sw=sw, wo=Wo, cin=Cin, relu=relu),
        out_shape=jax.ShapeDtypeStruct((B, Wo, Cout), jnp.float32),
        grid=(B,),
        in_specs=[
            pl.BlockSpec((1, Wn // sw, sw * Cin), lambda b: (b, 0, 0)),
            pl.BlockSpec((kw, Cin, Cout), lambda b: (0, 0, 0)),
            pl.BlockSpec((1, Cout), lambda b: (0, 0)),
            pl.BlockSpec((1, Cout), lambda b: (0, 0)),
        ],
        out_specs=pl.BlockSpec((1, Wo, Cout), lambda b: (b, 0, 0)),
        compiler_params=_compiler_params(("parallel",)),
    )(x2, layer['w'], layer['scale'], layer['bias'])


def linear_softmax(x, w_pad, b_pad, n_class):
    """softmax(x @ W.T + b) with W pre-transposed/padded at build time."""
    B, K = x.shape
    Np = w_pad.shape[1]
    Bp = _round_up(B, 8)
    x_p = x.astype(jnp.float32)
    if Bp != B:
        x_p = jnp.pad(x_p, ((0, Bp - B), (0, 0)))
    out = pl.pallas_call(
        functools.partial(_linear_softmax_kernel, n_valid=n_class),
        out_shape=jax.ShapeDtypeStruct((Bp, Np), jnp.float32),
        grid=(1,),
        in_specs=[
            pl.BlockSpec((Bp, K), lambda i: (0, 0)),
            pl.BlockSpec((K, Np), lambda i: (0, 0)),
            pl.BlockSpec((1, Np), lambda i: (0, 0)),
        ],
        out_specs=pl.BlockSpec((Bp, Np), lambda i: (0, 0)),
        compiler_params=_compiler_params(("arbitrary",)),
    )(x_p, w_pad, b_pad)
    return out[:B, :n_class]


# --------------------------------------------------------------------------
# Pooling glue (XLA, on bf16 NHWC activations)
# --------------------------------------------------------------------------
def maxpool_w(x, p):
    B, W, C = x.shape
    Wo = W // p
    return x[:, :Wo * p, :].reshape(B, Wo, p, C).max(axis=2)


def maxpool2d_nhwc(x, kh, kw):
    # TODO(synk): the stage-end maxpool could be fused into the conv epilogue;
    # kept as XLA glue on the (already bf16) activations.
    B, H, W, C = x.shape
    Ho, Wo = H // kh, W // kw
    x = x[:, :Ho * kh, :Wo * kw, :].reshape(B, Ho, kh, Wo, kw, C)
    return x.max(axis=(2, 4))


def avgpool2d_nhwc(x, kh, kw):
    B, H, W, C = x.shape
    Ho, Wo = H // kh, W // kw
    x = x[:, :Ho * kh, :Wo * kw, :].astype(jnp.float32).reshape(B, Ho, kh, Wo, kw, C)
    return x.mean(axis=(2, 4))


# --------------------------------------------------------------------------
# ACDNetV2 construction (mirrors the PyTorch __init__ logic)
# --------------------------------------------------------------------------
def get_tfeb_pool_size_component(length):
    c = []
    index = 1
    while index <= 6:
        if length >= 2:
            if index == 6:
                c.append(length)
            else:
                c.append(2)
                length = length // 2
        else:
            c.append(1)
        index += 1
    return c


def build_acdnet_params(key, input_length, n_class, sr, ch_conf=None):
    stride1, stride2, channels = 2, 2, 8
    k_size = (3, 3)
    n_frames = sr / 1000 * 10
    sfeb_pool_size = int(n_frames / (stride1 * stride2))
    ch = ch_conf if ch_conf is not None else [
        channels, channels * 8, channels * 4, channels * 8, channels * 8,
        channels * 16, channels * 16, channels * 32, channels * 32,
        channels * 64, channels * 64, n_class]

    conv_defs = [
        # (in_ch, out_ch, (kh, kw), stride, padding)
        (1,      ch[0],  (1, 9), (1, stride1), (0, 0)),   # conv1
        (ch[0],  ch[1],  (1, 5), (1, stride2), (0, 0)),   # conv2
        (1,      ch[2],  k_size, (1, 1),       (1, 1)),   # conv3
        (ch[2],  ch[3],  k_size, (1, 1),       (1, 1)),   # conv4
        (ch[3],  ch[4],  k_size, (1, 1),       (1, 1)),   # conv5
        (ch[4],  ch[5],  k_size, (1, 1),       (1, 1)),   # conv6
        (ch[5],  ch[6],  k_size, (1, 1),       (1, 1)),   # conv7
        (ch[6],  ch[7],  k_size, (1, 1),       (1, 1)),   # conv8
        (ch[7],  ch[8],  k_size, (1, 1),       (1, 1)),   # conv9
        (ch[8],  ch[9],  k_size, (1, 1),       (1, 1)),   # conv10
        (ch[9],  ch[10], k_size, (1, 1),       (1, 1)),   # conv11
        (ch[10], ch[11], (1, 1), (1, 1),       (0, 0)),   # conv12
    ]

    eps = 1e-5
    keys = jax.random.split(key, len(conv_defs) + 2)
    convs = []
    for idx, (cin, cout, (kh, kw), stride, pad) in enumerate(conv_defs):
        fan_in = cin * kh * kw
        std = (2.0 / fan_in) ** 0.5  # kaiming_normal_, relu gain
        w = std * jax.random.normal(keys[idx], (cout, cin, kh, kw), jnp.float32)
        gamma = jnp.ones((cout,), jnp.float32)
        beta = jnp.zeros((cout,), jnp.float32)
        mean = jnp.zeros((cout,), jnp.float32)
        var = jnp.ones((cout,), jnp.float32)
        # Fold BN (eval stats) once at build time.
        scale = gamma / jnp.sqrt(var + eps)
        bias = beta - mean * scale
        if idx < 2:
            # SFEB convs stay f32 (the raw waveform is f32 anyway); taps along kw.
            w_taps = jnp.transpose(w[:, :, 0, :], (2, 1, 0))            # (kw, Cin, Cout)
        else:
            # TFEB convs: tap-major (kh*kw, Cin, Cout), bf16 for the MXU.
            w_taps = jnp.transpose(w, (2, 3, 1, 0)).reshape(
                kh * kw, cin, cout).astype(jnp.bfloat16)
        convs.append(dict(
            w=w_taps,
            scale=scale.reshape(1, cout).astype(jnp.float32),
            bias=bias.reshape(1, cout).astype(jnp.float32),
            kh=kh, kw=kw, stride=stride, pad=pad, cin=cin, cout=cout))

    fcn_in = ch[-1]
    fcn_w = (1.0 / fcn_in) ** 0.5 * jax.random.normal(
        keys[-2], (n_class, fcn_in), jnp.float32)  # kaiming_normal_, sigmoid gain=1
    bound = 1.0 / (fcn_in ** 0.5)
    fcn_b = jax.random.uniform(keys[-1], (n_class,), jnp.float32, -bound, bound)
    # Pre-transpose + lane-pad the FC weight/bias once at build time.
    n_pad = _round_up(n_class, 128)
    fcn_w_pad = jnp.pad(fcn_w.T, ((0, 0), (0, n_pad - n_class)))
    fcn_b_pad = jnp.pad(fcn_b.reshape(1, n_class), ((0, 0), (0, n_pad - n_class)))

    tfeb_width = int(input_length / sr * 1000 / 10)
    pool_h = get_tfeb_pool_size_component(ch[1])
    pool_w = get_tfeb_pool_size_component(tfeb_width)
    tfeb_pool_sizes = list(zip(pool_h, pool_w))

    return dict(convs=convs,
                fcn_w=fcn_w_pad, fcn_b=fcn_b_pad, n_class=n_class,
                sfeb_pool_size=sfeb_pool_size,
                tfeb_pool_sizes=tfeb_pool_sizes)


# --------------------------------------------------------------------------
# Forward pass
# --------------------------------------------------------------------------
def acdnet_forward(params, x):
    convs = params['convs']
    B = x.shape[0]

    # NCHW (B, 1, 1, L) -> (B, L, 1): width-major, channel-minor (free reshape).
    x = x.reshape(B, x.shape[-1], 1)

    # ---- SFEB ---- (f32; tiny layers, no patch matrices in HBM)
    x = sfeb_conv_bn_relu(x, convs[0])
    x = sfeb_conv_bn_relu(x, convs[1])
    x = maxpool_w(x, params['sfeb_pool_size'])

    # PyTorch permute(0, 2, 1, 3) on NCHW (B, C, 1, W) -> (B, 1, C, W).
    # NHWC equivalent of the TFEB input: (B, H=C, W, Cin=1); cast to bf16 here.
    x = jnp.transpose(x, (0, 2, 1))[..., None].astype(jnp.bfloat16)

    # ---- TFEB ----
    pool_sizes = params['tfeb_pool_sizes']
    stage_convs = [[2], [3, 4], [5, 6], [7, 8], [9, 10]]  # conv3 .. conv11 (0-based)
    for p_index, conv_ids in enumerate(stage_convs):
        for cid in conv_ids:
            x = conv_bn_relu(x, convs[cid])
        h, w = pool_sizes[p_index]
        if h > 1 or w > 1:
            x = maxpool2d_nhwc(x, h, w)

    # Dropout(0.2): eval mode -> identity.
    # TODO(synk): training-mode dropout / batch-stat BatchNorm not implemented.
    x = conv_bn_relu(x, convs[11])
    h, w = pool_sizes[-1]
    if h > 1 or w > 1:
        x = avgpool2d_nhwc(x, h, w)

    # Flatten in NCHW order (matches torch.nn.Flatten), then fused Linear+Softmax.
    x = jnp.transpose(x, (0, 3, 1, 2)).reshape(B, -1).astype(jnp.float32)
    return linear_softmax(x, params['fcn_w'], params['fcn_b'], params['n_class'])


if __name__ == "__main__":
    # Small but self-consistent configuration:
    #   sr=2000 -> n_frames=20, sfeb_pool_size=5; input_length=336 -> tfeb_width=16
    input_length = 336
    sr = 2000
    n_class = 10
    ch_conf = [4, 16, 8, 8, 8, 16, 16, 16, 16, 32, 32, n_class]

    key = jax.random.PRNGKey(0)
    pkey, xkey = jax.random.split(key)
    params = build_acdnet_params(pkey, input_length, n_class, sr, ch_conf)

    x = jax.random.normal(xkey, (2, 1, 1, input_length), jnp.float32)  # NCHW

    fwd = jax.jit(functools.partial(acdnet_forward, params))
    y = jax.block_until_ready(fwd(x))

    assert y.shape == (2, n_class), y.shape
    assert bool(jnp.all(jnp.isfinite(y)))
    assert bool(jnp.allclose(jnp.sum(y, axis=1), 1.0, atol=1e-3))
    print("KERNEL_OK")
</pallas_src>

<mosaic_0001>
module attributes {stable_mosaic.version = 11 : i64} {
  func.func @_sfeb_conv_kernel(%arg0: i32, %arg1: memref<1x168x2xf32, #tpu.memory_space<vmem>>, %arg2: memref<9x1x4xf32, #tpu.memory_space<vmem>>, %arg3: memref<1x4xf32, #tpu.memory_space<vmem>>, %arg4: memref<1x4xf32, #tpu.memory_space<vmem>>, %arg5: memref<1x164x4xf32, #tpu.memory_space<vmem>>) attributes {dimension_semantics = [#tpu.dimension_semantics<parallel>], iteration_bounds = array<i64: 2>, scalar_prefetch = 0 : i64, scratch_operands = 0 : i64, tpu.core_type = #tpu.core_type<tc>, window_params = [{transform_indices = @transform_0, window_bounds = array<i64: 1, 168, 2>}, {pipeline_mode = #tpu.pipeline_mode<synchronous>, transform_indices = @transform_1, window_bounds = array<i64: 9, 1, 4>}, {pipeline_mode = #tpu.pipeline_mode<synchronous>, transform_indices = @transform_2, window_bounds = array<i64: 1, 4>}, {pipeline_mode = #tpu.pipeline_mode<synchronous>, transform_indices = @transform_3, window_bounds = array<i64: 1, 4>}, {transform_indices = @transform_4, window_bounds = array<i64: 1, 164, 4>}]} {
    %c0 = arith.constant 0 : index
    %c0_0 = arith.constant 0 : index
    %c0_1 = arith.constant 0 : index
    %0 = vector.load %arg1[%c0, %c0_0, %c0_1] : memref<1x168x2xf32, #tpu.memory_space<vmem>>, vector<1x164x1xf32>
    %1 = vector.shape_cast %0 : vector<1x164x1xf32> to vector<164x1xf32>
    %c0_2 = arith.constant 0 : index
    %c0_3 = arith.constant 0 : index
    %c0_4 = arith.constant 0 : index
    %2 = vector.load %arg2[%c0_2, %c0_3, %c0_4] : memref<9x1x4xf32, #tpu.memory_space<vmem>>, vector<1x1x4xf32>
    %3 = vector.shape_cast %2 : vector<1x1x4xf32> to vector<1x4xf32>
    %4 = vector.broadcast %1 : vector<164x1xf32> to vector<164x4xf32>
    %5 = vector.broadcast %3 : vector<1x4xf32> to vector<164x4xf32>
    %6 = arith.mulf %4, %5 : vector<164x4xf32>
    %c0_5 = arith.constant 0 : index
    %c0_6 = arith.constant 0 : index
    %c1 = arith.constant 1 : index
    %7 = vector.load %arg1[%c0_5, %c0_6, %c1] : memref<1x168x2xf32, #tpu.memory_space<vmem>>, vector<1x164x1xf32>
    %8 = vector.shape_cast %7 : vector<1x164x1xf32> to vector<164x1xf32>
    %c1_7 = arith.constant 1 : index
    %c0_8 = arith.constant 0 : index
    %c0_9 = arith.constant 0 : index
    %9 = vector.load %arg2[%c1_7, %c0_8, %c0_9] : memref<9x1x4xf32, #tpu.memory_space<vmem>>, vector<1x1x4xf32>
    %10 = vector.shape_cast %9 : vector<1x1x4xf32> to vector<1x4xf32>
    %11 = vector.broadcast %8 : vector<164x1xf32> to vector<164x4xf32>
    %12 = vector.broadcast %10 : vector<1x4xf32> to vector<164x4xf32>
    %13 = arith.mulf %11, %12 : vector<164x4xf32>
    %14 = arith.addf %6, %13 : vector<164x4xf32>
    %c0_10 = arith.constant 0 : index
    %c1_11 = arith.constant 1 : index
    %c0_12 = arith.constant 0 : index
    %15 = vector.load %arg1[%c0_10, %c1_11, %c0_12] : memref<1x168x2xf32, #tpu.memory_space<vmem>>, vector<1x164x1xf32>
    %16 = vector.shape_cast %15 : vector<1x164x1xf32> to vector<164x1xf32>
    %c2 = arith.constant 2 : index
    %c0_13 = arith.constant 0 : index
    %c0_14 = arith.constant 0 : index
    %17 = vector.load %arg2[%c2, %c0_13, %c0_14] : memref<9x1x4xf32, #tpu.memory_space<vmem>>, vector<1x1x4xf32>
    %18 = vector.shape_cast %17 : vector<1x1x4xf32> to vector<1x4xf32>
    %19 = vector.broadcast %16 : vector<164x1xf32> to vector<164x4xf32>
    %20 = vector.broadcast %18 : vector<1x4xf32> to vector<164x4xf32>
    %21 = arith.mulf %19, %20 : vector<164x4xf32>
    %22 = arith.addf %14, %21 : vector<164x4xf32>
    %c0_15 = arith.constant 0 : index
    %c1_16 = arith.constant 1 : index
    %c1_17 = arith.constant 1 : index
    %23 = vector.load %arg1[%c0_15, %c1_16, %c1_17] : memref<1x168x2xf32, #tpu.memory_space<vmem>>, vector<1x164x1xf32>
    %24 = vector.shape_cast %23 : vector<1x164x1xf32> to vector<164x1xf32>
    %c3 = arith.constant 3 : index
    %c0_18 = arith.constant 0 : index
    %c0_19 = arith.constant 0 : index
    %25 = vector.load %arg2[%c3, %c0_18, %c0_19] : memref<9x1x4xf32, #tpu.memory_space<vmem>>, vector<1x1x4xf32>
    %26 = vector.shape_cast %25 : vector<1x1x4xf32> to vector<1x4xf32>
    %27 = vector.broadcast %24 : vector<164x1xf32> to vector<164x4xf32>
    %28 = vector.broadcast %26 : vector<1x4xf32> to vector<164x4xf32>
    %29 = arith.mulf %27, %28 : vector<164x4xf32>
    %30 = arith.addf %22, %29 : vector<164x4xf32>
    %c0_20 = arith.constant 0 : index
    %c2_21 = arith.constant 2 : index
    %c0_22 = arith.constant 0 : index
    %31 = vector.load %arg1[%c0_20, %c2_21, %c0_22] : memref<1x168x2xf32, #tpu.memory_space<vmem>>, vector<1x164x1xf32>
    %32 = vector.shape_cast %31 : vector<1x164x1xf32> to vector<164x1xf32>
    %c4 = arith.constant 4 : index
    %c0_23 = arith.constant 0 : index
    %c0_24 = arith.constant 0 : index
    %33 = vector.load %arg2[%c4, %c0_23, %c0_24] : memref<9x1x4xf32, #tpu.memory_space<vmem>>, vector<1x1x4xf32>
    %34 = vector.shape_cast %33 : vector<1x1x4xf32> to vector<1x4xf32>
    %35 = vector.broadcast %32 : vector<164x1xf32> to vector<164x4xf32>
    %36 = vector.broadcast %34 : vector<1x4xf32> to vector<164x4xf32>
    %37 = arith.mulf %35, %36 : vector<164x4xf32>
    %38 = arith.addf %30, %37 : vector<164x4xf32>
    %c0_25 = arith.constant 0 : index
    %c2_26 = arith.constant 2 : index
    %c1_27 = arith.constant 1 : index
    %39 = vector.load %arg1[%c0_25, %c2_26, %c1_27] : memref<1x168x2xf32, #tpu.memory_space<vmem>>, vector<1x164x1xf32>
    %40 = vector.shape_cast %39 : vector<1x164x1xf32> to vector<164x1xf32>
    %c5 = arith.constant 5 : index
    %c0_28 = arith.constant 0 : index
    %c0_29 = arith.constant 0 : index
    %41 = vector.load %arg2[%c5, %c0_28, %c0_29] : memref<9x1x4xf32, #tpu.memory_space<vmem>>, vector<1x1x4xf32>
    %42 = vector.shape_cast %41 : vector<1x1x4xf32> to vector<1x4xf32>
    %43 = vector.broadcast %40 : vector<164x1xf32> to vector<164x4xf32>
    %44 = vector.broadcast %42 : vector<1x4xf32> to vector<164x4xf32>
    %45 = arith.mulf %43, %44 : vector<164x4xf32>
    %46 = arith.addf %38, %45 : vector<164x4xf32>
    %c0_30 = arith.constant 0 : index
    %c3_31 = arith.constant 3 : index
    %c0_32 = arith.constant 0 : index
    %47 = vector.load %arg1[%c0_30, %c3_31, %c0_32] : memref<1x168x2xf32, #tpu.memory_space<vmem>>, vector<1x164x1xf32>
    %48 = vector.shape_cast %47 : vector<1x164x1xf32> to vector<164x1xf32>
    %c6 = arith.constant 6 : index
    %c0_33 = arith.constant 0 : index
    %c0_34 = arith.constant 0 : index
    %49 = vector.load %arg2[%c6, %c0_33, %c0_34] : memref<9x1x4xf32, #tpu.memory_space<vmem>>, vector<1x1x4xf32>
    %50 = vector.shape_cast %49 : vector<1x1x4xf32> to vector<1x4xf32>
    %51 = vector.broadcast %48 : vector<164x1xf32> to vector<164x4xf32>
    %52 = vector.broadcast %50 : vector<1x4xf32> to vector<164x4xf32>
    %53 = arith.mulf %51, %52 : vector<164x4xf32>
    %54 = arith.addf %46, %53 : vector<164x4xf32>
    %c0_35 = arith.constant 0 : index
    %c3_36 = arith.constant 3 : index
    %c1_37 = arith.constant 1 : index
    %55 = vector.load %arg1[%c0_35, %c3_36, %c1_37] : memref<1x168x2xf32, #tpu.memory_space<vmem>>, vector<1x164x1xf32>
    %56 = vector.shape_cast %55 : vector<1x164x1xf32> to vector<164x1xf32>
    %c7 = arith.constant 7 : index
    %c0_38 = arith.constant 0 : index
    %c0_39 = arith.constant 0 : index
    %57 = vector.load %arg2[%c7, %c0_38, %c0_39] : memref<9x1x4xf32, #tpu.memory_space<vmem>>, vector<1x1x4xf32>
    %58 = vector.shape_cast %57 : vector<1x1x4xf32> to vector<1x4xf32>
    %59 = vector.broadcast %56 : vector<164x1xf32> to vector<164x4xf32>
    %60 = vector.broadcast %58 : vector<1x4xf32> to vector<164x4xf32>
    %61 = arith.mulf %59, %60 : vector<164x4xf32>
    %62 = arith.addf %54, %61 : vector<164x4xf32>
    %c0_40 = arith.constant 0 : index
    %c4_41 = arith.constant 4 : index
    %c0_42 = arith.constant 0 : index
    %63 = vector.load %arg1[%c0_40, %c4_41, %c0_42] : memref<1x168x2xf32, #tpu.memory_space<vmem>>, vector<1x164x1xf32>
    %64 = vector.shape_cast %63 : vector<1x164x1xf32> to vector<164x1xf32>
    %c8 = arith.constant 8 : index
    %c0_43 = arith.constant 0 : index
    %c0_44 = arith.constant 0 : index
    %65 = vector.load %arg2[%c8, %c0_43, %c0_44] : memref<9x1x4xf32, #tpu.memory_space<vmem>>, vector<1x1x4xf32>
    %66 = vector.shape_cast %65 : vector<1x1x4xf32> to vector<1x4xf32>
    %67 = vector.broadcast %64 : vector<164x1xf32> to vector<164x4xf32>
    %68 = vector.broadcast %66 : vector<1x4xf32> to vector<164x4xf32>
    %69 = arith.mulf %67, %68 : vector<164x4xf32>
    %70 = arith.addf %62, %69 : vector<164x4xf32>
    %c0_45 = arith.constant 0 : index
    %c0_46 = arith.constant 0 : index
    %71 = vector.load %arg3[%c0_45, %c0_46] : memref<1x4xf32, #tpu.memory_space<vmem>>, vector<1x4xf32>
    %72 = vector.broadcast %71 : vector<1x4xf32> to vector<164x4xf32>
    %73 = arith.mulf %70, %72 : vector<164x4xf32>
    %c0_47 = arith.constant 0 : index
    %c0_48 = arith.constant 0 : index
    %74 = vector.load %arg4[%c0_47, %c0_48] : memref<1x4xf32, #tpu.memory_space<vmem>>, vector<1x4xf32>
    %75 = vector.broadcast %74 : vector<1x4xf32> to vector<164x4xf32>
    %76 = arith.addf %73, %75 : vector<164x4xf32>
    %cst = arith.constant 0.000000e+00 : f32
    %77 = vector.broadcast %cst : f32 to vector<164x4xf32>
    %78 = arith.maximumf %76, %77 : vector<164x4xf32>
    %c0_49 = arith.constant 0 : index
    %c0_50 = arith.constant 0 : index
    %c0_51 = arith.constant 0 : index
    %79 = vector.load %arg5[%c0_49, %c0_50, %c0_51] : memref<1x164x4xf32, #tpu.memory_space<vmem>>, vector<1x164x4xf32>
    %80 = vector.shape_cast %79 : vector<1x164x4xf32> to vector<164x4xf32>
    %81 = vector.shape_cast %78 : vector<164x4xf32> to vector<1x164x4xf32>
    tpu.vector_store %arg5[%c0_49, %c0_50, %c0_51], %81 {strides = array<i32>} : memref<1x164x4xf32, #tpu.memory_space<vmem>>, vector<1x164x4xf32>,
    return
  }
  func.func @transform_0(%arg0: i32) -> (i32, i32, i32) {
    %c0_i32 = arith.constant 0 : i32
    %c0_i32_0 = arith.constant 0 : i32
    %c0_i32_1 = arith.constant 0 : i32
    return %arg0, %c0_i32, %c0_i32_0 : i32, i32, i32
  }
  func.func @transform_1(%arg0: i32) -> (i32, i32, i32) {
    %c0_i32 = arith.constant 0 : i32
    %c0_i32_0 = arith.constant 0 : i32
    %c0_i32_1 = arith.constant 0 : i32
    %c0_i32_2 = arith.constant 0 : i32
    return %c0_i32, %c0_i32_0, %c0_i32_1 : i32, i32, i32
  }
  func.func @transform_2(%arg0: i32) -> (i32, i32) {
    %c0_i32 = arith.constant 0 : i32
    %c0_i32_0 = arith.constant 0 : i32
    %c0_i32_1 = arith.constant 0 : i32
    return %c0_i32, %c0_i32_0 : i32, i32
  }
  func.func @transform_3(%arg0: i32) -> (i32, i32) {
    %c0_i32 = arith.constant 0 : i32
    %c0_i32_0 = arith.constant 0 : i32
    %c0_i32_1 = arith.constant 0 : i32
    return %c0_i32, %c0_i32_0 : i32, i32
  }
  func.func @transform_4(%arg0: i32) -> (i32, i32, i32) {
    %c0_i32 = arith.constant 0 : i32
    %c0_i32_0 = arith.constant 0 : i32
    %c0_i32_1 = arith.constant 0 : i32
    return %arg0, %c0_i32, %c0_i32_0 : i32, i32, i32
  }
}

module attributes {stable_mosaic.version = 11 : i64} {
  func.func @_sfeb_conv_kernel(%arg0: i32, %arg1: memref<1x82x8xf32, #tpu.memory_space<vmem>>, %arg2: memref<5x4x16xf32, #tpu.memory_space<vmem>>, %arg3: memref<1x16xf32, #tpu.memory_space<vmem>>, %arg4: memref<1x16xf32, #tpu.memory_space<vmem>>, %arg5: memref<1x80x16xf32, #tpu.memory_space<vmem>>) attributes {dimension_semantics = [#tpu.dimension_semantics<parallel>], iteration_bounds = array<i64: 2>, scalar_prefetch = 0 : i64, scratch_operands = 0 : i64, tpu.core_type = #tpu.core_type<tc>, window_params = [{transform_indices = @transform_0, window_bounds = array<i64: 1, 82, 8>}, {pipeline_mode = #tpu.pipeline_mode<synchronous>, transform_indices = @transform_1, window_bounds = array<i64: 5, 4, 16>}, {pipeline_mode = #tpu.pipeline_mode<synchronous>, transform_indices = @transform_2, window_bounds = array<i64: 1, 16>}, {pipeline_mode = #tpu.pipeline_mode<synchronous>, transform_indices = @transform_3, window_bounds = array<i64: 1, 16>}, {transform_indices = @transform_4, window_bounds = array<i64: 1, 80, 16>}]} {
    %c0 = arith.constant 0 : index
    %c0_0 = arith.constant 0 : index
    %c0_1 = arith.constant 0 : index
    %0 = vector.load %arg1[%c0, %c0_0, %c0_1] : memref<1x82x8xf32, #tpu.memory_space<vmem>>, vector<1x80x4xf32>
    %1 = vector.shape_cast %0 : vector<1x80x4xf32> to vector<80x4xf32>
    %c0_2 = arith.constant 0 : index
    %c0_3 = arith.constant 0 : index
    %c0_4 = arith.constant 0 : index
    %2 = vector.load %arg2[%c0_2, %c0_3, %c0_4] : memref<5x4x16xf32, #tpu.memory_space<vmem>>, vector<1x4x16xf32>
    %3 = vector.shape_cast %2 : vector<1x4x16xf32> to vector<4x16xf32>
    %cst = arith.constant dense<0.000000e+00> : vector<80x16xf32>
    %4 = tpu.matmul %1, %3, %cst {dimension_numbers = #tpu.dot_dimension_numbers<[1], [0], [0], [1], [0, 0, 1, 1], [], []>} : vector<80x4xf32>, vector<4x16xf32>, vector<80x16xf32> -> vector<80x16xf32>
    %c0_5 = arith.constant 0 : index
    %c0_6 = arith.constant 0 : index
    %c4 = arith.constant 4 : index
    %5 = vector.load %arg1[%c0_5, %c0_6, %c4] : memref<1x82x8xf32, #tpu.memory_space<vmem>>, vector<1x80x4xf32>
    %6 = vector.shape_cast %5 : vector<1x80x4xf32> to vector<80x4xf32>
    %c1 = arith.constant 1 : index
    %c0_7 = arith.constant 0 : index
    %c0_8 = arith.constant 0 : index
    %7 = vector.load %arg2[%c1, %c0_7, %c0_8] : memref<5x4x16xf32, #tpu.memory_space<vmem>>, vector<1x4x16xf32>
    %8 = vector.shape_cast %7 : vector<1x4x16xf32> to vector<4x16xf32>
    %cst_9 = arith.constant dense<0.000000e+00> : vector<80x16xf32>
    %9 = tpu.matmul %6, %8, %cst_9 {dimension_numbers = #tpu.dot_dimension_numbers<[1], [0], [0], [1], [0, 0, 1, 1], [], []>} : vector<80x4xf32>, vector<4x16xf32>, vector<80x16xf32> -> vector<80x16xf32>
    %10 = arith.addf %4, %9 : vector<80x16xf32>
    %c0_10 = arith.constant 0 : index
    %c1_11 = arith.constant 1 : index
    %c0_12 = arith.constant 0 : index
    %11 = vector.load %arg1[%c0_10, %c1_11, %c0_12] : memref<1x82x8xf32, #tpu.memory_space<vmem>>, vector<1x80x4xf32>
    %12 = vector.shape_cast %11 : vector<1x80x4xf32> to vector<80x4xf32>
    %c2 = arith.constant 2 : index
    %c0_13 = arith.constant 0 : index
    %c0_14 = arith.constant 0 : index
    %13 = vector.load %arg2[%c2, %c0_13, %c0_14] : memref<5x4x16xf32, #tpu.memory_space<vmem>>, vector<1x4x16xf32>
    %14 = vector.shape_cast %13 : vector<1x4x16xf32> to vector<4x16xf32>
    %cst_15 = arith.constant dense<0.000000e+00> : vector<80x16xf32>
    %15 = tpu.matmul %12, %14, %cst_15 {dimension_numbers = #tpu.dot_dimension_numbers<[1], [0], [0], [1], [0, 0, 1, 1], [], []>} : vector<80x4xf32>, vector<4x16xf32>, vector<80x16xf32> -> vector<80x16xf32>
    %16 = arith.addf %10, %15 : vector<80x16xf32>
    %c0_16 = arith.constant 0 : index
    %c1_17 = arith.constant 1 : index
    %c4_18 = arith.constant 4 : index
    %17 = vector.load %arg1[%c0_16, %c1_17, %c4_18] : memref<1x82x8xf32, #tpu.memory_space<vmem>>, vector<1x80x4xf32>
    %18 = vector.shape_cast %17 : vector<1x80x4xf32> to vector<80x4xf32>
    %c3 = arith.constant 3 : index
    %c0_19 = arith.constant 0 : index
    %c0_20 = arith.constant 0 : index
    %19 = vector.load %arg2[%c3, %c0_19, %c0_20] : memref<5x4x16xf32, #tpu.memory_space<vmem>>, vector<1x4x16xf32>
    %20 = vector.shape_cast %19 : vector<1x4x16xf32> to vector<4x16xf32>
    %cst_21 = arith.constant dense<0.000000e+00> : vector<80x16xf32>
    %21 = tpu.matmul %18, %20, %cst_21 {dimension_numbers = #tpu.dot_dimension_numbers<[1], [0], [0], [1], [0, 0, 1, 1], [], []>} : vector<80x4xf32>, vector<4x16xf32>, vector<80x16xf32> -> vector<80x16xf32>
    %22 = arith.addf %16, %21 : vector<80x16xf32>
    %c0_22 = arith.constant 0 : index
    %c2_23 = arith.constant 2 : index
    %c0_24 = arith.constant 0 : index
    %23 = vector.load %arg1[%c0_22, %c2_23, %c0_24] : memref<1x82x8xf32, #tpu.memory_space<vmem>>, vector<1x80x4xf32>
    %24 = vector.shape_cast %23 : vector<1x80x4xf32> to vector<80x4xf32>
    %c4_25 = arith.constant 4 : index
    %c0_26 = arith.constant 0 : index
    %c0_27 = arith.constant 0 : index
    %25 = vector.load %arg2[%c4_25, %c0_26, %c0_27] : memref<5x4x16xf32, #tpu.memory_space<vmem>>, vector<1x4x16xf32>
    %26 = vector.shape_cast %25 : vector<1x4x16xf32> to vector<4x16xf32>
    %cst_28 = arith.constant dense<0.000000e+00> : vector<80x16xf32>
    %27 = tpu.matmul %24, %26, %cst_28 {dimension_numbers = #tpu.dot_dimension_numbers<[1], [0], [0], [1], [0, 0, 1, 1], [], []>} : vector<80x4xf32>, vector<4x16xf32>, vector<80x16xf32> -> vector<80x16xf32>
    %28 = arith.addf %22, %27 : vector<80x16xf32>
    %c0_29 = arith.constant 0 : index
    %c0_30 = arith.constant 0 : index
    %29 = vector.load %arg3[%c0_29, %c0_30] : memref<1x16xf32, #tpu.memory_space<vmem>>, vector<1x16xf32>
    %30 = vector.broadcast %29 : vector<1x16xf32> to vector<80x16xf32>
    %31 = arith.mulf %28, %30 : vector<80x16xf32>
    %c0_31 = arith.constant 0 : index
    %c0_32 = arith.constant 0 : index
    %32 = vector.load %arg4[%c0_31, %c0_32] : memref<1x16xf32, #tpu.memory_space<vmem>>, vector<1x16xf32>
    %33 = vector.broadcast %32 : vector<1x16xf32> to vector<80x16xf32>
    %34 = arith.addf %31, %33 : vector<80x16xf32>
    %cst_33 = arith.constant 0.000000e+00 : f32
    %35 = vector.broadcast %cst_33 : f32 to vector<80x16xf32>
    %36 = arith.maximumf %34, %35 : vector<80x16xf32>
    %c0_34 = arith.constant 0 : index
    %c0_35 = arith.constant 0 : index
    %c0_36 = arith.constant 0 : index
    %37 = vector.load %arg5[%c0_34, %c0_35, %c0_36] : memref<1x80x16xf32, #tpu.memory_space<vmem>>, vector<1x80x16xf32>
    %38 = vector.shape_cast %37 : vector<1x80x16xf32> to vector<80x16xf32>
    %39 = vector.shape_cast %36 : vector<80x16xf32> to vector<1x80x16xf32>
    tpu.vector_store %arg5[%c0_34, %c0_35, %c0_36], %39 {strides = array<i32>} : memref<1x80x16xf32, #tpu.memory_space<vmem>>, vector<1x80x16xf32>,
    return
  }
  func.func @transform_0(%arg0: i32) -> (i32, i32, i32) {
    %c0_i32 = arith.constant 0 : i32
    %c0_i32_0 = arith.constant 0 : i32
    %c0_i32_1 = arith.constant 0 : i32
    return %arg0, %c0_i32, %c0_i32_0 : i32, i32, i32
  }
  func.func @transform_1(%arg0: i32) -> (i32, i32, i32) {
    %c0_i32 = arith.constant 0 : i32
    %c0_i32_0 = arith.constant 0 : i32
    %c0_i32_1 = arith.constant 0 : i32
    %c0_i32_2 = arith.constant 0 : i32
    return %c0_i32, %c0_i32_0, %c0_i32_1 : i32, i32, i32
  }
  func.func @transform_2(%arg0: i32) -> (i32, i32) {
    %c0_i32 = arith.constant 0 : i32
    %c0_i32_0 = arith.constant 0 : i32
    %c0_i32_1 = arith.constant 0 : i32
    return %c0_i32, %c0_i32_0 : i32, i32
  }
  func.func @transform_3(%arg0: i32) -> (i32, i32) {
    %c0_i32 = arith.constant 0 : i32
    %c0_i32_0 = arith.constant 0 : i32
    %c0_i32_1 = arith.constant 0 : i32
    return %c0_i32, %c0_i32_0 : i32, i32
  }
  func.func @transform_4(%arg0: i32) -> (i32, i32, i32) {
    %c0_i32 = arith.constant 0 : i32
    %c0_i32_0 = arith.constant 0 : i32
    %c0_i32_1 = arith.constant 0 : i32
    return %arg0, %c0_i32, %c0_i32_0 : i32, i32, i32
  }
}

module attributes {stable_mosaic.version = 11 : i64} {
  func.func @_conv_taps_kernel(%arg0: i32, %arg1: i32, %arg2: memref<1x342x1xbf16, #tpu.memory_space<vmem>>, %arg3: memref<9x1x8xbf16, #tpu.memory_space<vmem>>, %arg4: memref<1x8xf32, #tpu.memory_space<vmem>>, %arg5: memref<1x8xf32, #tpu.memory_space<vmem>>, %arg6: memref<1x288x8xbf16, #tpu.memory_space<vmem>>) attributes {dimension_semantics = [#tpu.dimension_semantics<parallel>, #tpu.dimension_semantics<parallel>], iteration_bounds = array<i64: 2, 1>, scalar_prefetch = 0 : i64, scratch_operands = 0 : i64, tpu.core_type = #tpu.core_type<tc>, window_params = [{transform_indices = @transform_0, window_bounds = array<i64: 1, 342, 1>}, {transform_indices = @transform_1, window_bounds = array<i64: 9, 1, 8>}, {transform_indices = @transform_2, window_bounds = array<i64: 1, 8>}, {transform_indices = @transform_3, window_bounds = array<i64: 1, 8>}, {transform_indices = @transform_4, window_bounds = array<i64: 1, 288, 8>}]} {
    %c0 = arith.constant 0 : index
    %c0_0 = arith.constant 0 : index
    %c0_1 = arith.constant 0 : index
    %0 = vector.load %arg2[%c0, %c0_0, %c0_1] : memref<1x342x1xbf16, #tpu.memory_space<vmem>>, vector<1x288x1xbf16>
    %1 = vector.shape_cast %0 : vector<1x288x1xbf16> to vector<288x1xbf16>
    %c0_2 = arith.constant 0 : index
    %c0_3 = arith.constant 0 : index
    %c0_4 = arith.constant 0 : index
    %2 = vector.load %arg3[%c0_2, %c0_3, %c0_4] : memref<9x1x8xbf16, #tpu.memory_space<vmem>>, vector<1x1x8xbf16>
    %3 = vector.shape_cast %2 : vector<1x1x8xbf16> to vector<1x8xbf16>
    %4 = arith.extf %1 : vector<288x1xbf16> to vector<288x1xf32>
    %5 = arith.extf %3 : vector<1x8xbf16> to vector<1x8xf32>
    %6 = vector.broadcast %4 : vector<288x1xf32> to vector<288x8xf32>
    %7 = vector.broadcast %5 : vector<1x8xf32> to vector<288x8xf32>
    %8 = arith.mulf %6, %7 : vector<288x8xf32>
    %c0_5 = arith.constant 0 : index
    %c1 = arith.constant 1 : index
    %c0_6 = arith.constant 0 : index
    %9 = vector.load %arg2[%c0_5, %c1, %c0_6] : memref<1x342x1xbf16, #tpu.memory_space<vmem>>, vector<1x288x1xbf16>
    %10 = vector.shape_cast %9 : vector<1x288x1xbf16> to vector<288x1xbf16>
    %c1_7 = arith.constant 1 : index
    %c0_8 = arith.constant 0 : index
    %c0_9 = arith.constant 0 : index
    %11 = vector.load %arg3[%c1_7, %c0_8, %c0_9] : memref<9x1x8xbf16, #tpu.memory_space<vmem>>, vector<1x1x8xbf16>
    %12 = vector.shape_cast %11 : vector<1x1x8xbf16> to vector<1x8xbf16>
    %13 = arith.extf %10 : vector<288x1xbf16> to vector<288x1xf32>
    %14 = arith.extf %12 : vector<1x8xbf16> to vector<1x8xf32>
    %15 = vector.broadcast %13 : vector<288x1xf32> to vector<288x8xf32>
    %16 = vector.broadcast %14 : vector<1x8xf32> to vector<288x8xf32>
    %17 = arith.mulf %15, %16 : vector<288x8xf32>
    %18 = arith.addf %8, %17 : vector<288x8xf32>
    %c0_10 = arith.constant 0 : index
    %c2 = arith.constant 2 : index
    %c0_11 = arith.constant 0 : index
    %19 = vector.load %arg2[%c0_10, %c2, %c0_11] : memref<1x342x1xbf16, #tpu.memory_space<vmem>>, vector<1x288x1xbf16>
    %20 = vector.shape_cast %19 : vector<1x288x1xbf16> to vector<288x1xbf16>
    %c2_12 = arith.constant 2 : index
    %c0_13 = arith.constant 0 : index
    %c0_14 = arith.constant 0 : index
    %21 = vector.load %arg3[%c2_12, %c0_13, %c0_14] : memref<9x1x8xbf16, #tpu.memory_space<vmem>>, vector<1x1x8xbf16>
    %22 = vector.shape_cast %21 : vector<1x1x8xbf16> to vector<1x8xbf16>
    %23 = arith.extf %20 : vector<288x1xbf16> to vector<288x1xf32>
    %24 = arith.extf %22 : vector<1x8xbf16> to vector<1x8xf32>
    %25 = vector.broadcast %23 : vector<288x1xf32> to vector<288x8xf32>
    %26 = vector.broadcast %24 : vector<1x8xf32> to vector<288x8xf32>
    %27 = arith.mulf %25, %26 : vector<288x8xf32>
    %28 = arith.addf %18, %27 : vector<288x8xf32>
    %c0_15 = arith.constant 0 : index
    %c18 = arith.constant 18 : index
    %c0_16 = arith.constant 0 : index
    %29 = vector.load %arg2[%c0_15, %c18, %c0_16] : memref<1x342x1xbf16, #tpu.memory_space<vmem>>, vector<1x288x1xbf16>
    %30 = vector.shape_cast %29 : vector<1x288x1xbf16> to vector<288x1xbf16>
    %c3 = arith.constant 3 : index
    %c0_17 = arith.constant 0 : index
    %c0_18 = arith.constant 0 : index
    %31 = vector.load %arg3[%c3, %c0_17, %c0_18] : memref<9x1x8xbf16, #tpu.memory_space<vmem>>, vector<1x1x8xbf16>
    %32 = vector.shape_cast %31 : vector<1x1x8xbf16> to vector<1x8xbf16>
    %33 = arith.extf %30 : vector<288x1xbf16> to vector<288x1xf32>
    %34 = arith.extf %32 : vector<1x8xbf16> to vector<1x8xf32>
    %35 = vector.broadcast %33 : vector<288x1xf32> to vector<288x8xf32>
    %36 = vector.broadcast %34 : vector<1x8xf32> to vector<288x8xf32>
    %37 = arith.mulf %35, %36 : vector<288x8xf32>
    %38 = arith.addf %28, %37 : vector<288x8xf32>
    %c0_19 = arith.constant 0 : index
    %c19 = arith.constant 19 : index
    %c0_20 = arith.constant 0 : index
    %39 = vector.load %arg2[%c0_19, %c19, %c0_20] : memref<1x342x1xbf16, #tpu.memory_space<vmem>>, vector<1x288x1xbf16>
    %40 = vector.shape_cast %39 : vector<1x288x1xbf16> to vector<288x1xbf16>
    %c4 = arith.constant 4 : index
    %c0_21 = arith.constant 0 : index
    %c0_22 = arith.constant 0 : index
    %41 = vector.load %arg3[%c4, %c0_21, %c0_22] : memref<9x1x8xbf16, #tpu.memory_space<vmem>>, vector<1x1x8xbf16>
    %42 = vector.shape_cast %41 : vector<1x1x8xbf16> to vector<1x8xbf16>
    %43 = arith.extf %40 : vector<288x1xbf16> to vector<288x1xf32>
    %44 = arith.extf %42 : vector<1x8xbf16> to vector<1x8xf32>
    %45 = vector.broadcast %43 : vector<288x1xf32> to vector<288x8xf32>
    %46 = vector.broadcast %44 : vector<1x8xf32> to vector<288x8xf32>
    %47 = arith.mulf %45, %46 : vector<288x8xf32>
    %48 = arith.addf %38, %47 : vector<288x8xf32>
    %c0_23 = arith.constant 0 : index
    %c20 = arith.constant 20 : index
    %c0_24 = arith.constant 0 : index
    %49 = vector.load %arg2[%c0_23, %c20, %c0_24] : memref<1x342x1xbf16, #tpu.memory_space<vmem>>, vector<1x288x1xbf16>
    %50 = vector.shape_cast %49 : vector<1x288x1xbf16> to vector<288x1xbf16>
    %c5 = arith.constant 5 : index
    %c0_25 = arith.constant 0 : index
    %c0_26 = arith.constant 0 : index
    %51 = vector.load %arg3[%c5, %c0_25, %c0_26] : memref<9x1x8xbf16, #tpu.memory_space<vmem>>, vector<1x1x8xbf16>
    %52 = vector.shape_cast %51 : vector<1x1x8xbf16> to vector<1x8xbf16>
    %53 = arith.extf %50 : vector<288x1xbf16> to vector<288x1xf32>
    %54 = arith.extf %52 : vector<1x8xbf16> to vector<1x8xf32>
    %55 = vector.broadcast %53 : vector<288x1xf32> to vector<288x8xf32>
    %56 = vector.broadcast %54 : vector<1x8xf32> to vector<288x8xf32>
    %57 = arith.mulf %55, %56 : vector<288x8xf32>
    %58 = arith.addf %48, %57 : vector<288x8xf32>
    %c0_27 = arith.constant 0 : index
    %c36 = arith.constant 36 : index
    %c0_28 = arith.constant 0 : index
    %59 = vector.load %arg2[%c0_27, %c36, %c0_28] : memref<1x342x1xbf16, #tpu.memory_space<vmem>>, vector<1x288x1xbf16>
    %60 = vector.shape_cast %59 : vector<1x288x1xbf16> to vector<288x1xbf16>
    %c6 = arith.constant 6 : index
    %c0_29 = arith.constant 0 : index
    %c0_30 = arith.constant 0 : index
    %61 = vector.load %arg3[%c6, %c0_29, %c0_30] : memref<9x1x8xbf16, #tpu.memory_space<vmem>>, vector<1x1x8xbf16>
    %62 = vector.shape_cast %61 : vector<1x1x8xbf16> to vector<1x8xbf16>
    %63 = arith.extf %60 : vector<288x1xbf16> to vector<288x1xf32>
    %64 = arith.extf %62 : vector<1x8xbf16> to vector<1x8xf32>
    %65 = vector.broadcast %63 : vector<288x1xf32> to vector<288x8xf32>
    %66 = vector.broadcast %64 : vector<1x8xf32> to vector<288x8xf32>
    %67 = arith.mulf %65, %66 : vector<288x8xf32>
    %68 = arith.addf %58, %67 : vector<288x8xf32>
    %c0_31 = arith.constant 0 : index
    %c37 = arith.constant 37 : index
    %c0_32 = arith.constant 0 : index
    %69 = vector.load %arg2[%c0_31, %c37, %c0_32] : memref<1x342x1xbf16, #tpu.memory_space<vmem>>, vector<1x288x1xbf16>
    %70 = vector.shape_cast %69 : vector<1x288x1xbf16> to vector<288x1xbf16>
    %c7 = arith.constant 7 : index
    %c0_33 = arith.constant 0 : index
    %c0_34 = arith.constant 0 : index
    %71 = vector.load %arg3[%c7, %c0_33, %c0_34] : memref<9x1x8xbf16, #tpu.memory_space<vmem>>, vector<1x1x8xbf16>
    %72 = vector.shape_cast %71 : vector<1x1x8xbf16> to vector<1x8xbf16>
    %73 = arith.extf %70 : vector<288x1xbf16> to vector<288x1xf32>
    %74 = arith.extf %72 : vector<1x8xbf16> to vector<1x8xf32>
    %75 = vector.broadcast %73 : vector<288x1xf32> to vector<288x8xf32>
    %76 = vector.broadcast %74 : vector<1x8xf32> to vector<288x8xf32>
    %77 = arith.mulf %75, %76 : vector<288x8xf32>
    %78 = arith.addf %68, %77 : vector<288x8xf32>
    %c0_35 = arith.constant 0 : index
    %c38 = arith.constant 38 : index
    %c0_36 = arith.constant 0 : index
    %79 = vector.load %arg2[%c0_35, %c38, %c0_36] : memref<1x342x1xbf16, #tpu.memory_space<vmem>>, vector<1x288x1xbf16>
    %80 = vector.shape_cast %79 : vector<1x288x1xbf16> to vector<288x1xbf16>
    %c8 = arith.constant 8 : index
    %c0_37 = arith.constant 0 : index
    %c0_38 = arith.constant 0 : index
    %81 = vector.load %arg3[%c8, %c0_37, %c0_38] : memref<9x1x8xbf16, #tpu.memory_space<vmem>>, vector<1x1x8xbf16>
    %82 = vector.shape_cast %81 : vector<1x1x8xbf16> to vector<1x8xbf16>
    %83 = arith.extf %80 : vector<288x1xbf16> to vector<288x1xf32>
    %84 = arith.extf %82 : vector<1x8xbf16> to vector<1x8xf32>
    %85 = vector.broadcast %83 : vector<288x1xf32> to vector<288x8xf32>
    %86 = vector.broadcast %84 : vector<1x8xf32> to vector<288x8xf32>
    %87 = arith.mulf %85, %86 : vector<288x8xf32>
    %88 = arith.addf %78, %87 : vector<288x8xf32>
    %c0_39 = arith.constant 0 : index
    %c0_40 = arith.constant 0 : index
    %89 = vector.load %arg4[%c0_39, %c0_40] : memref<1x8xf32, #tpu.memory_space<vmem>>, vector<1x8xf32>
    %90 = vector.broadcast %89 : vector<1x8xf32> to vector<288x8xf32>
    %91 = arith.mulf %88, %90 : vector<288x8xf32>
    %c0_41 = arith.constant 0 : index
    %c0_42 = arith.constant 0 : index
    %92 = vector.load %arg5[%c0_41, %c0_42] : memref<1x8xf32, #tpu.memory_space<vmem>>, vector<1x8xf32>
    %93 = vector.broadcast %92 : vector<1x8xf32> to vector<288x8xf32>
    %94 = arith.addf %91, %93 : vector<288x8xf32>
    %cst = arith.constant 0.000000e+00 : f32
    %95 = vector.broadcast %cst : f32 to vector<288x8xf32>
    %96 = arith.maximumf %94, %95 : vector<288x8xf32>
    %97 = arith.truncf %96 : vector<288x8xf32> to vector<288x8xbf16>
    %c0_43 = arith.constant 0 : index
    %c0_44 = arith.constant 0 : index
    %c0_45 = arith.constant 0 : index
    %98 = vector.load %arg6[%c0_43, %c0_44, %c0_45] : memref<1x288x8xbf16, #tpu.memory_space<vmem>>, vector<1x288x8xbf16>
    %99 = vector.shape_cast %98 : vector<1x288x8xbf16> to vector<288x8xbf16>
    %100 = vector.shape_cast %97 : vector<288x8xbf16> to vector<1x288x8xbf16>
    tpu.vector_store %arg6[%c0_43, %c0_44, %c0_45], %100 {strides = array<i32>} : memref<1x288x8xbf16, #tpu.memory_space<vmem>>, vector<1x288x8xbf16>,
    return
  }
  func.func @transform_0(%arg0: i32, %arg1: i32) -> (i32, i32, i32) {
    %c0_i32 = arith.constant 0 : i32
    %c0_i32_0 = arith.constant 0 : i32
    %c0_i32_1 = arith.constant 0 : i32
    return %arg0, %c0_i32, %c0_i32_0 : i32, i32, i32
  }
  func.func @transform_1(%arg0: i32, %arg1: i32) -> (i32, i32, i32) {
    %c0_i32 = arith.constant 0 : i32
    %c0_i32_0 = arith.constant 0 : i32
    %c0_i32_1 = arith.constant 0 : i32
    return %c0_i32, %c0_i32_0, %arg1 : i32, i32, i32
  }
  func.func @transform_2(%arg0: i32, %arg1: i32) -> (i32, i32) {
    %c0_i32 = arith.constant 0 : i32
    %c0_i32_0 = arith.constant 0 : i32
    return %c0_i32, %arg1 : i32, i32
  }
  func.func @transform_3(%arg0: i32, %arg1: i32) -> (i32, i32) {
    %c0_i32 = arith.constant 0 : i32
    %c0_i32_0 = arith.constant 0 : i32
    return %c0_i32, %arg1 : i32, i32
  }
  func.func @transform_4(%arg0: i32, %arg1: i32) -> (i32, i32, i32) {
    %c0_i32 = arith.constant 0 : i32
    %c0_i32_0 = arith.constant 0 : i32
    return %arg0, %c0_i32, %arg1 : i32, i32, i32
  }
}

module attributes {stable_mosaic.version = 11 : i64} {
  func.func @_conv_taps_kernel(%arg0: i32, %arg1: i32, %arg2: memref<1x110x8xbf16, #tpu.memory_space<vmem>>, %arg3: memref<9x8x8xbf16, #tpu.memory_space<vmem>>, %arg4: memref<1x8xf32, #tpu.memory_space<vmem>>, %arg5: memref<1x8xf32, #tpu.memory_space<vmem>>, %arg6: memref<1x80x8xbf16, #tpu.memory_space<vmem>>) attributes {dimension_semantics = [#tpu.dimension_semantics<parallel>, #tpu.dimension_semantics<parallel>], iteration_bounds = array<i64: 2, 1>, scalar_prefetch = 0 : i64, scratch_operands = 0 : i64, tpu.core_type = #tpu.core_type<tc>, window_params = [{transform_indices = @transform_0, window_bounds = array<i64: 1, 110, 8>}, {transform_indices = @transform_1, window_bounds = array<i64: 9, 8, 8>}, {transform_indices = @transform_2, window_bounds = array<i64: 1, 8>}, {transform_indices = @transform_3, window_bounds = array<i64: 1, 8>}, {transform_indices = @transform_4, window_bounds = array<i64: 1, 80, 8>}]} {
    %c0 = arith.constant 0 : index
    %c0_0 = arith.constant 0 : index
    %c0_1 = arith.constant 0 : index
    %0 = vector.load %arg2[%c0, %c0_0, %c0_1] : memref<1x110x8xbf16, #tpu.memory_space<vmem>>, vector<1x80x8xbf16>
    %1 = vector.shape_cast %0 : vector<1x80x8xbf16> to vector<80x8xbf16>
    %c0_2 = arith.constant 0 : index
    %c0_3 = arith.constant 0 : index
    %c0_4 = arith.constant 0 : index
    %2 = vector.load %arg3[%c0_2, %c0_3, %c0_4] : memref<9x8x8xbf16, #tpu.memory_space<vmem>>, vector<1x8x8xbf16>
    %3 = vector.shape_cast %2 : vector<1x8x8xbf16> to vector<8x8xbf16>
    %cst = arith.constant dense<0.000000e+00> : vector<80x8xf32>
    %4 = tpu.matmul %1, %3, %cst {dimension_numbers = #tpu.dot_dimension_numbers<[1], [0], [0], [1], [0, 0, 1, 1], [], []>} : vector<80x8xbf16>, vector<8x8xbf16>, vector<80x8xf32> -> vector<80x8xf32>
    %c0_5 = arith.constant 0 : index
    %c1 = arith.constant 1 : index
    %c0_6 = arith.constant 0 : index
    %5 = vector.load %arg2[%c0_5, %c1, %c0_6] : memref<1x110x8xbf16, #tpu.memory_space<vmem>>, vector<1x80x8xbf16>
    %6 = vector.shape_cast %5 : vector<1x80x8xbf16> to vector<80x8xbf16>
    %c1_7 = arith.constant 1 : index
    %c0_8 = arith.constant 0 : index
    %c0_9 = arith.constant 0 : index
    %7 = vector.load %arg3[%c1_7, %c0_8, %c0_9] : memref<9x8x8xbf16, #tpu.memory_space<vmem>>, vector<1x8x8xbf16>
    %8 = vector.shape_cast %7 : vector<1x8x8xbf16> to vector<8x8xbf16>
    %cst_10 = arith.constant dense<0.000000e+00> : vector<80x8xf32>
    %9 = tpu.matmul %6, %8, %cst_10 {dimension_numbers = #tpu.dot_dimension_numbers<[1], [0], [0], [1], [0, 0, 1, 1], [], []>} : vector<80x8xbf16>, vector<8x8xbf16>, vector<80x8xf32> -> vector<80x8xf32>
    %10 = arith.addf %4, %9 : vector<80x8xf32>
    %c0_11 = arith.constant 0 : index
    %c2 = arith.constant 2 : index
    %c0_12 = arith.constant 0 : index
    %11 = vector.load %arg2[%c0_11, %c2, %c0_12] : memref<1x110x8xbf16, #tpu.memory_space<vmem>>, vector<1x80x8xbf16>
    %12 = vector.shape_cast %11 : vector<1x80x8xbf16> to vector<80x8xbf16>
    %c2_13 = arith.constant 2 : index
    %c0_14 = arith.constant 0 : index
    %c0_15 = arith.constant 0 : index
    %13 = vector.load %arg3[%c2_13, %c0_14, %c0_15] : memref<9x8x8xbf16, #tpu.memory_space<vmem>>, vector<1x8x8xbf16>
    %14 = vector.shape_cast %13 : vector<1x8x8xbf16> to vector<8x8xbf16>
    %cst_16 = arith.constant dense<0.000000e+00> : vector<80x8xf32>
    %15 = tpu.matmul %12, %14, %cst_16 {dimension_numbers = #tpu.dot_dimension_numbers<[1], [0], [0], [1], [0, 0, 1, 1], [], []>} : vector<80x8xbf16>, vector<8x8xbf16>, vector<80x8xf32> -> vector<80x8xf32>
    %16 = arith.addf %10, %15 : vector<80x8xf32>
    %c0_17 = arith.constant 0 : index
    %c10 = arith.constant 10 : index
    %c0_18 = arith.constant 0 : index
    %17 = vector.load %arg2[%c0_17, %c10, %c0_18] : memref<1x110x8xbf16, #tpu.memory_space<vmem>>, vector<1x80x8xbf16>
    %18 = vector.shape_cast %17 : vector<1x80x8xbf16> to vector<80x8xbf16>
    %c3 = arith.constant 3 : index
    %c0_19 = arith.constant 0 : index
    %c0_20 = arith.constant 0 : index
    %19 = vector.load %arg3[%c3, %c0_19, %c0_20] : memref<9x8x8xbf16, #tpu.memory_space<vmem>>, vector<1x8x8xbf16>
    %20 = vector.shape_cast %19 : vector<1x8x8xbf16> to vector<8x8xbf16>
    %cst_21 = arith.constant dense<0.000000e+00> : vector<80x8xf32>
    %21 = tpu.matmul %18, %20, %cst_21 {dimension_numbers = #tpu.dot_dimension_numbers<[1], [0], [0], [1], [0, 0, 1, 1], [], []>} : vector<80x8xbf16>, vector<8x8xbf16>, vector<80x8xf32> -> vector<80x8xf32>
    %22 = arith.addf %16, %21 : vector<80x8xf32>
    %c0_22 = arith.constant 0 : index
    %c11 = arith.constant 11 : index
    %c0_23 = arith.constant 0 : index
    %23 = vector.load %arg2[%c0_22, %c11, %c0_23] : memref<1x110x8xbf16, #tpu.memory_space<vmem>>, vector<1x80x8xbf16>
    %24 = vector.shape_cast %23 : vector<1x80x8xbf16> to vector<80x8xbf16>
    %c4 = arith.constant 4 : index
    %c0_24 = arith.constant 0 : index
    %c0_25 = arith.constant 0 : index
    %25 = vector.load %arg3[%c4, %c0_24, %c0_25] : memref<9x8x8xbf16, #tpu.memory_space<vmem>>, vector<1x8x8xbf16>
    %26 = vector.shape_cast %25 : vector<1x8x8xbf16> to vector<8x8xbf16>
    %cst_26 = arith.constant dense<0.000000e+00> : vector<80x8xf32>
    %27 = tpu.matmul %24, %26, %cst_26 {dimension_numbers = #tpu.dot_dimension_numbers<[1], [0], [0], [1], [0, 0, 1, 1], [], []>} : vector<80x8xbf16>, vector<8x8xbf16>, vector<80x8xf32> -> vector<80x8xf32>
    %28 = arith.addf %22, %27 : vector<80x8xf32>
    %c0_27 = arith.constant 0 : index
    %c12 = arith.constant 12 : index
    %c0_28 = arith.constant 0 : index
    %29 = vector.load %arg2[%c0_27, %c12, %c0_28] : memref<1x110x8xbf16, #tpu.memory_space<vmem>>, vector<1x80x8xbf16>
    %30 = vector.shape_cast %29 : vector<1x80x8xbf16> to vector<80x8xbf16>
    %c5 = arith.constant 5 : index
    %c0_29 = arith.constant 0 : index
    %c0_30 = arith.constant 0 : index
    %31 = vector.load %arg3[%c5, %c0_29, %c0_30] : memref<9x8x8xbf16, #tpu.memory_space<vmem>>, vector<1x8x8xbf16>
    %32 = vector.shape_cast %31 : vector<1x8x8xbf16> to vector<8x8xbf16>
    %cst_31 = arith.constant dense<0.000000e+00> : vector<80x8xf32>
    %33 = tpu.matmul %30, %32, %cst_31 {dimension_numbers = #tpu.dot_dimension_numbers<[1], [0], [0], [1], [0, 0, 1, 1], [], []>} : vector<80x8xbf16>, vector<8x8xbf16>, vector<80x8xf32> -> vector<80x8xf32>
    %34 = arith.addf %28, %33 : vector<80x8xf32>
    %c0_32 = arith.constant 0 : index
    %c20 = arith.constant 20 : index
    %c0_33 = arith.constant 0 : index
    %35 = vector.load %arg2[%c0_32, %c20, %c0_33] : memref<1x110x8xbf16, #tpu.memory_space<vmem>>, vector<1x80x8xbf16>
    %36 = vector.shape_cast %35 : vector<1x80x8xbf16> to vector<80x8xbf16>
    %c6 = arith.constant 6 : index
    %c0_34 = arith.constant 0 : index
    %c0_35 = arith.constant 0 : index
    %37 = vector.load %arg3[%c6, %c0_34, %c0_35] : memref<9x8x8xbf16, #tpu.memory_space<vmem>>, vector<1x8x8xbf16>
    %38 = vector.shape_cast %37 : vector<1x8x8xbf16> to vector<8x8xbf16>
    %cst_36 = arith.constant dense<0.000000e+00> : vector<80x8xf32>
    %39 = tpu.matmul %36, %38, %cst_36 {dimension_numbers = #tpu.dot_dimension_numbers<[1], [0], [0], [1], [0, 0, 1, 1], [], []>} : vector<80x8xbf16>, vector<8x8xbf16>, vector<80x8xf32> -> vector<80x8xf32>
    %40 = arith.addf %34, %39 : vector<80x8xf32>
    %c0_37 = arith.constant 0 : index
    %c21 = arith.constant 21 : index
    %c0_38 = arith.constant 0 : index
    %41 = vector.load %arg2[%c0_37, %c21, %c0_38] : memref<1x110x8xbf16, #tpu.memory_space<vmem>>, vector<1x80x8xbf16>
    %42 = vector.shape_cast %41 : vector<1x80x8xbf16> to vector<80x8xbf16>
    %c7 = arith.constant 7 : index
    %c0_39 = arith.constant 0 : index
    %c0_40 = arith.constant 0 : index
    %43 = vector.load %arg3[%c7, %c0_39, %c0_40] : memref<9x8x8xbf16, #tpu.memory_space<vmem>>, vector<1x8x8xbf16>
    %44 = vector.shape_cast %43 : vector<1x8x8xbf16> to vector<8x8xbf16>
    %cst_41 = arith.constant dense<0.000000e+00> : vector<80x8xf32>
    %45 = tpu.matmul %42, %44, %cst_41 {dimension_numbers = #tpu.dot_dimension_numbers<[1], [0], [0], [1], [0, 0, 1, 1], [], []>} : vector<80x8xbf16>, vector<8x8xbf16>, vector<80x8xf32> -> vector<80x8xf32>
    %46 = arith.addf %40, %45 : vector<80x8xf32>
    %c0_42 = arith.constant 0 : index
    %c22 = arith.constant 22 : index
    %c0_43 = arith.constant 0 : index
    %47 = vector.load %arg2[%c0_42, %c22, %c0_43] : memref<1x110x8xbf16, #tpu.memory_space<vmem>>, vector<1x80x8xbf16>
    %48 = vector.shape_cast %47 : vector<1x80x8xbf16> to vector<80x8xbf16>
    %c8 = arith.constant 8 : index
    %c0_44 = arith.constant 0 : index
    %c0_45 = arith.constant 0 : index
    %49 = vector.load %arg3[%c8, %c0_44, %c0_45] : memref<9x8x8xbf16, #tpu.memory_space<vmem>>, vector<1x8x8xbf16>
    %50 = vector.shape_cast %49 : vector<1x8x8xbf16> to vector<8x8xbf16>
    %cst_46 = arith.constant dense<0.000000e+00> : vector<80x8xf32>
    %51 = tpu.matmul %48, %50, %cst_46 {dimension_numbers = #tpu.dot_dimension_numbers<[1], [0], [0], [1], [0, 0, 1, 1], [], []>} : vector<80x8xbf16>, vector<8x8xbf16>, vector<80x8xf32> -> vector<80x8xf32>
    %52 = arith.addf %46, %51 : vector<80x8xf32>
    %c0_47 = arith.constant 0 : index
    %c0_48 = arith.constant 0 : index
    %53 = vector.load %arg4[%c0_47, %c0_48] : memref<1x8xf32, #tpu.memory_space<vmem>>, vector<1x8xf32>
    %54 = vector.broadcast %53 : vector<1x8xf32> to vector<80x8xf32>
    %55 = arith.mulf %52, %54 : vector<80x8xf32>
    %c0_49 = arith.constant 0 : index
    %c0_50 = arith.constant 0 : index
    %56 = vector.load %arg5[%c0_49, %c0_50] : memref<1x8xf32, #tpu.memory_space<vmem>>, vector<1x8xf32>
    %57 = vector.broadcast %56 : vector<1x8xf32> to vector<80x8xf32>
    %58 = arith.addf %55, %57 : vector<80x8xf32>
    %cst_51 = arith.constant 0.000000e+00 : f32
    %59 = vector.broadcast %cst_51 : f32 to vector<80x8xf32>
    %60 = arith.maximumf %58, %59 : vector<80x8xf32>
    %61 = arith.truncf %60 : vector<80x8xf32> to vector<80x8xbf16>
    %c0_52 = arith.constant 0 : index
    %c0_53 = arith.constant 0 : index
    %c0_54 = arith.constant 0 : index
    %62 = vector.load %arg6[%c0_52, %c0_53, %c0_54] : memref<1x80x8xbf16, #tpu.memory_space<vmem>>, vector<1x80x8xbf16>
    %63 = vector.shape_cast %62 : vector<1x80x8xbf16> to vector<80x8xbf16>
    %64 = vector.shape_cast %61 : vector<80x8xbf16> to vector<1x80x8xbf16>
    tpu.vector_store %arg6[%c0_52, %c0_53, %c0_54], %64 {strides = array<i32>} : memref<1x80x8xbf16, #tpu.memory_space<vmem>>, vector<1x80x8xbf16>,
    return
  }
  func.func @transform_0(%arg0: i32, %arg1: i32) -> (i32, i32, i32) {
    %c0_i32 = arith.constant 0 : i32
    %c0_i32_0 = arith.constant 0 : i32
    %c0_i32_1 = arith.constant 0 : i32
    return %arg0, %c0_i32, %c0_i32_0 : i32, i32, i32
  }
  func.func @transform_1(%arg0: i32, %arg1: i32) -> (i32, i32, i32) {
    %c0_i32 = arith.constant 0 : i32
    %c0_i32_0 = arith.constant 0 : i32
    %c0_i32_1 = arith.constant 0 : i32
    return %c0_i32, %c0_i32_0, %arg1 : i32, i32, i32
  }
  func.func @transform_2(%arg0: i32, %arg1: i32) -> (i32, i32) {
    %c0_i32 = arith.constant 0 : i32
    %c0_i32_0 = arith.constant 0 : i32
    return %c0_i32, %arg1 : i32, i32
  }
  func.func @transform_3(%arg0: i32, %arg1: i32) -> (i32, i32) {
    %c0_i32 = arith.constant 0 : i32
    %c0_i32_0 = arith.constant 0 : i32
    return %c0_i32, %arg1 : i32, i32
  }
  func.func @transform_4(%arg0: i32, %arg1: i32) -> (i32, i32, i32) {
    %c0_i32 = arith.constant 0 : i32
    %c0_i32_0 = arith.constant 0 : i32
    return %arg0, %c0_i32, %arg1 : i32, i32, i32
  }
}

module attributes {stable_mosaic.version = 11 : i64} {
  func.func @_conv_taps_kernel(%arg0: i32, %arg1: i32, %arg2: memref<1x42x8xbf16, #tpu.memory_space<vmem>>, %arg3: memref<9x8x16xbf16, #tpu.memory_space<vmem>>, %arg4: memref<1x16xf32, #tpu.memory_space<vmem>>, %arg5: memref<1x16xf32, #tpu.memory_space<vmem>>, %arg6: memref<1x24x16xbf16, #tpu.memory_space<vmem>>) attributes {dimension_semantics = [#tpu.dimension_semantics<parallel>, #tpu.dimension_semantics<parallel>], iteration_bounds = array<i64: 2, 1>, scalar_prefetch = 0 : i64, scratch_operands = 0 : i64, tpu.core_type = #tpu.core_type<tc>, window_params = [{transform_indices = @transform_0, window_bounds = array<i64: 1, 42, 8>}, {transform_indices = @transform_1, window_bounds = array<i64: 9, 8, 16>}, {transform_indices = @transform_2, window_bounds = array<i64: 1, 16>}, {transform_indices = @transform_3, window_bounds = array<i64: 1, 16>}, {transform_indices = @transform_4, window_bounds = array<i64: 1, 24, 16>}]} {
    %c0 = arith.constant 0 : index
    %c0_0 = arith.constant 0 : index
    %c0_1 = arith.constant 0 : index
    %0 = vector.load %arg2[%c0, %c0_0, %c0_1] : memref<1x42x8xbf16, #tpu.memory_space<vmem>>, vector<1x24x8xbf16>
    %1 = vector.shape_cast %0 : vector<1x24x8xbf16> to vector<24x8xbf16>
    %c0_2 = arith.constant 0 : index
    %c0_3 = arith.constant 0 : index
    %c0_4 = arith.constant 0 : index
    %2 = vector.load %arg3[%c0_2, %c0_3, %c0_4] : memref<9x8x16xbf16, #tpu.memory_space<vmem>>, vector<1x8x16xbf16>
    %3 = vector.shape_cast %2 : vector<1x8x16xbf16> to vector<8x16xbf16>
    %cst = arith.constant dense<0.000000e+00> : vector<24x16xf32>
    %4 = tpu.matmul %1, %3, %cst {dimension_numbers = #tpu.dot_dimension_numbers<[1], [0], [0], [1], [0, 0, 1, 1], [], []>} : vector<24x8xbf16>, vector<8x16xbf16>, vector<24x16xf32> -> vector<24x16xf32>
    %c0_5 = arith.constant 0 : index
    %c1 = arith.constant 1 : index
    %c0_6 = arith.constant 0 : index
    %5 = vector.load %arg2[%c0_5, %c1, %c0_6] : memref<1x42x8xbf16, #tpu.memory_space<vmem>>, vector<1x24x8xbf16>
    %6 = vector.shape_cast %5 : vector<1x24x8xbf16> to vector<24x8xbf16>
    %c1_7 = arith.constant 1 : index
    %c0_8 = arith.constant 0 : index
    %c0_9 = arith.constant 0 : index
    %7 = vector.load %arg3[%c1_7, %c0_8, %c0_9] : memref<9x8x16xbf16, #tpu.memory_space<vmem>>, vector<1x8x16xbf16>
    %8 = vector.shape_cast %7 : vector<1x8x16xbf16> to vector<8x16xbf16>
    %cst_10 = arith.constant dense<0.000000e+00> : vector<24x16xf32>
    %9 = tpu.matmul %6, %8, %cst_10 {dimension_numbers = #tpu.dot_dimension_numbers<[1], [0], [0], [1], [0, 0, 1, 1], [], []>} : vector<24x8xbf16>, vector<8x16xbf16>, vector<24x16xf32> -> vector<24x16xf32>
    %10 = arith.addf %4, %9 : vector<24x16xf32>
    %c0_11 = arith.constant 0 : index
    %c2 = arith.constant 2 : index
    %c0_12 = arith.constant 0 : index
    %11 = vector.load %arg2[%c0_11, %c2, %c0_12] : memref<1x42x8xbf16, #tpu.memory_space<vmem>>, vector<1x24x8xbf16>
    %12 = vector.shape_cast %11 : vector<1x24x8xbf16> to vector<24x8xbf16>
    %c2_13 = arith.constant 2 : index
    %c0_14 = arith.constant 0 : index
    %c0_15 = arith.constant 0 : index
    %13 = vector.load %arg3[%c2_13, %c0_14, %c0_15] : memref<9x8x16xbf16, #tpu.memory_space<vmem>>, vector<1x8x16xbf16>
    %14 = vector.shape_cast %13 : vector<1x8x16xbf16> to vector<8x16xbf16>
    %cst_16 = arith.constant dense<0.000000e+00> : vector<24x16xf32>
    %15 = tpu.matmul %12, %14, %cst_16 {dimension_numbers = #tpu.dot_dimension_numbers<[1], [0], [0], [1], [0, 0, 1, 1], [], []>} : vector<24x8xbf16>, vector<8x16xbf16>, vector<24x16xf32> -> vector<24x16xf32>
    %16 = arith.addf %10, %15 : vector<24x16xf32>
    %c0_17 = arith.constant 0 : index
    %c6 = arith.constant 6 : index
    %c0_18 = arith.constant 0 : index
    %17 = vector.load %arg2[%c0_17, %c6, %c0_18] : memref<1x42x8xbf16, #tpu.memory_space<vmem>>, vector<1x24x8xbf16>
    %18 = vector.shape_cast %17 : vector<1x24x8xbf16> to vector<24x8xbf16>
    %c3 = arith.constant 3 : index
    %c0_19 = arith.constant 0 : index
    %c0_20 = arith.constant 0 : index
    %19 = vector.load %arg3[%c3, %c0_19, %c0_20] : memref<9x8x16xbf16, #tpu.memory_space<vmem>>, vector<1x8x16xbf16>
    %20 = vector.shape_cast %19 : vector<1x8x16xbf16> to vector<8x16xbf16>
    %cst_21 = arith.constant dense<0.000000e+00> : vector<24x16xf32>
    %21 = tpu.matmul %18, %20, %cst_21 {dimension_numbers = #tpu.dot_dimension_numbers<[1], [0], [0], [1], [0, 0, 1, 1], [], []>} : vector<24x8xbf16>, vector<8x16xbf16>, vector<24x16xf32> -> vector<24x16xf32>
    %22 = arith.addf %16, %21 : vector<24x16xf32>
    %c0_22 = arith.constant 0 : index
    %c7 = arith.constant 7 : index
    %c0_23 = arith.constant 0 : index
    %23 = vector.load %arg2[%c0_22, %c7, %c0_23] : memref<1x42x8xbf16, #tpu.memory_space<vmem>>, vector<1x24x8xbf16>
    %24 = vector.shape_cast %23 : vector<1x24x8xbf16> to vector<24x8xbf16>
    %c4 = arith.constant 4 : index
    %c0_24 = arith.constant 0 : index
    %c0_25 = arith.constant 0 : index
    %25 = vector.load %arg3[%c4, %c0_24, %c0_25] : memref<9x8x16xbf16, #tpu.memory_space<vmem>>, vector<1x8x16xbf16>
    %26 = vector.shape_cast %25 : vector<1x8x16xbf16> to vector<8x16xbf16>
    %cst_26 = arith.constant dense<0.000000e+00> : vector<24x16xf32>
    %27 = tpu.matmul %24, %26, %cst_26 {dimension_numbers = #tpu.dot_dimension_numbers<[1], [0], [0], [1], [0, 0, 1, 1], [], []>} : vector<24x8xbf16>, vector<8x16xbf16>, vector<24x16xf32> -> vector<24x16xf32>
    %28 = arith.addf %22, %27 : vector<24x16xf32>
    %c0_27 = arith.constant 0 : index
    %c8 = arith.constant 8 : index
    %c0_28 = arith.constant 0 : index
    %29 = vector.load %arg2[%c0_27, %c8, %c0_28] : memref<1x42x8xbf16, #tpu.memory_space<vmem>>, vector<1x24x8xbf16>
    %30 = vector.shape_cast %29 : vector<1x24x8xbf16> to vector<24x8xbf16>
    %c5 = arith.constant 5 : index
    %c0_29 = arith.constant 0 : index
    %c0_30 = arith.constant 0 : index
    %31 = vector.load %arg3[%c5, %c0_29, %c0_30] : memref<9x8x16xbf16, #tpu.memory_space<vmem>>, vector<1x8x16xbf16>
    %32 = vector.shape_cast %31 : vector<1x8x16xbf16> to vector<8x16xbf16>
    %cst_31 = arith.constant dense<0.000000e+00> : vector<24x16xf32>
    %33 = tpu.matmul %30, %32, %cst_31 {dimension_numbers = #tpu.dot_dimension_numbers<[1], [0], [0], [1], [0, 0, 1, 1], [], []>} : vector<24x8xbf16>, vector<8x16xbf16>, vector<24x16xf32> -> vector<24x16xf32>
    %34 = arith.addf %28, %33 : vector<24x16xf32>
    %c0_32 = arith.constant 0 : index
    %c12 = arith.constant 12 : index
    %c0_33 = arith.constant 0 : index
    %35 = vector.load %arg2[%c0_32, %c12, %c0_33] : memref<1x42x8xbf16, #tpu.memory_space<vmem>>, vector<1x24x8xbf16>
    %36 = vector.shape_cast %35 : vector<1x24x8xbf16> to vector<24x8xbf16>
    %c6_34 = arith.constant 6 : index
    %c0_35 = arith.constant 0 : index
    %c0_36 = arith.constant 0 : index
    %37 = vector.load %arg3[%c6_34, %c0_35, %c0_36] : memref<9x8x16xbf16, #tpu.memory_space<vmem>>, vector<1x8x16xbf16>
    %38 = vector.shape_cast %37 : vector<1x8x16xbf16> to vector<8x16xbf16>
    %cst_37 = arith.constant dense<0.000000e+00> : vector<24x16xf32>
    %39 = tpu.matmul %36, %38, %cst_37 {dimension_numbers = #tpu.dot_dimension_numbers<[1], [0], [0], [1], [0, 0, 1, 1], [], []>} : vector<24x8xbf16>, vector<8x16xbf16>, vector<24x16xf32> -> vector<24x16xf32>
    %40 = arith.addf %34, %39 : vector<24x16xf32>
    %c0_38 = arith.constant 0 : index
    %c13 = arith.constant 13 : index
    %c0_39 = arith.constant 0 : index
    %41 = vector.load %arg2[%c0_38, %c13, %c0_39] : memref<1x42x8xbf16, #tpu.memory_space<vmem>>, vector<1x24x8xbf16>
    %42 = vector.shape_cast %41 : vector<1x24x8xbf16> to vector<24x8xbf16>
    %c7_40 = arith.constant 7 : index
    %c0_41 = arith.constant 0 : index
    %c0_42 = arith.constant 0 : index
    %43 = vector.load %arg3[%c7_40, %c0_41, %c0_42] : memref<9x8x16xbf16, #tpu.memory_space<vmem>>, vector<1x8x16xbf16>
    %44 = vector.shape_cast %43 : vector<1x8x16xbf16> to vector<8x16xbf16>
    %cst_43 = arith.constant dense<0.000000e+00> : vector<24x16xf32>
    %45 = tpu.matmul %42, %44, %cst_43 {dimension_numbers = #tpu.dot_dimension_numbers<[1], [0], [0], [1], [0, 0, 1, 1], [], []>} : vector<24x8xbf16>, vector<8x16xbf16>, vector<24x16xf32> -> vector<24x16xf32>
    %46 = arith.addf %40, %45 : vector<24x16xf32>
    %c0_44 = arith.constant 0 : index
    %c14 = arith.constant 14 : index
    %c0_45 = arith.constant 0 : index
    %47 = vector.load %arg2[%c0_44, %c14, %c0_45] : memref<1x42x8xbf16, #tpu.memory_space<vmem>>, vector<1x24x8xbf16>
    %48 = vector.shape_cast %47 : vector<1x24x8xbf16> to vector<24x8xbf16>
    %c8_46 = arith.constant 8 : index
    %c0_47 = arith.constant 0 : index
    %c0_48 = arith.constant 0 : index
    %49 = vector.load %arg3[%c8_46, %c0_47, %c0_48] : memref<9x8x16xbf16, #tpu.memory_space<vmem>>, vector<1x8x16xbf16>
    %50 = vector.shape_cast %49 : vector<1x8x16xbf16> to vector<8x16xbf16>
    %cst_49 = arith.constant dense<0.000000e+00> : vector<24x16xf32>
    %51 = tpu.matmul %48, %50, %cst_49 {dimension_numbers = #tpu.dot_dimension_numbers<[1], [0], [0], [1], [0, 0, 1, 1], [], []>} : vector<24x8xbf16>, vector<8x16xbf16>, vector<24x16xf32> -> vector<24x16xf32>
    %52 = arith.addf %46, %51 : vector<24x16xf32>
    %c0_50 = arith.constant 0 : index
    %c0_51 = arith.constant 0 : index
    %53 = vector.load %arg4[%c0_50, %c0_51] : memref<1x16xf32, #tpu.memory_space<vmem>>, vector<1x16xf32>
    %54 = vector.broadcast %53 : vector<1x16xf32> to vector<24x16xf32>
    %55 = arith.mulf %52, %54 : vector<24x16xf32>
    %c0_52 = arith.constant 0 : index
    %c0_53 = arith.constant 0 : index
    %56 = vector.load %arg5[%c0_52, %c0_53] : memref<1x16xf32, #tpu.memory_space<vmem>>, vector<1x16xf32>
    %57 = vector.broadcast %56 : vector<1x16xf32> to vector<24x16xf32>
    %58 = arith.addf %55, %57 : vector<24x16xf32>
    %cst_54 = arith.constant 0.000000e+00 : f32
    %59 = vector.broadcast %cst_54 : f32 to vector<24x16xf32>
    %60 = arith.maximumf %58, %59 : vector<24x16xf32>
    %61 = arith.truncf %60 : vector<24x16xf32> to vector<24x16xbf16>
    %c0_55 = arith.constant 0 : index
    %c0_56 = arith.constant 0 : index
    %c0_57 = arith.constant 0 : index
    %62 = vector.load %arg6[%c0_55, %c0_56, %c0_57] : memref<1x24x16xbf16, #tpu.memory_space<vmem>>, vector<1x24x16xbf16>
    %63 = vector.shape_cast %62 : vector<1x24x16xbf16> to vector<24x16xbf16>
    %64 = vector.shape_cast %61 : vector<24x16xbf16> to vector<1x24x16xbf16>
    tpu.vector_store %arg6[%c0_55, %c0_56, %c0_57], %64 {strides = array<i32>} : memref<1x24x16xbf16, #tpu.memory_space<vmem>>, vector<1x24x16xbf16>,
    return
  }
  func.func @transform_0(%arg0: i32, %arg1: i32) -> (i32, i32, i32) {
    %c0_i32 = arith.constant 0 : i32
    %c0_i32_0 = arith.constant 0 : i32
    %c0_i32_1 = arith.constant 0 : i32
    return %arg0, %c0_i32, %c0_i32_0 : i32, i32, i32
  }
  func.func @transform_1(%arg0: i32, %arg1: i32) -> (i32, i32, i32) {
    %c0_i32 = arith.constant 0 : i32
    %c0_i32_0 = arith.constant 0 : i32
    %c0_i32_1 = arith.constant 0 : i32
    return %c0_i32, %c0_i32_0, %arg1 : i32, i32, i32
  }
  func.func @transform_2(%arg0: i32, %arg1: i32) -> (i32, i32) {
    %c0_i32 = arith.constant 0 : i32
    %c0_i32_0 = arith.constant 0 : i32
    return %c0_i32, %arg1 : i32, i32
  }
  func.func @transform_3(%arg0: i32, %arg1: i32) -> (i32, i32) {
    %c0_i32 = arith.constant 0 : i32
    %c0_i32_0 = arith.constant 0 : i32
    return %c0_i32, %arg1 : i32, i32
  }
  func.func @transform_4(%arg0: i32, %arg1: i32) -> (i32, i32, i32) {
    %c0_i32 = arith.constant 0 : i32
    %c0_i32_0 = arith.constant 0 : i32
    return %arg0, %c0_i32, %arg1 : i32, i32, i32
  }
}

module attributes {stable_mosaic.version = 11 : i64} {
  func.func @_conv_taps_kernel(%arg0: i32, %arg1: i32, %arg2: memref<1x42x16xbf16, #tpu.memory_space<vmem>>, %arg3: memref<9x16x16xbf16, #tpu.memory_space<vmem>>, %arg4: memref<1x16xf32, #tpu.memory_space<vmem>>, %arg5: memref<1x16xf32, #tpu.memory_space<vmem>>, %arg6: memref<1x24x16xbf16, #tpu.memory_space<vmem>>) attributes {dimension_semantics = [#tpu.dimension_semantics<parallel>, #tpu.dimension_semantics<parallel>], iteration_bounds = array<i64: 2, 1>, scalar_prefetch = 0 : i64, scratch_operands = 0 : i64, tpu.core_type = #tpu.core_type<tc>, window_params = [{transform_indices = @transform_0, window_bounds = array<i64: 1, 42, 16>}, {transform_indices = @transform_1, window_bounds = array<i64: 9, 16, 16>}, {transform_indices = @transform_2, window_bounds = array<i64: 1, 16>}, {transform_indices = @transform_3, window_bounds = array<i64: 1, 16>}, {transform_indices = @transform_4, window_bounds = array<i64: 1, 24, 16>}]} {
    %c0 = arith.constant 0 : index
    %c0_0 = arith.constant 0 : index
    %c0_1 = arith.constant 0 : index
    %0 = vector.load %arg2[%c0, %c0_0, %c0_1] : memref<1x42x16xbf16, #tpu.memory_space<vmem>>, vector<1x24x16xbf16>
    %1 = vector.shape_cast %0 : vector<1x24x16xbf16> to vector<24x16xbf16>
    %c0_2 = arith.constant 0 : index
    %c0_3 = arith.constant 0 : index
    %c0_4 = arith.constant 0 : index
    %2 = vector.load %arg3[%c0_2, %c0_3, %c0_4] : memref<9x16x16xbf16, #tpu.memory_space<vmem>>, vector<1x16x16xbf16>
    %3 = vector.shape_cast %2 : vector<1x16x16xbf16> to vector<16x16xbf16>
    %cst = arith.constant dense<0.000000e+00> : vector<24x16xf32>
    %4 = tpu.matmul %1, %3, %cst {dimension_numbers = #tpu.dot_dimension_numbers<[1], [0], [0], [1], [0, 0, 1, 1], [], []>} : vector<24x16xbf16>, vector<16x16xbf16>, vector<24x16xf32> -> vector<24x16xf32>
    %c0_5 = arith.constant 0 : index
    %c1 = arith.constant 1 : index
    %c0_6 = arith.constant 0 : index
    %5 = vector.load %arg2[%c0_5, %c1, %c0_6] : memref<1x42x16xbf16, #tpu.memory_space<vmem>>, vector<1x24x16xbf16>
    %6 = vector.shape_cast %5 : vector<1x24x16xbf16> to vector<24x16xbf16>
    %c1_7 = arith.constant 1 : index
    %c0_8 = arith.constant 0 : index
    %c0_9 = arith.constant 0 : index
    %7 = vector.load %arg3[%c1_7, %c0_8, %c0_9] : memref<9x16x16xbf16, #tpu.memory_space<vmem>>, vector<1x16x16xbf16>
    %8 = vector.shape_cast %7 : vector<1x16x16xbf16> to vector<16x16xbf16>
    %cst_10 = arith.constant dense<0.000000e+00> : vector<24x16xf32>
    %9 = tpu.matmul %6, %8, %cst_10 {dimension_numbers = #tpu.dot_dimension_numbers<[1], [0], [0], [1], [0, 0, 1, 1], [], []>} : vector<24x16xbf16>, vector<16x16xbf16>, vector<24x16xf32> -> vector<24x16xf32>
    %10 = arith.addf %4, %9 : vector<24x16xf32>
    %c0_11 = arith.constant 0 : index
    %c2 = arith.constant 2 : index
    %c0_12 = arith.constant 0 : index
    %11 = vector.load %arg2[%c0_11, %c2, %c0_12] : memref<1x42x16xbf16, #tpu.memory_space<vmem>>, vector<1x24x16xbf16>
    %12 = vector.shape_cast %11 : vector<1x24x16xbf16> to vector<24x16xbf16>
    %c2_13 = arith.constant 2 : index
    %c0_14 = arith.constant 0 : index
    %c0_15 = arith.constant 0 : index
    %13 = vector.load %arg3[%c2_13, %c0_14, %c0_15] : memref<9x16x16xbf16, #tpu.memory_space<vmem>>, vector<1x16x16xbf16>
    %14 = vector.shape_cast %13 : vector<1x16x16xbf16> to vector<16x16xbf16>
    %cst_16 = arith.constant dense<0.000000e+00> : vector<24x16xf32>
    %15 = tpu.matmul %12, %14, %cst_16 {dimension_numbers = #tpu.dot_dimension_numbers<[1], [0], [0], [1], [0, 0, 1, 1], [], []>} : vector<24x16xbf16>, vector<16x16xbf16>, vector<24x16xf32> -> vector<24x16xf32>
    %16 = arith.addf %10, %15 : vector<24x16xf32>
    %c0_17 = arith.constant 0 : index
    %c6 = arith.constant 6 : index
    %c0_18 = arith.constant 0 : index
    %17 = vector.load %arg2[%c0_17, %c6, %c0_18] : memref<1x42x16xbf16, #tpu.memory_space<vmem>>, vector<1x24x16xbf16>
    %18 = vector.shape_cast %17 : vector<1x24x16xbf16> to vector<24x16xbf16>
    %c3 = arith.constant 3 : index
    %c0_19 = arith.constant 0 : index
    %c0_20 = arith.constant 0 : index
    %19 = vector.load %arg3[%c3, %c0_19, %c0_20] : memref<9x16x16xbf16, #tpu.memory_space<vmem>>, vector<1x16x16xbf16>
    %20 = vector.shape_cast %19 : vector<1x16x16xbf16> to vector<16x16xbf16>
    %cst_21 = arith.constant dense<0.000000e+00> : vector<24x16xf32>
    %21 = tpu.matmul %18, %20, %cst_21 {dimension_numbers = #tpu.dot_dimension_numbers<[1], [0], [0], [1], [0, 0, 1, 1], [], []>} : vector<24x16xbf16>, vector<16x16xbf16>, vector<24x16xf32> -> vector<24x16xf32>
    %22 = arith.addf %16, %21 : vector<24x16xf32>
    %c0_22 = arith.constant 0 : index
    %c7 = arith.constant 7 : index
    %c0_23 = arith.constant 0 : index
    %23 = vector.load %arg2[%c0_22, %c7, %c0_23] : memref<1x42x16xbf16, #tpu.memory_space<vmem>>, vector<1x24x16xbf16>
    %24 = vector.shape_cast %23 : vector<1x24x16xbf16> to vector<24x16xbf16>
    %c4 = arith.constant 4 : index
    %c0_24 = arith.constant 0 : index
    %c0_25 = arith.constant 0 : index
    %25 = vector.load %arg3[%c4, %c0_24, %c0_25] : memref<9x16x16xbf16, #tpu.memory_space<vmem>>, vector<1x16x16xbf16>
    %26 = vector.shape_cast %25 : vector<1x16x16xbf16> to vector<16x16xbf16>
    %cst_26 = arith.constant dense<0.000000e+00> : vector<24x16xf32>
    %27 = tpu.matmul %24, %26, %cst_26 {dimension_numbers = #tpu.dot_dimension_numbers<[1], [0], [0], [1], [0, 0, 1, 1], [], []>} : vector<24x16xbf16>, vector<16x16xbf16>, vector<24x16xf32> -> vector<24x16xf32>
    %28 = arith.addf %22, %27 : vector<24x16xf32>
    %c0_27 = arith.constant 0 : index
    %c8 = arith.constant 8 : index
    %c0_28 = arith.constant 0 : index
    %29 = vector.load %arg2[%c0_27, %c8, %c0_28] : memref<1x42x16xbf16, #tpu.memory_space<vmem>>, vector<1x24x16xbf16>
    %30 = vector.shape_cast %29 : vector<1x24x16xbf16> to vector<24x16xbf16>
    %c5 = arith.constant 5 : index
    %c0_29 = arith.constant 0 : index
    %c0_30 = arith.constant 0 : index
    %31 = vector.load %arg3[%c5, %c0_29, %c0_30] : memref<9x16x16xbf16, #tpu.memory_space<vmem>>, vector<1x16x16xbf16>
    %32 = vector.shape_cast %31 : vector<1x16x16xbf16> to vector<16x16xbf16>
    %cst_31 = arith.constant dense<0.000000e+00> : vector<24x16xf32>
    %33 = tpu.matmul %30, %32, %cst_31 {dimension_numbers = #tpu.dot_dimension_numbers<[1], [0], [0], [1], [0, 0, 1, 1], [], []>} : vector<24x16xbf16>, vector<16x16xbf16>, vector<24x16xf32> -> vector<24x16xf32>
    %34 = arith.addf %28, %33 : vector<24x16xf32>
    %c0_32 = arith.constant 0 : index
    %c12 = arith.constant 12 : index
    %c0_33 = arith.constant 0 : index
    %35 = vector.load %arg2[%c0_32, %c12, %c0_33] : memref<1x42x16xbf16, #tpu.memory_space<vmem>>, vector<1x24x16xbf16>
    %36 = vector.shape_cast %35 : vector<1x24x16xbf16> to vector<24x16xbf16>
    %c6_34 = arith.constant 6 : index
    %c0_35 = arith.constant 0 : index
    %c0_36 = arith.constant 0 : index
    %37 = vector.load %arg3[%c6_34, %c0_35, %c0_36] : memref<9x16x16xbf16, #tpu.memory_space<vmem>>, vector<1x16x16xbf16>
    %38 = vector.shape_cast %37 : vector<1x16x16xbf16> to vector<16x16xbf16>
    %cst_37 = arith.constant dense<0.000000e+00> : vector<24x16xf32>
    %39 = tpu.matmul %36, %38, %cst_37 {dimension_numbers = #tpu.dot_dimension_numbers<[1], [0], [0], [1], [0, 0, 1, 1], [], []>} : vector<24x16xbf16>, vector<16x16xbf16>, vector<24x16xf32> -> vector<24x16xf32>
    %40 = arith.addf %34, %39 : vector<24x16xf32>
    %c0_38 = arith.constant 0 : index
    %c13 = arith.constant 13 : index
    %c0_39 = arith.constant 0 : index
    %41 = vector.load %arg2[%c0_38, %c13, %c0_39] : memref<1x42x16xbf16, #tpu.memory_space<vmem>>, vector<1x24x16xbf16>
    %42 = vector.shape_cast %41 : vector<1x24x16xbf16> to vector<24x16xbf16>
    %c7_40 = arith.constant 7 : index
    %c0_41 = arith.constant 0 : index
    %c0_42 = arith.constant 0 : index
    %43 = vector.load %arg3[%c7_40, %c0_41, %c0_42] : memref<9x16x16xbf16, #tpu.memory_space<vmem>>, vector<1x16x16xbf16>
    %44 = vector.shape_cast %43 : vector<1x16x16xbf16> to vector<16x16xbf16>
    %cst_43 = arith.constant dense<0.000000e+00> : vector<24x16xf32>
    %45 = tpu.matmul %42, %44, %cst_43 {dimension_numbers = #tpu.dot_dimension_numbers<[1], [0], [0], [1], [0, 0, 1, 1], [], []>} : vector<24x16xbf16>, vector<16x16xbf16>, vector<24x16xf32> -> vector<24x16xf32>
    %46 = arith.addf %40, %45 : vector<24x16xf32>
    %c0_44 = arith.constant 0 : index
    %c14 = arith.constant 14 : index
    %c0_45 = arith.constant 0 : index
    %47 = vector.load %arg2[%c0_44, %c14, %c0_45] : memref<1x42x16xbf16, #tpu.memory_space<vmem>>, vector<1x24x16xbf16>
    %48 = vector.shape_cast %47 : vector<1x24x16xbf16> to vector<24x16xbf16>
    %c8_46 = arith.constant 8 : index
    %c0_47 = arith.constant 0 : index
    %c0_48 = arith.constant 0 : index
    %49 = vector.load %arg3[%c8_46, %c0_47, %c0_48] : memref<9x16x16xbf16, #tpu.memory_space<vmem>>, vector<1x16x16xbf16>
    %50 = vector.shape_cast %49 : vector<1x16x16xbf16> to vector<16x16xbf16>
    %cst_49 = arith.constant dense<0.000000e+00> : vector<24x16xf32>
    %51 = tpu.matmul %48, %50, %cst_49 {dimension_numbers = #tpu.dot_dimension_numbers<[1], [0], [0], [1], [0, 0, 1, 1], [], []>} : vector<24x16xbf16>, vector<16x16xbf16>, vector<24x16xf32> -> vector<24x16xf32>
    %52 = arith.addf %46, %51 : vector<24x16xf32>
    %c0_50 = arith.constant 0 : index
    %c0_51 = arith.constant 0 : index
    %53 = vector.load %arg4[%c0_50, %c0_51] : memref<1x16xf32, #tpu.memory_space<vmem>>, vector<1x16xf32>
    %54 = vector.broadcast %53 : vector<1x16xf32> to vector<24x16xf32>
    %55 = arith.mulf %52, %54 : vector<24x16xf32>
    %c0_52 = arith.constant 0 : index
    %c0_53 = arith.constant 0 : index
    %56 = vector.load %arg5[%c0_52, %c0_53] : memref<1x16xf32, #tpu.memory_space<vmem>>, vector<1x16xf32>
    %57 = vector.broadcast %56 : vector<1x16xf32> to vector<24x16xf32>
    %58 = arith.addf %55, %57 : vector<24x16xf32>
    %cst_54 = arith.constant 0.000000e+00 : f32
    %59 = vector.broadcast %cst_54 : f32 to vector<24x16xf32>
    %60 = arith.maximumf %58, %59 : vector<24x16xf32>
    %61 = arith.truncf %60 : vector<24x16xf32> to vector<24x16xbf16>
    %c0_55 = arith.constant 0 : index
    %c0_56 = arith.constant 0 : index
    %c0_57 = arith.constant 0 : index
    %62 = vector.load %arg6[%c0_55, %c0_56, %c0_57] : memref<1x24x16xbf16, #tpu.memory_space<vmem>>, vector<1x24x16xbf16>
    %63 = vector.shape_cast %62 : vector<1x24x16xbf16> to vector<24x16xbf16>
    %64 = vector.shape_cast %61 : vector<24x16xbf16> to vector<1x24x16xbf16>
    tpu.vector_store %arg6[%c0_55, %c0_56, %c0_57], %64 {strides = array<i32>} : memref<1x24x16xbf16, #tpu.memory_space<vmem>>, vector<1x24x16xbf16>,
    return
  }
  func.func @transform_0(%arg0: i32, %arg1: i32) -> (i32, i32, i32) {
    %c0_i32 = arith.constant 0 : i32
    %c0_i32_0 = arith.constant 0 : i32
    %c0_i32_1 = arith.constant 0 : i32
    return %arg0, %c0_i32, %c0_i32_0 : i32, i32, i32
  }
  func.func @transform_1(%arg0: i32, %arg1: i32) -> (i32, i32, i32) {
    %c0_i32 = arith.constant 0 : i32
    %c0_i32_0 = arith.constant 0 : i32
    %c0_i32_1 = arith.constant 0 : i32
    return %c0_i32, %c0_i32_0, %arg1 : i32, i32, i32
  }
  func.func @transform_2(%arg0: i32, %arg1: i32) -> (i32, i32) {
    %c0_i32 = arith.constant 0 : i32
    %c0_i32_0 = arith.constant 0 : i32
    return %c0_i32, %arg1 : i32, i32
  }
  func.func @transform_3(%arg0: i32, %arg1: i32) -> (i32, i32) {
    %c0_i32 = arith.constant 0 : i32
    %c0_i32_0 = arith.constant 0 : i32
    return %c0_i32, %arg1 : i32, i32
  }
  func.func @transform_4(%arg0: i32, %arg1: i32) -> (i32, i32, i32) {
    %c0_i32 = arith.constant 0 : i32
    %c0_i32_0 = arith.constant 0 : i32
    return %arg0, %c0_i32, %arg1 : i32, i32, i32
  }
}

module attributes {stable_mosaic.version = 11 : i64} {
  func.func @_conv_taps_kernel(%arg0: i32, %arg1: i32, %arg2: memref<1x20x16xbf16, #tpu.memory_space<vmem>>, %arg3: memref<9x16x16xbf16, #tpu.memory_space<vmem>>, %arg4: memref<1x16xf32, #tpu.memory_space<vmem>>, %arg5: memref<1x16xf32, #tpu.memory_space<vmem>>, %arg6: memref<1x8x16xbf16, #tpu.memory_space<vmem>>) attributes {dimension_semantics = [#tpu.dimension_semantics<parallel>, #tpu.dimension_semantics<parallel>], iteration_bounds = array<i64: 2, 1>, scalar_prefetch = 0 : i64, scratch_operands = 0 : i64, tpu.core_type = #tpu.core_type<tc>, window_params = [{transform_indices = @transform_0, window_bounds = array<i64: 1, 20, 16>}, {transform_indices = @transform_1, window_bounds = array<i64: 9, 16, 16>}, {transform_indices = @transform_2, window_bounds = array<i64: 1, 16>}, {transform_indices = @transform_3, window_bounds = array<i64: 1, 16>}, {transform_indices = @transform_4, window_bounds = array<i64: 1, 8, 16>}]} {
    %c0 = arith.constant 0 : index
    %c0_0 = arith.constant 0 : index
    %c0_1 = arith.constant 0 : index
    %0 = vector.load %arg2[%c0, %c0_0, %c0_1] : memref<1x20x16xbf16, #tpu.memory_space<vmem>>, vector<1x8x16xbf16>
    %1 = vector.shape_cast %0 : vector<1x8x16xbf16> to vector<8x16xbf16>
    %c0_2 = arith.constant 0 : index
    %c0_3 = arith.constant 0 : index
    %c0_4 = arith.constant 0 : index
    %2 = vector.load %arg3[%c0_2, %c0_3, %c0_4] : memref<9x16x16xbf16, #tpu.memory_space<vmem>>, vector<1x16x16xbf16>
    %3 = vector.shape_cast %2 : vector<1x16x16xbf16> to vector<16x16xbf16>
    %cst = arith.constant dense<0.000000e+00> : vector<8x16xf32>
    %4 = tpu.matmul %1, %3, %cst {dimension_numbers = #tpu.dot_dimension_numbers<[1], [0], [0], [1], [0, 0, 1, 1], [], []>} : vector<8x16xbf16>, vector<16x16xbf16>, vector<8x16xf32> -> vector<8x16xf32>
    %c0_5 = arith.constant 0 : index
    %c1 = arith.constant 1 : index
    %c0_6 = arith.constant 0 : index
    %5 = vector.load %arg2[%c0_5, %c1, %c0_6] : memref<1x20x16xbf16, #tpu.memory_space<vmem>>, vector<1x8x16xbf16>
    %6 = vector.shape_cast %5 : vector<1x8x16xbf16> to vector<8x16xbf16>
    %c1_7 = arith.constant 1 : index
    %c0_8 = arith.constant 0 : index
    %c0_9 = arith.constant 0 : index
    %7 = vector.load %arg3[%c1_7, %c0_8, %c0_9] : memref<9x16x16xbf16, #tpu.memory_space<vmem>>, vector<1x16x16xbf16>
    %8 = vector.shape_cast %7 : vector<1x16x16xbf16> to vector<16x16xbf16>
    %cst_10 = arith.constant dense<0.000000e+00> : vector<8x16xf32>
    %9 = tpu.matmul %6, %8, %cst_10 {dimension_numbers = #tpu.dot_dimension_numbers<[1], [0], [0], [1], [0, 0, 1, 1], [], []>} : vector<8x16xbf16>, vector<16x16xbf16>, vector<8x16xf32> -> vector<8x16xf32>
    %10 = arith.addf %4, %9 : vector<8x16xf32>
    %c0_11 = arith.constant 0 : index
    %c2 = arith.constant 2 : index
    %c0_12 = arith.constant 0 : index
    %11 = vector.load %arg2[%c0_11, %c2, %c0_12] : memref<1x20x16xbf16, #tpu.memory_space<vmem>>, vector<1x8x16xbf16>
    %12 = vector.shape_cast %11 : vector<1x8x16xbf16> to vector<8x16xbf16>
    %c2_13 = arith.constant 2 : index
    %c0_14 = arith.constant 0 : index
    %c0_15 = arith.constant 0 : index
    %13 = vector.load %arg3[%c2_13, %c0_14, %c0_15] : memref<9x16x16xbf16, #tpu.memory_space<vmem>>, vector<1x16x16xbf16>
    %14 = vector.shape_cast %13 : vector<1x16x16xbf16> to vector<16x16xbf16>
    %cst_16 = arith.constant dense<0.000000e+00> : vector<8x16xf32>
    %15 = tpu.matmul %12, %14, %cst_16 {dimension_numbers = #tpu.dot_dimension_numbers<[1], [0], [0], [1], [0, 0, 1, 1], [], []>} : vector<8x16xbf16>, vector<16x16xbf16>, vector<8x16xf32> -> vector<8x16xf32>
    %16 = arith.addf %10, %15 : vector<8x16xf32>
    %c0_17 = arith.constant 0 : index
    %c4 = arith.constant 4 : index
    %c0_18 = arith.constant 0 : index
    %17 = vector.load %arg2[%c0_17, %c4, %c0_18] : memref<1x20x16xbf16, #tpu.memory_space<vmem>>, vector<1x8x16xbf16>
    %18 = vector.shape_cast %17 : vector<1x8x16xbf16> to vector<8x16xbf16>
    %c3 = arith.constant 3 : index
    %c0_19 = arith.constant 0 : index
    %c0_20 = arith.constant 0 : index
    %19 = vector.load %arg3[%c3, %c0_19, %c0_20] : memref<9x16x16xbf16, #tpu.memory_space<vmem>>, vector<1x16x16xbf16>
    %20 = vector.shape_cast %19 : vector<1x16x16xbf16> to vector<16x16xbf16>
    %cst_21 = arith.constant dense<0.000000e+00> : vector<8x16xf32>
    %21 = tpu.matmul %18, %20, %cst_21 {dimension_numbers = #tpu.dot_dimension_numbers<[1], [0], [0], [1], [0, 0, 1, 1], [], []>} : vector<8x16xbf16>, vector<16x16xbf16>, vector<8x16xf32> -> vector<8x16xf32>
    %22 = arith.addf %16, %21 : vector<8x16xf32>
    %c0_22 = arith.constant 0 : index
    %c5 = arith.constant 5 : index
    %c0_23 = arith.constant 0 : index
    %23 = vector.load %arg2[%c0_22, %c5, %c0_23] : memref<1x20x16xbf16, #tpu.memory_space<vmem>>, vector<1x8x16xbf16>
    %24 = vector.shape_cast %23 : vector<1x8x16xbf16> to vector<8x16xbf16>
    %c4_24 = arith.constant 4 : index
    %c0_25 = arith.constant 0 : index
    %c0_26 = arith.constant 0 : index
    %25 = vector.load %arg3[%c4_24, %c0_25, %c0_26] : memref<9x16x16xbf16, #tpu.memory_space<vmem>>, vector<1x16x16xbf16>
    %26 = vector.shape_cast %25 : vector<1x16x16xbf16> to vector<16x16xbf16>
    %cst_27 = arith.constant dense<0.000000e+00> : vector<8x16xf32>
    %27 = tpu.matmul %24, %26, %cst_27 {dimension_numbers = #tpu.dot_dimension_numbers<[1], [0], [0], [1], [0, 0, 1, 1], [], []>} : vector<8x16xbf16>, vector<16x16xbf16>, vector<8x16xf32> -> vector<8x16xf32>
    %28 = arith.addf %22, %27 : vector<8x16xf32>
    %c0_28 = arith.constant 0 : index
    %c6 = arith.constant 6 : index
    %c0_29 = arith.constant 0 : index
    %29 = vector.load %arg2[%c0_28, %c6, %c0_29] : memref<1x20x16xbf16, #tpu.memory_space<vmem>>, vector<1x8x16xbf16>
    %30 = vector.shape_cast %29 : vector<1x8x16xbf16> to vector<8x16xbf16>
    %c5_30 = arith.constant 5 : index
    %c0_31 = arith.constant 0 : index
    %c0_32 = arith.constant 0 : index
    %31 = vector.load %arg3[%c5_30, %c0_31, %c0_32] : memref<9x16x16xbf16, #tpu.memory_space<vmem>>, vector<1x16x16xbf16>
    %32 = vector.shape_cast %31 : vector<1x16x16xbf16> to vector<16x16xbf16>
    %cst_33 = arith.constant dense<0.000000e+00> : vector<8x16xf32>
    %33 = tpu.matmul %30, %32, %cst_33 {dimension_numbers = #tpu.dot_dimension_numbers<[1], [0], [0], [1], [0, 0, 1, 1], [], []>} : vector<8x16xbf16>, vector<16x16xbf16>, vector<8x16xf32> -> vector<8x16xf32>
    %34 = arith.addf %28, %33 : vector<8x16xf32>
    %c0_34 = arith.constant 0 : index
    %c8 = arith.constant 8 : index
    %c0_35 = arith.constant 0 : index
    %35 = vector.load %arg2[%c0_34, %c8, %c0_35] : memref<1x20x16xbf16, #tpu.memory_space<vmem>>, vector<1x8x16xbf16>
    %36 = vector.shape_cast %35 : vector<1x8x16xbf16> to vector<8x16xbf16>
    %c6_36 = arith.constant 6 : index
    %c0_37 = arith.constant 0 : index
    %c0_38 = arith.constant 0 : index
    %37 = vector.load %arg3[%c6_36, %c0_37, %c0_38] : memref<9x16x16xbf16, #tpu.memory_space<vmem>>, vector<1x16x16xbf16>
    %38 = vector.shape_cast %37 : vector<1x16x16xbf16> to vector<16x16xbf16>
    %cst_39 = arith.constant dense<0.000000e+00> : vector<8x16xf32>
    %39 = tpu.matmul %36, %38, %cst_39 {dimension_numbers = #tpu.dot_dimension_numbers<[1], [0], [0], [1], [0, 0, 1, 1], [], []>} : vector<8x16xbf16>, vector<16x16xbf16>, vector<8x16xf32> -> vector<8x16xf32>
    %40 = arith.addf %34, %39 : vector<8x16xf32>
    %c0_40 = arith.constant 0 : index
    %c9 = arith.constant 9 : index
    %c0_41 = arith.constant 0 : index
    %41 = vector.load %arg2[%c0_40, %c9, %c0_41] : memref<1x20x16xbf16, #tpu.memory_space<vmem>>, vector<1x8x16xbf16>
    %42 = vector.shape_cast %41 : vector<1x8x16xbf16> to vector<8x16xbf16>
    %c7 = arith.constant 7 : index
    %c0_42 = arith.constant 0 : index
    %c0_43 = arith.constant 0 : index
    %43 = vector.load %arg3[%c7, %c0_42, %c0_43] : memref<9x16x16xbf16, #tpu.memory_space<vmem>>, vector<1x16x16xbf16>
    %44 = vector.shape_cast %43 : vector<1x16x16xbf16> to vector<16x16xbf16>
    %cst_44 = arith.constant dense<0.000000e+00> : vector<8x16xf32>
    %45 = tpu.matmul %42, %44, %cst_44 {dimension_numbers = #tpu.dot_dimension_numbers<[1], [0], [0], [1], [0, 0, 1, 1], [], []>} : vector<8x16xbf16>, vector<16x16xbf16>, vector<8x16xf32> -> vector<8x16xf32>
    %46 = arith.addf %40, %45 : vector<8x16xf32>
    %c0_45 = arith.constant 0 : index
    %c10 = arith.constant 10 : index
    %c0_46 = arith.constant 0 : index
    %47 = vector.load %arg2[%c0_45, %c10, %c0_46] : memref<1x20x16xbf16, #tpu.memory_space<vmem>>, vector<1x8x16xbf16>
    %48 = vector.shape_cast %47 : vector<1x8x16xbf16> to vector<8x16xbf16>
    %c8_47 = arith.constant 8 : index
    %c0_48 = arith.constant 0 : index
    %c0_49 = arith.constant 0 : index
    %49 = vector.load %arg3[%c8_47, %c0_48, %c0_49] : memref<9x16x16xbf16, #tpu.memory_space<vmem>>, vector<1x16x16xbf16>
    %50 = vector.shape_cast %49 : vector<1x16x16xbf16> to vector<16x16xbf16>
    %cst_50 = arith.constant dense<0.000000e+00> : vector<8x16xf32>
    %51 = tpu.matmul %48, %50, %cst_50 {dimension_numbers = #tpu.dot_dimension_numbers<[1], [0], [0], [1], [0, 0, 1, 1], [], []>} : vector<8x16xbf16>, vector<16x16xbf16>, vector<8x16xf32> -> vector<8x16xf32>
    %52 = arith.addf %46, %51 : vector<8x16xf32>
    %c0_51 = arith.constant 0 : index
    %c0_52 = arith.constant 0 : index
    %53 = vector.load %arg4[%c0_51, %c0_52] : memref<1x16xf32, #tpu.memory_space<vmem>>, vector<1x16xf32>
    %54 = vector.broadcast %53 : vector<1x16xf32> to vector<8x16xf32>
    %55 = arith.mulf %52, %54 : vector<8x16xf32>
    %c0_53 = arith.constant 0 : index
    %c0_54 = arith.constant 0 : index
    %56 = vector.load %arg5[%c0_53, %c0_54] : memref<1x16xf32, #tpu.memory_space<vmem>>, vector<1x16xf32>
    %57 = vector.broadcast %56 : vector<1x16xf32> to vector<8x16xf32>
    %58 = arith.addf %55, %57 : vector<8x16xf32>
    %cst_55 = arith.constant 0.000000e+00 : f32
    %59 = vector.broadcast %cst_55 : f32 to vector<8x16xf32>
    %60 = arith.maximumf %58, %59 : vector<8x16xf32>
    %61 = arith.truncf %60 : vector<8x16xf32> to vector<8x16xbf16>
    %c0_56 = arith.constant 0 : index
    %c0_57 = arith.constant 0 : index
    %c0_58 = arith.constant 0 : index
    %62 = vector.load %arg6[%c0_56, %c0_57, %c0_58] : memref<1x8x16xbf16, #tpu.memory_space<vmem>>, vector<1x8x16xbf16>
    %63 = vector.shape_cast %62 : vector<1x8x16xbf16> to vector<8x16xbf16>
    %64 = vector.shape_cast %61 : vector<8x16xbf16> to vector<1x8x16xbf16>
    tpu.vector_store %arg6[%c0_56, %c0_57, %c0_58], %64 {strides = array<i32>} : memref<1x8x16xbf16, #tpu.memory_space<vmem>>, vector<1x8x16xbf16>,
    return
  }
  func.func @transform_0(%arg0: i32, %arg1: i32) -> (i32, i32, i32) {
    %c0_i32 = arith.constant 0 : i32
    %c0_i32_0 = arith.constant 0 : i32
    %c0_i32_1 = arith.constant 0 : i32
    return %arg0, %c0_i32, %c0_i32_0 : i32, i32, i32
  }
  func.func @transform_1(%arg0: i32, %arg1: i32) -> (i32, i32, i32) {
    %c0_i32 = arith.constant 0 : i32
    %c0_i32_0 = arith.constant 0 : i32
    %c0_i32_1 = arith.constant 0 : i32
    return %c0_i32, %c0_i32_0, %arg1 : i32, i32, i32
  }
  func.func @transform_2(%arg0: i32, %arg1: i32) -> (i32, i32) {
    %c0_i32 = arith.constant 0 : i32
    %c0_i32_0 = arith.constant 0 : i32
    return %c0_i32, %arg1 : i32, i32
  }
  func.func @transform_3(%arg0: i32, %arg1: i32) -> (i32, i32) {
    %c0_i32 = arith.constant 0 : i32
    %c0_i32_0 = arith.constant 0 : i32
    return %c0_i32, %arg1 : i32, i32
  }
  func.func @transform_4(%arg0: i32, %arg1: i32) -> (i32, i32, i32) {
    %c0_i32 = arith.constant 0 : i32
    %c0_i32_0 = arith.constant 0 : i32
    return %arg0, %c0_i32, %arg1 : i32, i32, i32
  }
}

module attributes {stable_mosaic.version = 11 : i64} {
  func.func @_conv_taps_kernel(%arg0: i32, %arg1: i32, %arg2: memref<1x12x16xbf16, #tpu.memory_space<vmem>>, %arg3: memref<9x16x32xbf16, #tpu.memory_space<vmem>>, %arg4: memref<1x32xf32, #tpu.memory_space<vmem>>, %arg5: memref<1x32xf32, #tpu.memory_space<vmem>>, %arg6: memref<1x3x32xbf16, #tpu.memory_space<vmem>>) attributes {dimension_semantics = [#tpu.dimension_semantics<parallel>, #tpu.dimension_semantics<parallel>], iteration_bounds = array<i64: 2, 1>, scalar_prefetch = 0 : i64, scratch_operands = 0 : i64, tpu.core_type = #tpu.core_type<tc>, window_params = [{transform_indices = @transform_0, window_bounds = array<i64: 1, 12, 16>}, {transform_indices = @transform_1, window_bounds = array<i64: 9, 16, 32>}, {transform_indices = @transform_2, window_bounds = array<i64: 1, 32>}, {transform_indices = @transform_3, window_bounds = array<i64: 1, 32>}, {transform_indices = @transform_4, window_bounds = array<i64: 1, 3, 32>}]} {
    %c0 = arith.constant 0 : index
    %c0_0 = arith.constant 0 : index
    %c0_1 = arith.constant 0 : index
    %0 = vector.load %arg2[%c0, %c0_0, %c0_1] : memref<1x12x16xbf16, #tpu.memory_space<vmem>>, vector<1x3x16xbf16>
    %1 = vector.shape_cast %0 : vector<1x3x16xbf16> to vector<3x16xbf16>
    %c0_2 = arith.constant 0 : index
    %c0_3 = arith.constant 0 : index
    %c0_4 = arith.constant 0 : index
    %2 = vector.load %arg3[%c0_2, %c0_3, %c0_4] : memref<9x16x32xbf16, #tpu.memory_space<vmem>>, vector<1x16x32xbf16>
    %3 = vector.shape_cast %2 : vector<1x16x32xbf16> to vector<16x32xbf16>
    %cst = arith.constant dense<0.000000e+00> : vector<3x32xf32>
    %4 = tpu.matmul %1, %3, %cst {dimension_numbers = #tpu.dot_dimension_numbers<[1], [0], [0], [1], [0, 0, 1, 1], [], []>} : vector<3x16xbf16>, vector<16x32xbf16>, vector<3x32xf32> -> vector<3x32xf32>
    %c0_5 = arith.constant 0 : index
    %c1 = arith.constant 1 : index
    %c0_6 = arith.constant 0 : index
    %5 = vector.load %arg2[%c0_5, %c1, %c0_6] : memref<1x12x16xbf16, #tpu.memory_space<vmem>>, vector<1x3x16xbf16>
    %6 = vector.shape_cast %5 : vector<1x3x16xbf16> to vector<3x16xbf16>
    %c1_7 = arith.constant 1 : index
    %c0_8 = arith.constant 0 : index
    %c0_9 = arith.constant 0 : index
    %7 = vector.load %arg3[%c1_7, %c0_8, %c0_9] : memref<9x16x32xbf16, #tpu.memory_space<vmem>>, vector<1x16x32xbf16>
    %8 = vector.shape_cast %7 : vector<1x16x32xbf16> to vector<16x32xbf16>
    %cst_10 = arith.constant dense<0.000000e+00> : vector<3x32xf32>
    %9 = tpu.matmul %6, %8, %cst_10 {dimension_numbers = #tpu.dot_dimension_numbers<[1], [0], [0], [1], [0, 0, 1, 1], [], []>} : vector<3x16xbf16>, vector<16x32xbf16>, vector<3x32xf32> -> vector<3x32xf32>
    %10 = arith.addf %4, %9 : vector<3x32xf32>
    %c0_11 = arith.constant 0 : index
    %c2 = arith.constant 2 : index
    %c0_12 = arith.constant 0 : index
    %11 = vector.load %arg2[%c0_11, %c2, %c0_12] : memref<1x12x16xbf16, #tpu.memory_space<vmem>>, vector<1x3x16xbf16>
    %12 = vector.shape_cast %11 : vector<1x3x16xbf16> to vector<3x16xbf16>
    %c2_13 = arith.constant 2 : index
    %c0_14 = arith.constant 0 : index
    %c0_15 = arith.constant 0 : index
    %13 = vector.load %arg3[%c2_13, %c0_14, %c0_15] : memref<9x16x32xbf16, #tpu.memory_space<vmem>>, vector<1x16x32xbf16>
    %14 = vector.shape_cast %13 : vector<1x16x32xbf16> to vector<16x32xbf16>
    %cst_16 = arith.constant dense<0.000000e+00> : vector<3x32xf32>
    %15 = tpu.matmul %12, %14, %cst_16 {dimension_numbers = #tpu.dot_dimension_numbers<[1], [0], [0], [1], [0, 0, 1, 1], [], []>} : vector<3x16xbf16>, vector<16x32xbf16>, vector<3x32xf32> -> vector<3x32xf32>
    %16 = arith.addf %10, %15 : vector<3x32xf32>
    %c0_17 = arith.constant 0 : index
    %c3 = arith.constant 3 : index
    %c0_18 = arith.constant 0 : index
    %17 = vector.load %arg2[%c0_17, %c3, %c0_18] : memref<1x12x16xbf16, #tpu.memory_space<vmem>>, vector<1x3x16xbf16>
    %18 = vector.shape_cast %17 : vector<1x3x16xbf16> to vector<3x16xbf16>
    %c3_19 = arith.constant 3 : index
    %c0_20 = arith.constant 0 : index
    %c0_21 = arith.constant 0 : index
    %19 = vector.load %arg3[%c3_19, %c0_20, %c0_21] : memref<9x16x32xbf16, #tpu.memory_space<vmem>>, vector<1x16x32xbf16>
    %20 = vector.shape_cast %19 : vector<1x16x32xbf16> to vector<16x32xbf16>
    %cst_22 = arith.constant dense<0.000000e+00> : vector<3x32xf32>
    %21 = tpu.matmul %18, %20, %cst_22 {dimension_numbers = #tpu.dot_dimension_numbers<[1], [0], [0], [1], [0, 0, 1, 1], [], []>} : vector<3x16xbf16>, vector<16x32xbf16>, vector<3x32xf32> -> vector<3x32xf32>
    %22 = arith.addf %16, %21 : vector<3x32xf32>
    %c0_23 = arith.constant 0 : index
    %c4 = arith.constant 4 : index
    %c0_24 = arith.constant 0 : index
    %23 = vector.load %arg2[%c0_23, %c4, %c0_24] : memref<1x12x16xbf16, #tpu.memory_space<vmem>>, vector<1x3x16xbf16>
    %24 = vector.shape_cast %23 : vector<1x3x16xbf16> to vector<3x16xbf16>
    %c4_25 = arith.constant 4 : index
    %c0_26 = arith.constant 0 : index
    %c0_27 = arith.constant 0 : index
    %25 = vector.load %arg3[%c4_25, %c0_26, %c0_27] : memref<9x16x32xbf16, #tpu.memory_space<vmem>>, vector<1x16x32xbf16>
    %26 = vector.shape_cast %25 : vector<1x16x32xbf16> to vector<16x32xbf16>
    %cst_28 = arith.constant dense<0.000000e+00> : vector<3x32xf32>
    %27 = tpu.matmul %24, %26, %cst_28 {dimension_numbers = #tpu.dot_dimension_numbers<[1], [0], [0], [1], [0, 0, 1, 1], [], []>} : vector<3x16xbf16>, vector<16x32xbf16>, vector<3x32xf32> -> vector<3x32xf32>
    %28 = arith.addf %22, %27 : vector<3x32xf32>
    %c0_29 = arith.constant 0 : index
    %c5 = arith.constant 5 : index
    %c0_30 = arith.constant 0 : index
    %29 = vector.load %arg2[%c0_29, %c5, %c0_30] : memref<1x12x16xbf16, #tpu.memory_space<vmem>>, vector<1x3x16xbf16>
    %30 = vector.shape_cast %29 : vector<1x3x16xbf16> to vector<3x16xbf16>
    %c5_31 = arith.constant 5 : index
    %c0_32 = arith.constant 0 : index
    %c0_33 = arith.constant 0 : index
    %31 = vector.load %arg3[%c5_31, %c0_32, %c0_33] : memref<9x16x32xbf16, #tpu.memory_space<vmem>>, vector<1x16x32xbf16>
    %32 = vector.shape_cast %31 : vector<1x16x32xbf16> to vector<16x32xbf16>
    %cst_34 = arith.constant dense<0.000000e+00> : vector<3x32xf32>
    %33 = tpu.matmul %30, %32, %cst_34 {dimension_numbers = #tpu.dot_dimension_numbers<[1], [0], [0], [1], [0, 0, 1, 1], [], []>} : vector<3x16xbf16>, vector<16x32xbf16>, vector<3x32xf32> -> vector<3x32xf32>
    %34 = arith.addf %28, %33 : vector<3x32xf32>
    %c0_35 = arith.constant 0 : index
    %c6 = arith.constant 6 : index
    %c0_36 = arith.constant 0 : index
    %35 = vector.load %arg2[%c0_35, %c6, %c0_36] : memref<1x12x16xbf16, #tpu.memory_space<vmem>>, vector<1x3x16xbf16>
    %36 = vector.shape_cast %35 : vector<1x3x16xbf16> to vector<3x16xbf16>
    %c6_37 = arith.constant 6 : index
    %c0_38 = arith.constant 0 : index
    %c0_39 = arith.constant 0 : index
    %37 = vector.load %arg3[%c6_37, %c0_38, %c0_39] : memref<9x16x32xbf16, #tpu.memory_space<vmem>>, vector<1x16x32xbf16>
    %38 = vector.shape_cast %37 : vector<1x16x32xbf16> to vector<16x32xbf16>
    %cst_40 = arith.constant dense<0.000000e+00> : vector<3x32xf32>
    %39 = tpu.matmul %36, %38, %cst_40 {dimension_numbers = #tpu.dot_dimension_numbers<[1], [0], [0], [1], [0, 0, 1, 1], [], []>} : vector<3x16xbf16>, vector<16x32xbf16>, vector<3x32xf32> -> vector<3x32xf32>
    %40 = arith.addf %34, %39 : vector<3x32xf32>
    %c0_41 = arith.constant 0 : index
    %c7 = arith.constant 7 : index
    %c0_42 = arith.constant 0 : index
    %41 = vector.load %arg2[%c0_41, %c7, %c0_42] : memref<1x12x16xbf16, #tpu.memory_space<vmem>>, vector<1x3x16xbf16>
    %42 = vector.shape_cast %41 : vector<1x3x16xbf16> to vector<3x16xbf16>
    %c7_43 = arith.constant 7 : index
    %c0_44 = arith.constant 0 : index
    %c0_45 = arith.constant 0 : index
    %43 = vector.load %arg3[%c7_43, %c0_44, %c0_45] : memref<9x16x32xbf16, #tpu.memory_space<vmem>>, vector<1x16x32xbf16>
    %44 = vector.shape_cast %43 : vector<1x16x32xbf16> to vector<16x32xbf16>
    %cst_46 = arith.constant dense<0.000000e+00> : vector<3x32xf32>
    %45 = tpu.matmul %42, %44, %cst_46 {dimension_numbers = #tpu.dot_dimension_numbers<[1], [0], [0], [1], [0, 0, 1, 1], [], []>} : vector<3x16xbf16>, vector<16x32xbf16>, vector<3x32xf32> -> vector<3x32xf32>
    %46 = arith.addf %40, %45 : vector<3x32xf32>
    %c0_47 = arith.constant 0 : index
    %c8 = arith.constant 8 : index
    %c0_48 = arith.constant 0 : index
    %47 = vector.load %arg2[%c0_47, %c8, %c0_48] : memref<1x12x16xbf16, #tpu.memory_space<vmem>>, vector<1x3x16xbf16>
    %48 = vector.shape_cast %47 : vector<1x3x16xbf16> to vector<3x16xbf16>
    %c8_49 = arith.constant 8 : index
    %c0_50 = arith.constant 0 : index
    %c0_51 = arith.constant 0 : index
    %49 = vector.load %arg3[%c8_49, %c0_50, %c0_51] : memref<9x16x32xbf16, #tpu.memory_space<vmem>>, vector<1x16x32xbf16>
    %50 = vector.shape_cast %49 : vector<1x16x32xbf16> to vector<16x32xbf16>
    %cst_52 = arith.constant dense<0.000000e+00> : vector<3x32xf32>
    %51 = tpu.matmul %48, %50, %cst_52 {dimension_numbers = #tpu.dot_dimension_numbers<[1], [0], [0], [1], [0, 0, 1, 1], [], []>} : vector<3x16xbf16>, vector<16x32xbf16>, vector<3x32xf32> -> vector<3x32xf32>
    %52 = arith.addf %46, %51 : vector<3x32xf32>
    %c0_53 = arith.constant 0 : index
    %c0_54 = arith.constant 0 : index
    %53 = vector.load %arg4[%c0_53, %c0_54] : memref<1x32xf32, #tpu.memory_space<vmem>>, vector<1x32xf32>
    %54 = vector.broadcast %53 : vector<1x32xf32> to vector<3x32xf32>
    %55 = arith.mulf %52, %54 : vector<3x32xf32>
    %c0_55 = arith.constant 0 : index
    %c0_56 = arith.constant 0 : index
    %56 = vector.load %arg5[%c0_55, %c0_56] : memref<1x32xf32, #tpu.memory_space<vmem>>, vector<1x32xf32>
    %57 = vector.broadcast %56 : vector<1x32xf32> to vector<3x32xf32>
    %58 = arith.addf %55, %57 : vector<3x32xf32>
    %cst_57 = arith.constant 0.000000e+00 : f32
    %59 = vector.broadcast %cst_57 : f32 to vector<3x32xf32>
    %60 = arith.maximumf %58, %59 : vector<3x32xf32>
    %61 = arith.truncf %60 : vector<3x32xf32> to vector<3x32xbf16>
    %c0_58 = arith.constant 0 : index
    %c0_59 = arith.constant 0 : index
    %c0_60 = arith.constant 0 : index
    %62 = vector.load %arg6[%c0_58, %c0_59, %c0_60] : memref<1x3x32xbf16, #tpu.memory_space<vmem>>, vector<1x3x32xbf16>
    %63 = vector.shape_cast %62 : vector<1x3x32xbf16> to vector<3x32xbf16>
    %64 = vector.shape_cast %61 : vector<3x32xbf16> to vector<1x3x32xbf16>
    tpu.vector_store %arg6[%c0_58, %c0_59, %c0_60], %64 {strides = array<i32>} : memref<1x3x32xbf16, #tpu.memory_space<vmem>>, vector<1x3x32xbf16>,
    return
  }
  func.func @transform_0(%arg0: i32, %arg1: i32) -> (i32, i32, i32) {
    %c0_i32 = arith.constant 0 : i32
    %c0_i32_0 = arith.constant 0 : i32
    %c0_i32_1 = arith.constant 0 : i32
    return %arg0, %c0_i32, %c0_i32_0 : i32, i32, i32
  }
  func.func @transform_1(%arg0: i32, %arg1: i32) -> (i32, i32, i32) {
    %c0_i32 = arith.constant 0 : i32
    %c0_i32_0 = arith.constant 0 : i32
    %c0_i32_1 = arith.constant 0 : i32
    return %c0_i32, %c0_i32_0, %arg1 : i32, i32, i32
  }
  func.func @transform_2(%arg0: i32, %arg1: i32) -> (i32, i32) {
    %c0_i32 = arith.constant 0 : i32
    %c0_i32_0 = arith.constant 0 : i32
    return %c0_i32, %arg1 : i32, i32
  }
  func.func @transform_3(%arg0: i32, %arg1: i32) -> (i32, i32) {
    %c0_i32 = arith.constant 0 : i32
    %c0_i32_0 = arith.constant 0 : i32
    return %c0_i32, %arg1 : i32, i32
  }
  func.func @transform_4(%arg0: i32, %arg1: i32) -> (i32, i32, i32) {
    %c0_i32 = arith.constant 0 : i32
    %c0_i32_0 = arith.constant 0 : i32
    return %arg0, %c0_i32, %arg1 : i32, i32, i32
  }
}

module attributes {stable_mosaic.version = 11 : i64} {
  func.func @_conv_taps_kernel(%arg0: i32, %arg1: i32, %arg2: memref<1x1x32xbf16, #tpu.memory_space<vmem>>, %arg3: memref<1x32x10xbf16, #tpu.memory_space<vmem>>, %arg4: memref<1x10xf32, #tpu.memory_space<vmem>>, %arg5: memref<1x10xf32, #tpu.memory_space<vmem>>, %arg6: memref<1x1x10xbf16, #tpu.memory_space<vmem>>) attributes {dimension_semantics = [#tpu.dimension_semantics<parallel>, #tpu.dimension_semantics<parallel>], iteration_bounds = array<i64: 2, 1>, scalar_prefetch = 0 : i64, scratch_operands = 0 : i64, tpu.core_type = #tpu.core_type<tc>, window_params = [{transform_indices = @transform_0, window_bounds = array<i64: 1, 1, 32>}, {transform_indices = @transform_1, window_bounds = array<i64: 1, 32, 10>}, {transform_indices = @transform_2, window_bounds = array<i64: 1, 10>}, {transform_indices = @transform_3, window_bounds = array<i64: 1, 10>}, {transform_indices = @transform_4, window_bounds = array<i64: 1, 1, 10>}]} {
    %c0 = arith.constant 0 : index
    %c0_0 = arith.constant 0 : index
    %c0_1 = arith.constant 0 : index
    %0 = vector.load %arg2[%c0, %c0_0, %c0_1] : memref<1x1x32xbf16, #tpu.memory_space<vmem>>, vector<1x1x32xbf16>
    %1 = vector.shape_cast %0 : vector<1x1x32xbf16> to vector<1x32xbf16>
    %c0_2 = arith.constant 0 : index
    %c0_3 = arith.constant 0 : index
    %c0_4 = arith.constant 0 : index
    %2 = vector.load %arg3[%c0_2, %c0_3, %c0_4] : memref<1x32x10xbf16, #tpu.memory_space<vmem>>, vector<1x32x10xbf16>
    %3 = vector.shape_cast %2 : vector<1x32x10xbf16> to vector<32x10xbf16>
    %cst = arith.constant dense<0.000000e+00> : vector<1x10xf32>
    %4 = tpu.matmul %1, %3, %cst {dimension_numbers = #tpu.dot_dimension_numbers<[1], [0], [0], [1], [0, 0, 1, 1], [], []>} : vector<1x32xbf16>, vector<32x10xbf16>, vector<1x10xf32> -> vector<1x10xf32>
    %c0_5 = arith.constant 0 : index
    %c0_6 = arith.constant 0 : index
    %5 = vector.load %arg4[%c0_5, %c0_6] : memref<1x10xf32, #tpu.memory_space<vmem>>, vector<1x10xf32>
    %6 = arith.mulf %4, %5 : vector<1x10xf32>
    %c0_7 = arith.constant 0 : index
    %c0_8 = arith.constant 0 : index
    %7 = vector.load %arg5[%c0_7, %c0_8] : memref<1x10xf32, #tpu.memory_space<vmem>>, vector<1x10xf32>
    %8 = arith.addf %6, %7 : vector<1x10xf32>
    %cst_9 = arith.constant 0.000000e+00 : f32
    %9 = vector.broadcast %cst_9 : f32 to vector<1x10xf32>
    %10 = arith.maximumf %8, %9 : vector<1x10xf32>
    %11 = arith.truncf %10 : vector<1x10xf32> to vector<1x10xbf16>
    %c0_10 = arith.constant 0 : index
    %c0_11 = arith.constant 0 : index
    %c0_12 = arith.constant 0 : index
    %12 = vector.load %arg6[%c0_10, %c0_11, %c0_12] : memref<1x1x10xbf16, #tpu.memory_space<vmem>>, vector<1x1x10xbf16>
    %13 = vector.shape_cast %12 : vector<1x1x10xbf16> to vector<1x10xbf16>
    %14 = vector.shape_cast %11 : vector<1x10xbf16> to vector<1x1x10xbf16>
    tpu.vector_store %arg6[%c0_10, %c0_11, %c0_12], %14 {strides = array<i32>} : memref<1x1x10xbf16, #tpu.memory_space<vmem>>, vector<1x1x10xbf16>,
    return
  }
  func.func @transform_0(%arg0: i32, %arg1: i32) -> (i32, i32, i32) {
    %c0_i32 = arith.constant 0 : i32
    %c0_i32_0 = arith.constant 0 : i32
    %c0_i32_1 = arith.constant 0 : i32
    return %arg0, %c0_i32, %c0_i32_0 : i32, i32, i32
  }
  func.func @transform_1(%arg0: i32, %arg1: i32) -> (i32, i32, i32) {
    %c0_i32 = arith.constant 0 : i32
    %c0_i32_0 = arith.constant 0 : i32
    %c0_i32_1 = arith.constant 0 : i32
    return %c0_i32, %c0_i32_0, %arg1 : i32, i32, i32
  }
  func.func @transform_2(%arg0: i32, %arg1: i32) -> (i32, i32) {
    %c0_i32 = arith.constant 0 : i32
    %c0_i32_0 = arith.constant 0 : i32
    return %c0_i32, %arg1 : i32, i32
  }
  func.func @transform_3(%arg0: i32, %arg1: i32) -> (i32, i32) {
    %c0_i32 = arith.constant 0 : i32
    %c0_i32_0 = arith.constant 0 : i32
    return %c0_i32, %arg1 : i32, i32
  }
  func.func @transform_4(%arg0: i32, %arg1: i32) -> (i32, i32, i32) {
    %c0_i32 = arith.constant 0 : i32
    %c0_i32_0 = arith.constant 0 : i32
    return %arg0, %c0_i32, %arg1 : i32, i32, i32
  }
}

module attributes {stable_mosaic.version = 11 : i64} {
  func.func @_linear_softmax_kernel(%arg0: i32, %arg1: memref<8x10xf32, #tpu.memory_space<vmem>>, %arg2: memref<10x128xf32, #tpu.memory_space<vmem>>, %arg3: memref<1x128xf32, #tpu.memory_space<vmem>>, %arg4: memref<8x128xf32, #tpu.memory_space<vmem>>) attributes {dimension_semantics = [#tpu.dimension_semantics<arbitrary>], iteration_bounds = array<i64: 1>, scalar_prefetch = 0 : i64, scratch_operands = 0 : i64, tpu.core_type = #tpu.core_type<tc>, window_params = [{pipeline_mode = #tpu.pipeline_mode<synchronous>, transform_indices = @transform_0, window_bounds = array<i64: 8, 10>}, {pipeline_mode = #tpu.pipeline_mode<synchronous>, transform_indices = @transform_1, window_bounds = array<i64: 10, 128>}, {pipeline_mode = #tpu.pipeline_mode<synchronous>, transform_indices = @transform_2, window_bounds = array<i64: 1, 128>}, {pipeline_mode = #tpu.pipeline_mode<synchronous>, transform_indices = @transform_3, window_bounds = array<i64: 8, 128>}]} {
    %c0 = arith.constant 0 : index
    %c0_0 = arith.constant 0 : index
    %0 = vector.load %arg1[%c0, %c0_0] : memref<8x10xf32, #tpu.memory_space<vmem>>, vector<8x10xf32>
    %c0_1 = arith.constant 0 : index
    %c0_2 = arith.constant 0 : index
    %1 = vector.load %arg2[%c0_1, %c0_2] : memref<10x128xf32, #tpu.memory_space<vmem>>, vector<10x128xf32>
    %cst = arith.constant dense<0.000000e+00> : vector<8x128xf32>
    %2 = tpu.matmul %0, %1, %cst {dimension_numbers = #tpu.dot_dimension_numbers<[1], [0], [0], [1], [0, 0, 1, 1], [], []>} : vector<8x10xf32>, vector<10x128xf32>, vector<8x128xf32> -> vector<8x128xf32>
    %c0_3 = arith.constant 0 : index
    %c0_4 = arith.constant 0 : index
    %3 = vector.load %arg3[%c0_3, %c0_4] : memref<1x128xf32, #tpu.memory_space<vmem>>, vector<1x128xf32>
    %4 = vector.broadcast %3 : vector<1x128xf32> to vector<8x128xf32>
    %5 = arith.addf %2, %4 : vector<8x128xf32>
    %6 = tpu.iota {dimensions = array<i32: 1>} : vector<8x128xi32>
    %c10_i32 = arith.constant 10 : i32
    %7 = vector.broadcast %c10_i32 : i32 to vector<8x128xi32>
    %8 = arith.cmpi slt, %6, %7 : vector<8x128xi32>
    %cst_5 = arith.constant 0xFF800000 : f32
    %9 = vector.broadcast %cst_5 : f32 to vector<8x128xf32>
    %10 = arith.select %8, %5, %9 : vector<8x128xi1>, vector<8x128xf32>
    %cst_6 = arith.constant dense<0xFF800000> : vector<8xf32>
    %11 = vector.multi_reduction <maximumf>, %10, %cst_6 [1] : vector<8x128xf32> to vector<8xf32>
    %12 = vector.shape_cast %11 : vector<8xf32> to vector<8x1xf32>
    %13 = vector.broadcast %12 : vector<8x1xf32> to vector<8x128xf32>
    %14 = arith.subf %10, %13 : vector<8x128xf32>
    %15 = math.exp %14 : vector<8x128xf32>
    %cst_7 = arith.constant 0.000000e+00 : f32
    %16 = vector.broadcast %cst_7 : f32 to vector<8x128xf32>
    %17 = arith.select %8, %15, %16 : vector<8x128xi1>, vector<8x128xf32>
    %cst_8 = arith.constant dense<0.000000e+00> : vector<8xf32>
    %18 = vector.multi_reduction <add>, %17, %cst_8 [1] : vector<8x128xf32> to vector<8xf32>
    %19 = vector.shape_cast %18 : vector<8xf32> to vector<8x1xf32>
    %20 = tpu.reciprocal %19 : vector<8x1xf32> -> vector<8x1xf32>
    %21 = vector.broadcast %20 : vector<8x1xf32> to vector<8x128xf32>
    %22 = arith.mulf %17, %21 : vector<8x128xf32>
    %c0_9 = arith.constant 0 : index
    %c0_10 = arith.constant 0 : index
    %23 = vector.load %arg4[%c0_9, %c0_10] : memref<8x128xf32, #tpu.memory_space<vmem>>, vector<8x128xf32>
    tpu.vector_store %arg4[%c0_9, %c0_10], %22 {strides = array<i32>} : memref<8x128xf32, #tpu.memory_space<vmem>>, vector<8x128xf32>,
    return
  }
  func.func @transform_0(%arg0: i32) -> (i32, i32) {
    %c0_i32 = arith.constant 0 : i32
    %c0_i32_0 = arith.constant 0 : i32
    %c0_i32_1 = arith.constant 0 : i32
    return %c0_i32, %c0_i32_0 : i32, i32
  }
  func.func @transform_1(%arg0: i32) -> (i32, i32) {
    %c0_i32 = arith.constant 0 : i32
    %c0_i32_0 = arith.constant 0 : i32
    %c0_i32_1 = arith.constant 0 : i32
    return %c0_i32, %c0_i32_0 : i32, i32
  }
  func.func @transform_2(%arg0: i32) -> (i32, i32) {
    %c0_i32 = arith.constant 0 : i32
    %c0_i32_0 = arith.constant 0 : i32
    %c0_i32_1 = arith.constant 0 : i32
    return %c0_i32, %c0_i32_0 : i32, i32
  }
  func.func @transform_3(%arg0: i32) -> (i32, i32) {
    %c0_i32 = arith.constant 0 : i32
    %c0_i32_0 = arith.constant 0 : i32
    %c0_i32_1 = arith.constant 0 : i32
    return %c0_i32, %c0_i32_0 : i32, i32
  }
}

module attributes {stable_mosaic.version = 11 : i64} {
  func.func @_conv_taps_kernel(%arg0: i32, %arg1: i32, %arg2: memref<1x12x32xbf16, #tpu.memory_space<vmem>>, %arg3: memref<9x32x32xbf16, #tpu.memory_space<vmem>>, %arg4: memref<1x32xf32, #tpu.memory_space<vmem>>, %arg5: memref<1x32xf32, #tpu.memory_space<vmem>>, %arg6: memref<1x3x32xbf16, #tpu.memory_space<vmem>>) attributes {dimension_semantics = [#tpu.dimension_semantics<parallel>, #tpu.dimension_semantics<parallel>], iteration_bounds = array<i64: 2, 1>, scalar_prefetch = 0 : i64, scratch_operands = 0 : i64, tpu.core_type = #tpu.core_type<tc>, window_params = [{transform_indices = @transform_0, window_bounds = array<i64: 1, 12, 32>}, {transform_indices = @transform_1, window_bounds = array<i64: 9, 32, 32>}, {transform_indices = @transform_2, window_bounds = array<i64: 1, 32>}, {transform_indices = @transform_3, window_bounds = array<i64: 1, 32>}, {transform_indices = @transform_4, window_bounds = array<i64: 1, 3, 32>}]} {
    %c0 = arith.constant 0 : index
    %c0_0 = arith.constant 0 : index
    %c0_1 = arith.constant 0 : index
    %0 = vector.load %arg2[%c0, %c0_0, %c0_1] : memref<1x12x32xbf16, #tpu.memory_space<vmem>>, vector<1x3x32xbf16>
    %1 = vector.shape_cast %0 : vector<1x3x32xbf16> to vector<3x32xbf16>
    %c0_2 = arith.constant 0 : index
    %c0_3 = arith.constant 0 : index
    %c0_4 = arith.constant 0 : index
    %2 = vector.load %arg3[%c0_2, %c0_3, %c0_4] : memref<9x32x32xbf16, #tpu.memory_space<vmem>>, vector<1x32x32xbf16>
    %3 = vector.shape_cast %2 : vector<1x32x32xbf16> to vector<32x32xbf16>
    %cst = arith.constant dense<0.000000e+00> : vector<3x32xf32>
    %4 = tpu.matmul %1, %3, %cst {dimension_numbers = #tpu.dot_dimension_numbers<[1], [0], [0], [1], [0, 0, 1, 1], [], []>} : vector<3x32xbf16>, vector<32x32xbf16>, vector<3x32xf32> -> vector<3x32xf32>
    %c0_5 = arith.constant 0 : index
    %c1 = arith.constant 1 : index
    %c0_6 = arith.constant 0 : index
    %5 = vector.load %arg2[%c0_5, %c1, %c0_6] : memref<1x12x32xbf16, #tpu.memory_space<vmem>>, vector<1x3x32xbf16>
    %6 = vector.shape_cast %5 : vector<1x3x32xbf16> to vector<3x32xbf16>
    %c1_7 = arith.constant 1 : index
    %c0_8 = arith.constant 0 : index
    %c0_9 = arith.constant 0 : index
    %7 = vector.load %arg3[%c1_7, %c0_8, %c0_9] : memref<9x32x32xbf16, #tpu.memory_space<vmem>>, vector<1x32x32xbf16>
    %8 = vector.shape_cast %7 : vector<1x32x32xbf16> to vector<32x32xbf16>
    %cst_10 = arith.constant dense<0.000000e+00> : vector<3x32xf32>
    %9 = tpu.matmul %6, %8, %cst_10 {dimension_numbers = #tpu.dot_dimension_numbers<[1], [0], [0], [1], [0, 0, 1, 1], [], []>} : vector<3x32xbf16>, vector<32x32xbf16>, vector<3x32xf32> -> vector<3x32xf32>
    %10 = arith.addf %4, %9 : vector<3x32xf32>
    %c0_11 = arith.constant 0 : index
    %c2 = arith.constant 2 : index
    %c0_12 = arith.constant 0 : index
    %11 = vector.load %arg2[%c0_11, %c2, %c0_12] : memref<1x12x32xbf16, #tpu.memory_space<vmem>>, vector<1x3x32xbf16>
    %12 = vector.shape_cast %11 : vector<1x3x32xbf16> to vector<3x32xbf16>
    %c2_13 = arith.constant 2 : index
    %c0_14 = arith.constant 0 : index
    %c0_15 = arith.constant 0 : index
    %13 = vector.load %arg3[%c2_13, %c0_14, %c0_15] : memref<9x32x32xbf16, #tpu.memory_space<vmem>>, vector<1x32x32xbf16>
    %14 = vector.shape_cast %13 : vector<1x32x32xbf16> to vector<32x32xbf16>
    %cst_16 = arith.constant dense<0.000000e+00> : vector<3x32xf32>
    %15 = tpu.matmul %12, %14, %cst_16 {dimension_numbers = #tpu.dot_dimension_numbers<[1], [0], [0], [1], [0, 0, 1, 1], [], []>} : vector<3x32xbf16>, vector<32x32xbf16>, vector<3x32xf32> -> vector<3x32xf32>
    %16 = arith.addf %10, %15 : vector<3x32xf32>
    %c0_17 = arith.constant 0 : index
    %c3 = arith.constant 3 : index
    %c0_18 = arith.constant 0 : index
    %17 = vector.load %arg2[%c0_17, %c3, %c0_18] : memref<1x12x32xbf16, #tpu.memory_space<vmem>>, vector<1x3x32xbf16>
    %18 = vector.shape_cast %17 : vector<1x3x32xbf16> to vector<3x32xbf16>
    %c3_19 = arith.constant 3 : index
    %c0_20 = arith.constant 0 : index
    %c0_21 = arith.constant 0 : index
    %19 = vector.load %arg3[%c3_19, %c0_20, %c0_21] : memref<9x32x32xbf16, #tpu.memory_space<vmem>>, vector<1x32x32xbf16>
    %20 = vector.shape_cast %19 : vector<1x32x32xbf16> to vector<32x32xbf16>
    %cst_22 = arith.constant dense<0.000000e+00> : vector<3x32xf32>
    %21 = tpu.matmul %18, %20, %cst_22 {dimension_numbers = #tpu.dot_dimension_numbers<[1], [0], [0], [1], [0, 0, 1, 1], [], []>} : vector<3x32xbf16>, vector<32x32xbf16>, vector<3x32xf32> -> vector<3x32xf32>
    %22 = arith.addf %16, %21 : vector<3x32xf32>
    %c0_23 = arith.constant 0 : index
    %c4 = arith.constant 4 : index
    %c0_24 = arith.constant 0 : index
    %23 = vector.load %arg2[%c0_23, %c4, %c0_24] : memref<1x12x32xbf16, #tpu.memory_space<vmem>>, vector<1x3x32xbf16>
    %24 = vector.shape_cast %23 : vector<1x3x32xbf16> to vector<3x32xbf16>
    %c4_25 = arith.constant 4 : index
    %c0_26 = arith.constant 0 : index
    %c0_27 = arith.constant 0 : index
    %25 = vector.load %arg3[%c4_25, %c0_26, %c0_27] : memref<9x32x32xbf16, #tpu.memory_space<vmem>>, vector<1x32x32xbf16>
    %26 = vector.shape_cast %25 : vector<1x32x32xbf16> to vector<32x32xbf16>
    %cst_28 = arith.constant dense<0.000000e+00> : vector<3x32xf32>
    %27 = tpu.matmul %24, %26, %cst_28 {dimension_numbers = #tpu.dot_dimension_numbers<[1], [0], [0], [1], [0, 0, 1, 1], [], []>} : vector<3x32xbf16>, vector<32x32xbf16>, vector<3x32xf32> -> vector<3x32xf32>
    %28 = arith.addf %22, %27 : vector<3x32xf32>
    %c0_29 = arith.constant 0 : index
    %c5 = arith.constant 5 : index
    %c0_30 = arith.constant 0 : index
    %29 = vector.load %arg2[%c0_29, %c5, %c0_30] : memref<1x12x32xbf16, #tpu.memory_space<vmem>>, vector<1x3x32xbf16>
    %30 = vector.shape_cast %29 : vector<1x3x32xbf16> to vector<3x32xbf16>
    %c5_31 = arith.constant 5 : index
    %c0_32 = arith.constant 0 : index
    %c0_33 = arith.constant 0 : index
    %31 = vector.load %arg3[%c5_31, %c0_32, %c0_33] : memref<9x32x32xbf16, #tpu.memory_space<vmem>>, vector<1x32x32xbf16>
    %32 = vector.shape_cast %31 : vector<1x32x32xbf16> to vector<32x32xbf16>
    %cst_34 = arith.constant dense<0.000000e+00> : vector<3x32xf32>
    %33 = tpu.matmul %30, %32, %cst_34 {dimension_numbers = #tpu.dot_dimension_numbers<[1], [0], [0], [1], [0, 0, 1, 1], [], []>} : vector<3x32xbf16>, vector<32x32xbf16>, vector<3x32xf32> -> vector<3x32xf32>
    %34 = arith.addf %28, %33 : vector<3x32xf32>
    %c0_35 = arith.constant 0 : index
    %c6 = arith.constant 6 : index
    %c0_36 = arith.constant 0 : index
    %35 = vector.load %arg2[%c0_35, %c6, %c0_36] : memref<1x12x32xbf16, #tpu.memory_space<vmem>>, vector<1x3x32xbf16>
    %36 = vector.shape_cast %35 : vector<1x3x32xbf16> to vector<3x32xbf16>
    %c6_37 = arith.constant 6 : index
    %c0_38 = arith.constant 0 : index
    %c0_39 = arith.constant 0 : index
    %37 = vector.load %arg3[%c6_37, %c0_38, %c0_39] : memref<9x32x32xbf16, #tpu.memory_space<vmem>>, vector<1x32x32xbf16>
    %38 = vector.shape_cast %37 : vector<1x32x32xbf16> to vector<32x32xbf16>
    %cst_40 = arith.constant dense<0.000000e+00> : vector<3x32xf32>
    %39 = tpu.matmul %36, %38, %cst_40 {dimension_numbers = #tpu.dot_dimension_numbers<[1], [0], [0], [1], [0, 0, 1, 1], [], []>} : vector<3x32xbf16>, vector<32x32xbf16>, vector<3x32xf32> -> vector<3x32xf32>
    %40 = arith.addf %34, %39 : vector<3x32xf32>
    %c0_41 = arith.constant 0 : index
    %c7 = arith.constant 7 : index
    %c0_42 = arith.constant 0 : index
    %41 = vector.load %arg2[%c0_41, %c7, %c0_42] : memref<1x12x32xbf16, #tpu.memory_space<vmem>>, vector<1x3x32xbf16>
    %42 = vector.shape_cast %41 : vector<1x3x32xbf16> to vector<3x32xbf16>
    %c7_43 = arith.constant 7 : index
    %c0_44 = arith.constant 0 : index
    %c0_45 = arith.constant 0 : index
    %43 = vector.load %arg3[%c7_43, %c0_44, %c0_45] : memref<9x32x32xbf16, #tpu.memory_space<vmem>>, vector<1x32x32xbf16>
    %44 = vector.shape_cast %43 : vector<1x32x32xbf16> to vector<32x32xbf16>
    %cst_46 = arith.constant dense<0.000000e+00> : vector<3x32xf32>
    %45 = tpu.matmul %42, %44, %cst_46 {dimension_numbers = #tpu.dot_dimension_numbers<[1], [0], [0], [1], [0, 0, 1, 1], [], []>} : vector<3x32xbf16>, vector<32x32xbf16>, vector<3x32xf32> -> vector<3x32xf32>
    %46 = arith.addf %40, %45 : vector<3x32xf32>
    %c0_47 = arith.constant 0 : index
    %c8 = arith.constant 8 : index
    %c0_48 = arith.constant 0 : index
    %47 = vector.load %arg2[%c0_47, %c8, %c0_48] : memref<1x12x32xbf16, #tpu.memory_space<vmem>>, vector<1x3x32xbf16>
    %48 = vector.shape_cast %47 : vector<1x3x32xbf16> to vector<3x32xbf16>
    %c8_49 = arith.constant 8 : index
    %c0_50 = arith.constant 0 : index
    %c0_51 = arith.constant 0 : index
    %49 = vector.load %arg3[%c8_49, %c0_50, %c0_51] : memref<9x32x32xbf16, #tpu.memory_space<vmem>>, vector<1x32x32xbf16>
    %50 = vector.shape_cast %49 : vector<1x32x32xbf16> to vector<32x32xbf16>
    %cst_52 = arith.constant dense<0.000000e+00> : vector<3x32xf32>
    %51 = tpu.matmul %48, %50, %cst_52 {dimension_numbers = #tpu.dot_dimension_numbers<[1], [0], [0], [1], [0, 0, 1, 1], [], []>} : vector<3x32xbf16>, vector<32x32xbf16>, vector<3x32xf32> -> vector<3x32xf32>
    %52 = arith.addf %46, %51 : vector<3x32xf32>
    %c0_53 = arith.constant 0 : index
    %c0_54 = arith.constant 0 : index
    %53 = vector.load %arg4[%c0_53, %c0_54] : memref<1x32xf32, #tpu.memory_space<vmem>>, vector<1x32xf32>
    %54 = vector.broadcast %53 : vector<1x32xf32> to vector<3x32xf32>
    %55 = arith.mulf %52, %54 : vector<3x32xf32>
    %c0_55 = arith.constant 0 : index
    %c0_56 = arith.constant 0 : index
    %56 = vector.load %arg5[%c0_55, %c0_56] : memref<1x32xf32, #tpu.memory_space<vmem>>, vector<1x32xf32>
    %57 = vector.broadcast %56 : vector<1x32xf32> to vector<3x32xf32>
    %58 = arith.addf %55, %57 : vector<3x32xf32>
    %cst_57 = arith.constant 0.000000e+00 : f32
    %59 = vector.broadcast %cst_57 : f32 to vector<3x32xf32>
    %60 = arith.maximumf %58, %59 : vector<3x32xf32>
    %61 = arith.truncf %60 : vector<3x32xf32> to vector<3x32xbf16>
    %c0_58 = arith.constant 0 : index
    %c0_59 = arith.constant 0 : index
    %c0_60 = arith.constant 0 : index
    %62 = vector.load %arg6[%c0_58, %c0_59, %c0_60] : memref<1x3x32xbf16, #tpu.memory_space<vmem>>, vector<1x3x32xbf16>
    %63 = vector.shape_cast %62 : vector<1x3x32xbf16> to vector<3x32xbf16>
    %64 = vector.shape_cast %61 : vector<3x32xbf16> to vector<1x3x32xbf16>
    tpu.vector_store %arg6[%c0_58, %c0_59, %c0_60], %64 {strides = array<i32>} : memref<1x3x32xbf16, #tpu.memory_space<vmem>>, vector<1x3x32xbf16>,
    return
  }
  func.func @transform_0(%arg0: i32, %arg1: i32) -> (i32, i32, i32) {
    %c0_i32 = arith.constant 0 : i32
    %c0_i32_0 = arith.constant 0 : i32
    %c0_i32_1 = arith.constant 0 : i32
    return %arg0, %c0_i32, %c0_i32_0 : i32, i32, i32
  }
  func.func @transform_1(%arg0: i32, %arg1: i32) -> (i32, i32, i32) {
    %c0_i32 = arith.constant 0 : i32
    %c0_i32_0 = arith.constant 0 : i32
    %c0_i32_1 = arith.constant 0 : i32
    return %c0_i32, %c0_i32_0, %arg1 : i32, i32, i32
  }
  func.func @transform_2(%arg0: i32, %arg1: i32) -> (i32, i32) {
    %c0_i32 = arith.constant 0 : i32
    %c0_i32_0 = arith.constant 0 : i32
    return %c0_i32, %arg1 : i32, i32
  }
  func.func @transform_3(%arg0: i32, %arg1: i32) -> (i32, i32) {
    %c0_i32 = arith.constant 0 : i32
    %c0_i32_0 = arith.constant 0 : i32
    return %c0_i32, %arg1 : i32, i32
  }
  func.func @transform_4(%arg0: i32, %arg1: i32) -> (i32, i32, i32) {
    %c0_i32 = arith.constant 0 : i32
    %c0_i32_0 = arith.constant 0 : i32
    return %arg0, %c0_i32, %arg1 : i32, i32, i32
  }
}

</mosaic_0001>

<bundles_post_ra>
// kernel: acdnet_forward.14
= control target key start
LH: loop header
LB: loop body
LE: loop exit
PB: predicated region body
PF: predicated region fallthrough
CT: control target
= control target key end

     0   :  { %s1396_s15 = smov 0   ;;  %s1647_s0 = inlined_call_operand.vmem [shape: f32[2,82,8], index: 0, kind: input, shape index: {}]   ;;  %s1648_s1 = inlined_call_operand.vmem [shape: f32[5,4,16], index: 1, kind: input, shape index: {}]   ;;  %s1649_s2 = inlined_call_operand.vmem [shape: f32[1,16], index: 2, kind: input, shape index: {}]   ;;  %s1650_s3 = inlined_call_operand.vmem [shape: f32[1,16], index: 3, kind: input, shape index: {}]   ;;  %s1651_s4 = inlined_call_operand.vmem [shape: f32[2,80,16], index: 4, kind: output, shape index: {}]  }
   0x1 LB: > { %s1139_s16 = sadd.s32 4294967295, %s1368_s15   ;;  %p1143_p0 = scmp.ge.s32.totalorder %s1368_s15, 1  ;;  %s1368_s15 = sphi %s1396_s15, %s14_s15  }
   0x2   : > { %p162_p1 = scmp.lt.s32.totalorder %s1368_s15, 3 }
   0x4   : > { %p163_p2 = pnand %p1143_p0, %p162_p1 }
   0x5   : > { %p188_p3 = scmp.lt.s32.totalorder (!%p163_p2), %s1139_s16, 1  ;;  %s1370_s27 = smov (!%p163_p2), 124  }
   0x6   : > { %166 = sbr.rel (%p163_p2) target bundleno = 392 (0x188), region = 36 }
   0xb   : > { %v1146_v0 = vld [vmem:[%s1648_s1 + $0x4] sm:$0xf]  ;;  %vm262_vm0 = vcmask 1043456   ;;  %s1653_s16 = smov (!%p188_p3, %s1139_s16), 1  ;;  %v1169_v1 = vld [vmem:[%s1648_s1 + $0x8] sm:$0xf] }
   0xc   : > { %1264 = vmatprep.subr.msk.mxu0 %vm262_vm0, %v1146_v0  ;;  %1349 = vmatprep.subr.msk.mxu1 %vm262_vm0, %v1146_v0  ;;  %s1351_s21 = smul.u32 88, %s1653_s16  ;;  %v208_v2 = vld [vmem:[%s1648_s1] sm:$0xf]  ;;  %vm241_vm1 = vcmask 31744   ;;  %v1181_v27 = vld [vmem:[%s1648_s1 + $0xc] sm:$0xf] }
   0xd   : > { %1265 = vmatpush3.msk.msra.mxu0 %vm262_vm0, %v1146_v0  ;;  %1350 = vmatpush3.msk.msra.mxu1 %vm262_vm0, %v1146_v0  ;;  %v1193_v28 = vld [vmem:[%s1648_s1 + $0x10] sm:$0xf]  ;;  %s1352_s8 = smul.u32 80, %s1653_s16  ;;  %vm1073_vm2 = vcmask 130048  }
   0xe   : > { %1298 = vmatprep.subr.msk.mxu0 %vm262_vm0, %v1169_v1  ;;  %1281 = vmatprep.subr.msk.mxu1 %vm262_vm0, %v208_v2  ;;  %s1425_s26 = scalar_lea.vmem %s1647_s0, %s1351_s21 }
   0xf   : > { %v1428_v3 = vld [vmem:[%s1425_s26 + $0x30] sm:$0xff]  ;;  %v1431_v4 = vld [vmem:[%s1425_s26] sm:$0xff]  ;;  %v1438_v5 = vld [vmem:[%s1425_s26 + $0x38] sm:$0xff]  ;;  %s1598_s13 = scalar_lea.vmem %s1651_s4, %s1352_s8 }
  0x10   : > { %233 = vrot.lane.b32.xlu1 %v1428_v3, %s1370_s27  ;;  %221 = vrot.lane.b32.xlu0 %v1431_v4, %s1370_s27  ;;  %v1441_v6 = vld [vmem:[%s1425_s26 + $0x8] sm:$0xff]  ;;  %v200_v7 = vld [vmem:[%s1425_s26 + $0x10] sm:$0xff] }
  0x11   : > { %v1449_v8 = vld [vmem:[%s1425_s26 + $0x18] sm:$0xff]  ;;  %v1455_v9 = vld [vmem:[%s1425_s26 + $0x40] sm:$0xff]  ;;  %v1458_v10 = vld [vmem:[%s1425_s26 + $0x48] sm:$0xff] }
  0x12   : > { %v202_v11 = vld [vmem:[%s1425_s26 + $0x20] sm:$0xff]  ;;  %v203_v12 = vld [vmem:[%s1425_s26 + $0x28] sm:$0xff]  ;;  %v521_v15 = vld [vmem:[%s1425_s26 + $0x11] sm:$0xff] }
  0x13   : > { %v519_v13 = vld [vmem:[%s1425_s26 + $0x1] sm:$0xff]  ;;  %v520_v14 = vld [vmem:[%s1425_s26 + $0x9] sm:$0xff]  ;;  %v522_v16 = vld [vmem:[%s1425_s26 + $0x19] sm:$0xff] }
  0x14   : > { %235 = vrot.lane.b32.xlu1 %v1438_v5, %s1370_s27  ;;  %223 = vrot.lane.b32.xlu0 %v1441_v6, %s1370_s27  ;;  %v523_v17 = vld [vmem:[%s1425_s26 + $0x21] sm:$0xff]  ;;  %v524_v18 = vld [vmem:[%s1425_s26 + $0x29] sm:$0xff] }
  0x15   : > { %v525_v19 = vld [vmem:[%s1425_s26 + $0x31] sm:$0xff]  ;;  %v526_v20 = vld [vmem:[%s1425_s26 + $0x39] sm:$0xff]  ;;  %v527_v21 = vld [vmem:[%s1425_s26 + $0x41] sm:$0xff] }
  0x16   : > { %v528_v22 = vld [vmem:[%s1425_s26 + $0x49] sm:$0xff]  ;;  %v861_v43 = vld [vmem:[%s1425_s26 + $0x12] sm:$0xff]  ;;  %v862_v45 = vld [vmem:[%s1425_s26 + $0x1a] sm:$0xff] }
  0x17   : > { %v859_v39 = vld [vmem:[%s1425_s26 + $0x2] sm:$0xff]  ;;  %v860_v41 = vld [vmem:[%s1425_s26 + $0xa] sm:$0xff]  ;;  %v865_v50 = vld [vmem:[%s1425_s26 + $0x32] sm:$0xff] }
  0x18   : > { %225 = vrot.lane.b32.xlu0 %v200_v7, %s1370_s27  ;;  %227 = vrot.lane.b32.xlu1 %v1449_v8, %s1370_s27  ;;  %v863_v46 = vld [vmem:[%s1425_s26 + $0x22] sm:$0xff]  ;;  %v864_v48 = vld [vmem:[%s1425_s26 + $0x2a] sm:$0xff] }
  0x19   : > { %v866_v52 = vld [vmem:[%s1425_s26 + $0x3a] sm:$0xff]  ;;  %v867_v53 = vld [vmem:[%s1425_s26 + $0x42] sm:$0xff]  ;;  %v868_v54 = vld [vmem:[%s1425_s26 + $0x4a] sm:$0xff] }
  0x1c   : > { %237 = vrot.lane.b32.xlu0 %v1455_v9, %s1370_s27  ;;  %239 = vrot.lane.b32.xlu1 %v1458_v10, %s1370_s27 }
  0x20   : > { %229 = vrot.lane.b32.xlu0 %v202_v11, %s1370_s27  ;;  %231 = vrot.lane.b32.xlu1 %v203_v12, %s1370_s27 }
  0x24   : > { %691 = vrot.lane.b32.xlu0 %v519_v13, %s1370_s27  ;;  %693 = vrot.lane.b32.xlu1 %v520_v14, %s1370_s27 }
  0x28   : > { %695 = vrot.lane.b32.xlu0 %v521_v15, %s1370_s27  ;;  %697 = vrot.lane.b32.xlu1 %v522_v16, %s1370_s27 }
  0x2c   : > { %699 = vrot.lane.b32.xlu0 %v523_v17, %s1370_s27  ;;  %701 = vrot.lane.b32.xlu1 %v524_v18, %s1370_s27 }
  0x30   : > { %703 = vrot.lane.b32.xlu0 %v525_v19, %s1370_s27  ;;  %705 = vrot.lane.b32.xlu1 %v526_v20, %s1370_s27 }
  0x34   : > { %707 = vrot.lane.b32.xlu0 %v527_v21, %s1370_s27  ;;  %709 = vrot.lane.b32.xlu1 %v528_v22, %s1370_s27 }
  0x82   : > { %v234_v23 = vpop.permute.xlu1 %233  ;;  %v222_v24 = vpop.permute.xlu0 %221 }
  0x83   : > { %1266 = vmatprep.mubr.msk.f32.mxu0 %vm241_vm1, %v222_v24  ;;  %1275 = vmatprep.mubr.msk.f32.mxu1 %vm241_vm1, %v234_v23 }
  0x86   : > { %v236_v25 = vpop.permute.xlu1 %235  ;;  %v224_v26 = vpop.permute.xlu0 %223 }
  0x87   : > { %1267 = vmatmul.mubr.msk.f32.vlgmr.msra.gmra.mxu0 %vm241_vm1, %v224_v26  ;;  %1276 = vmatmul.mubr.msk.f32.vlgmr.msra.gmra.mxu1 %vm241_vm1, %v236_v25 }
  0x88   : > { %1299 = vmatpush3.msk.msra.mxu0 %vm262_vm0, %v1169_v1  ;;  %1282 = vmatpush3.msk.msra.mxu1 %vm262_vm0, %v208_v2 }
  0x89   : > { %1315 = vmatprep.subr.msk.mxu1 %vm262_vm0, %v1181_v27  ;;  %1332 = vmatprep.subr.msk.mxu0 %vm262_vm0, %v1193_v28 }
  0x8a   : > { %v226_v29 = vpop.permute.xlu0 %225  ;;  %v228_v30 = vpop.permute.xlu1 %227 }
  0x8b   : > { %1269 = vmatprep.mubr.msk.f32.mxu0 %vm241_vm1, %v226_v29 }
  0x8c   : > { %1270 = vmatmul.mubr.msk.f32.gmra.mxu0 %vm241_vm1, %v228_v30 }
  0x8e   : > { %v238_v31 = vpop.permute.xlu0 %237  ;;  %v240_v32 = vpop.permute.xlu1 %239 }
  0x8f   : > { %1278 = vmatprep.mubr.msk.f32.mxu1 %vm241_vm1, %v238_v31  ;;  %v1584_v31 = vld [vmem:[%s1649_s2] ss:$0 sm:$0xff] }
  0x90   : > { %1279 = vmatmul.mubr.msk.f32.gmra.mxu1 %vm241_vm1, %v240_v32 }
  0x91   : > { %1283 = vmatprep.mubr.msk.f32.mxu1 %vm241_vm1, %v1431_v4 }
  0x92   : > { %v230_v33 = vpop.permute.xlu0 %229  ;;  %v232_v34 = vpop.permute.xlu1 %231 }
  0x93   : > { %1272 = vmatprep.mubr.msk.f32.mxu0 %vm241_vm1, %v230_v33 }
  0x94   : > { %1273 = vmatmul.mubr.msk.f32.gmra.mxu0 %vm241_vm1, %v232_v34  ;;  %1284 = vmatmul.mubr.msk.f32.vlgmr.msra.gmra.mxu1 %vm241_vm1, %v1441_v6 }
  0x95   : > { %1316 = vmatpush3.msk.msra.mxu1 %vm262_vm0, %v1181_v27  ;;  %1286 = vmatprep.mubr.msk.f32.mxu1 %vm241_vm1, %v200_v7 }
  0x96   : > { %1300 = vmatprep.mubr.msk.f32.mxu0 %vm241_vm1, %v519_v13  ;;  %v692_v35 = vpop.permute.xlu0 %691  ;;  %v694_v36 = vpop.permute.xlu1 %693 }
  0x98   : > { %1287 = vmatmul.mubr.msk.f32.gmra.mxu1 %vm241_vm1, %v1449_v8  ;;  %1301 = vmatmul.mubr.msk.f32.vlgmr.msra.gmra.mxu0 %vm241_vm1, %v520_v14 }
  0x99   : > { %1333 = vmatpush3.msk.msra.mxu0 %vm262_vm0, %v1193_v28  ;;  %1289 = vmatprep.mubr.msk.f32.mxu1 %vm241_vm1, %v202_v11 }
  0x9a   : > { %1303 = vmatprep.mubr.msk.f32.mxu0 %vm241_vm1, %v521_v15  ;;  %v696_v37 = vpop.permute.xlu0 %695  ;;  %v698_v38 = vpop.permute.xlu1 %697 }
  0x9c   : > { %1290 = vmatmul.mubr.msk.f32.gmra.mxu1 %vm241_vm1, %v203_v12  ;;  %1304 = vmatmul.mubr.msk.f32.gmra.mxu0 %vm241_vm1, %v522_v16 }
  0x9d   : > { %1292 = vmatprep.mubr.msk.f32.mxu1 %vm241_vm1, %v1428_v3  ;;  %1306 = vmatprep.mubr.msk.f32.mxu0 %vm241_vm1, %v523_v17 }
  0x9e   : > { %v700_v40 = vpop.permute.xlu0 %699  ;;  %v702_v42 = vpop.permute.xlu1 %701 }
  0xa0   : > { %1293 = vmatmul.mubr.msk.f32.gmra.mxu1 %vm241_vm1, %v1438_v5  ;;  %1307 = vmatmul.mubr.msk.f32.gmra.mxu0 %vm241_vm1, %v524_v18 }
  0xa1   : > { %1295 = vmatprep.mubr.msk.f32.mxu1 %vm241_vm1, %v1455_v9  ;;  %1309 = vmatprep.mubr.msk.f32.mxu0 %vm241_vm1, %v525_v19 }
  0xa2   : > { %v704_v44 = vpop.permute.xlu0 %703  ;;  %v706_v47 = vpop.permute.xlu1 %705 }
  0xa4   : > { %1296 = vmatmul.mubr.msk.f32.gmra.mxu1 %vm241_vm1, %v1458_v10  ;;  %1310 = vmatmul.mubr.msk.f32.gmra.mxu0 %vm241_vm1, %v526_v20 }
  0xa5   : > { %1312 = vmatprep.mubr.msk.f32.mxu0 %vm241_vm1, %v527_v21  ;;  %1317 = vmatprep.mubr.msk.f32.mxu1 %vm241_vm1, %v692_v35 }
  0xa6   : > { %v708_v49 = vpop.permute.xlu0 %707  ;;  %v710_v51 = vpop.permute.xlu1 %709 }
  0xa8   : > { %1313 = vmatmul.mubr.msk.f32.gmra.mxu0 %vm241_vm1, %v528_v22  ;;  %1318 = vmatmul.mubr.msk.f32.vlgmr.msra.gmra.mxu1 %vm241_vm1, %v694_v36  ;;  %v1590_v36 = vld [vmem:[%s1650_s3] ss:$0 sm:$0xff] }
  0xa9   : > { %1320 = vmatprep.mubr.msk.f32.mxu1 %vm241_vm1, %v696_v37  ;;  %1334 = vmatprep.mubr.msk.f32.mxu0 %vm241_vm1, %v859_v39 }
  0xac   : > { %1321 = vmatmul.mubr.msk.f32.gmra.mxu1 %vm241_vm1, %v698_v38  ;;  %1335 = vmatmul.mubr.msk.f32.vlgmr.msra.gmra.mxu0 %vm241_vm1, %v860_v41 }
  0xad   : > { %1323 = vmatprep.mubr.msk.f32.mxu1 %vm241_vm1, %v700_v40  ;;  %1337 = vmatprep.mubr.msk.f32.mxu0 %vm241_vm1, %v861_v43 }
  0xb0   : > { %1324 = vmatmul.mubr.msk.f32.gmra.mxu1 %vm241_vm1, %v702_v42  ;;  %1338 = vmatmul.mubr.msk.f32.gmra.mxu0 %vm241_vm1, %v862_v45 }
  0xb1   : > { %1326 = vmatprep.mubr.msk.f32.mxu1 %vm241_vm1, %v704_v44  ;;  %1340 = vmatprep.mubr.msk.f32.mxu0 %vm241_vm1, %v863_v46 }
  0xb4   : > { %1327 = vmatmul.mubr.msk.f32.gmra.mxu1 %vm241_vm1, %v706_v47  ;;  %1341 = vmatmul.mubr.msk.f32.gmra.mxu0 %vm241_vm1, %v864_v48 }
  0xb5   : > { %1329 = vmatprep.mubr.msk.f32.mxu1 %vm241_vm1, %v708_v49  ;;  %1343 = vmatprep.mubr.msk.f32.mxu0 %vm241_vm1, %v865_v50 }
  0xb8   : > { %1330 = vmatmul.mubr.msk.f32.gmra.mxu1 %vm241_vm1, %v710_v51  ;;  %1344 = vmatmul.mubr.msk.f32.gmra.mxu0 %vm241_vm1, %v866_v52 }
  0xb9   : > { %1346 = vmatprep.mubr.msk.f32.mxu0 %vm241_vm1, %v867_v53 }
  0xbc   : > { %1347 = vmatmul.mubr.msk.f32.gmra.mxu0 %vm241_vm1, %v868_v54 }
 0x147   : > { %v1268_v55 = vpop.f32.mrf.mxu0  ;;  %v1277_v56 = vpop.f32.mrf.mxu1 }
 0x149   : > { %v332_v57 = vpop.f32.mrf.mxu0  ;;  %v1567_v58 = vpop.f32.mrf.mxu1 }
 0x14c   : > { %v1271_v59 = vpop.f32.mrf.mxu0 }
 0x14e   : > { %v342_v61 = vpop.f32.mrf.mxu0 }
 0x150   : > { %v1569_v60 = vpop.f32.mrf.mxu1 }
 0x152   : > { %v1571_v62 = vpop.f32.mrf.mxu1 }
 0x154   : > { %v1274_v63 = vpop.f32.mrf.mxu0  ;;  %v1285_v0 = vpop.f32.mrf.mxu1 }
 0x155   : > { %v476_v19 = vadd.f32 %v1285_v0, %v1268_v55 }
 0x156   : > { %v352_v1 = vpop.f32.mrf.mxu0  ;;  %v470_v2 = vpop.f32.mrf.mxu1 }
 0x157   : > { %v471_v22 = vadd.f32 %v470_v2, %v332_v57 }
 0x158   : > { %v1288_v3 = vpop.f32.mrf.mxu1  ;;  %v1302_v4 = vpop.f32.mrf.mxu0 }
 0x159   : > { %v680_v23 = vadd.f32 %v1302_v4, %v476_v19  ;;  %v486_v26 = vadd.f32 %v1288_v3, %v1271_v59 }
 0x15a   : > { %v480_v5 = vpop.f32.mrf.mxu1  ;;  %v630_v6 = vpop.f32.mrf.mxu0 }
 0x15b   : > { %v679_v27 = vadd.f32 %v630_v6, %v471_v22  ;;  %v481_v35 = vadd.f32 %v480_v5, %v342_v61 }
 0x15c   : > { %v1291_v7 = vpop.f32.mrf.mxu1  ;;  %v1305_v8 = vpop.f32.mrf.mxu0 }
 0x15d   : > { %v682_v32 = vadd.f32 %v1305_v8, %v486_v26  ;;  %v496_v39 = vadd.f32 %v1291_v7, %v1274_v63 }
 0x15e   : > { %v490_v9 = vpop.f32.mrf.mxu1  ;;  %v640_v10 = vpop.f32.mrf.mxu0 }
 0x15f   : > { %v491_v43 = vadd.f32 %v490_v9, %v352_v1  ;;  %v681_v44 = vadd.f32 %v640_v10, %v481_v35 }
 0x160   : > { %v1294_v11 = vpop.f32.mrf.mxu1  ;;  %v1308_v12 = vpop.f32.mrf.mxu0 }
 0x161   : > { %v684_v47 = vadd.f32 %v1308_v12, %v496_v39  ;;  %v506_v51 = vadd.f32 %v1294_v11, %v1277_v56 }
 0x162   : > { %v500_v13 = vpop.f32.mrf.mxu1  ;;  %v650_v14 = vpop.f32.mrf.mxu0 }
 0x163   : > { %v683_v52 = vadd.f32 %v650_v14, %v491_v43  ;;  %v501_v7 = vadd.f32 %v500_v13, %v1567_v58 }
 0x164   : > { %v1297_v15 = vpop.f32.mrf.mxu1  ;;  %v1311_v16 = vpop.f32.mrf.mxu0 }
 0x165   : > { %v686_v0 = vadd.f32 %v1311_v16, %v506_v51  ;;  %v516_v8 = vadd.f32 %v1297_v15, %v1569_v60 }
 0x166   : > { %v1573_v17 = vpop.f32.mrf.mxu1  ;;  %v1575_v18 = vpop.f32.mrf.mxu0 }
 0x167   : > { %v685_v22 = vadd.f32 %v1575_v18, %v501_v7 }
 0x168   : > { %v1577_v20 = vpop.f32.mrf.mxu0  ;;  %v1319_v21 = vpop.f32.mrf.mxu1 }
 0x169   : > { %v850_v28 = vadd.f32 %v1319_v21, %v680_v23  ;;  %v511_v21 = vadd.f32 %v1573_v17, %v1571_v62  ;;  %v688_v15 = vadd.f32 %v1577_v20, %v516_v8 }
 0x16a   : > { %v1579_v24 = vpop.f32.mrf.mxu0  ;;  %v800_v25 = vpop.f32.mrf.mxu1 }
 0x16b   : > { %v849_v33 = vadd.f32 %v800_v25, %v679_v27  ;;  %v687_v27 = vadd.f32 %v1579_v24, %v511_v21 }
 0x16c   : > { %v1322_v29 = vpop.f32.mrf.mxu1  ;;  %v1336_v30 = vpop.f32.mrf.mxu0 }
 0x16d   : > { %v1020_v34 = vadd.f32 %v1336_v30, %v850_v28  ;;  %v852_v40 = vadd.f32 %v1322_v29, %v682_v32 }
 0x16e   : > { %v810_v37 = vpop.f32.mrf.mxu1  ;;  %v970_v38 = vpop.f32.mrf.mxu0 }
 0x16f   : > { %v1037_v41 = vmul.f32 %v1584_v31, %v1020_v34  ;;  %v1019_v42 = vadd.f32 %v970_v38, %v849_v33  ;;  %v851_v53 = vadd.f32 %v810_v37, %v681_v44 }
 0x170   : > { %v1325_v45 = vpop.f32.mrf.mxu1  ;;  %v1339_v46 = vpop.f32.mrf.mxu0 }
 0x171   : > { %v1054_v48 = vadd.f32 %v1590_v36, %v1037_v41  ;;  %v1036_v49 = vmul.f32 %v1584_v31, %v1019_v42  ;;  %v1022_v50 = vadd.f32 %v1339_v46, %v852_v40  ;;  %v854_v61 = vadd.f32 %v1325_v45, %v684_v47 }
 0x172   : > { %v820_v54 = vpop.f32.mrf.mxu1  ;;  %v980_v55 = vpop.f32.mrf.mxu0 }
 0x173   : > { %v1064_v57 = vmax.f32 %v1054_v48, 0.0  ;;  %v1053_v59 = vadd.f32 %v1590_v36, %v1036_v49  ;;  %v1039_v63 = vmul.f32 %v1584_v31, %v1022_v50  ;;  %v1021_v56 = vadd.f32 %v980_v55, %v851_v53 }
 0x174   : > { %v1328_v1 = vpop.f32.mrf.mxu1  ;;  %v1342_v2 = vpop.f32.mrf.mxu0  ;;  %v853_v5 = vadd.f32 %v820_v54, %v683_v52 }
 0x175   : > { %1075 = vst.msk [vmem:[%s1598_s13 + $0x8] sm:$0xff] %vm1073_vm2, %v1064_v57  ;;  %v1063_v3 = vmax.f32 %v1053_v59, 0.0  ;;  %v1056_v4 = vadd.f32 %v1590_v36, %v1039_v63  ;;  %v1024_v6 = vadd.f32 %v1342_v2, %v854_v61  ;;  %v1038_v9 = vmul.f32 %v1584_v31, %v1021_v56 }
 0x176   : > { %v830_v10 = vpop.f32.mrf.mxu1  ;;  %v990_v11 = vpop.f32.mrf.mxu0  ;;  %v856_v14 = vadd.f32 %v1328_v1, %v686_v0 }
 0x177   : > { %1074 = vst.msk [vmem:[%s1598_s13] sm:$0xff] %vm1073_vm2, %v1063_v3  ;;  %v1066_v12 = vmax.f32 %v1056_v4, 0.0  ;;  %v1041_v16 = vmul.f32 %v1584_v31, %v1024_v6  ;;  %v1023_v19 = vadd.f32 %v990_v11, %v853_v5  ;;  %v1055_v58 = vadd.f32 %v1590_v36, %v1038_v9 }
 0x178   : > { %v1331_v13 = vpop.f32.mrf.mxu1  ;;  %v1345_v60 = vpop.f32.mrf.mxu0  ;;  %v855_v17 = vadd.f32 %v830_v10, %v685_v22 }
 0x179   : > { %1077 = vst.msk [vmem:[%s1598_s13 + $0x18] sm:$0xff] %vm1073_vm2, %v1066_v12  ;;  %v1058_v23 = vadd.f32 %v1590_v36, %v1041_v16  ;;  %v1040_v25 = vmul.f32 %v1584_v31, %v1023_v19  ;;  %v1026_v26 = vadd.f32 %v1345_v60, %v856_v14  ;;  %v1065_v62 = vmax.f32 %v1055_v58, 0.0 }
 0x17a   : > { %v840_v18 = vpop.f32.mrf.mxu1  ;;  %v1000_v28 = vpop.f32.mrf.mxu0  ;;  %v858_v32 = vadd.f32 %v1331_v13, %v688_v15 }
 0x17b   : > { %v1068_v29 = vmax.f32 %v1058_v23, 0.0  ;;  %v1057_v30 = vadd.f32 %v1590_v36, %v1040_v25  ;;  %v1043_v20 = vmul.f32 %v1584_v31, %v1026_v26  ;;  %1076 = vst.msk [vmem:[%s1598_s13 + $0x10] sm:$0xff] %vm1073_vm2, %v1065_v62  ;;  %v1025_v33 = vadd.f32 %v1000_v28, %v855_v17 }
 0x17c   : > { %v1348_v34 = vpop.f32.mrf.mxu0  ;;  %v857_v37 = vadd.f32 %v840_v18, %v687_v27 }
 0x17d   : > { %1079 = vst.msk [vmem:[%s1598_s13 + $0x28] sm:$0xff] %vm1073_vm2, %v1068_v29  ;;  %v1067_v35 = vmax.f32 %v1057_v30, 0.0  ;;  %v1060_v24 = vadd.f32 %v1590_v36, %v1043_v20  ;;  %v1028_v38 = vadd.f32 %v1348_v34, %v858_v32  ;;  %v1042_v39 = vmul.f32 %v1584_v31, %v1025_v33 }
 0x17e   : > { %v1010_v40 = vpop.f32.mrf.mxu0 }
 0x17f   : > { %1078 = vst.msk [vmem:[%s1598_s13 + $0x20] sm:$0xff] %vm1073_vm2, %v1067_v35  ;;  %v1070_v41 = vmax.f32 %v1060_v24, 0.0  ;;  %v1045_v42 = vmul.f32 %v1584_v31, %v1028_v38  ;;  %v1027_v43 = vadd.f32 %v1010_v40, %v857_v37  ;;  %v1059_v44 = vadd.f32 %v1590_v36, %v1042_v39 }
 0x181   : > { %1081 = vst.msk [vmem:[%s1598_s13 + $0x38] sm:$0xff] %vm1073_vm2, %v1070_v41  ;;  %v1062_v45 = vadd.f32 %v1590_v36, %v1045_v42  ;;  %v1044_v46 = vmul.f32 %v1584_v31, %v1027_v43  ;;  %v1069_v47 = vmax.f32 %v1059_v44, 0.0 }
 0x183   : > { %v1072_v48 = vmax.f32 %v1062_v45, 0.0  ;;  %v1061_v49 = vadd.f32 %v1590_v36, %v1044_v46  ;;  %1080 = vst.msk [vmem:[%s1598_s13 + $0x30] sm:$0xff] %vm1073_vm2, %v1069_v47 }
 0x185   : > { %1083 = vst.msk [vmem:[%s1598_s13 + $0x48] sm:$0xff] %vm1073_vm2, %v1072_v48  ;;  %v1071_v50 = vmax.f32 %v1061_v49, 0.0 }
 0x187   : > { %1082 = vst.msk [vmem:[%s1598_s13 + $0x40] sm:$0xff] %vm1073_vm2, %v1071_v50 }
 0x188 PF: > { %s14_s15 = sadd.s32 1, %s1368_s15  }
 0x189   : > { %p11_p4 = scmp.ge.s32.totalorder %s14_s15, 4  }
 0x18b   :  { %13 = sbr.rel (!%p11_p4) target bundleno = 1 (0x1), region = 70 }

// kernel: acdnet_forward.13
= control target key start
LH: loop header
LB: loop body
LE: loop exit
PB: predicated region body
PF: predicated region fallthrough
CT: control target
= control target key end

     0   :  { %s1832_s15 = smov 0   ;;  %s2967_s0 = inlined_call_operand.vmem [shape: f32[2,168,2], index: 0, kind: input, shape index: {}]   ;;  %s2968_s1 = inlined_call_operand.vmem [shape: f32[9,1,4], index: 1, kind: input, shape index: {}]   ;;  %s2969_s2 = inlined_call_operand.vmem [shape: f32[1,4], index: 2, kind: input, shape index: {}]   ;;  %s2970_s3 = inlined_call_operand.vmem [shape: f32[1,4], index: 3, kind: input, shape index: {}]   ;;  %s2971_s4 = inlined_call_operand.vmem [shape: f32[2,164,4], index: 4, kind: output, shape index: {}]  }
   0x1 LB: > { %s1747_s16 = sadd.s32 4294967295, %s1803_s15   ;;  %p1751_p0 = scmp.ge.s32.totalorder %s1803_s15, 1  ;;  %s1803_s15 = sphi %s1832_s15, %s14_s15  }
   0x2   : > { %p162_p1 = scmp.lt.s32.totalorder %s1803_s15, 3 }
   0x4   : > { %p163_p2 = pnand %p1751_p0, %p162_p1 }
   0x6   : > { %166 = sbr.rel (%p163_p2) target bundleno = 549 (0x225), region = 36 }
   0xb   : > { %p188_p3 = scmp.lt.s32.totalorder %s1747_s16, 1  ;;  %v2972_v0 = vmov 1   ;;  %v2974_v1 = vmov 0   ;;  %vm1669_vm0 = vcmask 31744   ;;  %vm1690_vm1 = vcmask 27648  }
   0xc   : > { %1788 = vset.pattern.permute.xlu0 %v2972_v0  ;;  %1786 = vset.pattern.permute.xlu1 %v2974_v1 }
   0xd   : > { %s3099_s16 = smov (!%p188_p3, %s1747_s16), 1 }
   0xe   : > { %s1775_s17 = smul.u32 168, %s3099_s16 }
  0x10   : > { %s1850_s20 = scalar_lea.vmem %s2967_s0, %s1775_s17  ;;  %s2779_s22 = scalar_lea.vmem %s2971_s4, %s1775_s17 }
  0x11   : > { %v200_v2 = vld [vmem:[%s1850_s20 + $0x10] sm:$0xff]  ;;  %v1854_v3 = vld [vmem:[%s1850_s20 + $0x8] sm:$0xff]  ;;  %v201_v4 = vld [vmem:[%s1850_s20 + $0x18] sm:$0xff] }
  0x12   : > { %232 = vperm.xlu1 %1786, %v200_v2   ;;  %359 = vperm.xlu0 %1788, %v1854_v3   ;;  %v1859_v5 = vld [vmem:[%s1850_s20 + $0x20] sm:$0xff]  ;;  %v203_v6 = vld [vmem:[%s1850_s20 + $0x28] sm:$0xff]  ;;  %v1864_v7 = vld [vmem:[%s1850_s20 + $0x30] sm:$0xff] }
  0x13   : > { %v205_v8 = vld [vmem:[%s1850_s20 + $0x38] sm:$0xff]  ;;  %v1869_v9 = vld [vmem:[%s1850_s20 + $0x40] sm:$0xff]  ;;  %v207_v10 = vld [vmem:[%s1850_s20 + $0x48] sm:$0xff] }
  0x14   : > { %v1874_v11 = vld [vmem:[%s1850_s20 + $0x50] sm:$0xff]  ;;  %v209_v12 = vld [vmem:[%s1850_s20 + $0x58] sm:$0xff]  ;;  %v1879_v13 = vld [vmem:[%s1850_s20 + $0x60] sm:$0xff] }
  0x15   : > { %v211_v14 = vld [vmem:[%s1850_s20 + $0x68] sm:$0xff]  ;;  %v1884_v15 = vld [vmem:[%s1850_s20 + $0x70] sm:$0xff]  ;;  %v213_v16 = vld [vmem:[%s1850_s20 + $0x78] sm:$0xff] }
  0x16   : > { %237 = vperm.xlu1 %1786, %v201_v4   ;;  %371 = vperm.xlu0 %1788, %v1859_v5   ;;  %v1889_v17 = vld [vmem:[%s1850_s20 + $0x80] sm:$0xff]  ;;  %v215_v18 = vld [vmem:[%s1850_s20 + $0x88] sm:$0xff]  ;;  %v1894_v19 = vld [vmem:[%s1850_s20 + $0x90] sm:$0xff] }
  0x17   : > { %v217_v20 = vld [vmem:[%s1850_s20 + $0x98] sm:$0xff]  ;;  %v1899_v21 = vld [vmem:[%s1850_s20 + $0xa0] sm:$0xf]  ;;  %v1903_v22 = vld [vmem:[%s1850_s20 + $0x9] sm:$0xff] }
  0x18   : > { %v1906_v23 = vld [vmem:[%s1850_s20] sm:$0xff]  ;;  %v1916_v25 = vld [vmem:[%s1850_s20 + $0x31] sm:$0xff]  ;;  %v491_v41 = vld [vmem:[%s1850_s20 + $0x29] sm:$0xff] }
  0x19   : > { %v1912_v24 = vld [vmem:[%s1850_s20 + $0x21] sm:$0xff]  ;;  %v1924_v27 = vld [vmem:[%s1850_s20 + $0x51] sm:$0xff]  ;;  %v489_v39 = vld [vmem:[%s1850_s20 + $0x19] sm:$0xff] }
  0x1a   : > { %247 = vperm.xlu1 %1786, %v203_v6   ;;  %379 = vperm.xlu0 %1788, %v1864_v7   ;;  %v1920_v26 = vld [vmem:[%s1850_s20 + $0x41] sm:$0xff]  ;;  %v1932_v29 = vld [vmem:[%s1850_s20 + $0x71] sm:$0xff]  ;;  %v493_v43 = vld [vmem:[%s1850_s20 + $0x39] sm:$0xff] }
  0x1b   : > { %v1928_v28 = vld [vmem:[%s1850_s20 + $0x61] sm:$0xff]  ;;  %v1940_v31 = vld [vmem:[%s1850_s20 + $0x91] sm:$0xff]  ;;  %v495_v45 = vld [vmem:[%s1850_s20 + $0x49] sm:$0xff] }
  0x1c   : > { %v1936_v30 = vld [vmem:[%s1850_s20 + $0x81] sm:$0xff]  ;;  %v1948_v33 = vld [vmem:[%s1850_s20 + $0xa] sm:$0xff]  ;;  %v1958_v36 = vld [vmem:[%s1850_s20 + $0x32] sm:$0xff] }
  0x1d   : > { %v1944_v32 = vld [vmem:[%s1850_s20 + $0xa1] sm:$0xf]  ;;  %v488_v37 = vld [vmem:[%s1850_s20 + $0x11] sm:$0xff]  ;;  %v497_v47 = vld [vmem:[%s1850_s20 + $0x59] sm:$0xff] }
  0x1e   : > { %257 = vperm.xlu1 %1786, %v205_v8   ;;  %387 = vperm.xlu0 %1788, %v1869_v9   ;;  %v1952_v34 = vld [vmem:[%s1850_s20 + $0x22] sm:$0xff]  ;;  %v1968_v40 = vld [vmem:[%s1850_s20 + $0x52] sm:$0xff] }
  0x1f   : > { %v486_v35 = vld [vmem:[%s1850_s20 + $0x1] sm:$0xff]  ;;  %v1978_v44 = vld [vmem:[%s1850_s20 + $0x72] sm:$0xff]  ;;  %v499_v49 = vld [vmem:[%s1850_s20 + $0x69] sm:$0xff] }
  0x20   : > { %v1963_v38 = vld [vmem:[%s1850_s20 + $0x42] sm:$0xff]  ;;  %v1988_v48 = vld [vmem:[%s1850_s20 + $0x92] sm:$0xff] }
  0x21   : > { %v1973_v42 = vld [vmem:[%s1850_s20 + $0x62] sm:$0xff]  ;;  %v501_v51 = vld [vmem:[%s1850_s20 + $0x79] sm:$0xff]  ;;  %v1998_v52 = vld [vmem:[%s1850_s20 + $0xb] sm:$0xff] }
  0x22   : > { %267 = vperm.xlu1 %1786, %v207_v10   ;;  %395 = vperm.xlu0 %1788, %v1874_v11   ;;  %v1983_v46 = vld [vmem:[%s1850_s20 + $0x82] sm:$0xff]  ;;  %v505_v57 = vld [vmem:[%s1850_s20 + $0x99] sm:$0xff] }
  0x23   : > { %v1993_v50 = vld [vmem:[%s1850_s20 + $0xa2] sm:$0xf]  ;;  %v503_v53 = vld [vmem:[%s1850_s20 + $0x89] sm:$0xff]  ;;  %v2012_v58 = vld [vmem:[%s1850_s20 + $0x33] sm:$0xff] }
  0x24   : > { %v2003_v54 = vld [vmem:[%s1850_s20 + $0x23] sm:$0xff] }
  0x25   : > { %v2020_v61 = vld [vmem:[%s1850_s20 + $0x43] sm:$0xff] }
  0x26   : > { %277 = vperm.xlu1 %1786, %v209_v12   ;;  %403 = vperm.xlu0 %1788, %v1879_v13  }
  0x2a   : > { %287 = vperm.xlu1 %1786, %v211_v14   ;;  %411 = vperm.xlu0 %1788, %v1884_v15  }
  0x2e   : > { %297 = vperm.xlu1 %1786, %v213_v16   ;;  %419 = vperm.xlu0 %1788, %v1889_v17  }
  0x32   : > { %307 = vperm.xlu1 %1786, %v215_v18   ;;  %427 = vperm.xlu0 %1788, %v1894_v19  }
  0x36   : > { %317 = vperm.xlu1 %1786, %v217_v20   ;;  %435 = vperm.xlu0 %1788, %v1899_v21  }
  0x3a   : > { %1787 = vset.pattern.permute.xlu1 %v2972_v0  ;;  %669 = vperm.xlu0 %1788, %v1903_v22  }
  0x3b   : > { %355 = vperm.xlu1 %1787, %v1906_v23  }
  0x3e   : > { %681 = vperm.xlu0 %1788, %v1912_v24  }
  0x3f   : > { %363 = vperm.xlu1 %1787, %v200_v2   ;;  %v2029_v2 = vld [vmem:[%s1850_s20 + $0x53] sm:$0xff] }
  0x42   : > { %689 = vperm.xlu0 %1788, %v1916_v25  }
  0x43   : > { %367 = vperm.xlu1 %1787, %v201_v4  }
  0x46   : > { %697 = vperm.xlu0 %1788, %v1920_v26  }
  0x47   : > { %375 = vperm.xlu1 %1787, %v203_v6  }
  0x4a   : > { %705 = vperm.xlu0 %1788, %v1924_v27  }
  0x4b   : > { %383 = vperm.xlu1 %1787, %v205_v8   ;;  %v2037_v8 = vld [vmem:[%s1850_s20 + $0x63] sm:$0xff] }
  0x4e   : > { %713 = vperm.xlu0 %1788, %v1928_v28  }
  0x4f   : > { %391 = vperm.xlu1 %1787, %v207_v10  }
  0x52   : > { %721 = vperm.xlu0 %1788, %v1932_v29  }
  0x53   : > { %399 = vperm.xlu1 %1787, %v209_v12  }
  0x56   : > { %729 = vperm.xlu0 %1788, %v1936_v30  }
  0x57   : > { %407 = vperm.xlu1 %1787, %v211_v14   ;;  %v2045_v14 = vld [vmem:[%s1850_s20 + $0x73] sm:$0xff] }
  0x5a   : > { %737 = vperm.xlu0 %1788, %v1940_v31  }
  0x5b   : > { %415 = vperm.xlu1 %1787, %v213_v16  }
  0x5e   : > { %745 = vperm.xlu0 %1788, %v1944_v32  }
  0x5f   : > { %423 = vperm.xlu1 %1787, %v215_v18  }
  0x62   : > { %979 = vperm.xlu0 %1788, %v1948_v33  }
  0x63   : > { %431 = vperm.xlu1 %1787, %v217_v20   ;;  %v2053_v20 = vld [vmem:[%s1850_s20 + $0x83] sm:$0xff] }
  0x66   : > { %991 = vperm.xlu0 %1788, %v1952_v34  }
  0x67   : > { %1789 = vset.pattern.permute.xlu1 %v2974_v1 }
  0x68   : > { %511 = vperm.xlu1 %1789, %v486_v35  }
  0x6a   : > { %999 = vperm.xlu0 %1788, %v1958_v36  }
  0x6c   : > { %521 = vperm.xlu1 %1789, %v488_v37  }
  0x6e   : > { %1007 = vperm.xlu0 %1788, %v1963_v38  }
  0x70   : > { %526 = vperm.xlu1 %1789, %v489_v39  }
  0x72   : > { %1015 = vperm.xlu0 %1788, %v1968_v40  }
  0x74   : > { %536 = vperm.xlu1 %1789, %v491_v41  }
  0x76   : > { %1023 = vperm.xlu0 %1788, %v1973_v42  }
  0x78   : > { %546 = vperm.xlu1 %1789, %v493_v43  }
  0x7a   : > { %1031 = vperm.xlu0 %1788, %v1978_v44  }
  0x7c   : > { %556 = vperm.xlu1 %1789, %v495_v45  }
  0x7e   : > { %1039 = vperm.xlu0 %1788, %v1983_v46  }
  0x80   : > { %566 = vperm.xlu1 %1789, %v497_v47  }
  0x82   : > { %1047 = vperm.xlu0 %1788, %v1988_v48  }
  0x84   : > { %576 = vperm.xlu1 %1789, %v499_v49  }
  0x86   : > { %1055 = vperm.xlu0 %1788, %v1993_v50  }
  0x88   : > { %586 = vperm.xlu1 %1789, %v501_v51  }
  0x8a   : > { %1289 = vperm.xlu0 %1788, %v1998_v52  }
  0x8c   : > { %596 = vperm.xlu1 %1789, %v503_v53  }
  0x8d   : > { %v2005_v55 = vpop.permute.xlu1 %232  ;;  %v2007_v56 = vpop.permute.xlu0 %359 }
  0x8e   : > { %2976 = vst [vmem:[#allocation2_spill] sm:$0xff] %v2005_v55  ;;  %1301 = vperm.xlu0 %1788, %v2003_v54  }
  0x90   : > { %606 = vperm.xlu1 %1789, %v505_v57  }
  0x91   : > { %v2014_v59 = vpop.permute.xlu1 %237  ;;  %v2016_v60 = vpop.permute.xlu0 %371 }
  0x92   : > { %2977 = vst [vmem:[#allocation3_spill] sm:$0xff] %v2014_v59  ;;  %1309 = vperm.xlu0 %1788, %v2012_v58   ;;  %v2983_v59 = vmov 0  }
  0x94   : > { %1790 = vset.pattern.permute.xlu1 %v2972_v0 }
  0x95   : > { %v2023_v62 = vpop.permute.xlu1 %247  ;;  %v2025_v63 = vpop.permute.xlu0 %379  ;;  %665 = vperm.xlu1 %1790, %v486_v35  }
  0x96   : > { %2978 = vst [vmem:[#allocation4_spill] sm:$0xff] %v2023_v62  ;;  %1317 = vperm.xlu0 %1788, %v2020_v61  }
  0x99   : > { %v2031_v4 = vpop.permute.xlu1 %257  ;;  %v2033_v6 = vpop.permute.xlu0 %387  ;;  %673 = vperm.xlu1 %1790, %v488_v37  }
  0x9a   : > { %2979 = vst [vmem:[#allocation5_spill] sm:$0xff] %v2031_v4  ;;  %1325 = vperm.xlu0 %1788, %v2029_v2  }
  0x9d   : > { %v2039_v10 = vpop.permute.xlu1 %267  ;;  %v2041_v12 = vpop.permute.xlu0 %395  ;;  %677 = vperm.xlu1 %1790, %v489_v39   ;;  %v2061_v39 = vld [vmem:[%s1850_s20 + $0x93] sm:$0xff] }
  0x9e   : > { %2980 = vst [vmem:[#allocation6_spill] sm:$0xff] %v2039_v10  ;;  %1333 = vperm.xlu0 %1788, %v2037_v8  }
  0xa1   : > { %v2047_v16 = vpop.permute.xlu1 %277  ;;  %v2049_v18 = vpop.permute.xlu0 %403  ;;  %685 = vperm.xlu1 %1790, %v491_v41   ;;  %v2069_v41 = vld [vmem:[%s1850_s20 + $0xa3] sm:$0xf] }
  0xa2   : > { %1341 = vperm.xlu0 %1788, %v2045_v14  }
  0xa5   : > { %v2055_v35 = vpop.permute.xlu1 %287  ;;  %v2057_v37 = vpop.permute.xlu0 %411  ;;  %693 = vperm.xlu1 %1790, %v493_v43  }
  0xa6   : > { %1349 = vperm.xlu0 %1788, %v2053_v20  }
  0xa9   : > { %v2063_v0 = vpop.permute.xlu1 %297  ;;  %v2065_v1 = vpop.permute.xlu0 %419  ;;  %701 = vperm.xlu1 %1790, %v495_v45  }
  0xaa   : > { %1357 = vperm.xlu0 %1788, %v2061_v39  }
  0xad   : > { %v2071_v10 = vpop.permute.xlu1 %307  ;;  %v2073_v4 = vpop.permute.xlu0 %427  ;;  %709 = vperm.xlu1 %1790, %v497_v47  }
  0xae   : > { %2981 = vst [vmem:[#allocation7_spill] sm:$0xff] %v2071_v10  ;;  %1365 = vperm.xlu0 %1788, %v2069_v41  }
  0xb1   : > { %v2076_v43 = vpop.permute.xlu1 %317  ;;  %v2078_v62 = vpop.permute.xlu0 %435  ;;  %717 = vperm.xlu1 %1790, %v499_v49  }
  0xb2   : > { %2982 = vst [vmem:[#allocation8_spill] sm:$0xff] %v2076_v43  ;;  %1795 = vset.pattern.permute.xlu0 %v2983_v59 }
  0xb3   : > { %222 = vperm.xlu0 %1795, %v1906_v23  }
  0xb5   : > { %v2082_v45 = vpop.permute.xlu0 %669  ;;  %725 = vperm.xlu1 %1790, %v501_v51   ;;  %v796_v51 = vld [vmem:[%s1850_s20 + $0x2] sm:$0xff] }
  0xb6   : > { %v2084_v55 = vpop.permute.xlu1 %355 }
  0xb7   : > { %2984 = vst [vmem:[#allocation9_spill] sm:$0xff] %v2084_v55  ;;  %227 = vperm.xlu0 %1795, %v1854_v3  }
  0xb9   : > { %v2087_v47 = vpop.permute.xlu0 %681  ;;  %733 = vperm.xlu1 %1790, %v503_v53  }
  0xba   : > { %2985 = vst [vmem:[#allocation10_spill] sm:$0xff] %v2087_v47  ;;  %v2089_v43 = vpop.permute.xlu1 %363  ;;  %v811_v47 = vld [vmem:[%s1850_s20 + $0x7a] sm:$0xff] }
  0xbb   : > { %2986 = vst [vmem:[#allocation11_spill] sm:$0xff] %v2089_v43  ;;  %242 = vperm.xlu0 %1795, %v1859_v5   ;;  %v798_v5 = vld [vmem:[%s1850_s20 + $0x12] sm:$0xff] }
  0xbd   : > { %v2092_v49 = vpop.permute.xlu0 %689  ;;  %741 = vperm.xlu1 %1790, %v505_v57  }
  0xbe   : > { %2987 = vst [vmem:[#allocation12_spill] sm:$0xff] %v2092_v49  ;;  %v2094_v23 = vpop.permute.xlu1 %367 }
  0xbf   : > { %2988 = vst [vmem:[#allocation13_spill] sm:$0xff] %v2094_v23  ;;  %252 = vperm.xlu0 %1795, %v1864_v7   ;;  %v799_v7 = vld [vmem:[%s1850_s20 + $0x1a] sm:$0xff] }
  0xc1   : > { %v2098_v55 = vpop.permute.xlu0 %697  ;;  %1791 = vset.pattern.permute.xlu1 %v2983_v59 }
  0xc2   : > { %2989 = vst [vmem:[#allocation14_spill] sm:$0xff] %v2098_v55  ;;  %821 = vperm.xlu1 %1791, %v796_v51   ;;  %v2101_v3 = vpop.permute.xlu1 %375 }
  0xc3   : > { %2990 = vst [vmem:[#allocation15_spill] sm:$0xff] %v2101_v3  ;;  %262 = vperm.xlu0 %1795, %v1869_v9   ;;  %v801_v9 = vld [vmem:[%s1850_s20 + $0x2a] sm:$0xff] }
  0xc5   : > { %v2105_v53 = vpop.permute.xlu0 %705 }
  0xc6   : > { %2991 = vst [vmem:[#allocation16_spill] sm:$0xff] %v2105_v53  ;;  %831 = vperm.xlu1 %1791, %v798_v5   ;;  %v2107_v57 = vpop.permute.xlu1 %383 }
  0xc7   : > { %2992 = vst [vmem:[#allocation17_spill] sm:$0xff] %v2107_v57  ;;  %272 = vperm.xlu0 %1795, %v1874_v11   ;;  %v803_v11 = vld [vmem:[%s1850_s20 + $0x3a] sm:$0xff] }
  0xc9   : > { %v2111_v23 = vpop.permute.xlu0 %713 }
  0xca   : > { %2993 = vst [vmem:[#allocation18_spill] sm:$0xff] %v2111_v23  ;;  %836 = vperm.xlu1 %1791, %v799_v7   ;;  %v2113_v43 = vpop.permute.xlu1 %391 }
  0xcb   : > { %2994 = vst [vmem:[#allocation19_spill] sm:$0xff] %v2113_v43  ;;  %282 = vperm.xlu0 %1795, %v1879_v13   ;;  %v805_v13 = vld [vmem:[%s1850_s20 + $0x4a] sm:$0xff] }
  0xcd   : > { %v2117_v3 = vpop.permute.xlu0 %721 }
  0xce   : > { %2995 = vst [vmem:[#allocation20_spill] sm:$0xff] %v2117_v3  ;;  %846 = vperm.xlu1 %1791, %v801_v9   ;;  %v2119_v53 = vpop.permute.xlu1 %399 }
  0xcf   : > { %292 = vperm.xlu0 %1795, %v1884_v15   ;;  %v807_v15 = vld [vmem:[%s1850_s20 + $0x5a] sm:$0xff] }
  0xd1   : > { %v2123_v57 = vpop.permute.xlu0 %729 }
  0xd2   : > { %2996 = vst [vmem:[#allocation21_spill] sm:$0xff] %v2123_v57  ;;  %856 = vperm.xlu1 %1791, %v803_v11   ;;  %v2125_v23 = vpop.permute.xlu1 %407 }
  0xd3   : > { %302 = vperm.xlu0 %1795, %v1889_v17   ;;  %v809_v17 = vld [vmem:[%s1850_s20 + $0x6a] sm:$0xff] }
  0xd5   : > { %v2129_v43 = vpop.permute.xlu0 %737 }
  0xd6   : > { %2997 = vst [vmem:[#allocation22_spill] sm:$0xff] %v2129_v43  ;;  %866 = vperm.xlu1 %1791, %v805_v13   ;;  %v2131_v3 = vpop.permute.xlu1 %415 }
  0xd7   : > { %312 = vperm.xlu0 %1795, %v1894_v19  }
  0xd9   : > { %v2135_v55 = vpop.permute.xlu0 %745 }
  0xda   : > { %2998 = vst [vmem:[#allocation23_spill] sm:$0xff] %v2135_v55  ;;  %876 = vperm.xlu1 %1791, %v807_v15   ;;  %v2137_v57 = vpop.permute.xlu1 %423 }
  0xdb   : > { %2999 = vst [vmem:[#allocation24_spill] sm:$0xff] %v2137_v57  ;;  %322 = vperm.xlu0 %1795, %v1899_v21   ;;  %v813_v57 = vld [vmem:[%s1850_s20 + $0x8a] sm:$0xff] }
  0xdd   : > { %v2141_v49 = vpop.permute.xlu0 %979 }
  0xde   : > { %3000 = vst [vmem:[#allocation25_spill] sm:$0xff] %v2141_v49  ;;  %886 = vperm.xlu1 %1791, %v809_v17   ;;  %v2143_v43 = vpop.permute.xlu1 %431  ;;  %v815_v49 = vld [vmem:[%s1850_s20 + $0x9a] sm:$0xff] }
  0xdf   : > { %3001 = vst [vmem:[#allocation26_spill] sm:$0xff] %v2143_v43  ;;  %516 = vperm.xlu0 %1795, %v1903_v22  }
  0xe1   : > { %v2147_v19 = vpop.permute.xlu0 %991 }
  0xe2   : > { %3002 = vst [vmem:[#allocation27_spill] sm:$0xff] %v2147_v19  ;;  %896 = vperm.xlu1 %1791, %v811_v47  }
  0xe3   : > { %531 = vperm.xlu0 %1795, %v1912_v24   ;;  %v2150_v55 = vpop.permute.xlu1 %511  ;;  %v3008_v24 = vmov 1  }
  0xe5   : > { %v2153_v10 = vpop.permute.xlu0 %999 }
  0xe6   : > { %3003 = vst [vmem:[#allocation28_spill] sm:$0xff] %v2153_v10  ;;  %906 = vperm.xlu1 %1791, %v813_v57  }
  0xe7   : > { %541 = vperm.xlu0 %1795, %v1916_v25   ;;  %v2156_v21 = vpop.permute.xlu1 %521 }
  0xe8   : > { %3004 = vst [vmem:[#allocation29_spill] sm:$0xff] %v2156_v21 }
  0xe9   : > { %v2159_v43 = vpop.permute.xlu0 %1007 }
  0xea   : > { %3005 = vst [vmem:[#allocation30_spill] sm:$0xff] %v2159_v43  ;;  %916 = vperm.xlu1 %1791, %v815_v49  }
  0xeb   : > { %551 = vperm.xlu0 %1795, %v1920_v26   ;;  %v2162_v22 = vpop.permute.xlu1 %526 }
  0xec   : > { %3006 = vst [vmem:[#allocation31_spill] sm:$0xff] %v2162_v22 }
  0xed   : > { %v2164_v19 = vpop.permute.xlu0 %1015 }
  0xee   : > { %3007 = vst [vmem:[#allocation32_spill] sm:$0xff] %v2164_v19  ;;  %1792 = vset.pattern.permute.xlu1 %v3008_v24 }
  0xef   : > { %561 = vperm.xlu0 %1795, %v1924_v27   ;;  %975 = vperm.xlu1 %1792, %v796_v51   ;;  %v2168_v10 = vpop.permute.xlu1 %536 }
  0xf0   : > { %3009 = vst [vmem:[#allocation33_spill] sm:$0xff] %v2168_v10 }
  0xf1   : > { %v2170_v25 = vpop.permute.xlu0 %1023 }
  0xf2   : > { %3010 = vst [vmem:[#allocation34_spill] sm:$0xff] %v2170_v25 }
  0xf3   : > { %571 = vperm.xlu0 %1795, %v1928_v28   ;;  %983 = vperm.xlu1 %1792, %v798_v5   ;;  %v2173_v43 = vpop.permute.xlu1 %546 }
  0xf4   : > { %3011 = vst [vmem:[#allocation35_spill] sm:$0xff] %v2173_v43 }
  0xf5   : > { %v2175_v21 = vpop.permute.xlu0 %1031 }
  0xf6   : > { %3012 = vst [vmem:[#allocation36_spill] sm:$0xff] %v2175_v21 }
  0xf7   : > { %581 = vperm.xlu0 %1795, %v1932_v29   ;;  %987 = vperm.xlu1 %1792, %v799_v7   ;;  %v2178_v26 = vpop.permute.xlu1 %556 }
  0xf8   : > { %3013 = vst [vmem:[#allocation37_spill] sm:$0xff] %v2178_v26 }
  0xf9   : > { %v2180_v19 = vpop.permute.xlu0 %1039 }
  0xfa   : > { %3014 = vst [vmem:[#allocation38_spill] sm:$0xff] %v2180_v19 }
  0xfb   : > { %591 = vperm.xlu0 %1795, %v1936_v30   ;;  %995 = vperm.xlu1 %1792, %v801_v9   ;;  %v2183_v27 = vpop.permute.xlu1 %566 }
  0xfd   : > { %v2185_v51 = vpop.permute.xlu0 %1047 }
  0xfe   : > { %3015 = vst [vmem:[#allocation39_spill] sm:$0xff] %v2185_v51 }
  0xff   : > { %601 = vperm.xlu0 %1795, %v1940_v31   ;;  %1003 = vperm.xlu1 %1792, %v803_v11   ;;  %v2188_v28 = vpop.permute.xlu1 %576 }
 0x101   : > { %v2190_v5 = vpop.permute.xlu0 %1055 }
 0x102   : > { %3016 = vst [vmem:[#allocation40_spill] sm:$0xff] %v2190_v5  ;;  %v1109_v5 = vld [vmem:[%s1850_s20 + $0x1b] sm:$0xff] }
 0x103   : > { %611 = vperm.xlu0 %1795, %v1944_v32   ;;  %1011 = vperm.xlu1 %1792, %v805_v13   ;;  %v2193_v29 = vpop.permute.xlu1 %586 }
 0x105   : > { %v2195_v7 = vpop.permute.xlu0 %1289 }
 0x106   : > { %3017 = vst [vmem:[#allocation41_spill] sm:$0xff] %v2195_v7 }
 0x107   : > { %826 = vperm.xlu0 %1795, %v1948_v33   ;;  %1019 = vperm.xlu1 %1792, %v807_v15   ;;  %v2198_v30 = vpop.permute.xlu1 %596 }
 0x109   : > { %v2200_v9 = vpop.permute.xlu0 %1301 }
 0x10a   : > { %3018 = vst [vmem:[#allocation42_spill] sm:$0xff] %v2200_v9  ;;  %v2281_v9 = vld [vmem:[%s1850_s20 + $0x8b] sm:$0xff] }
 0x10b   : > { %841 = vperm.xlu0 %1795, %v1952_v34   ;;  %1027 = vperm.xlu1 %1792, %v809_v17   ;;  %v2203_v31 = vpop.permute.xlu1 %606  ;;  %v1108_v17 = vld [vmem:[%s1850_s20 + $0x13] sm:$0xff] }
 0x10d   : > { %v2205_v11 = vpop.permute.xlu0 %1309 }
 0x10e   : > { %3019 = vst [vmem:[#allocation43_spill] sm:$0xff] %v2205_v11 }
 0x10f   : > { %851 = vperm.xlu0 %1795, %v1958_v36   ;;  %1035 = vperm.xlu1 %1792, %v811_v47   ;;  %v1106_v47 = vld [vmem:[%s1850_s20 + $0x3] sm:$0xff] }
 0x110   : > { %v2208_v32 = vpop.permute.xlu1 %665 }
 0x111   : > { %v2210_v33 = vpop.permute.xlu0 %1317 }
 0x112   : > { %3020 = vst [vmem:[#allocation44_spill] sm:$0xff] %v2210_v33  ;;  %v2274_v33 = vld [vmem:[%s1850_s20 + $0x7b] sm:$0xff] }
 0x113   : > { %861 = vperm.xlu0 %1795, %v1963_v38   ;;  %1043 = vperm.xlu1 %1792, %v813_v57  }
 0x114   : > { %v2213_v13 = vpop.permute.xlu1 %673 }
 0x115   : > { %3021 = vst [vmem:[#allocation45_spill] sm:$0xff] %v2213_v13  ;;  %v2215_v34 = vpop.permute.xlu0 %1325 }
 0x116   : > { %3022 = vst [vmem:[#allocation46_spill] sm:$0xff] %v2215_v34 }
 0x117   : > { %871 = vperm.xlu0 %1795, %v1968_v40   ;;  %1051 = vperm.xlu1 %1792, %v815_v49  }
 0x118   : > { %v2218_v15 = vpop.permute.xlu1 %677 }
 0x119   : > { %3023 = vst [vmem:[#allocation47_spill] sm:$0xff] %v2218_v15  ;;  %v2220_v36 = vpop.permute.xlu0 %1333 }
 0x11a   : > { %3024 = vst [vmem:[#allocation48_spill] sm:$0xff] %v2220_v36  ;;  %v1113_v36 = vld [vmem:[%s1850_s20 + $0x3b] sm:$0xff] }
 0x11b   : > { %881 = vperm.xlu0 %1795, %v1973_v42   ;;  %1793 = vset.pattern.permute.xlu1 %v2983_v59 }
 0x11c   : > { %1131 = vperm.xlu1 %1793, %v1106_v47   ;;  %v2225_v38 = vpop.permute.xlu1 %685 }
 0x11d   : > { %3025 = vst [vmem:[#allocation49_spill] sm:$0xff] %v2225_v38  ;;  %v2227_v57 = vpop.permute.xlu0 %1341 }
 0x11e   : > { %3026 = vst [vmem:[#allocation50_spill] sm:$0xff] %v2227_v57  ;;  %v1111_v57 = vld [vmem:[%s1850_s20 + $0x2b] sm:$0xff] }
 0x11f   : > { %891 = vperm.xlu0 %1795, %v1978_v44  }
 0x120   : > { %1141 = vperm.xlu1 %1793, %v1108_v17   ;;  %v2231_v40 = vpop.permute.xlu1 %693 }
 0x121   : > { %3027 = vst [vmem:[#allocation51_spill] sm:$0xff] %v2231_v40  ;;  %v2233_v49 = vpop.permute.xlu0 %1349 }
 0x122   : > { %3028 = vst [vmem:[#allocation52_spill] sm:$0xff] %v2233_v49  ;;  %v1115_v49 = vld [vmem:[%s1850_s20 + $0x4b] sm:$0xff] }
 0x123   : > { %901 = vperm.xlu0 %1795, %v1983_v46  }
 0x124   : > { %1146 = vperm.xlu1 %1793, %v1109_v5   ;;  %v2237_v42 = vpop.permute.xlu1 %701 }
 0x125   : > { %3029 = vst [vmem:[#allocation53_spill] sm:$0xff] %v2237_v42  ;;  %v2239_v51 = vpop.permute.xlu0 %1357  ;;  %v2288_v42 = vld [vmem:[%s1850_s20 + $0x9b] sm:$0xff] }
 0x126   : > { %3030 = vst [vmem:[#allocation54_spill] sm:$0xff] %v2239_v51  ;;  %v2258_v51 = vld [vmem:[%s1850_s20 + $0x5b] sm:$0xff] }
 0x127   : > { %911 = vperm.xlu0 %1795, %v1988_v48  }
 0x128   : > { %1156 = vperm.xlu1 %1793, %v1111_v57   ;;  %v2243_v44 = vpop.permute.xlu1 %709 }
 0x129   : > { %v2245_v19 = vpop.permute.xlu0 %1365 }
 0x12a   : > { %3031 = vst [vmem:[#allocation55_spill] sm:$0xff] %v2245_v19  ;;  %v2267_v19 = vld [vmem:[%s1850_s20 + $0x6b] sm:$0xff] }
 0x12b   : > { %921 = vperm.xlu0 %1795, %v1993_v50  }
 0x12c   : > { %1166 = vperm.xlu1 %1793, %v1113_v36   ;;  %v2249_v46 = vpop.permute.xlu1 %717 }
 0x12e   : > { %v2252_v21 = vpop.permute.xlu0 %222 }
 0x12f   : > { %1136 = vperm.xlu0 %1795, %v1998_v52  }
 0x130   : > { %1176 = vperm.xlu1 %1793, %v1115_v49   ;;  %v2255_v48 = vpop.permute.xlu1 %725 }
 0x132   : > { %v2260_v34 = vpop.permute.xlu0 %227 }
 0x133   : > { %1151 = vperm.xlu0 %1795, %v2003_v54  }
 0x134   : > { %1186 = vperm.xlu1 %1793, %v2258_v51   ;;  %v2264_v50 = vpop.permute.xlu1 %733 }
 0x136   : > { %v243_v25 = vpop.permute.xlu0 %242 }
 0x137   : > { %1161 = vperm.xlu0 %1795, %v2012_v58  }
 0x138   : > { %1196 = vperm.xlu1 %1793, %v2267_v19   ;;  %v2271_v52 = vpop.permute.xlu1 %741 }
 0x13a   : > { %v253_v11 = vpop.permute.xlu0 %252 }
 0x13b   : > { %1171 = vperm.xlu0 %1795, %v2020_v61  }
 0x13c   : > { %1206 = vperm.xlu1 %1793, %v2274_v33  }
 0x13d   : > { %v2278_v54 = vpop.permute.xlu1 %821 }
 0x13e   : > { %3032 = vst [vmem:[#allocation56_spill] sm:$0xff] %v2278_v54  ;;  %v263_v7 = vpop.permute.xlu0 %262 }
 0x13f   : > { %1181 = vperm.xlu0 %1795, %v2029_v2  }
 0x140   : > { %1216 = vperm.xlu1 %1793, %v2281_v9  }
 0x141   : > { %v2285_v58 = vpop.permute.xlu1 %831 }
 0x142   : > { %3033 = vst [vmem:[#allocation57_spill] sm:$0xff] %v2285_v58  ;;  %v273_v26 = vpop.permute.xlu0 %272 }
 0x143   : > { %1191 = vperm.xlu0 %1795, %v2037_v8  }
 0x144   : > { %1226 = vperm.xlu1 %1793, %v2288_v42  }
 0x145   : > { %v2292_v61 = vpop.permute.xlu1 %836 }
 0x146   : > { %3034 = vst [vmem:[#allocation58_spill] sm:$0xff] %v2292_v61  ;;  %v2294_v40 = vpop.permute.xlu0 %282 }
 0x147   : > { %1201 = vperm.xlu0 %1795, %v2045_v14  }
 0x148   : > { %1794 = vset.pattern.permute.xlu1 %v3008_v24  ;;  %v1417_v24 = vld [vmem:[%s1850_s20 + $0xc] sm:$0xff] }
 0x149   : > { %1285 = vperm.xlu1 %1794, %v1106_v47   ;;  %v2298_v2 = vpop.permute.xlu1 %846 }
 0x14a   : > { %3035 = vst [vmem:[#allocation59_spill] sm:$0xff] %v2298_v2  ;;  %v2300_v43 = vpop.permute.xlu0 %292  ;;  %v2342_v2 = vld [vmem:[%s2968_s1 + $0x2] ss:$0 sm:$0xff] }
 0x14b   : > { %1211 = vperm.xlu0 %1795, %v2053_v20  }
 0x14d   : > { %1293 = vperm.xlu1 %1794, %v1108_v17   ;;  %v2303_v8 = vpop.permute.xlu1 %856  ;;  %v1420_v17 = vld [vmem:[%s1850_s20 + $0x24] sm:$0xff] }
 0x14e   : > { %3036 = vst [vmem:[#allocation60_spill] sm:$0xff] %v2303_v8  ;;  %v2305_v38 = vpop.permute.xlu0 %302 }
 0x14f   : > { %1221 = vperm.xlu0 %1795, %v2061_v39   ;;  %v2324_v39 = vld [vmem:[%s2968_s1] ss:$0 sm:$0xff] }
 0x150   : > { %v337_v58 = vmul.f32 %v2324_v39, %v253_v11 }
 0x151   : > { %1297 = vperm.xlu1 %1794, %v1109_v5   ;;  %v2308_v61 = vpop.permute.xlu1 %866 }
 0x152   : > { %3037 = vst [vmem:[#allocation61_spill] sm:$0xff] %v2308_v61  ;;  %v2310_v14 = vpop.permute.xlu0 %312 }
 0x153   : > { %1231 = vperm.xlu0 %1795, %v2069_v41   ;;  %v2329_v41 = vld [vmem:[%s2968_s1 + $0x1] ss:$0 sm:$0xff] }
 0x155   : > { %1305 = vperm.xlu1 %1794, %v1111_v57   ;;  %v2314_v47 = vpop.permute.xlu1 %876  ;;  %v335_v57 = vmul.f32 %v2324_v39, %v243_v25 }
 0x156   : > { %v2316_v20 = vpop.permute.xlu0 %322 }
 0x157   : > { %1446 = vperm.xlu0 %1795, %v1417_v24   ;;  %v1422_v24 = vld [vmem:[%s1850_s20 + $0x34] sm:$0xff] }
 0x159   : > { %1313 = vperm.xlu1 %1794, %v1113_v36   ;;  %v2319_v8 = vpop.permute.xlu1 %886  ;;  %v448_v36 = vmul.f32 %v2329_v41, %v2016_v60  ;;  %v450_v60 = vmul.f32 %v2329_v41, %v2025_v63 }
 0x15a   : > { %v2331_v5 = vpop.permute.xlu0 %516 }
 0x15b   : > { %1461 = vperm.xlu0 %1795, %v1420_v17   ;;  %v469_v15 = vadd.f32 %v448_v36, %v335_v57  ;;  %v1424_v17 = vld [vmem:[%s1850_s20 + $0x44] sm:$0xff]  ;;  %v471_v54 = vadd.f32 %v450_v60, %v337_v58  ;;  %v339_v57 = vmul.f32 %v2324_v39, %v263_v7  ;;  %v341_v58 = vmul.f32 %v2324_v39, %v273_v26 }
 0x15c   : > { %v343_v60 = vmul.f32 %v2324_v39, %v2294_v40  ;;  %v345_v40 = vmul.f32 %v2324_v39, %v2300_v43 }
 0x15d   : > { %1321 = vperm.xlu1 %1794, %v1115_v49   ;;  %v2337_v61 = vpop.permute.xlu1 %896 }
 0x15e   : > { %v532_v10 = vpop.permute.xlu0 %531 }
 0x15f   : > { %v624_v25 = vmul.f32 %v2342_v2, %v532_v10  ;;  %1471 = vperm.xlu0 %1795, %v1422_v24   ;;  %v1426_v10 = vld [vmem:[%s1850_s20 + $0x54] sm:$0xff]  ;;  %v452_v24 = vmul.f32 %v2329_v41, %v2033_v6 }
 0x161   : > { %v2349_v49 = vadd.f32 %v624_v25, %v469_v15  ;;  %1329 = vperm.xlu1 %1794, %v2258_v51   ;;  %v2352_v22 = vpop.permute.xlu1 %906  ;;  %v473_v15 = vadd.f32 %v452_v24, %v339_v57  ;;  %v454_v25 = vmul.f32 %v2329_v41, %v2041_v12  ;;  %v1430_v57 = vld [vmem:[%s1850_s20 + $0x74] sm:$0xff] }
 0x162   : > { %v542_v13 = vpop.permute.xlu0 %541 }
 0x163   : > { %v626_v11 = vmul.f32 %v2342_v2, %v542_v13  ;;  %1481 = vperm.xlu0 %1795, %v1424_v17   ;;  %v1428_v13 = vld [vmem:[%s1850_s20 + $0x64] sm:$0xff] }
 0x165   : > { %v2359_v36 = vadd.f32 %v626_v11, %v471_v54  ;;  %1337 = vperm.xlu1 %1794, %v2267_v19   ;;  %v2362_v63 = vpop.permute.xlu1 %916  ;;  %v475_v54 = vadd.f32 %v454_v25, %v341_v58  ;;  %v456_v11 = vmul.f32 %v2329_v41, %v2049_v18  ;;  %v458_v18 = vmul.f32 %v2329_v41, %v2057_v37 }
 0x166   : > { %v552_v51 = vpop.permute.xlu0 %551  ;;  %v347_v25 = vmul.f32 %v2324_v39, %v2305_v38  ;;  %v460_v37 = vmul.f32 %v2329_v41, %v2065_v1  ;;  %v349_v38 = vmul.f32 %v2324_v39, %v2310_v14  ;;  %v1436_v1 = vld [vmem:[%s1850_s20 + $0xa4] sm:$0xf]  ;;  %v445_v14 = vmul.f32 %v2329_v41, %v2007_v56  ;;  %v1419_v56 = vld [vmem:[%s1850_s20 + $0x1c] sm:$0xff] }
 0x167   : > { %v628_v7 = vmul.f32 %v2342_v2, %v552_v51  ;;  %1491 = vperm.xlu0 %1795, %v1426_v10   ;;  %v477_v24 = vadd.f32 %v456_v11, %v343_v60 }
 0x169   : > { %v2369_v17 = vadd.f32 %v628_v7, %v473_v15  ;;  %1345 = vperm.xlu1 %1794, %v2274_v33   ;;  %v1432_v15 = vld [vmem:[%s1850_s20 + $0x84] sm:$0xff] }
 0x16a   : > { %v562_v6 = vpop.permute.xlu0 %561  ;;  %v2372_v19 = vpop.permute.xlu1 %975 }
 0x16b   : > { %v630_v26 = vmul.f32 %v2342_v2, %v562_v6  ;;  %1501 = vperm.xlu0 %1795, %v1428_v13   ;;  %v479_v13 = vadd.f32 %v458_v18, %v345_v40  ;;  %v1416_v6 = vld [vmem:[%s1850_s20 + $0x4] sm:$0xff]  ;;  %v332_v40 = vmul.f32 %v2324_v39, %v2260_v34  ;;  %v631_v18 = vmul.f32 %v2342_v2, %v2183_v27 }
 0x16c   : > { %v621_v34 = vmul.f32 %v2342_v2, %v2331_v5 }
 0x16d   : > { %v2380_v12 = vadd.f32 %v630_v26, %v475_v54  ;;  %1353 = vperm.xlu1 %1794, %v2281_v9   ;;  %v1434_v54 = vld [vmem:[%s1850_s20 + $0x94] sm:$0xff] }
 0x16e   : > { %v572_v33 = vpop.permute.xlu0 %571  ;;  %v2383_v10 = vpop.permute.xlu1 %983 }
 0x16f   : > { %v632_v51 = vmul.f32 %v2342_v2, %v572_v33  ;;  %1511 = vperm.xlu0 %1795, %v1430_v57   ;;  %v481_v57 = vadd.f32 %v460_v37, %v347_v25  ;;  %v1418_v33 = vld [vmem:[%s1850_s20 + $0x14] sm:$0xff]  ;;  %v344_v37 = vmul.f32 %v2324_v39, %v2055_v35 }
 0x171   : > { %v2391_v58 = vadd.f32 %v632_v51, %v477_v24  ;;  %1361 = vperm.xlu1 %1794, %v2288_v42   ;;  %v455_v24 = vmul.f32 %v2329_v41, %v2119_v53 }
 0x172   : > { %v582_v9 = vpop.permute.xlu0 %581  ;;  %v2394_v7 = vpop.permute.xlu1 %987 }
 0x173   : > { %v634_v43 = vmul.f32 %v2342_v2, %v582_v9  ;;  %1521 = vperm.xlu0 %1795, %v1432_v15   ;;  %v342_v15 = vmul.f32 %v2324_v39, %v2047_v16  ;;  %v2438_v16 = vld [vmem:[%s2968_s1 + $0x3] ss:$0 sm:$0xff] }
 0x174   : > { %v765_v5 = vmul.f32 %v2438_v16, %v2243_v44 }
 0x175   : > { %v2403_v60 = vadd.f32 %v634_v43, %v479_v13  ;;  %1796 = vset.pattern.permute.xlu1 %v2983_v59  ;;  %v462_v59 = vmul.f32 %v2329_v41, %v2073_v4  ;;  %v351_v4 = vmul.f32 %v2324_v39, %v2316_v20  ;;  %v476_v27 = vadd.f32 %v455_v24, %v342_v15  ;;  %v1421_v24 = vld [vmem:[%s1850_s20 + $0x2c] sm:$0xff] }
 0x176   : > { %v592_v42 = vpop.permute.xlu0 %591  ;;  %1441 = vperm.xlu1 %1796, %v1416_v6   ;;  %v2406_v26 = vpop.permute.xlu1 %995  ;;  %v457_v43 = vmul.f32 %v2329_v41, %v2125_v23  ;;  %v464_v20 = vmul.f32 %v2329_v41, %v2078_v62  ;;  %v466_v6 = vadd.f32 %v445_v14, %v332_v40  ;;  %v2455_v23 = vld [vmem:[%s2968_s1 + $0x4] ss:$0 sm:$0xff]  ;;  %v755_v40 = vmul.f32 %v2438_v16, %v2082_v45 }
 0x177   : > { %v636_v11 = vmul.f32 %v2342_v2, %v592_v42  ;;  %1531 = vperm.xlu0 %1795, %v1434_v54   ;;  %v483_v13 = vadd.f32 %v462_v59, %v349_v38  ;;  %v652_v42 = vadd.f32 %v631_v18, %v476_v27  ;;  %v941_v44 = vmul.f32 %v2455_v23, %v2314_v47  ;;  %v2476_v18 = vld [vmem:[%s2968_s1 + $0x5] ss:$0 sm:$0xff]  ;;  %v3038_v27 = vld [vmem:[#allocation7_spill] sm:$0xff] }
 0x178   : > { %v767_v59 = vmul.f32 %v2438_v16, %v2249_v46  ;;  %v346_v47 = vmul.f32 %v2324_v39, %v2063_v0  ;;  %v943_v46 = vmul.f32 %v2455_v23, %v2319_v8 }
 0x179   : > { %v2419_v51 = vadd.f32 %v636_v11, %v481_v57  ;;  %v633_v57 = vmul.f32 %v2342_v2, %v2188_v28  ;;  %v485_v11 = vadd.f32 %v464_v20, %v351_v4  ;;  %v459_v28 = vmul.f32 %v2329_v41, %v2131_v3 }
 0x17a   : > { %v602_v53 = vpop.permute.xlu0 %601  ;;  %1451 = vperm.xlu1 %1796, %v1418_v33   ;;  %v2427_v9 = vpop.permute.xlu1 %1003  ;;  %v642_v33 = vadd.f32 %v621_v34, %v466_v6  ;;  %v786_v14 = vadd.f32 %v765_v5, %v652_v42  ;;  %v635_v3 = vmul.f32 %v2342_v2, %v2193_v29  ;;  %v3039_v5 = vld [vmem:[#allocation24_spill] sm:$0xff]  ;;  %v769_v42 = vmul.f32 %v2438_v16, %v2255_v48 }
 0x17b   : > { %v638_v25 = vmul.f32 %v2342_v2, %v602_v53  ;;  %1541 = vperm.xlu0 %1795, %v1436_v1   ;;  %v478_v1 = vadd.f32 %v457_v43, %v344_v37  ;;  %v348_v43 = vmul.f32 %v2324_v39, %v3038_v27  ;;  %v480_v20 = vadd.f32 %v459_v28, %v346_v47  ;;  %v3040_v37 = vld [vmem:[#allocation10_spill] sm:$0xff] }
 0x17c   : > { %v962_v4 = vadd.f32 %v941_v44, %v786_v14  ;;  %v776_v34 = vadd.f32 %v755_v40, %v642_v33  ;;  %v461_v29 = vmul.f32 %v2329_v41, %v3039_v5  ;;  %v758_v8 = vmul.f32 %v2438_v16, %v3040_v37  ;;  %v3041_v44 = vld [vmem:[#allocation8_spill] sm:$0xff]  ;;  %v1425_v47 = vld [vmem:[%s1850_s20 + $0x4c] sm:$0xff] }
 0x17d   : > { %v2446_v54 = vadd.f32 %v638_v25, %v483_v13  ;;  %v654_v53 = vadd.f32 %v633_v57, %v478_v1  ;;  %v656_v33 = vadd.f32 %v635_v3, %v480_v20  ;;  %v639_v27 = vmul.f32 %v2342_v2, %v2203_v31  ;;  %v1427_v37 = vld [vmem:[%s1850_s20 + $0x5c] sm:$0xff] }
 0x17e   : > { %v612_v38 = vpop.permute.xlu0 %611  ;;  %1456 = vperm.xlu1 %1796, %v1419_v56   ;;  %v2457_v62 = vpop.permute.xlu1 %1011  ;;  %v1423_v56 = vld [vmem:[%s1850_s20 + $0x3c] sm:$0xff]  ;;  %v779_v48 = vadd.f32 %v758_v8, %v2349_v49  ;;  %v3045_v8 = vld [vmem:[#allocation2_spill] sm:$0xff] }
 0x17f   : > { %v640_v35 = vmul.f32 %v2342_v2, %v612_v38  ;;  %v788_v6 = vadd.f32 %v767_v59, %v654_v53  ;;  %v945_v59 = vmul.f32 %v2455_v23, %v2337_v61  ;;  %v482_v53 = vadd.f32 %v461_v29, %v348_v43 }
 0x180   : > { %v790_v49 = vadd.f32 %v769_v42, %v656_v33  ;;  %v333_v42 = vmul.f32 %v2324_v39, %v3045_v8 }
 0x181   : > { %v2469_v15 = vadd.f32 %v640_v35, %v485_v11  ;;  %v350_v11 = vmul.f32 %v2324_v39, %v3041_v44  ;;  %v637_v35 = vmul.f32 %v2342_v2, %v2198_v30  ;;  %v331_v30 = vmul.f32 %v2324_v39, %v2252_v21 }
 0x182   : > { %v827_v13 = vpop.permute.xlu0 %826  ;;  %1466 = vperm.xlu1 %1796, %v1421_v24   ;;  %v1020_v45 = vpop.permute.xlu1 %1019  ;;  %v964_v24 = vadd.f32 %v943_v46, %v788_v6  ;;  %v771_v46 = vmul.f32 %v2438_v16, %v2264_v50  ;;  %v947_v21 = vmul.f32 %v2455_v23, %v2352_v22  ;;  %v966_v20 = vadd.f32 %v945_v59, %v790_v49  ;;  %v3050_v49 = vld [vmem:[#allocation11_spill] sm:$0xff] }
 0x183   : > { %v931_v25 = vmul.f32 %v2455_v23, %v827_v13  ;;  %v1075_v0 = vmul.f32 %v2476_v18, %v1020_v45  ;;  %v3042_v13 = vld [vmem:[#allocation26_spill] sm:$0xff]  ;;  %v3043_v45 = vld [vmem:[#allocation12_spill] sm:$0xff] }
 0x184   : > { %v463_v3 = vmul.f32 %v2329_v41, %v3042_v13  ;;  %v760_v61 = vmul.f32 %v2438_v16, %v3043_v45 }
 0x185   : > { %v2493_v57 = vadd.f32 %v931_v25, %v776_v34  ;;  %v2495_v38 = vadd.f32 %v1075_v0, %v962_v4  ;;  %v3044_v25 = vld [vmem:[#allocation9_spill] sm:$0xff] }
 0x186   : > { %v842_v1 = vpop.permute.xlu0 %841  ;;  %1476 = vperm.xlu1 %1796, %v1423_v56   ;;  %v1028_v28 = vpop.permute.xlu1 %1027  ;;  %v444_v0 = vmul.f32 %v2329_v41, %v3044_v25  ;;  %v658_v56 = vadd.f32 %v637_v35, %v482_v53  ;;  %v781_v5 = vadd.f32 %v760_v61, %v2359_v36  ;;  %v484_v44 = vadd.f32 %v463_v3, %v350_v11  ;;  %v3046_v35 = vld [vmem:[#allocation14_spill] sm:$0xff]  ;;  %v3049_v61 = vld [vmem:[#allocation5_spill] sm:$0xff] }
 0x187   : > { %v934_v40 = vmul.f32 %v2455_v23, %v842_v1  ;;  %v1077_v14 = vmul.f32 %v2476_v18, %v1028_v28  ;;  %v762_v22 = vmul.f32 %v2438_v16, %v3046_v35  ;;  %v3047_v28 = vld [vmem:[#allocation3_spill] sm:$0xff]  ;;  %v949_v53 = vmul.f32 %v2455_v23, %v2362_v63 }
 0x188   : > { %v465_v33 = vadd.f32 %v444_v0, %v331_v30  ;;  %v792_v31 = vadd.f32 %v771_v46, %v658_v56  ;;  %v334_v59 = vmul.f32 %v2324_v39, %v3047_v28  ;;  %v660_v11 = vadd.f32 %v639_v27, %v484_v44  ;;  %v1429_v30 = vld [vmem:[%s1850_s20 + $0x6c] sm:$0xff]  ;;  %v3048_v46 = vld [vmem:[#allocation4_spill] sm:$0xff] }
 0x189   : > { %v2515_v4 = vadd.f32 %v934_v40, %v779_v48  ;;  %v2517_v34 = vadd.f32 %v1077_v14, %v964_v24  ;;  %v773_v24 = vmul.f32 %v2438_v16, %v2271_v52  ;;  %v620_v48 = vmul.f32 %v2342_v2, %v2150_v55  ;;  %v3051_v56 = vld [vmem:[#allocation16_spill] sm:$0xff] }
 0x18a   : > { %v852_v50 = vpop.permute.xlu0 %851  ;;  %1486 = vperm.xlu1 %1796, %v1425_v47   ;;  %v1036_v43 = vpop.permute.xlu1 %1035  ;;  %v968_v40 = vadd.f32 %v947_v21, %v792_v31  ;;  %v783_v52 = vadd.f32 %v762_v22, %v2369_v17  ;;  %v336_v45 = vmul.f32 %v2324_v39, %v3048_v46  ;;  %v2553_v55 = vmul.f32 %v2324_v39, %v3049_v61 }
 0x18b   : > { %v936_v29 = vmul.f32 %v2455_v23, %v852_v50  ;;  %v1079_v6 = vmul.f32 %v2476_v18, %v1036_v43  ;;  %v446_v25 = vmul.f32 %v2329_v41, %v3050_v49  ;;  %v641_v0 = vadd.f32 %v620_v48, %v465_v33  ;;  %v3052_v50 = vld [vmem:[#allocation13_spill] sm:$0xff] }
 0x18c   : > { %v764_v63 = vmul.f32 %v2438_v16, %v3051_v56  ;;  %v794_v17 = vadd.f32 %v773_v24, %v660_v11  ;;  %v447_v43 = vmul.f32 %v2329_v41, %v3052_v50  ;;  %v1431_v24 = vld [vmem:[%s1850_s20 + $0x7c] sm:$0xff]  ;;  %v3055_v48 = vld [vmem:[#allocation45_spill] sm:$0xff] }
 0x18d   : > { %v2535_v1 = vadd.f32 %v936_v29, %v781_v5  ;;  %v2537_v36 = vadd.f32 %v1079_v6, %v966_v20  ;;  %v3053_v20 = vld [vmem:[#allocation29_spill] sm:$0xff]  ;;  %v754_v29 = vmul.f32 %v2438_v16, %v2208_v32  ;;  %v3054_v6 = vld [vmem:[#allocation56_spill] sm:$0xff]  ;;  %v467_v28 = vadd.f32 %v446_v25, %v333_v42  ;;  %v3059_v25 = vld [vmem:[#allocation15_spill] sm:$0xff] }
 0x18e   : > { %v862_v14 = vpop.permute.xlu0 %861  ;;  %1496 = vperm.xlu1 %1796, %v1427_v37   ;;  %v1044_v47 = vpop.permute.xlu1 %1043  ;;  %v622_v5 = vmul.f32 %v2342_v2, %v3053_v20  ;;  %v930_v37 = vmul.f32 %v2455_v23, %v3054_v6  ;;  %v970_v33 = vadd.f32 %v949_v53, %v794_v17  ;;  %v785_v31 = vadd.f32 %v764_v63, %v2380_v12  ;;  %v2590_v42 = vld [vmem:[%s2968_s1 + $0x6] ss:$0 sm:$0xff]  ;;  %v3060_v56 = vld [vmem:[#allocation47_spill] sm:$0xff] }
 0x18f   : > { %v938_v13 = vmul.f32 %v2455_v23, %v862_v14  ;;  %v1081_v3 = vmul.f32 %v2476_v18, %v1044_v47  ;;  %v756_v11 = vmul.f32 %v2438_v16, %v3055_v48  ;;  %v1064_v32 = vmul.f32 %v2476_v18, %v2372_v19  ;;  %v3056_v14 = vld [vmem:[#allocation18_spill] sm:$0xff]  ;;  %v3058_v19 = vld [vmem:[#allocation57_spill] sm:$0xff] }
 0x190   : > { %v766_v47 = vmul.f32 %v2438_v16, %v3056_v14  ;;  %v932_v61 = vmul.f32 %v2455_v23, %v3058_v19  ;;  %v757_v63 = vmul.f32 %v2438_v16, %v3060_v56  ;;  %v1067_v19 = vmul.f32 %v2476_v18, %v2394_v7 }
 0x191   : > { %v2559_v27 = vadd.f32 %v938_v13, %v783_v52  ;;  %v2561_v21 = vadd.f32 %v1081_v3, %v968_v40  ;;  %v775_v40 = vadd.f32 %v754_v29, %v641_v0  ;;  %v3057_v52 = vld [vmem:[#allocation31_spill] sm:$0xff]  ;;  %v468_v3 = vadd.f32 %v447_v43, %v334_v59  ;;  %v1433_v29 = vld [vmem:[%s1850_s20 + $0x8c] sm:$0xff] }
 0x192   : > { %v872_v8 = vpop.permute.xlu0 %871  ;;  %1506 = vperm.xlu1 %1796, %v1429_v30   ;;  %v1052_v44 = vpop.permute.xlu1 %1051  ;;  %v623_v12 = vmul.f32 %v2342_v2, %v3057_v52  ;;  %v643_v30 = vadd.f32 %v622_v5, %v467_v28  ;;  %v449_v0 = vmul.f32 %v2329_v41, %v3059_v25  ;;  %v787_v17 = vadd.f32 %v766_v47, %v2391_v58  ;;  %v3064_v28 = vld [vmem:[#allocation58_spill] sm:$0xff]  ;;  %v3066_v25 = vld [vmem:[#allocation21_spill] sm:$0xff] }
 0x193   : > { %v940_v35 = vmul.f32 %v2455_v23, %v872_v8  ;;  %v1083_v22 = vmul.f32 %v2476_v18, %v1052_v44  ;;  %v951_v46 = vadd.f32 %v930_v37, %v775_v40  ;;  %v1066_v5 = vmul.f32 %v2476_v18, %v2383_v10  ;;  %v3061_v37 = vld [vmem:[#allocation17_spill] sm:$0xff]  ;;  %v3062_v44 = vld [vmem:[#allocation20_spill] sm:$0xff] }
 0x194   : > { %v777_v59 = vadd.f32 %v756_v11, %v643_v30  ;;  %v451_v8 = vmul.f32 %v2329_v41, %v3061_v37  ;;  %v933_v48 = vmul.f32 %v2455_v23, %v3064_v28  ;;  %v470_v40 = vadd.f32 %v449_v0, %v336_v45  ;;  %v3067_v0 = vld [vmem:[#allocation35_spill] sm:$0xff]  ;;  %v3072_v28 = vld [vmem:[#allocation22_spill] sm:$0xff] }
 0x195   : > { %v2583_v53 = vadd.f32 %v940_v35, %v785_v31  ;;  %v2585_v13 = vadd.f32 %v1083_v22, %v970_v33  ;;  %v1085_v43 = vadd.f32 %v1064_v32, %v951_v46  ;;  %v768_v33 = vmul.f32 %v2438_v16, %v3062_v44  ;;  %v3063_v35 = vld [vmem:[#allocation33_spill] sm:$0xff] }
 0x196   : > { %v882_v49 = vpop.permute.xlu0 %881  ;;  %1516 = vperm.xlu1 %1796, %v1431_v24   ;;  %v644_v31 = vadd.f32 %v623_v12, %v468_v3  ;;  %v625_v22 = vmul.f32 %v2342_v2, %v3063_v35  ;;  %v953_v24 = vadd.f32 %v932_v61, %v777_v59  ;;  %v1435_v12 = vld [vmem:[%s1850_s20 + $0x9c] sm:$0xff]  ;;  %v3065_v3 = vld [vmem:[#allocation49_spill] sm:$0xff]  ;;  %v770_v45 = vmul.f32 %v2438_v16, %v3066_v25 }
 0x197   : > { %v942_v50 = vmul.f32 %v2455_v23, %v882_v49  ;;  %v1132_v20 = vpop.permute.xlu1 %1131  ;;  %v789_v14 = vadd.f32 %v768_v33, %v2403_v60  ;;  %v759_v30 = vmul.f32 %v2438_v16, %v3065_v3  ;;  %v472_v49 = vadd.f32 %v451_v8, %v2553_v55  ;;  %v3069_v59 = vld [vmem:[#allocation19_spill] sm:$0xff] }
 0x198   : > { %v1240_v6 = vmul.f32 %v2590_v42, %v1132_v20  ;;  %v778_v32 = vadd.f32 %v757_v63, %v644_v31  ;;  %v1087_v46 = vadd.f32 %v1066_v5, %v953_v24  ;;  %v627_v60 = vmul.f32 %v2342_v2, %v3067_v0 }
 0x199   : > { %v2608_v58 = vadd.f32 %v942_v50, %v787_v17  ;;  %v646_v63 = vadd.f32 %v625_v22, %v470_v40  ;;  %v3068_v50 = vld [vmem:[#allocation59_spill] sm:$0xff]  ;;  %v453_v55 = vmul.f32 %v2329_v41, %v3069_v59  ;;  %v1069_v31 = vmul.f32 %v2476_v18, %v2406_v26  ;;  %v3071_v22 = vld [vmem:[#allocation6_spill] sm:$0xff] }
 0x19a   : > { %v2614_v10 = vadd.f32 %v1240_v6, %v1085_v43  ;;  %v892_v11 = vpop.permute.xlu0 %891  ;;  %1526 = vperm.xlu1 %1796, %v1433_v29   ;;  %v954_v17 = vadd.f32 %v933_v48, %v778_v32  ;;  %v935_v20 = vmul.f32 %v2455_v23, %v3068_v50  ;;  %v3070_v43 = vld [vmem:[#allocation51_spill] sm:$0xff]  ;;  %v791_v6 = vadd.f32 %v770_v45, %v2419_v51  ;;  %v3073_v51 = vld [vmem:[#allocation37_spill] sm:$0xff] }
 0x19b   : > { %v944_v47 = vmul.f32 %v2455_v23, %v892_v11  ;;  %v1142_v52 = vpop.permute.xlu1 %1141  ;;  %v761_v5 = vmul.f32 %v2438_v16, %v3070_v43  ;;  %v780_v44 = vadd.f32 %v759_v30, %v646_v63  ;;  %v340_v24 = vmul.f32 %v2324_v39, %v3071_v22  ;;  %v3076_v45 = vld [vmem:[#allocation23_spill] sm:$0xff] }
 0x19c   : > { %v1242_v61 = vmul.f32 %v2590_v42, %v1142_v52  ;;  %v1088_v33 = vadd.f32 %v1067_v19, %v954_v17  ;;  %v772_v41 = vmul.f32 %v2438_v16, %v3072_v28  ;;  %v648_v48 = vadd.f32 %v627_v60, %v472_v49  ;;  %v3075_v19 = vld [vmem:[#allocation53_spill] sm:$0xff] }
 0x19d   : > { %v2629_v56 = vadd.f32 %v944_v47, %v789_v14  ;;  %v629_v40 = vmul.f32 %v2342_v2, %v3073_v51  ;;  %v956_v32 = vadd.f32 %v935_v20, %v780_v44  ;;  %v3074_v14 = vld [vmem:[#allocation60_spill] sm:$0xff]  ;;  %v1071_v2 = vmul.f32 %v2476_v18, %v2427_v9 }
 0x19e   : > { %v2633_v29 = vadd.f32 %v1242_v61, %v1087_v46  ;;  %v902_v7 = vpop.permute.xlu0 %901  ;;  %1536 = vperm.xlu1 %1796, %v1435_v12   ;;  %v937_v47 = vmul.f32 %v2455_v23, %v3074_v14  ;;  %v474_v12 = vadd.f32 %v453_v55, %v340_v24  ;;  %v782_v3 = vadd.f32 %v761_v5, %v648_v48 }
 0x19f   : > { %v946_v37 = vmul.f32 %v2455_v23, %v902_v7  ;;  %v1147_v8 = vpop.permute.xlu1 %1146  ;;  %v793_v39 = vadd.f32 %v772_v41, %v2446_v54  ;;  %v763_v61 = vmul.f32 %v2438_v16, %v3075_v19  ;;  %v1090_v49 = vadd.f32 %v1069_v31, %v956_v32  ;;  %v3077_v54 = vld [vmem:[#allocation61_spill] sm:$0xff] }
 0x1a0   : > { %v1243_v35 = vmul.f32 %v2590_v42, %v1147_v8  ;;  %v774_v0 = vmul.f32 %v2438_v16, %v3076_v45  ;;  %v650_v63 = vadd.f32 %v629_v40, %v474_v12  ;;  %v958_v17 = vadd.f32 %v937_v47, %v782_v3 }
 0x1a1   : > { %v2648_v11 = vadd.f32 %v946_v37, %v791_v6  ;;  %v939_v50 = vmul.f32 %v2455_v23, %v3077_v54  ;;  %v1073_v16 = vmul.f32 %v2476_v18, %v2457_v62 }
 0x1a2   : > { %v2654_v52 = vadd.f32 %v1243_v35, %v1088_v33  ;;  %v912_v26 = vpop.permute.xlu0 %911  ;;  %v795_v59 = vadd.f32 %v774_v0, %v2469_v15  ;;  %v784_v43 = vadd.f32 %v763_v61, %v650_v63  ;;  %v1092_v5 = vadd.f32 %v1071_v2, %v958_v17  ;;  %v2724_v17 = vld [vmem:[%s2968_s1 + $0x7] ss:$0 sm:$0xff] }
 0x1a3   : > { %v948_v30 = vmul.f32 %v2455_v23, %v912_v26  ;;  %v1157_v46 = vpop.permute.xlu1 %1156 }
 0x1a4   : > { %v1245_v25 = vmul.f32 %v2590_v42, %v1157_v46  ;;  %v960_v8 = vadd.f32 %v939_v50, %v784_v43  ;;  %v3079_v50 = vld [vmem:[#allocation27_spill] sm:$0xff]  ;;  %v2736_v43 = vld [vmem:[%s2968_s1 + $0x8] ss:$0 sm:$0xff] }
 0x1a5   : > { %v2665_v60 = vadd.f32 %v948_v30, %v793_v39 }
 0x1a6   : > { %v2669_v20 = vadd.f32 %v1245_v25, %v1090_v49  ;;  %v922_v7 = vpop.permute.xlu0 %921  ;;  %v1094_v35 = vadd.f32 %v1073_v16, %v960_v8 }
 0x1a7   : > { %v950_v55 = vmul.f32 %v2455_v23, %v922_v7  ;;  %v1167_v9 = vpop.permute.xlu1 %1166  ;;  %v1068_v7 = vmul.f32 %v2476_v18, %v3079_v50 }
 0x1a8   : > { %v1247_v6 = vmul.f32 %v2590_v42, %v1167_v9 }
 0x1a9   : > { %v2676_v37 = vadd.f32 %v950_v55, %v795_v59  ;;  %v1089_v16 = vadd.f32 %v1068_v7, %v2515_v4  ;;  %v3082_v4 = vld [vmem:[#allocation42_spill] sm:$0xff] }
 0x1aa   : > { %v2678_v44 = vadd.f32 %v1247_v6, %v1092_v5  ;;  %v1137_v33 = vpop.permute.xlu0 %1136  ;;  %v3081_v6 = vld [vmem:[#allocation28_spill] sm:$0xff] }
 0x1ab   : > { %v1177_v31 = vpop.permute.xlu1 %1176  ;;  %v1241_v0 = vmul.f32 %v2590_v42, %v1137_v33  ;;  %v1070_v8 = vmul.f32 %v2476_v18, %v3081_v6 }
 0x1ac   : > { %v1249_v15 = vmul.f32 %v2590_v42, %v1177_v31 }
 0x1ae   : > { %v2681_v22 = vadd.f32 %v1249_v15, %v1094_v35  ;;  %v1152_v23 = vpop.permute.xlu0 %1151 }
 0x1af   : > { %v1187_v24 = vpop.permute.xlu1 %1186  ;;  %v1244_v55 = vmul.f32 %v2590_v42, %v1152_v23 }
 0x1b0   : > { %v1251_v28 = vmul.f32 %v2590_v42, %v1187_v24  ;;  %v1091_v24 = vadd.f32 %v1070_v8, %v2535_v1  ;;  %v2760_v1 = vld [vmem:[%s2970_s3] ss:$0 sm:$0xff] }
 0x1b1   : > { %v1265_v35 = vadd.f32 %v1244_v55, %v1089_v16 }
 0x1b2   : > { %v2685_v62 = vadd.f32 %v1251_v28, %v2495_v38  ;;  %v1162_v41 = vpop.permute.xlu0 %1161  ;;  %v2749_v28 = vld [vmem:[%s2969_s2] ss:$0 sm:$0xff] }
 0x1b3   : > { %v1197_v48 = vpop.permute.xlu1 %1196  ;;  %v1246_v33 = vmul.f32 %v2590_v42, %v1162_v41 }
 0x1b4   : > { %v1253_v51 = vmul.f32 %v2590_v42, %v1197_v48 }
 0x1b6   : > { %v2689_v40 = vadd.f32 %v1253_v51, %v2517_v34  ;;  %v1172_v32 = vpop.permute.xlu0 %1171  ;;  %v1378_v51 = vmul.f32 %v2724_v17, %v3082_v4 }
 0x1b7   : > { %v1207_v14 = vpop.permute.xlu1 %1206 }
 0x1b8   : > { %v1255_v47 = vmul.f32 %v2590_v42, %v1207_v14 }
 0x1ba   : > { %v2693_v26 = vadd.f32 %v1255_v47, %v2537_v36  ;;  %v1182_v12 = vpop.permute.xlu0 %1181  ;;  %v3083_v47 = vld [vmem:[#allocation30_spill] sm:$0xff] }
 0x1bb   : > { %v1217_v3 = vpop.permute.xlu1 %1216  ;;  %v1072_v41 = vmul.f32 %v2476_v18, %v3083_v47 }
 0x1bc   : > { %v1257_v39 = vmul.f32 %v2590_v42, %v1217_v3  ;;  %v1267_v3 = vadd.f32 %v1246_v33, %v1091_v24 }
 0x1bd   : > { %v1093_v7 = vadd.f32 %v1072_v41, %v2559_v27 }
 0x1be   : > { %v2697_v38 = vadd.f32 %v1257_v39, %v2561_v21  ;;  %v2699_v30 = vpop.permute.xlu0 %1191  ;;  %v3078_v21 = vld [vmem:[#allocation25_spill] sm:$0xff] }
 0x1bf   : > { %v1227_v46 = vpop.permute.xlu1 %1226  ;;  %v1065_v45 = vmul.f32 %v2476_v18, %v3078_v21  ;;  %v1399_v21 = vadd.f32 %v1378_v51, %v1265_v35  ;;  %v3087_v51 = vld [vmem:[#allocation34_spill] sm:$0xff]  ;;  %v1252_v41 = vmul.f32 %v2590_v42, %v2699_v30 }
 0x1c0   : > { %v1259_v34 = vmul.f32 %v2590_v42, %v1227_v46  ;;  %v1248_v46 = vmul.f32 %v2590_v42, %v1172_v32  ;;  %v1250_v32 = vmul.f32 %v2590_v42, %v1182_v12  ;;  %v3086_v12 = vld [vmem:[#allocation44_spill] sm:$0xff] }
 0x1c2   : > { %v2703_v19 = vadd.f32 %v1259_v34, %v2585_v13  ;;  %v2705_v61 = vpop.permute.xlu0 %1201  ;;  %v1086_v13 = vadd.f32 %v1065_v45, %v2493_v57  ;;  %v3080_v57 = vld [vmem:[#allocation41_spill] sm:$0xff]  ;;  %v1269_v8 = vadd.f32 %v1248_v46, %v1093_v7 }
 0x1c3   : > { %v1375_v5 = vmul.f32 %v2724_v17, %v3080_v57  ;;  %v3085_v57 = vld [vmem:[#allocation32_spill] sm:$0xff] }
 0x1c4   : > { %v2707_v49 = vpop.permute.xlu1 %1285  ;;  %v1262_v59 = vadd.f32 %v1241_v0, %v1086_v13  ;;  %v3084_v0 = vld [vmem:[#allocation43_spill] sm:$0xff] }
 0x1c5   : > { %v1380_v13 = vmul.f32 %v2724_v17, %v3084_v0 }
 0x1c6   : > { %v2709_v36 = vpop.permute.xlu0 %1211  ;;  %v1396_v15 = vadd.f32 %v1375_v5, %v1262_v59  ;;  %v1074_v5 = vmul.f32 %v2476_v18, %v3085_v57 }
 0x1c7   : > { %v1401_v16 = vadd.f32 %v1380_v13, %v1267_v3 }
 0x1c8   : > { %v2711_v2 = vpop.permute.xlu1 %1293  ;;  %v1095_v35 = vadd.f32 %v1074_v5, %v2583_v53 }
 0x1ca   : > { %v2713_v25 = vpop.permute.xlu0 %1221  ;;  %v1271_v47 = vadd.f32 %v1250_v32, %v1095_v35 }
 0x1cc   : > { %v2718_v63 = vpop.permute.xlu1 %1297 }
 0x1ce   : > { %v2726_v54 = vpop.permute.xlu0 %1231 }
 0x1d0   : > { %v2731_v9 = vpop.permute.xlu1 %1305 }
 0x1d2   : > { %v1447_v31 = vpop.permute.xlu0 %1446 }
 0x1d3   : > { %v1551_v23 = vmul.f32 %v2736_v43, %v1447_v31 }
 0x1d4   : > { %v2751_v48 = vpop.permute.xlu1 %1313 }
 0x1d5   : > { %v1572_v14 = vadd.f32 %v1551_v23, %v1396_v15  ;;  %v1382_v23 = vmul.f32 %v2724_v17, %v3086_v12 }
 0x1d6   : > { %v1462_v39 = vpop.permute.xlu0 %1461 }
 0x1d7   : > { %v1600_v34 = vmul.f32 %v2749_v28, %v1572_v14  ;;  %v1554_v45 = vmul.f32 %v2736_v43, %v1462_v39  ;;  %v1076_v14 = vmul.f32 %v2476_v18, %v3087_v51  ;;  %v1403_v46 = vadd.f32 %v1382_v23, %v1269_v8 }
 0x1d8   : > { %v2767_v50 = vpop.permute.xlu1 %1321 }
 0x1d9   : > { %v1628_v59 = vadd.f32 %v2760_v1, %v1600_v34  ;;  %v1575_v55 = vadd.f32 %v1554_v45, %v1399_v21  ;;  %v3088_v21 = vld [vmem:[#allocation46_spill] sm:$0xff]  ;;  %v1097_v0 = vadd.f32 %v1076_v14, %v2608_v58 }
 0x1da   : > { %v1472_v6 = vpop.permute.xlu0 %1471  ;;  %v1384_v45 = vmul.f32 %v2724_v17, %v3088_v21 }
 0x1db   : > { %v1649_v27 = vmax.f32 %v1628_v59, 0.0  ;;  %v1603_v33 = vmul.f32 %v2749_v28, %v1575_v55  ;;  %v1556_v31 = vmul.f32 %v2736_v43, %v1472_v6  ;;  %v3089_v59 = vld [vmem:[#allocation36_spill] sm:$0xff]  ;;  %v1273_v57 = vadd.f32 %v1252_v41, %v1097_v0 }
 0x1dc   : > { %v2784_v15 = vpop.permute.xlu1 %1329  ;;  %v1078_v55 = vmul.f32 %v2476_v18, %v3089_v59  ;;  %v1405_v5 = vadd.f32 %v1384_v45, %v1271_v47  ;;  %v3093_v45 = vld [vmem:[#allocation39_spill] sm:$0xff] }
 0x1dd   : > { %1671 = vst.msk [vmem:[%s2779_s22 + $0x8] sm:$0xff] %vm1669_vm0, %v1649_v27  ;;  %v1631_v24 = vadd.f32 %v2760_v1, %v1603_v33  ;;  %v1577_v4 = vadd.f32 %v1556_v31, %v1401_v16  ;;  %v1254_v16 = vmul.f32 %v2590_v42, %v2705_v61  ;;  %v3090_v27 = vld [vmem:[#allocation48_spill] sm:$0xff]  ;;  %v1082_v0 = vmul.f32 %v2476_v18, %v3093_v45 }
 0x1de   : > { %v1482_v3 = vpop.permute.xlu0 %1481  ;;  %v1386_v33 = vmul.f32 %v2724_v17, %v3090_v27  ;;  %v1099_v35 = vadd.f32 %v1078_v55, %v2629_v56  ;;  %v3095_v27 = vld [vmem:[#allocation40_spill] sm:$0xff] }
 0x1df   : > { %v1652_v53 = vmax.f32 %v1631_v24, 0.0  ;;  %v1605_v39 = vmul.f32 %v2749_v28, %v1577_v4  ;;  %v1558_v34 = vmul.f32 %v2736_v43, %v1482_v3  ;;  %v3091_v24 = vld [vmem:[#allocation38_spill] sm:$0xff]  ;;  %v1256_v4 = vmul.f32 %v2590_v42, %v2709_v36 }
 0x1e0   : > { %v2800_v13 = vpop.permute.xlu1 %1337  ;;  %v1080_v61 = vmul.f32 %v2476_v18, %v3091_v24  ;;  %v1407_v51 = vadd.f32 %v1386_v33, %v1273_v57  ;;  %v1275_v47 = vadd.f32 %v1254_v16, %v1099_v35  ;;  %v1084_v33 = vmul.f32 %v2476_v18, %v3095_v27 }
 0x1e1   : > { %1674 = vst.msk [vmem:[%s2779_s22 + $0x20] sm:$0xff] %vm1669_vm0, %v1652_v53  ;;  %v1633_v7 = vadd.f32 %v2760_v1, %v1605_v39  ;;  %v1579_v30 = vadd.f32 %v1558_v34, %v1403_v46  ;;  %v3092_v46 = vld [vmem:[#allocation50_spill] sm:$0xff]  ;;  %v1374_v35 = vmul.f32 %v2724_v17, %v2707_v49 }
 0x1e2   : > { %v1492_v32 = vpop.permute.xlu0 %1491  ;;  %v1101_v56 = vadd.f32 %v1080_v61, %v2648_v11  ;;  %v1388_v34 = vmul.f32 %v2724_v17, %v3092_v46 }
 0x1e3   : > { %v1654_v6 = vmax.f32 %v1633_v7, 0.0  ;;  %v1607_v58 = vmul.f32 %v2749_v28, %v1579_v30  ;;  %v1560_v8 = vmul.f32 %v2736_v43, %v1492_v32  ;;  %v1258_v30 = vmul.f32 %v2590_v42, %v2713_v25  ;;  %v3094_v32 = vld [vmem:[#allocation52_spill] sm:$0xff] }
 0x1e4   : > { %v2813_v31 = vpop.permute.xlu1 %1345  ;;  %v1277_v7 = vadd.f32 %v1256_v4, %v1101_v56  ;;  %v1409_v57 = vadd.f32 %v1388_v34, %v1275_v47  ;;  %v1390_v16 = vmul.f32 %v2724_v17, %v3094_v32 }
 0x1e5   : > { %1676 = vst.msk [vmem:[%s2779_s22 + $0x30] sm:$0xff] %vm1669_vm0, %v1654_v6  ;;  %v1635_v12 = vadd.f32 %v2760_v1, %v1607_v58  ;;  %v1581_v23 = vadd.f32 %v1560_v8, %v1405_v5  ;;  %v1103_v6 = vadd.f32 %v1082_v0, %v2665_v60  ;;  %v1260_v60 = vmul.f32 %v2590_v42, %v2726_v54  ;;  %v3097_v0 = vld [vmem:[#allocation55_spill] sm:$0xff] }
 0x1e6   : > { %v1502_v14 = vpop.permute.xlu0 %1501  ;;  %v1376_v42 = vmul.f32 %v2724_v17, %v2711_v2 }
 0x1e7   : > { %v1656_v41 = vmax.f32 %v1635_v12, 0.0  ;;  %v1609_v3 = vmul.f32 %v2749_v28, %v1581_v23  ;;  %v1562_v53 = vmul.f32 %v2736_v43, %v1502_v14  ;;  %v1279_v12 = vadd.f32 %v1258_v30, %v1103_v6  ;;  %v3096_v14 = vld [vmem:[#allocation54_spill] sm:$0xff] }
 0x1e8   : > { %v2826_v39 = vpop.permute.xlu1 %1353  ;;  %v1411_v23 = vadd.f32 %v1390_v16, %v1277_v7  ;;  %v1392_v47 = vmul.f32 %v2724_v17, %v3096_v14  ;;  %v1394_v7 = vmul.f32 %v2724_v17, %v3097_v0 }
 0x1e9   : > { %1678 = vst.msk [vmem:[%s2779_s22 + $0x40] sm:$0xff] %vm1669_vm0, %v1656_v41  ;;  %v1637_v36 = vadd.f32 %v2760_v1, %v1609_v3  ;;  %v1583_v21 = vadd.f32 %v1562_v53, %v1407_v51  ;;  %v1105_v41 = vadd.f32 %v1084_v33, %v2676_v37  ;;  %v1395_v53 = vadd.f32 %v1374_v35, %v2614_v10 }
 0x1ea   : > { %v1512_v59 = vpop.permute.xlu0 %1511  ;;  %v1413_v56 = vadd.f32 %v1392_v47, %v1279_v12 }
 0x1eb   : > { %v1658_v11 = vmax.f32 %v1637_v36, 0.0  ;;  %v1611_v55 = vmul.f32 %v2749_v28, %v1583_v21  ;;  %v1564_v5 = vmul.f32 %v2736_v43, %v1512_v59  ;;  %v1281_v34 = vadd.f32 %v1260_v60, %v1105_v41 }
 0x1ec   : > { %v2842_v58 = vpop.permute.xlu1 %1361  ;;  %v1397_v59 = vadd.f32 %v1376_v42, %v2633_v29  ;;  %v1379_v29 = vmul.f32 %v2724_v17, %v2731_v9  ;;  %v1381_v41 = vmul.f32 %v2724_v17, %v2751_v48 }
 0x1ed   : > { %1680 = vst.msk [vmem:[%s2779_s22 + $0x50] sm:$0xff] %vm1669_vm0, %v1658_v11  ;;  %v1639_v8 = vadd.f32 %v2760_v1, %v1611_v55  ;;  %v1585_v25 = vadd.f32 %v1564_v5, %v1409_v57  ;;  %v1377_v11 = vmul.f32 %v2724_v17, %v2718_v63  ;;  %v1415_v6 = vadd.f32 %v1394_v7, %v1281_v34 }
 0x1ee   : > { %v1522_v24 = vpop.permute.xlu0 %1521  ;;  %v1400_v14 = vadd.f32 %v1379_v29, %v2669_v20 }
 0x1ef   : > { %v1660_v61 = vmax.f32 %v1639_v8, 0.0  ;;  %v1613_v4 = vmul.f32 %v2749_v28, %v1585_v25  ;;  %v1566_v51 = vmul.f32 %v2736_v43, %v1522_v24  ;;  %v1398_v12 = vadd.f32 %v1377_v11, %v2654_v52 }
 0x1f1   : > { %1682 = vst.msk [vmem:[%s2779_s22 + $0x60] sm:$0xff] %vm1669_vm0, %v1660_v61  ;;  %v1641_v18 = vadd.f32 %v2760_v1, %v1613_v4  ;;  %v1587_v49 = vadd.f32 %v1566_v51, %v1411_v23  ;;  %v1442_v3 = vpop.permute.xlu1 %1441 }
 0x1f2   : > { %v1550_v54 = vmul.f32 %v2736_v43, %v1442_v3  ;;  %v1532_v46 = vpop.permute.xlu0 %1531 }
 0x1f3   : > { %v1662_v36 = vmax.f32 %v1641_v18, 0.0  ;;  %v1615_v37 = vmul.f32 %v2749_v28, %v1587_v49  ;;  %v1568_v21 = vmul.f32 %v2736_v43, %v1532_v46  ;;  %v1402_v46 = vadd.f32 %v1381_v41, %v2678_v44 }
 0x1f4   : > { %v1571_v45 = vadd.f32 %v1550_v54, %v1395_v53  ;;  %v1383_v54 = vmul.f32 %v2724_v17, %v2767_v50  ;;  %v1385_v50 = vmul.f32 %v2724_v17, %v2784_v15 }
 0x1f5   : > { %1684 = vst.msk [vmem:[%s2779_s22 + $0x70] sm:$0xff] %vm1669_vm0, %v1662_v36  ;;  %v1643_v10 = vadd.f32 %v2760_v1, %v1615_v37  ;;  %v1589_v2 = vadd.f32 %v1568_v21, %v1413_v56  ;;  %v1452_v30 = vpop.permute.xlu1 %1451 }
 0x1f6   : > { %v1599_v55 = vmul.f32 %v2749_v28, %v1571_v45  ;;  %v1552_v57 = vmul.f32 %v2736_v43, %v1452_v30  ;;  %v1542_v5 = vpop.permute.xlu0 %1541  ;;  %v1404_v45 = vadd.f32 %v1383_v54, %v2681_v22  ;;  %v1406_v22 = vadd.f32 %v1385_v50, %v2685_v62 }
 0x1f7   : > { %v1664_v32 = vmax.f32 %v1643_v10, 0.0  ;;  %v1617_v16 = vmul.f32 %v2749_v28, %v1589_v2  ;;  %v1570_v8 = vmul.f32 %v2736_v43, %v1542_v5 }
 0x1f8   : > { %v1627_v25 = vadd.f32 %v2760_v1, %v1599_v55  ;;  %v1573_v27 = vadd.f32 %v1552_v57, %v1397_v59  ;;  %v1387_v59 = vmul.f32 %v2724_v17, %v2800_v13  ;;  %v1389_v13 = vmul.f32 %v2724_v17, %v2813_v31 }
 0x1f9   : > { %1686 = vst.msk [vmem:[%s2779_s22 + $0x80] sm:$0xff] %vm1669_vm0, %v1664_v32  ;;  %v1645_v63 = vadd.f32 %v2760_v1, %v1617_v16  ;;  %v1591_v33 = vadd.f32 %v1570_v8, %v1415_v6  ;;  %v1457_v35 = vpop.permute.xlu1 %1456 }
 0x1fa   : > { %v1648_v23 = vmax.f32 %v1627_v25, 0.0  ;;  %v1601_v24 = vmul.f32 %v2749_v28, %v1573_v27  ;;  %v1553_v60 = vmul.f32 %v2736_v43, %v1457_v35  ;;  %v1408_v16 = vadd.f32 %v1387_v59, %v2689_v40 }
 0x1fb   : > { %v1666_v61 = vmax.f32 %v1645_v63, 0.0  ;;  %v1619_v4 = vmul.f32 %v2749_v28, %v1591_v33  ;;  %v1391_v63 = vmul.f32 %v2724_v17, %v2826_v39  ;;  %v1410_v40 = vadd.f32 %v1389_v13, %v2693_v26 }
 0x1fc   : > { %1670 = vst.msk [vmem:[%s2779_s22] sm:$0xff] %vm1669_vm0, %v1648_v23  ;;  %v1629_v9 = vadd.f32 %v2760_v1, %v1601_v24  ;;  %v1574_v51 = vadd.f32 %v1553_v60, %v1398_v12  ;;  %v1393_v39 = vmul.f32 %v2724_v17, %v2842_v58 }
 0x1fd   : > { %1688 = vst.msk [vmem:[%s2779_s22 + $0x90] sm:$0xff] %vm1669_vm0, %v1666_v61  ;;  %v1647_v52 = vadd.f32 %v2760_v1, %v1619_v4  ;;  %v1467_v47 = vpop.permute.xlu1 %1466  ;;  %v1412_v60 = vadd.f32 %v1391_v63, %v2697_v38 }
 0x1fe   : > { %v1650_v18 = vmax.f32 %v1629_v9, 0.0  ;;  %v1602_v49 = vmul.f32 %v2749_v28, %v1574_v51  ;;  %v1555_v3 = vmul.f32 %v2736_v43, %v1467_v47  ;;  %v1414_v47 = vadd.f32 %v1393_v39, %v2703_v19 }
 0x1ff   : > { %v1668_v53 = vmax.f32 %v1647_v52, 0.0 }
 0x200   : > { %1672 = vst.msk [vmem:[%s2779_s22 + $0x10] sm:$0xff] %vm1669_vm0, %v1650_v18  ;;  %v1630_v20 = vadd.f32 %v2760_v1, %v1602_v49  ;;  %v1576_v42 = vadd.f32 %v1555_v3, %v1400_v14 }
 0x201   : > { %1691 = vst.msk [vmem:[%s2779_s22 + $0xa0] sm:$0xf] %vm1690_vm1, %v1668_v53  ;;  %v1477_v56 = vpop.permute.xlu1 %1476 }
 0x202   : > { %v1651_v48 = vmax.f32 %v1630_v20, 0.0  ;;  %v1604_v34 = vmul.f32 %v2749_v28, %v1576_v42  ;;  %v1557_v36 = vmul.f32 %v2736_v43, %v1477_v56 }
 0x204   : > { %1673 = vst.msk [vmem:[%s2779_s22 + $0x18] sm:$0xff] %vm1669_vm0, %v1651_v48  ;;  %v1632_v37 = vadd.f32 %v2760_v1, %v1604_v34  ;;  %v1578_v21 = vadd.f32 %v1557_v36, %v1402_v46 }
 0x205   : > { %v1487_v0 = vpop.permute.xlu1 %1486 }
 0x206   : > { %v1653_v7 = vmax.f32 %v1632_v37, 0.0  ;;  %v1606_v44 = vmul.f32 %v2749_v28, %v1578_v21  ;;  %v1559_v10 = vmul.f32 %v2736_v43, %v1487_v0 }
 0x208   : > { %1675 = vst.msk [vmem:[%s2779_s22 + $0x28] sm:$0xff] %vm1669_vm0, %v1653_v7  ;;  %v1634_v2 = vadd.f32 %v2760_v1, %v1606_v44  ;;  %v1580_v30 = vadd.f32 %v1559_v10, %v1404_v45 }
 0x209   : > { %v1497_v11 = vpop.permute.xlu1 %1496 }
 0x20a   : > { %v1655_v55 = vmax.f32 %v1634_v2, 0.0  ;;  %v1608_v15 = vmul.f32 %v2749_v28, %v1580_v30  ;;  %v1561_v57 = vmul.f32 %v2736_v43, %v1497_v11 }
 0x20c   : > { %1677 = vst.msk [vmem:[%s2779_s22 + $0x38] sm:$0xff] %vm1669_vm0, %v1655_v55  ;;  %v1636_v5 = vadd.f32 %v2760_v1, %v1608_v15  ;;  %v1582_v32 = vadd.f32 %v1561_v57, %v1406_v22 }
 0x20d   : > { %v1507_v6 = vpop.permute.xlu1 %1506 }
 0x20e   : > { %v1657_v8 = vmax.f32 %v1636_v5, 0.0  ;;  %v1610_v62 = vmul.f32 %v2749_v28, %v1582_v32  ;;  %v1563_v25 = vmul.f32 %v2736_v43, %v1507_v6 }
 0x210   : > { %1679 = vst.msk [vmem:[%s2779_s22 + $0x48] sm:$0xff] %vm1669_vm0, %v1657_v8  ;;  %v1638_v27 = vadd.f32 %v2760_v1, %v1610_v62  ;;  %v1584_v29 = vadd.f32 %v1563_v25, %v1408_v16 }
 0x211   : > { %v1517_v33 = vpop.permute.xlu1 %1516 }
 0x212   : > { %v1659_v35 = vmax.f32 %v1638_v27, 0.0  ;;  %v1612_v31 = vmul.f32 %v2749_v28, %v1584_v29  ;;  %v1565_v12 = vmul.f32 %v2736_v43, %v1517_v33 }
 0x214   : > { %1681 = vst.msk [vmem:[%s2779_s22 + $0x58] sm:$0xff] %vm1669_vm0, %v1659_v35  ;;  %v1640_v23 = vadd.f32 %v2760_v1, %v1612_v31  ;;  %v1586_v24 = vadd.f32 %v1565_v12, %v1410_v40 }
 0x215   : > { %v1527_v61 = vpop.permute.xlu1 %1526 }
 0x216   : > { %v1661_v4 = vmax.f32 %v1640_v23, 0.0  ;;  %v1614_v26 = vmul.f32 %v2749_v28, %v1586_v24  ;;  %v1567_v9 = vmul.f32 %v2736_v43, %v1527_v61 }
 0x218   : > { %1683 = vst.msk [vmem:[%s2779_s22 + $0x68] sm:$0xff] %vm1669_vm0, %v1661_v4  ;;  %v1642_v51 = vadd.f32 %v2760_v1, %v1614_v26  ;;  %v1588_v14 = vadd.f32 %v1567_v9, %v1412_v60 }
 0x219   : > { %v1537_v52 = vpop.permute.xlu1 %1536 }
 0x21a   : > { %v1663_v38 = vmax.f32 %v1642_v51, 0.0  ;;  %v1616_v41 = vmul.f32 %v2749_v28, %v1588_v14  ;;  %v1569_v17 = vmul.f32 %v2736_v43, %v1537_v52 }
 0x21c   : > { %1685 = vst.msk [vmem:[%s2779_s22 + $0x78] sm:$0xff] %vm1669_vm0, %v1663_v38  ;;  %v1644_v58 = vadd.f32 %v2760_v1, %v1616_v41  ;;  %v1590_v18 = vadd.f32 %v1569_v17, %v1414_v47 }
 0x21e   : > { %v1665_v49 = vmax.f32 %v1644_v58, 0.0  ;;  %v1618_v3 = vmul.f32 %v2749_v28, %v1590_v18 }
 0x220   : > { %1687 = vst.msk [vmem:[%s2779_s22 + $0x88] sm:$0xff] %vm1669_vm0, %v1665_v49  ;;  %v1646_v53 = vadd.f32 %v2760_v1, %v1618_v3 }
 0x222   : > { %v1667_v20 = vmax.f32 %v1646_v53, 0.0 }
 0x224   : > { %1689 = vst.msk [vmem:[%s2779_s22 + $0x98] sm:$0xff] %vm1669_vm0, %v1667_v20 }
 0x225 PF: > { %s14_s15 = sadd.s32 1, %s1803_s15  }
 0x226   : > { %p11_p4 = scmp.ge.s32.totalorder %s14_s15, 4  }
 0x228   :  { %13 = sbr.rel (!%p11_p4) target bundleno = 1 (0x1), region = 74 }

// kernel: acdnet_forward.15
= control target key start
LH: loop header
LB: loop body
LE: loop exit
PB: predicated region body
PF: predicated region fallthrough
CT: control target
= control target key end

     0   :  { %s4495_s15 = smov 0   ;;  %s4497_s16 = smov 0   ;;  %s6457_s0 = inlined_call_operand.vmem [shape: bf16[2,342,1], index: 0, kind: input, shape index: {}]   ;;  %s6458_s1 = inlined_call_operand.vmem [shape: bf16[9,1,8], index: 1, kind: input, shape index: {}]   ;;  %s6459_s2 = inlined_call_operand.vmem [shape: f32[1,8], index: 2, kind: input, shape index: {}]   ;;  %s6460_s3 = inlined_call_operand.vmem [shape: f32[1,8], index: 3, kind: input, shape index: {}]   ;;  %s6461_s4 = inlined_call_operand.vmem [shape: bf16[2,288,8], index: 4, kind: output, shape index: {}]  }
   0x1   :  { %s4499_s17 = smov 0  }
   0x2 LB: > { %s26_s18 = sadd.s32 1, %s4463_s16  ;;  %p3604_p0 = scmp.ge.s32.totalorder %s4467_s17, 1  ;;  %s4467_s17 = sphi %s4499_s17, %s14_s17   ;;  %s4463_s16 = sphi %s4497_s16, %s6618_s16   ;;  %s4459_s15 = sphi %s4495_s15, %s6617_s15  }
   0x3   : > { %p28_p1 = scmp.ge.s32.totalorder %s26_s18, 2  ;;  %p200_p2 = scmp.lt.s32.totalorder %s4467_s17, 3 }
   0x5   : > { %s6620_s18 = smov (%p28_p1, %s26_s18), 0  ;;  %p201_p3 = pnand %p3604_p0, %p200_p2 }
   0x7   : > { %204 = sbr.rel (%p201_p3) target bundleno = 564 (0x234), region = 36 }
   0xc   : > { %p238_p4 = scmp.lt.s32.totalorder %s4459_s15, 1  ;;  %v4469_v0 = vmov 0   ;;  %vm894_vm0 = vcmask 1046528   ;;  %vm1128_vm1 = vcmask 1045504   ;;  %vm1847_vm2 = vcmask 1044480  }
   0xd   : > { %4077 = vset.pattern.permute.xlu1 %v4469_v0  ;;  %4066 = vset.pattern.permute.xlu0 %v4469_v0  ;;  %vm2081_vm3 = vcmask 1043456   ;;  %vm2800_vm4 = vcmask 1042432   ;;  %vm3034_vm5 = vcmask 1041408   ;;  %vm3446_vm6 = vcmask 60416  }
   0xe   : > { %s6622_s15 = smov (!%p238_p4, %s4459_s15), 1 }
   0xf   : > { %s4039_s19 = smul.u32 172, %s6622_s15 }
  0x10   : > { %s4040_s23 = smul.u32 144, %s6622_s15 }
  0x11   : > { %s4519_s22 = scalar_lea.vmem %s6457_s0, %s4039_s19 }
  0x12   : > { %v3972_v1 = vld [vmem:[%s4519_s22 + $0x10] sm:$0xff]   ;;  %v3692_v2 = vld [vmem:[%s4519_s22] sm:$0xff]   ;;  %v4524_v3 = vld [vmem:[%s4519_s22 + $0x18] sm:$0xff]   ;;  %s5889_s25 = scalar_lea.vmem %s6461_s4, %s4040_s23 }
  0x13   : > { %v3701_v4 = vunpack.c.l.bf16 %v3972_v1  ;;  %v3702_v5 = vunpack.c.h.bf16 %v3972_v1  ;;  %v3693_v6 = vunpack.c.l.bf16 %v3692_v2  ;;  %v3694_v7 = vunpack.c.h.bf16 %v3692_v2  ;;  %v3971_v8 = vld [vmem:[%s4519_s22 + $0x8] sm:$0xff]   ;;  %v4533_v14 = vld [vmem:[%s4519_s22 + $0x20] sm:$0xff]   ;;  %v3977_v23 = vld [vmem:[%s4519_s22 + $0x38] sm:$0xff]  }
  0x14   : > { %v4528_v9 = vld [vmem:[%s4519_s22 + $0x28] sm:$0xff]   ;;  %v3705_v10 = vunpack.c.l.bf16 %v4524_v3  ;;  %v3706_v11 = vunpack.c.h.bf16 %v4524_v3  ;;  %v3697_v12 = vunpack.c.l.bf16 %v3971_v8  ;;  %v3698_v13 = vunpack.c.h.bf16 %v3971_v8  ;;  %v3976_v24 = vld [vmem:[%s4519_s22 + $0x30] sm:$0xff]   ;;  %v3978_v26 = vld [vmem:[%s4519_s22 + $0x40] sm:$0xff]  }
  0x15   : > { %v4535_v15 = vpack.i.bf16 %v3702_v5, %v3701_v4  ;;  %v4537_v16 = vpack.i.bf16 %v3694_v7, %v3693_v6  ;;  %v3713_v17 = vunpack.c.l.bf16 %v4528_v9  ;;  %v3714_v18 = vunpack.c.h.bf16 %v4528_v9  ;;  %v3979_v25 = vld [vmem:[%s4519_s22 + $0x48] sm:$0xff]   ;;  %v3981_v29 = vld [vmem:[%s4519_s22 + $0x58] sm:$0xff]   ;;  %v3980_v34 = vld [vmem:[%s4519_s22 + $0x50] sm:$0xff]  }
  0x16   : > { %v4547_v19 = vpack.i.bf16 %v3706_v11, %v3705_v10  ;;  %v4549_v20 = vpack.i.bf16 %v3698_v13, %v3697_v12  ;;  %v3709_v21 = vunpack.c.l.bf16 %v4533_v14  ;;  %v3710_v22 = vunpack.c.h.bf16 %v4533_v14  ;;  %v3983_v41 = vld [vmem:[%s4519_s22 + $0x68] sm:$0xff]   ;;  %v3982_v44 = vld [vmem:[%s4519_s22 + $0x60] sm:$0xff]   ;;  %v3985_v47 = vld [vmem:[%s4519_s22 + $0x78] sm:$0xff]  }
  0x17   : > { %4079 = vperm.xlu1 %4077, %v4535_v15   ;;  %4068 = vperm.xlu0 %4066, %v4537_v16   ;;  %v4559_v27 = vpack.i.bf16 %v3714_v18, %v3713_v17  ;;  %v3721_v28 = vunpack.c.l.bf16 %v3977_v23  ;;  %v3722_v31 = vunpack.c.h.bf16 %v3977_v23  ;;  %v3717_v32 = vunpack.c.l.bf16 %v3976_v24  ;;  %v3984_v51 = vld [vmem:[%s4519_s22 + $0x70] sm:$0xff]   ;;  %v3987_v52 = vld [vmem:[%s4519_s22 + $0x88] sm:$0xff]   ;;  %v3986_v57 = vld [vmem:[%s4519_s22 + $0x80] sm:$0xff]  }
  0x18   : > { %v4564_v30 = vpack.i.bf16 %v3710_v22, %v3709_v21  ;;  %v3718_v33 = vunpack.c.h.bf16 %v3976_v24  ;;  %v3729_v35 = vunpack.c.l.bf16 %v3979_v25  ;;  %v3730_v36 = vunpack.c.h.bf16 %v3979_v25  ;;  %v4586_v58 = vld [vmem:[%s4519_s22 + $0xc] ss:$8 sps:$4 sm:$0xff]  }
  0x19   : > { %v3725_v37 = vunpack.c.l.bf16 %v3978_v26  ;;  %v3726_v38 = vunpack.c.h.bf16 %v3978_v26  ;;  %v3737_v39 = vunpack.c.l.bf16 %v3981_v29  ;;  %v3738_v40 = vunpack.c.h.bf16 %v3981_v29  ;;  %v4591_v62 = vld [vmem:[%s4519_s22 + $0x90] sm:$0xff]  }
  0x1a   : > { %v3733_v42 = vunpack.c.l.bf16 %v3980_v34  ;;  %v3734_v43 = vunpack.c.h.bf16 %v3980_v34  ;;  %v4571_v45 = vpack.i.bf16 %v3722_v31, %v3721_v28  ;;  %v4573_v46 = vpack.i.bf16 %v3718_v33, %v3717_v32 }
  0x1b   : > { %4084 = vperm.xlu1 %4077, %v4547_v19   ;;  %4073 = vperm.xlu0 %4066, %v4549_v20   ;;  %v4576_v48 = vpack.i.bf16 %v3730_v36, %v3729_v35  ;;  %v4578_v49 = vpack.i.bf16 %v3726_v38, %v3725_v37  ;;  %v3745_v50 = vunpack.c.l.bf16 %v3983_v41  ;;  %v4582_v53 = vpack.i.bf16 %v3738_v40, %v3737_v39 }
  0x1c   : > { %v3746_v54 = vunpack.c.h.bf16 %v3983_v41  ;;  %v3741_v55 = vunpack.c.l.bf16 %v3982_v44  ;;  %v3742_v56 = vunpack.c.h.bf16 %v3982_v44  ;;  %v4588_v59 = vpack.i.bf16 %v3734_v43, %v3733_v42  ;;  %v2227_v44 = vld [vmem:[%s4519_s22 + $0x10] sm:$0xc] }
  0x1d   : > { %v3753_v60 = vunpack.c.l.bf16 %v3985_v47  ;;  %v3754_v61 = vunpack.c.h.bf16 %v3985_v47  ;;  %v2267_v63 = vunpack.c.h.bf16 %v4586_v58  ;;  %v3749_v0 = vunpack.c.l.bf16 %v3984_v51 }
  0x1e   : > { %v3750_v1 = vunpack.c.h.bf16 %v3984_v51  ;;  %v3761_v2 = vunpack.c.l.bf16 %v3987_v52  ;;  %v3762_v4 = vunpack.c.h.bf16 %v3987_v52  ;;  %v3757_v5 = vunpack.c.l.bf16 %v3986_v57  ;;  %v296_v52 = vld [vmem:[%s6458_s1] sm:$0x1] }
  0x1f   : > { %4094 = vperm.xlu1 %4077, %v4559_v27   ;;  %4089 = vperm.xlu0 %4066, %v4564_v30   ;;  %v4598_v6 = vpack.i.bf16 %v3705_v10, %v2267_v63  ;;  %v4600_v7 = vpack.i.bf16 %v3713_v17, %v3710_v22  ;;  %v4604_v8 = vpack.i.bf16 %v3709_v21, %v3706_v11  ;;  %v3758_v12 = vunpack.c.h.bf16 %v3986_v57 }
  0x20   : > { %v3901_v13 = vunpack.c.l.bf16 %v4591_v62  ;;  %v4607_v14 = vpack.i.bf16 %v3721_v28, %v3718_v33  ;;  %v4611_v23 = vpack.i.bf16 %v3717_v32, %v3714_v18  ;;  %v4613_v24 = vpack.i.bf16 %v3729_v35, %v3726_v38  ;;  %v1040_v35 = vld [vmem:[%s4519_s22] sm:$0xe] }
  0x21   : > { %v4615_v25 = vpack.i.bf16 %v3725_v37, %v3722_v31  ;;  %v4617_v10 = vpack.i.bf16 %v3737_v39, %v3734_v43  ;;  %v4619_v17 = vpack.i.bf16 %v3733_v42, %v3730_v36  ;;  %v4623_v3 = vpack.i.bf16 %v3745_v50, %v3742_v56  ;;  %v1993_v43 = vld [vmem:[%s4519_s22 + $0x8] sm:$0xc] }
  0x22   : > { %v4625_v11 = vpack.i.bf16 %v3741_v55, %v3738_v40  ;;  %v4627_v21 = vpack.i.bf16 %v3753_v60, %v3750_v1  ;;  %v4629_v9 = vpack.i.bf16 %v3749_v0, %v3746_v54  ;;  %v4631_v18 = vpack.i.bf16 %v3761_v2, %v3758_v12 }
  0x23   : > { %4104 = vperm.xlu1 %4077, %v4571_v45   ;;  %4099 = vperm.xlu0 %4066, %v4573_v46   ;;  %v4633_v22 = vpack.i.bf16 %v3757_v5, %v3754_v61  ;;  %v4637_v26 = vpack.i.bf16 %v3901_v13, %v3762_v4  ;;  %v4133_v28 = vpack.i.bf16 %v3746_v54, %v3745_v50  ;;  %v1314_v37 = vunpack.c.l.bf16 %v4586_v58 }
  0x24   : > { %v4128_v29 = vpack.i.bf16 %v3742_v56, %v3741_v55  ;;  %v4143_v31 = vpack.i.bf16 %v3754_v61, %v3753_v60  ;;  %v4138_v32 = vpack.i.bf16 %v3750_v1, %v3749_v0  ;;  %v4153_v33 = vpack.i.bf16 %v3762_v4, %v3761_v2  ;;  %v4038_v0 = vld [vmem:[%s4519_s22 + $0x98] sm:$0xff]  }
  0x25   : > { %v4148_v34 = vpack.i.bf16 %v3758_v12, %v3757_v5  ;;  %v1043_v39 = vunpack.c.l.bf16 %v1040_v35  ;;  %v3902_v42 = vunpack.c.h.bf16 %v4591_v62  ;;  %v1996_v47 = vunpack.c.l.bf16 %v1993_v43 }
  0x26   : > { %v514_v50 = vlaneseq }
  0x27   : > { %4114 = vperm.xlu1 %4077, %v4576_v48   ;;  %4109 = vperm.xlu0 %4066, %v4578_v49  }
  0x28   : > { %v515_v51 = vshrl.u32 %v514_v50, 7 }
  0x2a   : > { %v4680_v54 = vsub.s32 0, %v515_v51 }
  0x2b   : > { %4124 = vperm.xlu1 %4077, %v4582_v53   ;;  %4119 = vperm.xlu0 %4066, %v4588_v59  }
  0x2c   : > { %6499 = vst [vmem:[#allocation2_spill] sm:$0xff] %v4680_v54 }
  0x2f   : > { %4134 = vperm.xlu1 %4077, %v4133_v28   ;;  %4129 = vperm.xlu0 %4066, %v4128_v29  }
  0x33   : > { %4144 = vperm.xlu1 %4077, %v4143_v31   ;;  %4139 = vperm.xlu0 %4066, %v4138_v32  }
  0x37   : > { %4154 = vperm.xlu1 %4077, %v4153_v33   ;;  %4149 = vperm.xlu0 %4066, %v4148_v34  }
  0x3b   : > { %4164 = vperm.xlu1 %4077, %v4549_v20   ;;  %4159 = vperm.xlu0 %4066, %v4537_v16   ;;  %v1274_v16 = vld [vmem:[%s4519_s22 + $0x8] sm:$0xe]  ;;  %v590_v20 = vld [vmem:[%s4519_s22 + $0x90] sm:$0x1] }
  0x3c   : > { %v1313_v36 = vunpack.c.l.bf16 %v1274_v16  ;;  %v629_v38 = vunpack.c.l.bf16 %v590_v20 }
  0x3e   : > { %v4253_v40 = vpack.i.bf16 %v1314_v37, %v1313_v36  ;;  %v4248_v41 = vpack.i.bf16 %v1043_v39, %v629_v38 }
  0x3f   : > { %4174 = vperm.xlu1 %4077, %v4547_v19   ;;  %4169 = vperm.xlu0 %4066, %v4535_v15  }
  0x43   : > { %4184 = vperm.xlu1 %4077, %v4559_v27   ;;  %4179 = vperm.xlu0 %4066, %v4564_v30  }
  0x47   : > { %4194 = vperm.xlu1 %4077, %v4571_v45   ;;  %4189 = vperm.xlu0 %4066, %v4573_v46  }
  0x4b   : > { %4204 = vperm.xlu1 %4077, %v4576_v48   ;;  %4199 = vperm.xlu0 %4066, %v4578_v49  }
  0x4f   : > { %4214 = vperm.xlu1 %4077, %v4582_v53   ;;  %4209 = vperm.xlu0 %4066, %v4588_v59  }
  0x53   : > { %4224 = vperm.xlu1 %4077, %v4133_v28   ;;  %4219 = vperm.xlu0 %4066, %v4128_v29  }
  0x57   : > { %4234 = vperm.xlu1 %4077, %v4143_v31   ;;  %4229 = vperm.xlu0 %4066, %v4138_v32  }
  0x5b   : > { %4244 = vperm.xlu1 %4077, %v4153_v33   ;;  %4239 = vperm.xlu0 %4066, %v4148_v34  }
  0x5f   : > { %4254 = vperm.xlu1 %4077, %v4253_v40   ;;  %4249 = vperm.xlu0 %4066, %v4248_v41   ;;  %v4749_v40 = vld [vmem:[%s6458_s1 + $0x5] sm:$0x1] }
  0x63   : > { %4264 = vperm.xlu1 %4077, %v4547_v19   ;;  %4259 = vperm.xlu0 %4066, %v4535_v15   ;;  %v1310_v15 = vld [vmem:[%s4519_s22 + $0x98] sm:$0x1] }
  0x64   : > { %v1759_v19 = vld [vmem:[%s4519_s22 + $0x98] sm:$0x3] }
  0x67   : > { %4274 = vperm.xlu1 %4077, %v4559_v27   ;;  %4269 = vperm.xlu0 %4066, %v4564_v30   ;;  %v1349_v27 = vunpack.c.l.bf16 %v1310_v15  ;;  %v1762_v30 = vunpack.c.l.bf16 %v1759_v19 }
  0x6b   : > { %4284 = vperm.xlu1 %4077, %v4571_v45   ;;  %4279 = vperm.xlu0 %4066, %v4573_v46   ;;  %v4343_v45 = vpack.i.bf16 %v1762_v30, %v1349_v27  ;;  %v4338_v46 = vpack.i.bf16 %v3902_v42, %v3901_v13  ;;  %v3607_v13 = vld [vmem:[%s6458_s1 + $0x1] sm:$0x1] }
  0x6f   : > { %4294 = vperm.xlu1 %4077, %v4576_v48   ;;  %4289 = vperm.xlu0 %4066, %v4578_v49   ;;  %v2266_v48 = vunpack.c.l.bf16 %v2227_v44 }
  0x71   : > { %v4348_v49 = vpack.i.bf16 %v2266_v48, %v1996_v47 }
  0x73   : > { %4304 = vperm.xlu1 %4077, %v4582_v53   ;;  %4299 = vperm.xlu0 %4066, %v4588_v59   ;;  %v333_v53 = vunpack.c.l.bf16 %v296_v52 }
  0x75   : > { %v4685_v55 = vrot.slane %v333_v53, %v4680_v54 }
  0x77   : > { %4314 = vperm.xlu1 %4077, %v4133_v28   ;;  %4309 = vperm.xlu0 %4066, %v4128_v29   ;;  %v630_v28 = vunpack.c.l.bf16 %v3607_v13 }
  0x79   : > { %v4752_v15 = vrot.slane %v630_v28, %v4680_v54 }
  0x7b   : > { %4324 = vperm.xlu1 %4077, %v4143_v31   ;;  %4319 = vperm.xlu0 %4066, %v4138_v32  }
  0x7f   : > { %4334 = vperm.xlu1 %4077, %v4153_v33   ;;  %4329 = vperm.xlu0 %4066, %v4148_v34   ;;  %v2946_v33 = vld [vmem:[%s4519_s22 + $0x10] sm:$0x8] }
  0x80   : > { %v2949_v41 = vunpack.c.l.bf16 %v2946_v33 }
  0x83   : > { %4344 = vperm.xlu1 %4077, %v4343_v45   ;;  %4339 = vperm.xlu0 %4066, %v4338_v46  }
  0x87   : > { %4354 = vperm.xlu1 %4077, %v4598_v6   ;;  %4349 = vperm.xlu0 %4066, %v4348_v49   ;;  %v3969_v6 = vunpack.c.l.bf16 %v4038_v0 }
  0x8b   : > { %4364 = vperm.xlu1 %4077, %v4600_v7   ;;  %4359 = vperm.xlu0 %4066, %v4604_v8   ;;  %v2263_v7 = vld [vmem:[%s4519_s22 + $0xa0] sm:$0x3] }
  0x8f   : > { %4374 = vperm.xlu1 %4077, %v4607_v14   ;;  %4369 = vperm.xlu0 %4066, %v4611_v23   ;;  %v3608_v14 = vld [vmem:[%s6458_s1 + $0x2] sm:$0x1] }
  0x90   : > { %v1044_v29 = vunpack.c.l.bf16 %v3608_v14 }
  0x92   : > { %v4687_v56 = vpop.permute.xlu1 %4079  ;;  %v4689_v57 = vpop.permute.xlu0 %4068  ;;  %v4755_v19 = vrot.slane %v1044_v29, %v4680_v54 }
  0x93   : > { %v4070_v58 = vunpack.i.l.bf16 %v4689_v57  ;;  %4384 = vperm.xlu1 %4077, %v4613_v24   ;;  %4379 = vperm.xlu0 %4066, %v4615_v25   ;;  %v3970_v25 = vunpack.c.h.bf16 %v4038_v0  ;;  %v4082_v44 = vunpack.i.h.bf16 %v4687_v56  ;;  %v4081_v45 = vunpack.i.l.bf16 %v4687_v56 }
  0x95   : > { %v4695_v59 = vmul.f32 %v4070_v58, %v4685_v55  ;;  %v4071_v58 = vunpack.i.h.bf16 %v4689_v57  ;;  %v4792_v57 = vmul.f32 %v4082_v44, %v4685_v55  ;;  %v4795_v13 = vmul.f32 %v4081_v45, %v4685_v55 }
  0x96   : > { %v4697_v60 = vpop.permute.xlu1 %4084  ;;  %v4699_v61 = vpop.permute.xlu0 %4073 }
  0x97   : > { %4394 = vperm.xlu1 %4077, %v4617_v10   ;;  %4389 = vperm.xlu0 %4066, %v4619_v17   ;;  %v2302_v10 = vunpack.c.l.bf16 %v2263_v7  ;;  %v4087_v0 = vunpack.i.h.bf16 %v4697_v60  ;;  %v4076_v56 = vunpack.i.h.bf16 %v4699_v61 }
  0x99   : > { %v4438_v20 = vpack.i.bf16 %v2302_v10, %v3970_v25 }
  0x9a   : > { %v4703_v62 = vpop.permute.xlu1 %4094  ;;  %v4705_v63 = vpop.permute.xlu0 %4089 }
  0x9b   : > { %4404 = vperm.xlu1 %4077, %v4623_v3   ;;  %4399 = vperm.xlu0 %4066, %v4625_v11   ;;  %v4433_v11 = vpack.i.bf16 %v3969_v6, %v3902_v42  ;;  %v4091_v44 = vunpack.i.l.bf16 %v4705_v63 }
  0x9e   : > { %v4105_v1 = vpop.permute.xlu1 %4104  ;;  %v4710_v2 = vpop.permute.xlu0 %4099 }
  0x9f   : > { %v4107_v4 = vunpack.i.h.bf16 %v4105_v1  ;;  %v4106_v5 = vunpack.i.l.bf16 %v4105_v1  ;;  %4414 = vperm.xlu1 %4077, %v4627_v21   ;;  %4409 = vperm.xlu0 %4066, %v4629_v9   ;;  %v2712_v21 = vld [vmem:[%s4519_s22 + $0xa0] sm:$0x7]  ;;  %v3609_v9 = vld [vmem:[%s6458_s1 + $0x3] sm:$0x1]  ;;  %v4086_v1 = vunpack.i.l.bf16 %v4697_v60  ;;  %v4075_v60 = vunpack.i.l.bf16 %v4699_v61 }
  0xa0   : > { %v2715_v16 = vunpack.c.l.bf16 %v2712_v21  ;;  %v1350_v35 = vunpack.c.l.bf16 %v3609_v9  ;;  %v4802_v21 = vmul.f32 %v4071_v58, %v4685_v55  ;;  %v4805_v9 = vmul.f32 %v4087_v0, %v4685_v55 }
  0xa1   : > { %v4716_v8 = vmul.f32 %v4107_v4, %v4685_v55  ;;  %v4719_v12 = vmul.f32 %v4106_v5, %v4685_v55  ;;  %v4808_v28 = vmul.f32 %v4086_v1, %v4685_v55  ;;  %v4811_v61 = vmul.f32 %v4076_v56, %v4685_v55 }
  0xa2   : > { %v4115_v23 = vpop.permute.xlu1 %4114  ;;  %v4727_v24 = vpop.permute.xlu0 %4109  ;;  %v4772_v48 = vrot.slane %v1350_v35, %v4680_v54  ;;  %v4092_v35 = vunpack.i.h.bf16 %v4705_v63  ;;  %v4102_v45 = vunpack.i.h.bf16 %v4710_v2 }
  0xa3   : > { %v4117_v17 = vunpack.i.h.bf16 %v4115_v23  ;;  %v4116_v3 = vunpack.i.l.bf16 %v4115_v23  ;;  %4424 = vperm.xlu1 %4077, %v4631_v18   ;;  %4419 = vperm.xlu0 %4066, %v4633_v22   ;;  %v3610_v18 = vld [vmem:[%s6458_s1 + $0x4] sm:$0x1]  ;;  %v4111_v58 = vunpack.i.l.bf16 %v4727_v24 }
  0xa4   : > { %v1763_v27 = vunpack.c.l.bf16 %v3610_v18 }
  0xa5   : > { %v4736_v31 = vmul.f32 %v4117_v17, %v4685_v55  ;;  %v4739_v32 = vmul.f32 %v4116_v3, %v4685_v55 }
  0xa6   : > { %v4125_v22 = vpop.permute.xlu1 %4124  ;;  %v4120_v34 = vpop.permute.xlu0 %4119  ;;  %v4799_v25 = vrot.slane %v1763_v27, %v4680_v54 }
  0xa7   : > { %v4127_v36 = vunpack.i.h.bf16 %v4125_v22  ;;  %v4126_v37 = vunpack.i.l.bf16 %v4125_v22  ;;  %v4122_v38 = vunpack.i.h.bf16 %v4120_v34  ;;  %v4121_v39 = vunpack.i.l.bf16 %v4120_v34  ;;  %4434 = vperm.xlu1 %4077, %v4433_v11   ;;  %4429 = vperm.xlu0 %4066, %v4637_v26  }
  0xa8   : > { %v520_v34 = vmul.f32 %v4075_v60, %v4685_v55 }
  0xa9   : > { %v4758_v30 = vmul.f32 %v4127_v36, %v4685_v55  ;;  %v4761_v42 = vmul.f32 %v4126_v37, %v4685_v55  ;;  %v4764_v26 = vmul.f32 %v4122_v38, %v4685_v55  ;;  %v4767_v43 = vmul.f32 %v4121_v39, %v4685_v55 }
  0xaa   : > { %v4135_v46 = vpop.permute.xlu1 %4134  ;;  %v4130_v47 = vpop.permute.xlu0 %4129 }
  0xab   : > { %v4137_v50 = vunpack.i.h.bf16 %v4135_v46  ;;  %v4136_v51 = vunpack.i.l.bf16 %v4135_v46  ;;  %v4132_v52 = vunpack.i.h.bf16 %v4130_v47  ;;  %v4131_v53 = vunpack.i.l.bf16 %v4130_v47  ;;  %2719 = vperm.xlu1 %4077, %v2715_v16   ;;  %4439 = vperm.xlu0 %4066, %v4438_v20  }
  0xac   : > { %v4097_v16 = vunpack.i.h.bf16 %v4703_v62  ;;  %v4096_v20 = vunpack.i.l.bf16 %v4703_v62  ;;  %v4101_v46 = vunpack.i.l.bf16 %v4710_v2  ;;  %v4112_v47 = vunpack.i.h.bf16 %v4727_v24 }
  0xad   : > { %v4780_v4 = vmul.f32 %v4137_v50, %v4685_v55  ;;  %v4783_v5 = vmul.f32 %v4136_v51, %v4685_v55  ;;  %v4786_v6 = vmul.f32 %v4132_v52, %v4685_v55  ;;  %v4789_v7 = vmul.f32 %v4131_v53, %v4685_v55 }
  0xae   : > { %v4145_v14 = vpop.permute.xlu1 %4144  ;;  %v4140_v23 = vpop.permute.xlu0 %4139  ;;  %v4846_v63 = vmul.f32 %v4097_v16, %v4685_v55  ;;  %v4849_v53 = vmul.f32 %v4096_v20, %v4685_v55  ;;  %v4852_v2 = vmul.f32 %v4092_v35, %v4685_v55 }
  0xaf   : > { %v4147_v10 = vunpack.i.h.bf16 %v4145_v14  ;;  %v4146_v17 = vunpack.i.l.bf16 %v4145_v14  ;;  %v4142_v3 = vunpack.i.h.bf16 %v4140_v23  ;;  %v4141_v11 = vunpack.i.l.bf16 %v4140_v23  ;;  %2953 = vperm.xlu0 %4066, %v2949_v41  }
  0xb1   : > { %v4814_v29 = vmul.f32 %v4147_v10, %v4685_v55  ;;  %v4817_v33 = vmul.f32 %v4146_v17, %v4685_v55  ;;  %v4820_v18 = vmul.f32 %v4142_v3, %v4685_v55  ;;  %v4823_v22 = vmul.f32 %v4141_v11, %v4685_v55 }
  0xb2   : > { %v4155_v36 = vpop.permute.xlu1 %4154  ;;  %v4150_v37 = vpop.permute.xlu0 %4149  ;;  %v4856_v10 = vmul.f32 %v4091_v44, %v4685_v55  ;;  %v4859_v17 = vmul.f32 %v4102_v45, %v4685_v55  ;;  %v4862_v3 = vmul.f32 %v4101_v46, %v4685_v55  ;;  %v4865_v11 = vmul.f32 %v4112_v47, %v4685_v55 }
  0xb3   : > { %v4157_v38 = vunpack.i.h.bf16 %v4155_v36  ;;  %v4156_v39 = vunpack.i.l.bf16 %v4155_v36  ;;  %v4152_v41 = vunpack.i.h.bf16 %v4150_v37  ;;  %v4151_v27 = vunpack.i.l.bf16 %v4150_v37 }
  0xb4   : > { %v4876_v36 = vmul.f32 %v4111_v58, %v4685_v55 }
  0xb5   : > { %v4834_v62 = vmul.f32 %v4157_v38, %v4685_v55  ;;  %v4837_v50 = vmul.f32 %v4156_v39, %v4685_v55  ;;  %v4840_v51 = vmul.f32 %v4152_v41, %v4685_v55  ;;  %v4843_v52 = vmul.f32 %v4151_v27, %v4685_v55 }
  0xb6   : > { %v4165_v0 = vpop.permute.xlu1 %4164  ;;  %v4160_v1 = vpop.permute.xlu0 %4159 }
  0xb7   : > { %6500 = vst [vmem:[#allocation3_spill] sm:$0xff] %v4834_v62  ;;  %6501 = vst [vmem:[#allocation4_spill] sm:$0xff] %v4843_v52  ;;  %v4167_v56 = vunpack.i.h.bf16 %v4165_v0  ;;  %v4166_v60 = vunpack.i.l.bf16 %v4165_v0  ;;  %v4162_v14 = vunpack.i.h.bf16 %v4160_v1  ;;  %v4161_v23 = vunpack.i.l.bf16 %v4160_v1 }
  0xb9   : > { %v4868_v24 = vmul.f32 %v4167_v56, %v4752_v15  ;;  %v4871_v16 = vmul.f32 %v4167_v56, %v4755_v19  ;;  %v822_v20 = vmul.f32 %v4166_v60, %v4752_v15  ;;  %v1056_v35 = vmul.f32 %v4166_v60, %v4755_v19 }
  0xba   : > { %v821_v37 = vmul.f32 %v4162_v14, %v4752_v15  ;;  %v4880_v38 = vmul.f32 %v4162_v14, %v4755_v19  ;;  %v820_v39 = vmul.f32 %v4161_v23, %v4752_v15  ;;  %v4175_v41 = vpop.permute.xlu1 %4174  ;;  %v4170_v27 = vpop.permute.xlu0 %4169 }
  0xbb   : > { %v900_v44 = vrot.slane %v4868_v24, 1  ;;  %v1134_v45 = vrot.slane %v4871_v16, 2  ;;  %v898_v46 = vrot.slane %v822_v20, 1  ;;  %v1132_v47 = vrot.slane %v1056_v35, 2 }
  0xbc   : > { %6502 = vst [vmem:[#allocation5_spill] sm:$0xff] %v4880_v38  ;;  %v896_v0 = vrot.slane %v821_v37, 1  ;;  %v6462_v1 = vrot.slane %v4880_v38, 2  ;;  %v895_v55 = vrot.slane %v820_v39, 1  ;;  %v4177_v58 = vunpack.i.h.bf16 %v4175_v41 }
  0xbd   : > { %v901_v56 = vsel %vm894_vm0, %v898_v46, %v900_v44  ;;  %v1135_v60 = vsel %vm1128_vm1, %v1132_v47, %v1134_v45  ;;  %v4176_v14 = vunpack.i.l.bf16 %v4175_v41  ;;  %v4172_v49 = vunpack.i.h.bf16 %v4170_v27 }
  0xbe   : > { %v1006_v23 = vadd.f32 %v901_v56, %v520_v34  ;;  %v899_v62 = vsel %vm894_vm0, %v896_v0, %v898_v46  ;;  %v1133_v24 = vsel %vm1128_vm1, %v6462_v1, %v1132_v47  ;;  %v897_v16 = vsel %vm894_vm0, %v895_v55, %v896_v0  ;;  %v4185_v0 = vpop.permute.xlu1 %4184  ;;  %v4180_v55 = vpop.permute.xlu0 %4179 }
  0xbf   : > { %v4894_v20 = vadd.f32 %v897_v16, %v4695_v59  ;;  %v1005_v35 = vadd.f32 %v899_v62, %v4802_v21  ;;  %v4898_v37 = vmul.f32 %v4177_v58, %v4752_v15  ;;  %v4901_v39 = vmul.f32 %v4177_v58, %v4755_v19 }
  0xc0   : > { %v4903_v34 = vadd.f32 %v1135_v60, %v1006_v23  ;;  %v826_v41 = vmul.f32 %v4176_v14, %v4752_v15  ;;  %v1060_v46 = vmul.f32 %v4176_v14, %v4755_v19  ;;  %v825_v47 = vmul.f32 %v4172_v49, %v4752_v15 }
  0xc1   : > { %6503 = vst [vmem:[#allocation6_spill] sm:$0xff] %v4894_v20  ;;  %v4908_v59 = vadd.f32 %v1133_v24, %v1005_v35  ;;  %v6464_v21 = vrot.slane %v4898_v37, 1  ;;  %v6465_v62 = vrot.slane %v4901_v39, 2  ;;  %v1059_v56 = vmul.f32 %v4172_v49, %v4755_v19 }
  0xc2   : > { %6504 = vst [vmem:[#allocation7_spill] sm:$0xff] %v4903_v34  ;;  %v906_v58 = vrot.slane %v826_v41, 1  ;;  %v1140_v16 = vrot.slane %v1060_v46, 2  ;;  %v904_v60 = vrot.slane %v825_v47, 1  ;;  %v4171_v23 = vunpack.i.l.bf16 %v4170_v27 }
  0xc3   : > { %6505 = vst [vmem:[#allocation8_spill] sm:$0xff] %v4908_v59  ;;  %v1138_v1 = vrot.slane %v1059_v56, 2  ;;  %v4187_v34 = vunpack.i.h.bf16 %v4185_v0  ;;  %v4186_v20 = vunpack.i.l.bf16 %v4185_v0  ;;  %v4182_v14 = vunpack.i.h.bf16 %v4180_v55 }
  0xc4   : > { %v909_v38 = vsel %vm894_vm0, %v906_v58, %v6464_v21  ;;  %v1143_v24 = vsel %vm1128_vm1, %v1140_v16, %v6465_v62  ;;  %v907_v35 = vsel %vm894_vm0, %v904_v60, %v906_v58  ;;  %v824_v49 = vmul.f32 %v4171_v23, %v4752_v15 }
  0xc5   : > { %v1010_v41 = vadd.f32 %v909_v38, %v4808_v28  ;;  %v1009_v27 = vadd.f32 %v907_v35, %v4792_v57  ;;  %v1141_v46 = vsel %vm1128_vm1, %v1138_v1, %v1140_v16  ;;  %v1058_v47 = vmul.f32 %v4171_v23, %v4755_v19 }
  0xc6   : > { %v902_v0 = vrot.slane %v824_v49, 1  ;;  %v4926_v56 = vmul.f32 %v4187_v34, %v4752_v15  ;;  %v4929_v21 = vmul.f32 %v4187_v34, %v4755_v19  ;;  %v830_v62 = vmul.f32 %v4186_v20, %v4752_v15  ;;  %v4195_v49 = vpop.permute.xlu1 %4194 }
  0xc7   : > { %v4932_v58 = vadd.f32 %v1143_v24, %v1010_v41  ;;  %v4934_v59 = vadd.f32 %v1141_v46, %v1009_v27  ;;  %v1136_v28 = vrot.slane %v1058_v47, 2  ;;  %v1064_v57 = vmul.f32 %v4186_v20, %v4755_v19 }
  0xc8   : > { %v903_v38 = vsel %vm894_vm0, %v900_v44, %v902_v0  ;;  %v905_v16 = vsel %vm894_vm0, %v902_v0, %v904_v60  ;;  %v6466_v23 = vrot.slane %v4926_v56, 1  ;;  %v914_v27 = vrot.slane %v830_v62, 1 }
  0xc9   : > { %v1007_v34 = vadd.f32 %v903_v38, %v4811_v61  ;;  %v1008_v52 = vadd.f32 %v905_v16, %v4795_v13  ;;  %v1137_v24 = vsel %vm1128_vm1, %v1134_v45, %v1136_v28  ;;  %v1139_v41 = vsel %vm1128_vm1, %v1136_v28, %v1138_v1 }
  0xca   : > { %v1148_v46 = vrot.slane %v1064_v57, 2  ;;  %v829_v20 = vmul.f32 %v4182_v14, %v4752_v15  ;;  %v1063_v44 = vmul.f32 %v4182_v14, %v4755_v19  ;;  %v4181_v0 = vunpack.i.l.bf16 %v4180_v55 }
  0xcb   : > { %v4947_v60 = vadd.f32 %v1137_v24, %v1007_v34  ;;  %v4949_v47 = vadd.f32 %v1139_v41, %v1008_v52  ;;  %v4197_v35 = vunpack.i.h.bf16 %v4195_v49  ;;  %v917_v13 = vsel %vm894_vm0, %v914_v27, %v6466_v23 }
  0xcc   : > { %v6506_v61 = vrot.slane %v4929_v21, 2  ;;  %v912_v1 = vrot.slane %v829_v20, 1  ;;  %v1146_v62 = vrot.slane %v1063_v44, 2  ;;  %v1014_v28 = vadd.f32 %v917_v13, %v4849_v53 }
  0xcd   : > { %v828_v14 = vmul.f32 %v4181_v0, %v4752_v15  ;;  %v1062_v57 = vmul.f32 %v4181_v0, %v4755_v19  ;;  %v4961_v52 = vmul.f32 %v4197_v35, %v4752_v15  ;;  %v4966_v16 = vmul.f32 %v4197_v35, %v4755_v19 }
  0xce   : > { %v1151_v45 = vsel %vm1128_vm1, %v1148_v46, %v6506_v61  ;;  %v915_v55 = vsel %vm894_vm0, %v912_v1, %v914_v27  ;;  %v1149_v38 = vsel %vm1128_vm1, %v1146_v62, %v1148_v46  ;;  %v4196_v34 = vunpack.i.l.bf16 %v4195_v49  ;;  %v4190_v61 = vpop.permute.xlu0 %4189  ;;  %v4205_v46 = vpop.permute.xlu1 %4204 }
  0xcf   : > { %v4968_v24 = vadd.f32 %v1151_v45, %v1014_v28  ;;  %v910_v41 = vrot.slane %v828_v14, 1  ;;  %v1013_v53 = vadd.f32 %v915_v55, %v4852_v2  ;;  %v1144_v20 = vrot.slane %v1062_v57, 2 }
  0xd0   : > { %v834_v13 = vmul.f32 %v4196_v34, %v4752_v15  ;;  %v1068_v27 = vmul.f32 %v4196_v34, %v4755_v19  ;;  %v6508_v35 = vrot.slane %v4898_v37, 1  ;;  %v6509_v28 = vrot.slane %v4901_v39, 2 }
  0xd1   : > { %6507 = vst [vmem:[#allocation9_spill] sm:$0xff] %v4968_v24  ;;  %v913_v45 = vsel %vm894_vm0, %v910_v41, %v912_v1  ;;  %v1147_v14 = vsel %vm1128_vm1, %v1144_v20, %v1146_v62  ;;  %v4985_v23 = vadd.f32 %v1149_v38, %v1013_v53  ;;  %v4192_v44 = vunpack.i.h.bf16 %v4190_v61 }
  0xd2   : > { %v911_v49 = vsel %vm894_vm0, %v6508_v35, %v910_v41  ;;  %v1145_v2 = vsel %vm1128_vm1, %v6509_v28, %v1144_v20  ;;  %v1012_v55 = vadd.f32 %v913_v45, %v4856_v10  ;;  %v922_v34 = vrot.slane %v834_v13, 1 }
  0xd3   : > { %v1011_v57 = vadd.f32 %v911_v49, %v4805_v9  ;;  %v1156_v0 = vrot.slane %v1068_v27, 2  ;;  %v4191_v37 = vunpack.i.l.bf16 %v4190_v61  ;;  %v4207_v24 = vunpack.i.h.bf16 %v4205_v46 }
  0xd4   : > { %v4989_v1 = vadd.f32 %v1147_v14, %v1012_v55  ;;  %v6510_v39 = vrot.slane %v4961_v52, 1  ;;  %v4206_v62 = vunpack.i.l.bf16 %v4205_v46  ;;  %v6511_v10 = vrot.slane %v4966_v16, 2 }
  0xd5   : > { %v4987_v35 = vadd.f32 %v1145_v2, %v1011_v57  ;;  %v833_v53 = vmul.f32 %v4192_v44, %v4752_v15  ;;  %v1067_v20 = vmul.f32 %v4192_v44, %v4755_v19  ;;  %v832_v13 = vmul.f32 %v4191_v37, %v4752_v15 }
  0xd6   : > { %v925_v41 = vsel %vm894_vm0, %v922_v34, %v6510_v39  ;;  %v1159_v38 = vsel %vm1128_vm1, %v1156_v0, %v6511_v10  ;;  %v1066_v27 = vmul.f32 %v4191_v37, %v4755_v19  ;;  %v5003_v61 = vmul.f32 %v4207_v24, %v4752_v15 }
  0xd7   : > { %v1018_v9 = vadd.f32 %v925_v41, %v4719_v12  ;;  %v5006_v49 = vmul.f32 %v4207_v24, %v4755_v19  ;;  %v920_v12 = vrot.slane %v833_v53, 1  ;;  %v1154_v45 = vrot.slane %v1067_v20, 2  ;;  %v4200_v41 = vpop.permute.xlu0 %4199 }
  0xd8   : > { %v838_v28 = vmul.f32 %v4206_v62, %v4752_v15  ;;  %v918_v2 = vrot.slane %v832_v13, 1  ;;  %v1152_v14 = vrot.slane %v1066_v27, 2  ;;  %v932_v44 = vrot.slane %v5003_v61, 1  ;;  %v4215_v27 = vpop.permute.xlu1 %4214 }
  0xd9   : > { %v5008_v46 = vadd.f32 %v1159_v38, %v1018_v9  ;;  %v6467_v57 = vrot.slane %v5006_v49, 2  ;;  %v923_v55 = vsel %vm894_vm0, %v920_v12, %v922_v34  ;;  %v1157_v37 = vsel %vm1128_vm1, %v1154_v45, %v1156_v0 }
  0xda   : > { %v930_v39 = vrot.slane %v838_v28, 1  ;;  %v1072_v24 = vmul.f32 %v4206_v62, %v4755_v19  ;;  %v6512_v9 = vrot.slane %v4926_v56, 1  ;;  %v921_v38 = vsel %vm894_vm0, %v918_v2, %v920_v12 }
  0xdb   : > { %v1017_v53 = vadd.f32 %v923_v55, %v4859_v17  ;;  %v6513_v20 = vrot.slane %v4929_v21, 2  ;;  %v1016_v0 = vadd.f32 %v921_v38, %v4862_v3  ;;  %v1155_v62 = vsel %vm1128_vm1, %v1152_v14, %v1154_v45 }
  0xdc   : > { %v919_v10 = vsel %vm894_vm0, %v6512_v9, %v918_v2  ;;  %v933_v56 = vsel %vm894_vm0, %v930_v39, %v932_v44  ;;  %v1164_v17 = vrot.slane %v1072_v24, 2  ;;  %v4202_v2 = vunpack.i.h.bf16 %v4200_v41 }
  0xdd   : > { %v1153_v13 = vsel %vm1128_vm1, %v6513_v20, %v1152_v14  ;;  %v1015_v34 = vadd.f32 %v919_v10, %v4846_v63  ;;  %v5030_v28 = vadd.f32 %v1157_v37, %v1017_v53  ;;  %v1022_v12 = vadd.f32 %v933_v56, %v4739_v32 }
  0xde   : > { %v5035_v55 = vadd.f32 %v1155_v62, %v1016_v0  ;;  %v4201_v9 = vunpack.i.l.bf16 %v4200_v41  ;;  %v4217_v63 = vunpack.i.h.bf16 %v4215_v27  ;;  %v1167_v3 = vsel %vm1128_vm1, %v1164_v17, %v6467_v57  ;;  %v4225_v57 = vpop.permute.xlu1 %4224 }
  0xdf   : > { %v5033_v21 = vadd.f32 %v1153_v13, %v1015_v34  ;;  %v837_v45 = vmul.f32 %v4202_v2, %v4752_v15  ;;  %v1071_v14 = vmul.f32 %v4202_v2, %v4755_v19  ;;  %v4216_v37 = vunpack.i.l.bf16 %v4215_v27 }
  0xe0   : > { %v5042_v10 = vadd.f32 %v1167_v3, %v1022_v12  ;;  %v836_v32 = vmul.f32 %v4201_v9, %v4752_v15  ;;  %v1070_v24 = vmul.f32 %v4201_v9, %v4755_v19  ;;  %v5047_v38 = vmul.f32 %v4217_v63, %v4752_v15  ;;  %v4210_v3 = vpop.permute.xlu0 %4209 }
  0xe1   : > { %v928_v41 = vrot.slane %v837_v45, 1  ;;  %v1162_v53 = vrot.slane %v1071_v14, 2  ;;  %v5050_v20 = vmul.f32 %v4217_v63, %v4755_v19  ;;  %v842_v13 = vmul.f32 %v4216_v37, %v4752_v15 }
  0xe2   : > { %v926_v34 = vrot.slane %v836_v32, 1  ;;  %v1160_v0 = vrot.slane %v1070_v24, 2  ;;  %v940_v27 = vrot.slane %v5047_v38, 1  ;;  %v1076_v62 = vmul.f32 %v4216_v37, %v4755_v19 }
  0xe3   : > { %v931_v56 = vsel %vm894_vm0, %v928_v41, %v930_v39  ;;  %v1165_v12 = vsel %vm1128_vm1, %v1162_v53, %v1164_v17  ;;  %v6468_v2 = vrot.slane %v5050_v20, 2  ;;  %v938_v9 = vrot.slane %v842_v13, 1 }
  0xe4   : > { %v6514_v45 = vrot.slane %v4961_v52, 1  ;;  %v929_v14 = vsel %vm894_vm0, %v926_v34, %v928_v41  ;;  %v1021_v32 = vadd.f32 %v931_v56, %v4865_v11  ;;  %v6515_v24 = vrot.slane %v4966_v16, 2 }
  0xe5   : > { %v1020_v17 = vadd.f32 %v929_v14, %v4876_v36  ;;  %v1163_v13 = vsel %vm1128_vm1, %v1160_v0, %v1162_v53  ;;  %v941_v52 = vsel %vm894_vm0, %v938_v9, %v940_v27  ;;  %v1172_v11 = vrot.slane %v1076_v62, 2 }
  0xe6   : > { %v927_v63 = vsel %vm894_vm0, %v6514_v45, %v926_v34  ;;  %v1161_v37 = vsel %vm1128_vm1, %v6515_v24, %v1160_v0  ;;  %v5072_v45 = vadd.f32 %v1165_v12, %v1021_v32  ;;  %v1026_v41 = vadd.f32 %v941_v52, %v4761_v42 }
  0xe7   : > { %v1019_v39 = vadd.f32 %v927_v63, %v4716_v8  ;;  %v4212_v34 = vunpack.i.h.bf16 %v4210_v3  ;;  %v5077_v56 = vadd.f32 %v1163_v13, %v1020_v17  ;;  %v4211_v24 = vunpack.i.l.bf16 %v4210_v3 }
  0xe8   : > { %v4227_v8 = vunpack.i.h.bf16 %v4225_v57  ;;  %v1175_v36 = vsel %vm1128_vm1, %v1172_v11, %v6468_v2  ;;  %v4226_v12 = vunpack.i.l.bf16 %v4225_v57  ;;  %v4235_v2 = vpop.permute.xlu1 %4234 }
  0xe9   : > { %v5075_v16 = vadd.f32 %v1161_v37, %v1019_v39  ;;  %v841_v53 = vmul.f32 %v4212_v34, %v4752_v15  ;;  %v1075_v0 = vmul.f32 %v4212_v34, %v4755_v19  ;;  %v5084_v63 = vadd.f32 %v1175_v36, %v1026_v41 }
  0xea   : > { %v840_v42 = vmul.f32 %v4211_v24, %v4752_v15  ;;  %v1074_v62 = vmul.f32 %v4211_v24, %v4755_v19  ;;  %v5089_v14 = vmul.f32 %v4227_v8, %v4752_v15  ;;  %v5092_v37 = vmul.f32 %v4227_v8, %v4755_v19 }
  0xeb   : > { %v936_v3 = vrot.slane %v841_v53, 1  ;;  %v1170_v32 = vrot.slane %v1075_v0, 2  ;;  %v846_v39 = vmul.f32 %v4226_v12, %v4752_v15  ;;  %v1080_v52 = vmul.f32 %v4226_v12, %v4755_v19  ;;  %v4220_v53 = vpop.permute.xlu0 %4219 }
  0xec   : > { %v934_v17 = vrot.slane %v840_v42, 1  ;;  %v1168_v13 = vrot.slane %v1074_v62, 2  ;;  %v948_v57 = vrot.slane %v5089_v14, 1  ;;  %v6469_v24 = vrot.slane %v5092_v37, 2 }
  0xed   : > { %v939_v41 = vsel %vm894_vm0, %v936_v3, %v938_v9  ;;  %v1173_v34 = vsel %vm1128_vm1, %v1170_v32, %v1172_v11  ;;  %v946_v36 = vrot.slane %v846_v39, 1  ;;  %v6516_v62 = vrot.slane %v5006_v49, 2 }
  0xee   : > { %v935_v8 = vsel %vm894_vm0, %v932_v44, %v934_v17  ;;  %v937_v0 = vsel %vm894_vm0, %v934_v17, %v936_v3  ;;  %v1025_v42 = vadd.f32 %v939_v41, %v4764_v26  ;;  %v1171_v39 = vsel %vm1128_vm1, %v1168_v13, %v1170_v32 }
  0xef   : > { %v1169_v12 = vsel %vm1128_vm1, %v6516_v62, %v1168_v13  ;;  %v1023_v9 = vadd.f32 %v935_v8, %v4736_v31  ;;  %v1024_v11 = vadd.f32 %v937_v0, %v4767_v43  ;;  %v949_v61 = vsel %vm894_vm0, %v946_v36, %v948_v57 }
  0xf0   : > { %v5114_v44 = vadd.f32 %v1173_v34, %v1025_v42  ;;  %v1030_v3 = vadd.f32 %v949_v61, %v4783_v5  ;;  %v1180_v26 = vrot.slane %v1080_v52, 2  ;;  %v4222_v17 = vunpack.i.h.bf16 %v4220_v53 }
  0xf1   : > { %v5117_v49 = vadd.f32 %v1169_v12, %v1023_v9  ;;  %v5119_v41 = vadd.f32 %v1171_v39, %v1024_v11  ;;  %v4221_v62 = vunpack.i.l.bf16 %v4220_v53  ;;  %v4237_v31 = vunpack.i.h.bf16 %v4235_v2 }
  0xf2   : > { %v1183_v43 = vsel %vm1128_vm1, %v1180_v26, %v6469_v24  ;;  %v845_v32 = vmul.f32 %v4222_v17, %v4752_v15  ;;  %v1079_v13 = vmul.f32 %v4222_v17, %v4755_v19  ;;  %v4236_v34 = vunpack.i.l.bf16 %v4235_v2  ;;  %v4245_v24 = vpop.permute.xlu1 %4244 }
  0xf3   : > { %v5126_v8 = vadd.f32 %v1183_v43, %v1030_v3  ;;  %v844_v5 = vmul.f32 %v4221_v62, %v4752_v15  ;;  %v1078_v52 = vmul.f32 %v4221_v62, %v4755_v19  ;;  %v5131_v0 = vmul.f32 %v4237_v31, %v4752_v15 }
  0xf4   : > { %v944_v53 = vrot.slane %v845_v32, 1  ;;  %v1178_v42 = vrot.slane %v1079_v13, 2  ;;  %v5134_v12 = vmul.f32 %v4237_v31, %v4755_v19  ;;  %v850_v9 = vmul.f32 %v4236_v34, %v4752_v15  ;;  %v4230_v32 = vpop.permute.xlu0 %4229 }
  0xf5   : > { %v942_v11 = vrot.slane %v844_v5, 1  ;;  %v1176_v39 = vrot.slane %v1078_v52, 2  ;;  %v956_v2 = vrot.slane %v5131_v0, 1  ;;  %v1084_v61 = vmul.f32 %v4236_v34, %v4755_v19 }
  0xf6   : > { %v947_v3 = vsel %vm894_vm0, %v944_v53, %v946_v36  ;;  %v1181_v17 = vsel %vm1128_vm1, %v1178_v42, %v1180_v26  ;;  %v6470_v62 = vrot.slane %v5134_v12, 2  ;;  %v954_v43 = vrot.slane %v850_v9, 1 }
  0xf7   : > { %v943_v31 = vsel %vm894_vm0, %v940_v27, %v942_v11  ;;  %v945_v13 = vsel %vm894_vm0, %v942_v11, %v944_v53  ;;  %v1029_v5 = vadd.f32 %v947_v3, %v4786_v6  ;;  %v6517_v52 = vrot.slane %v5050_v20, 2 }
  0xf8   : > { %v1027_v36 = vadd.f32 %v943_v31, %v4758_v30  ;;  %v1028_v26 = vadd.f32 %v945_v13, %v4789_v7  ;;  %v1179_v9 = vsel %vm1128_vm1, %v1176_v39, %v1178_v42  ;;  %v957_v38 = vsel %vm894_vm0, %v954_v43, %v956_v2 }
  0xf9   : > { %v1177_v34 = vsel %vm1128_vm1, %v6517_v52, %v1176_v39  ;;  %v5156_v27 = vadd.f32 %v1181_v17, %v1029_v5  ;;  %v1034_v53 = vadd.f32 %v957_v38, %v4817_v33  ;;  %v1188_v6 = vrot.slane %v1084_v61, 2 }
  0xfa   : > { %v4232_v11 = vunpack.i.h.bf16 %v4230_v32  ;;  %v5159_v20 = vadd.f32 %v1177_v34, %v1027_v36  ;;  %v5161_v3 = vadd.f32 %v1179_v9, %v1028_v26  ;;  %v4231_v52 = vunpack.i.l.bf16 %v4230_v32 }
  0xfb   : > { %v4247_v30 = vunpack.i.h.bf16 %v4245_v24  ;;  %v1191_v7 = vsel %vm1128_vm1, %v1188_v6, %v6470_v62  ;;  %v4246_v17 = vunpack.i.l.bf16 %v4245_v24  ;;  %v4255_v62 = vpop.permute.xlu1 %4254 }
  0xfc   : > { %v849_v42 = vmul.f32 %v4232_v11, %v4752_v15  ;;  %v1083_v39 = vmul.f32 %v4232_v11, %v4755_v19  ;;  %v5168_v31 = vadd.f32 %v1191_v7, %v1034_v53  ;;  %v848_v33 = vmul.f32 %v4231_v52, %v4752_v15 }
  0xfd   : > { %v1082_v61 = vmul.f32 %v4231_v52, %v4755_v19  ;;  %v5173_v13 = vmul.f32 %v4247_v30, %v4752_v15  ;;  %v5176_v34 = vmul.f32 %v4247_v30, %v4755_v19  ;;  %v854_v36 = vmul.f32 %v4246_v17, %v4752_v15 }
  0xfe   : > { %v952_v32 = vrot.slane %v849_v42, 1  ;;  %v1186_v5 = vrot.slane %v1083_v39, 2  ;;  %v950_v26 = vrot.slane %v848_v33, 1  ;;  %v1088_v38 = vmul.f32 %v4246_v17, %v4755_v19  ;;  %v4240_v42 = vpop.permute.xlu0 %4239 }
  0xff   : > { %v1184_v9 = vrot.slane %v1082_v61, 2  ;;  %v6472_v24 = vrot.slane %v5173_v13, 1  ;;  %v6471_v52 = vrot.slane %v5176_v34, 2  ;;  %v962_v7 = vrot.slane %v854_v36, 1 }
 0x100   : > { %v955_v53 = vsel %vm894_vm0, %v952_v32, %v954_v43  ;;  %v1189_v11 = vsel %vm1128_vm1, %v1186_v5, %v1188_v6  ;;  %v951_v30 = vsel %vm894_vm0, %v948_v57, %v950_v26  ;;  %v953_v39 = vsel %vm894_vm0, %v950_v26, %v952_v32 }
 0x101   : > { %v1033_v33 = vadd.f32 %v955_v53, %v4820_v18  ;;  %v6518_v61 = vrot.slane %v5092_v37, 2  ;;  %v1031_v43 = vadd.f32 %v951_v30, %v4780_v4  ;;  %v1032_v6 = vadd.f32 %v953_v39, %v4823_v22 }
 0x102   : > { %v1187_v36 = vsel %vm1128_vm1, %v1184_v9, %v1186_v5  ;;  %v965_v14 = vsel %vm894_vm0, %v962_v7, %v6472_v24  ;;  %v1196_v18 = vrot.slane %v1088_v38, 2  ;;  %v4242_v26 = vunpack.i.h.bf16 %v4240_v42 }
 0x103   : > { %v1185_v17 = vsel %vm1128_vm1, %v6518_v61, %v1184_v9  ;;  %v5198_v57 = vadd.f32 %v1189_v11, %v1033_v33  ;;  %v1038_v32 = vadd.f32 %v965_v14, %v4837_v50  ;;  %v5203_v53 = vadd.f32 %v1187_v36, %v1032_v6 }
 0x104   : > { %v5201_v37 = vadd.f32 %v1185_v17, %v1031_v43  ;;  %v4241_v61 = vunpack.i.l.bf16 %v4240_v42  ;;  %v4257_v4 = vunpack.i.h.bf16 %v4255_v62  ;;  %v1199_v22 = vsel %vm1128_vm1, %v1196_v18, %v6471_v52  ;;  %v6522_v52 = vld [vmem:[#allocation4_spill] sm:$0xff] }
 0x105   : > { %v853_v5 = vmul.f32 %v4242_v26, %v4752_v15  ;;  %v1087_v9 = vmul.f32 %v4242_v26, %v4755_v19  ;;  %v4256_v11 = vunpack.i.l.bf16 %v4255_v62  ;;  %v5210_v30 = vadd.f32 %v1199_v22, %v1038_v32 }
 0x106   : > { %v852_v50 = vmul.f32 %v4241_v61, %v4752_v15  ;;  %v1086_v38 = vmul.f32 %v4241_v61, %v4755_v19  ;;  %v5215_v39 = vmul.f32 %v4257_v4, %v4772_v48  ;;  %v6520_v17 = vunpack.c.l.bf16 %v4749_v40 }
 0x107   : > { %6519 = vst [vmem:[#allocation10_spill] sm:$0xff] %v5210_v30  ;;  %v960_v42 = vrot.slane %v853_v5, 1  ;;  %v1194_v33 = vrot.slane %v1087_v9, 2  ;;  %v5223_v6 = vmul.f32 %v4257_v4, %v4799_v25  ;;  %v1540_v14 = vmul.f32 %v4256_v11, %v4772_v48  ;;  %v4250_v5 = vpop.permute.xlu0 %4249 }
 0x108   : > { %v5220_v43 = vrot.slane %v6520_v17, %v4680_v54  ;;  %v958_v62 = vrot.slane %v852_v50, 1  ;;  %v1192_v36 = vrot.slane %v1086_v38, 2  ;;  %v6521_v38 = vrot.slane %v5134_v12, 2 }
 0x109   : > { %v963_v32 = vsel %vm894_vm0, %v960_v42, %v962_v7  ;;  %v1197_v26 = vsel %vm1128_vm1, %v1194_v33, %v1196_v18  ;;  %v4265_v7 = vpop.permute.xlu1 %4264  ;;  %v1614_v61 = vrot.slane %v1540_v14, 2  ;;  %v1773_v0 = vmul.f32 %v4256_v11, %v4799_v25 }
 0x10a   : > { %v959_v40 = vsel %vm894_vm0, %v956_v2, %v958_v62  ;;  %v961_v9 = vsel %vm894_vm0, %v958_v62, %v960_v42  ;;  %v1037_v50 = vadd.f32 %v963_v32, %v4840_v51  ;;  %v1193_v17 = vsel %vm1128_vm1, %v6521_v38, %v1192_v36 }
 0x10b   : > { %v1035_v18 = vadd.f32 %v959_v40, %v4814_v29  ;;  %v1036_v24 = vadd.f32 %v961_v9, %v6522_v52  ;;  %v1195_v22 = vsel %vm1128_vm1, %v1192_v36, %v1194_v33  ;;  %v4252_v2 = vunpack.i.h.bf16 %v4250_v5 }
 0x10c   : > { %v5241_v54 = vadd.f32 %v1197_v26, %v1037_v50  ;;  %v4251_v42 = vunpack.i.l.bf16 %v4250_v5  ;;  %v6524_v12 = vrot.slane %v5215_v39, 2  ;;  %v4267_v29 = vunpack.i.h.bf16 %v4265_v7 }
 0x10d   : > { %v5244_v62 = vadd.f32 %v1193_v17, %v1035_v18  ;;  %v5246_v51 = vadd.f32 %v1195_v22, %v1036_v24  ;;  %v1848_v40 = vrot.slane %v1773_v0, 3  ;;  %v1054_v52 = vmul.f32 %v4252_v2, %v4755_v19  ;;  %v4260_v18 = vpop.permute.xlu0 %4259  ;;  %v6529_v2 = vld [vmem:[#allocation5_spill] sm:$0xff] }
 0x10e   : > { %6523 = vst [vmem:[#allocation4_spill] sm:$0xff] %v5241_v54  ;;  %v1616_v32 = vsel %vm1128_vm1, %v1614_v61, %v6524_v12  ;;  %v856_v33 = vmul.f32 %v4251_v42, %v4752_v15  ;;  %v1090_v36 = vmul.f32 %v4251_v42, %v4755_v19  ;;  %v5255_v11 = vmul.f32 %v4267_v29, %v4772_v48 }
 0x10f   : > { %v5258_v14 = vmul.f32 %v4267_v29, %v4799_v25  ;;  %v5261_v24 = vmul.f32 %v4267_v29, %v5220_v43  ;;  %v4266_v26 = vunpack.i.l.bf16 %v4265_v7  ;;  %v6525_v61 = vrot.slane %v5223_v6, 3 }
 0x110   : > { %v1129_v5 = vrot.slane %v1054_v52, 2  ;;  %v966_v15 = vrot.slane %v856_v33, 1  ;;  %v1200_v9 = vrot.slane %v1090_v36, 2  ;;  %v5269_v19 = vmul.f32 %v4257_v4, %v5220_v43  ;;  %v4275_v52 = vpop.permute.xlu1 %4274  ;;  %v6532_v33 = vld [vmem:[#allocation3_spill] sm:$0xff] }
 0x111   : > { %v5266_v22 = vsel %vm1847_vm2, %v1848_v40, %v6525_v61  ;;  %v1544_v17 = vmul.f32 %v4266_v26, %v4772_v48  ;;  %v6528_v7 = vrot.slane %v5173_v13, 1  ;;  %v6530_v42 = vrot.slane %v6529_v2, 2  ;;  %v6533_v61 = vld [vmem:[#allocation6_spill] sm:$0xff] }
 0x112   : > { %6526 = vst [vmem:[#allocation11_spill] sm:$0xff] %v5266_v22  ;;  %6527 = vst [vmem:[#allocation12_spill] sm:$0xff] %v5269_v19  ;;  %v6531_v29 = vrot.slane %v5176_v34, 2  ;;  %v1777_v40 = vmul.f32 %v4266_v26, %v4799_v25  ;;  %v2011_v13 = vmul.f32 %v4266_v26, %v5220_v43  ;;  %v4262_v2 = vunpack.i.h.bf16 %v4260_v18 }
 0x113   : > { %v967_v0 = vsel %vm894_vm0, %v6528_v7, %v966_v15  ;;  %v1131_v12 = vsel %vm1128_vm1, %v1129_v5, %v6530_v42  ;;  %v1621_v50 = vrot.slane %v1544_v17, 2  ;;  %v4261_v22 = vunpack.i.l.bf16 %v4260_v18 }
 0x114   : > { %v1201_v4 = vsel %vm1128_vm1, %v6531_v29, %v1200_v9  ;;  %v1039_v36 = vadd.f32 %v967_v0, %v6532_v33  ;;  %v1238_v38 = vadd.f32 %v1131_v12, %v6533_v61  ;;  %v1855_v7 = vrot.slane %v1777_v40, 3 }
 0x115   : > { %v6536_v9 = vrot.slane %v5255_v11, 2  ;;  %v4277_v29 = vunpack.i.h.bf16 %v4275_v52  ;;  %v2089_v12 = vrot.slane %v2011_v13, 4  ;;  %v1543_v17 = vmul.f32 %v4262_v2, %v4772_v48 }
 0x116   : > { %v5288_v5 = vadd.f32 %v1201_v4, %v1039_v36  ;;  %v5290_v34 = vadd.f32 %v1616_v32, %v1238_v38  ;;  %v1776_v26 = vmul.f32 %v4262_v2, %v4799_v25  ;;  %v6537_v40 = vrot.slane %v5258_v14, 3 }
 0x117   : > { %v1624_v42 = vsel %vm1128_vm1, %v1621_v50, %v6536_v9  ;;  %v2010_v4 = vmul.f32 %v4262_v2, %v5220_v43  ;;  %v1542_v32 = vmul.f32 %v4261_v22, %v4772_v48  ;;  %v1775_v38 = vmul.f32 %v4261_v22, %v4799_v25 }
 0x118   : > { %6534 = vst [vmem:[#allocation5_spill] sm:$0xff] %v5288_v5  ;;  %6535 = vst [vmem:[#allocation3_spill] sm:$0xff] %v5290_v34  ;;  %v1727_v0 = vadd.f32 %v1624_v42, %v4949_v47  ;;  %v1858_v18 = vsel %vm1847_vm2, %v1855_v7, %v6537_v40  ;;  %v1619_v36 = vrot.slane %v1543_v17, 2  ;;  %v1853_v61 = vrot.slane %v1776_v26, 3 }
 0x119   : > { %v2009_v47 = vmul.f32 %v4261_v22, %v5220_v43  ;;  %v2087_v13 = vrot.slane %v2010_v4, 4  ;;  %v1617_v9 = vrot.slane %v1542_v32, 2  ;;  %v1851_v42 = vrot.slane %v1775_v38, 3  ;;  %v6541_v32 = vld [vmem:[#allocation8_spill] sm:$0xff]  ;;  %v6542_v38 = vld [vmem:[#allocation7_spill] sm:$0xff] }
 0x11a   : > { %v1961_v33 = vadd.f32 %v1858_v18, %v1727_v0  ;;  %v6475_v15 = vrot.slane %v5269_v19, 4  ;;  %v6538_v34 = vrot.slane %v5261_v24, 4  ;;  %v1622_v2 = vsel %vm1128_vm1, %v1619_v36, %v1621_v50 }
 0x11b   : > { %v2085_v30 = vrot.slane %v2009_v47, 4  ;;  %v6539_v54 = vrot.slane %v5215_v39, 2  ;;  %v1620_v17 = vsel %vm1128_vm1, %v1617_v9, %v1619_v36  ;;  %v1726_v22 = vadd.f32 %v1622_v2, %v4947_v60  ;;  %v4270_v47 = vpop.permute.xlu0 %4269 }
 0x11c   : > { %v2092_v40 = vsel %vm2081_vm3, %v2089_v12, %v6538_v34  ;;  %v5316_v26 = vmul.f32 %v4277_v29, %v4772_v48  ;;  %v1856_v4 = vsel %vm1847_vm2, %v1853_v61, %v1855_v7  ;;  %v1725_v50 = vadd.f32 %v1620_v17, %v6542_v38 }
 0x11d   : > { %v1618_v0 = vsel %vm1128_vm1, %v6539_v54, %v1617_v9  ;;  %v5318_v18 = vadd.f32 %v2092_v40, %v1961_v33  ;;  %v2090_v39 = vsel %vm2081_vm3, %v2087_v13, %v2089_v12  ;;  %v6543_v54 = vrot.slane %v5223_v6, 3 }
 0x11e   : > { %v1724_v34 = vadd.f32 %v1618_v0, %v6541_v32  ;;  %v1854_v60 = vsel %vm1847_vm2, %v1851_v42, %v1853_v61  ;;  %v1960_v9 = vadd.f32 %v1856_v4, %v1726_v22  ;;  %v2086_v33 = vsel %vm2081_vm3, %v6475_v15, %v2085_v30 }
 0x11f   : > { %6540 = vst [vmem:[#allocation6_spill] sm:$0xff] %v5318_v18  ;;  %v1852_v36 = vsel %vm1847_vm2, %v6543_v54, %v1851_v42  ;;  %v2088_v7 = vsel %vm2081_vm3, %v2085_v30, %v2087_v13  ;;  %v5333_v40 = vmul.f32 %v4277_v29, %v4799_v25  ;;  %v5336_v2 = vmul.f32 %v4277_v29, %v5220_v43 }
 0x120   : > { %v4276_v6 = vunpack.i.l.bf16 %v4275_v52  ;;  %v4272_v0 = vunpack.i.h.bf16 %v4270_v47  ;;  %v4271_v17 = vunpack.i.l.bf16 %v4270_v47  ;;  %v1958_v32 = vadd.f32 %v1852_v36, %v1724_v34 }
 0x121   : > { %v1959_v61 = vadd.f32 %v1854_v60, %v1725_v50  ;;  %v5351_v22 = vadd.f32 %v2090_v39, %v1960_v9  ;;  %v6544_v18 = vrot.slane %v5316_v26, 2  ;;  %v6546_v39 = vrot.slane %v5255_v11, 2 }
 0x122   : > { %v1548_v4 = vmul.f32 %v4276_v6, %v4772_v48  ;;  %v1781_v30 = vmul.f32 %v4276_v6, %v4799_v25  ;;  %v2015_v13 = vmul.f32 %v4276_v6, %v5220_v43  ;;  %v1547_v29 = vmul.f32 %v4272_v0, %v4772_v48 }
 0x123   : > { %v1780_v38 = vmul.f32 %v4272_v0, %v4799_v25  ;;  %v2014_v52 = vmul.f32 %v4272_v0, %v5220_v43  ;;  %v1546_v47 = vmul.f32 %v4271_v17, %v4772_v48  ;;  %v1779_v34 = vmul.f32 %v4271_v17, %v4799_v25 }
 0x124   : > { %v1629_v50 = vrot.slane %v1548_v4, 2  ;;  %v1863_v54 = vrot.slane %v1781_v30, 3  ;;  %v2097_v36 = vrot.slane %v2015_v13, 4  ;;  %v1627_v60 = vrot.slane %v1547_v29, 2 }
 0x125   : > { %v5349_v15 = vadd.f32 %v2086_v33, %v1958_v32  ;;  %v1861_v42 = vrot.slane %v1780_v38, 3  ;;  %v1625_v6 = vrot.slane %v1546_v47, 2  ;;  %v5353_v12 = vadd.f32 %v2088_v7, %v1959_v61  ;;  %v4285_v7 = vpop.permute.xlu1 %4284 }
 0x126   : > { %v1632_v0 = vsel %vm1128_vm1, %v1629_v50, %v6544_v18  ;;  %v1630_v19 = vsel %vm1128_vm1, %v1627_v60, %v1629_v50  ;;  %v1859_v5 = vrot.slane %v1779_v34, 3  ;;  %v6545_v30 = vrot.slane %v5333_v40, 3  ;;  %v4280_v34 = vpop.permute.xlu0 %4279 }
 0x127   : > { %v1731_v4 = vadd.f32 %v1632_v0, %v4989_v1  ;;  %v2095_v32 = vrot.slane %v2014_v52, 4  ;;  %v1626_v9 = vsel %vm1128_vm1, %v6546_v39, %v1625_v6  ;;  %v6547_v61 = vrot.slane %v5336_v2, 4 }
 0x128   : > { %v1866_v33 = vsel %vm1847_vm2, %v1863_v54, %v6545_v30  ;;  %v1628_v18 = vsel %vm1128_vm1, %v1625_v6, %v1627_v60  ;;  %v1728_v29 = vadd.f32 %v1626_v9, %v4934_v59  ;;  %v1730_v1 = vadd.f32 %v1630_v19, %v4987_v35 }
 0x129   : > { %v2100_v13 = vsel %vm2081_vm3, %v2097_v36, %v6547_v61  ;;  %v1965_v38 = vadd.f32 %v1866_v33, %v1731_v4  ;;  %v1864_v47 = vsel %vm1847_vm2, %v1861_v42, %v1863_v54  ;;  %v1729_v52 = vadd.f32 %v1628_v18, %v4932_v58 }
 0x12a   : > { %v2013_v11 = vmul.f32 %v4271_v17, %v5220_v43  ;;  %v6548_v50 = vrot.slane %v5258_v14, 3  ;;  %v1964_v30 = vadd.f32 %v1864_v47, %v1730_v1  ;;  %v4287_v39 = vunpack.i.h.bf16 %v4285_v7  ;;  %v4295_v47 = vpop.permute.xlu1 %4294 }
 0x12b   : > { %v4286_v61 = vunpack.i.l.bf16 %v4285_v7  ;;  %v2098_v60 = vsel %vm2081_vm3, %v2095_v32, %v2097_v36  ;;  %v1862_v59 = vsel %vm1847_vm2, %v1859_v5, %v1861_v42  ;;  %v4282_v14 = vunpack.i.h.bf16 %v4280_v34 }
 0x12c   : > { %v1860_v0 = vsel %vm1847_vm2, %v6548_v50, %v1859_v5  ;;  %v2093_v19 = vrot.slane %v2013_v11, 4  ;;  %v5381_v54 = vmul.f32 %v4287_v39, %v4772_v48  ;;  %v5384_v58 = vmul.f32 %v4287_v39, %v4799_v25 }
 0x12d   : > { %v1962_v35 = vadd.f32 %v1860_v0, %v1728_v29  ;;  %v5387_v17 = vmul.f32 %v4287_v39, %v5220_v43  ;;  %v5389_v6 = vadd.f32 %v2100_v13, %v1965_v38  ;;  %v1963_v4 = vadd.f32 %v1862_v59, %v1729_v52 }
 0x12e   : > { %v1552_v33 = vmul.f32 %v4286_v61, %v4772_v48  ;;  %v1785_v36 = vmul.f32 %v4286_v61, %v4799_v25  ;;  %v6549_v5 = vrot.slane %v5261_v24, 4  ;;  %v5396_v9 = vadd.f32 %v2098_v60, %v1964_v30 }
 0x12f   : > { %v6478_v7 = vrot.slane %v5381_v54, 2  ;;  %v6477_v18 = vrot.slane %v5384_v58, 3  ;;  %v6479_v29 = vrot.slane %v5387_v17, 4  ;;  %v2019_v38 = vmul.f32 %v4286_v61, %v5220_v43 }
 0x130   : > { %v2094_v42 = vsel %vm2081_vm3, %v6549_v5, %v2093_v19  ;;  %6550 = vst [vmem:[#allocation8_spill] sm:$0xff] %v5396_v9  ;;  %v1637_v1 = vrot.slane %v1552_v33, 2  ;;  %v1871_v13 = vrot.slane %v1785_v36, 3  ;;  %v1551_v52 = vmul.f32 %v4282_v14, %v4772_v48 }
 0x131   : > { %v1784_v11 = vmul.f32 %v4282_v14, %v4799_v25  ;;  %v2018_v24 = vmul.f32 %v4282_v14, %v5220_v43  ;;  %v4281_v50 = vunpack.i.l.bf16 %v4280_v34  ;;  %v2096_v0 = vsel %vm2081_vm3, %v2093_v19, %v2095_v32 }
 0x132   : > { %v5406_v30 = vadd.f32 %v2094_v42, %v1962_v35  ;;  %v1640_v39 = vsel %vm1128_vm1, %v1637_v1, %v6478_v7  ;;  %v2105_v60 = vrot.slane %v2019_v38, 4  ;;  %v1874_v61 = vsel %vm1847_vm2, %v1871_v13, %v6477_v18 }
 0x133   : > { %v1735_v59 = vadd.f32 %v1640_v39, %v5035_v55  ;;  %v1635_v33 = vrot.slane %v1551_v52, 2  ;;  %v4297_v36 = vunpack.i.h.bf16 %v4295_v47  ;;  %v1869_v5 = vrot.slane %v1784_v11, 3 }
 0x134   : > { %v1550_v34 = vmul.f32 %v4281_v50, %v4772_v48  ;;  %v1783_v32 = vmul.f32 %v4281_v50, %v4799_v25  ;;  %v2017_v35 = vmul.f32 %v4281_v50, %v5220_v43  ;;  %v2108_v14 = vsel %vm2081_vm3, %v2105_v60, %v6479_v29 }
 0x135   : > { %v1969_v19 = vadd.f32 %v1874_v61, %v1735_v59  ;;  %v1638_v55 = vsel %vm1128_vm1, %v1635_v33, %v1637_v1  ;;  %v2103_v42 = vrot.slane %v2018_v24, 4  ;;  %v5423_v11 = vadd.f32 %v2096_v0, %v1963_v4 }
 0x136   : > { %v1633_v38 = vrot.slane %v1550_v34, 2  ;;  %v1734_v39 = vadd.f32 %v1638_v55, %v5033_v21  ;;  %v1867_v52 = vrot.slane %v1783_v32, 3  ;;  %v2101_v18 = vrot.slane %v2017_v35, 4  ;;  %v6552_v34 = vld [vmem:[#allocation9_spill] sm:$0xff] }
 0x137   : > { %v5425_v7 = vadd.f32 %v2108_v14, %v1969_v19  ;;  %v5428_v9 = vmul.f32 %v4297_v36, %v4772_v48  ;;  %v5431_v50 = vmul.f32 %v4297_v36, %v4799_v25  ;;  %v1872_v59 = vsel %vm1847_vm2, %v1869_v5, %v1871_v13  ;;  %v4290_v19 = vpop.permute.xlu0 %4289 }
 0x138   : > { %v6551_v1 = vrot.slane %v5316_v26, 2  ;;  %v1636_v21 = vsel %vm1128_vm1, %v1633_v38, %v1635_v33  ;;  %v5439_v61 = vmul.f32 %v4297_v36, %v5220_v43  ;;  %v2106_v4 = vsel %vm2081_vm3, %v2103_v42, %v2105_v60 }
 0x139   : > { %v1733_v32 = vadd.f32 %v1636_v21, %v6552_v34  ;;  %v1968_v35 = vadd.f32 %v1872_v59, %v1734_v39  ;;  %v6553_v14 = vrot.slane %v5333_v40, 3  ;;  %v1870_v26 = vsel %vm1847_vm2, %v1867_v52, %v1869_v5 }
 0x13a   : > { %v1634_v24 = vsel %vm1128_vm1, %v6551_v1, %v1633_v38  ;;  %v6554_v55 = vrot.slane %v5336_v2, 4  ;;  %v2104_v36 = vsel %vm2081_vm3, %v2101_v18, %v2103_v42  ;;  %v4305_v38 = vpop.permute.xlu1 %4304  ;;  %v4296_v59 = vunpack.i.l.bf16 %v4295_v47 }
 0x13b   : > { %v1732_v0 = vadd.f32 %v1634_v24, %v4985_v23  ;;  %v1868_v13 = vsel %vm1847_vm2, %v6553_v14, %v1867_v52  ;;  %v5452_v60 = vadd.f32 %v2106_v4, %v1968_v35  ;;  %v6480_v23 = vrot.slane %v5428_v9, 2 }
 0x13c   : > { %v2102_v33 = vsel %vm2081_vm3, %v6554_v55, %v2101_v18  ;;  %v4292_v24 = vunpack.i.h.bf16 %v4290_v19  ;;  %v4291_v21 = vunpack.i.l.bf16 %v4290_v19  ;;  %v1967_v5 = vadd.f32 %v1870_v26, %v1733_v32 }
 0x13d   : > { %6555 = vst [vmem:[#allocation7_spill] sm:$0xff] %v5452_v60  ;;  %v1966_v1 = vadd.f32 %v1868_v13, %v1732_v0  ;;  %v1556_v2 = vmul.f32 %v4296_v59, %v4772_v48  ;;  %v1789_v52 = vmul.f32 %v4296_v59, %v4799_v25  ;;  %v4307_v34 = vunpack.i.h.bf16 %v4305_v38 }
 0x13e   : > { %v2023_v18 = vmul.f32 %v4296_v59, %v5220_v43  ;;  %v1555_v42 = vmul.f32 %v4292_v24, %v4772_v48  ;;  %v1788_v4 = vmul.f32 %v4292_v24, %v4799_v25  ;;  %v2022_v35 = vmul.f32 %v4292_v24, %v5220_v43 }
 0x13f   : > { %v1645_v47 = vrot.slane %v1556_v2, 2  ;;  %v1879_v0 = vrot.slane %v1789_v52, 3  ;;  %v1554_v14 = vmul.f32 %v4291_v21, %v4772_v48  ;;  %v1787_v19 = vmul.f32 %v4291_v21, %v4799_v25 }
 0x140   : > { %v2113_v32 = vrot.slane %v2023_v18, 4  ;;  %v1643_v13 = vrot.slane %v1555_v42, 2  ;;  %v1877_v26 = vrot.slane %v1788_v4, 3  ;;  %v4306_v55 = vunpack.i.l.bf16 %v4305_v38 }
 0x141   : > { %v5465_v29 = vadd.f32 %v2102_v33, %v1966_v1  ;;  %v5467_v40 = vadd.f32 %v2104_v36, %v1967_v5  ;;  %v1648_v59 = vsel %vm1128_vm1, %v1645_v47, %v6480_v23  ;;  %v1641_v39 = vrot.slane %v1554_v14, 2 }
 0x142   : > { %v1739_v24 = vadd.f32 %v1648_v59, %v5077_v56  ;;  %v1646_v2 = vsel %vm1128_vm1, %v1643_v13, %v1645_v47  ;;  %v2111_v52 = vrot.slane %v2022_v35, 4  ;;  %v1875_v60 = vrot.slane %v1787_v19, 3 }
 0x143   : > { %v6556_v18 = vrot.slane %v5431_v50, 3  ;;  %v6557_v33 = vrot.slane %v5381_v54, 2  ;;  %v1644_v38 = vsel %vm1128_vm1, %v1641_v39, %v1643_v13  ;;  %v1738_v1 = vadd.f32 %v1646_v2, %v5075_v16 }
 0x144   : > { %v6558_v4 = vrot.slane %v5439_v61, 4  ;;  %v1880_v35 = vsel %vm1847_vm2, %v1877_v26, %v1879_v0  ;;  %v1737_v14 = vadd.f32 %v1644_v38, %v5008_v46  ;;  %v2021_v54 = vmul.f32 %v4291_v21, %v5220_v43 }
 0x145   : > { %v1882_v42 = vsel %vm1847_vm2, %v1879_v0, %v6556_v18  ;;  %v1642_v36 = vsel %vm1128_vm1, %v6557_v33, %v1641_v39  ;;  %v1972_v19 = vadd.f32 %v1880_v35, %v1738_v1  ;;  %v5490_v59 = vmul.f32 %v4307_v34, %v4772_v48  ;;  %v4315_v1 = vpop.permute.xlu1 %4314 }
 0x146   : > { %v1973_v5 = vadd.f32 %v1882_v42, %v1739_v24  ;;  %v2116_v56 = vsel %vm2081_vm3, %v2113_v32, %v6558_v4  ;;  %v1736_v47 = vadd.f32 %v1642_v36, %v5030_v28  ;;  %v2114_v39 = vsel %vm2081_vm3, %v2111_v52, %v2113_v32  ;;  %v4300_v28 = vpop.permute.xlu0 %4299 }
 0x147   : > { %v6559_v16 = vrot.slane %v5384_v58, 3  ;;  %v1878_v24 = vsel %vm1847_vm2, %v1875_v60, %v1877_v26  ;;  %v5498_v0 = vmul.f32 %v4307_v34, %v4799_v25  ;;  %v2109_v18 = vrot.slane %v2021_v54, 4 }
 0x148   : > { %v5500_v2 = vadd.f32 %v2116_v56, %v1973_v5  ;;  %v5503_v21 = vmul.f32 %v4307_v34, %v5220_v43  ;;  %v1655_v42 = vrot.slane %v5490_v59, 2  ;;  %v1560_v32 = vmul.f32 %v4306_v55, %v4772_v48 }
 0x149   : > { %v1876_v13 = vsel %vm1847_vm2, %v6559_v16, %v1875_v60  ;;  %v1793_v58 = vmul.f32 %v4306_v55, %v4799_v25  ;;  %v2027_v33 = vmul.f32 %v4306_v55, %v5220_v43  ;;  %v1971_v60 = vadd.f32 %v1878_v24, %v1737_v14 }
 0x14a   : > { %v1970_v46 = vadd.f32 %v1876_v13, %v1736_v47  ;;  %v5509_v26 = vadd.f32 %v2114_v39, %v1972_v19  ;;  %v6481_v36 = vrot.slane %v5498_v0, 3  ;;  %v4302_v38 = vunpack.i.h.bf16 %v4300_v28 }
 0x14b   : > { %v6560_v5 = vrot.slane %v5387_v17, 4  ;;  %v2112_v4 = vsel %vm2081_vm3, %v2109_v18, %v2111_v52  ;;  %v1653_v56 = vrot.slane %v1560_v32, 2  ;;  %v1887_v35 = vrot.slane %v1793_v58, 3 }
 0x14c   : > { %v6482_v47 = vrot.slane %v5503_v21, 4  ;;  %v1559_v54 = vmul.f32 %v4302_v38, %v4772_v48  ;;  %v1792_v55 = vmul.f32 %v4302_v38, %v4799_v25  ;;  %v2026_v14 = vmul.f32 %v4302_v38, %v5220_v43 }
 0x14d   : > { %v2110_v34 = vsel %vm2081_vm3, %v6560_v5, %v2109_v18  ;;  %v1656_v19 = vsel %vm1128_vm1, %v1653_v56, %v1655_v42  ;;  %v2121_v39 = vrot.slane %v2027_v33, 4  ;;  %v4301_v17 = vunpack.i.l.bf16 %v4300_v28 }
 0x14e   : > { %v4317_v16 = vunpack.i.h.bf16 %v4315_v1  ;;  %v1743_v13 = vadd.f32 %v1656_v19, %v5119_v41  ;;  %v1890_v52 = vsel %vm1847_vm2, %v1887_v35, %v6481_v36  ;;  %v1651_v24 = vrot.slane %v1559_v54, 2 }
 0x14f   : > { %v1885_v18 = vrot.slane %v1792_v55, 3  ;;  %v2119_v32 = vrot.slane %v2026_v14, 4  ;;  %v1558_v58 = vmul.f32 %v4301_v17, %v4772_v48  ;;  %v1791_v38 = vmul.f32 %v4301_v17, %v4799_v25 }
 0x150   : > { %v2025_v5 = vmul.f32 %v4301_v17, %v5220_v43  ;;  %v5530_v23 = vadd.f32 %v2110_v34, %v1970_v46  ;;  %v1977_v33 = vadd.f32 %v1890_v52, %v1743_v13  ;;  %v1654_v28 = vsel %vm1128_vm1, %v1651_v24, %v1653_v56  ;;  %v4310_v52 = vpop.permute.xlu0 %4309 }
 0x151   : > { %v5534_v41 = vmul.f32 %v4317_v16, %v4772_v48  ;;  %v5536_v19 = vadd.f32 %v2112_v4, %v1971_v60  ;;  %v1649_v36 = vrot.slane %v1558_v58, 2  ;;  %v1742_v54 = vadd.f32 %v1654_v28, %v5117_v49 }
 0x152   : > { %v1883_v55 = vrot.slane %v1791_v38, 3  ;;  %v2124_v14 = vsel %vm2081_vm3, %v2121_v39, %v6482_v47  ;;  %v1888_v17 = vsel %vm1847_vm2, %v1885_v18, %v1887_v35  ;;  %v2122_v46 = vsel %vm2081_vm3, %v2119_v32, %v2121_v39 }
 0x153   : > { %v2117_v34 = vrot.slane %v2025_v5, 4  ;;  %v5544_v13 = vadd.f32 %v2124_v14, %v1977_v33  ;;  %v6561_v56 = vrot.slane %v5428_v9, 2  ;;  %v1652_v4 = vsel %vm1128_vm1, %v1649_v36, %v1651_v24 }
 0x154   : > { %v6485_v49 = vrot.slane %v5534_v41, 2  ;;  %v1741_v38 = vadd.f32 %v1652_v4, %v5042_v10  ;;  %v1976_v28 = vadd.f32 %v1888_v17, %v1742_v54  ;;  %v5554_v35 = vmul.f32 %v4317_v16, %v4799_v25 }
 0x155   : > { %v1650_v60 = vsel %vm1128_vm1, %v6561_v56, %v1649_v36  ;;  %v6562_v39 = vrot.slane %v5431_v50, 3  ;;  %v1886_v9 = vsel %vm1847_vm2, %v1883_v55, %v1885_v18  ;;  %v5561_v33 = vmul.f32 %v4317_v16, %v5220_v43  ;;  %v4325_v18 = vpop.permute.xlu1 %4324 }
 0x156   : > { %v1740_v58 = vadd.f32 %v1650_v60, %v5072_v45  ;;  %v4316_v36 = vunpack.i.l.bf16 %v4315_v1  ;;  %v6563_v14 = vrot.slane %v5439_v61, 4  ;;  %v2120_v10 = vsel %vm2081_vm3, %v2117_v34, %v2119_v32 }
 0x157   : > { %v1884_v5 = vsel %vm1847_vm2, %v6562_v39, %v1883_v55  ;;  %v4312_v54 = vunpack.i.h.bf16 %v4310_v52  ;;  %v1975_v17 = vadd.f32 %v1886_v9, %v1741_v38  ;;  %v5570_v55 = vadd.f32 %v2122_v46, %v1976_v28 }
 0x158   : > { %v1974_v24 = vadd.f32 %v1884_v5, %v1740_v58  ;;  %v2118_v45 = vsel %vm2081_vm3, %v6563_v14, %v2117_v34  ;;  %v1564_v56 = vmul.f32 %v4316_v36, %v4772_v48  ;;  %v1797_v50 = vmul.f32 %v4316_v36, %v4799_v25 }
 0x159   : > { %v2031_v60 = vmul.f32 %v4316_v36, %v5220_v43  ;;  %v6484_v1 = vrot.slane %v5554_v35, 3  ;;  %v1563_v16 = vmul.f32 %v4312_v54, %v4772_v48  ;;  %v1796_v61 = vmul.f32 %v4312_v54, %v4799_v25 }
 0x15a   : > { %v6483_v4 = vrot.slane %v5561_v33, 4  ;;  %v1661_v32 = vrot.slane %v1564_v56, 2  ;;  %v1895_v34 = vrot.slane %v1797_v50, 3  ;;  %v2030_v58 = vmul.f32 %v4312_v54, %v5220_v43 }
 0x15b   : > { %v1659_v38 = vrot.slane %v1563_v16, 2  ;;  %v1893_v39 = vrot.slane %v1796_v61, 3  ;;  %v4311_v5 = vunpack.i.l.bf16 %v4310_v52  ;;  %v4327_v9 = vunpack.i.h.bf16 %v4325_v18 }
 0x15c   : > { %v5577_v36 = vadd.f32 %v2118_v45, %v1974_v24  ;;  %v5579_v46 = vadd.f32 %v2120_v10, %v1975_v17  ;;  %v1664_v28 = vsel %vm1128_vm1, %v1661_v32, %v6485_v49  ;;  %v2129_v14 = vrot.slane %v2031_v60, 4 }
 0x15d   : > { %v1747_v47 = vadd.f32 %v1664_v28, %v5161_v3  ;;  %v1662_v56 = vsel %vm1128_vm1, %v1659_v38, %v1661_v32  ;;  %v2127_v50 = vrot.slane %v2030_v58, 4  ;;  %v1562_v54 = vmul.f32 %v4311_v5, %v4772_v48 }
 0x15e   : > { %v1898_v52 = vsel %vm1847_vm2, %v1895_v34, %v6484_v1  ;;  %v1746_v24 = vadd.f32 %v1662_v56, %v5159_v20  ;;  %v1795_v45 = vmul.f32 %v4311_v5, %v4799_v25  ;;  %v2029_v10 = vmul.f32 %v4311_v5, %v5220_v43 }
 0x15f   : > { %v1981_v17 = vadd.f32 %v1898_v52, %v1747_v47  ;;  %v1896_v60 = vsel %vm1847_vm2, %v1893_v39, %v1895_v34  ;;  %v1657_v16 = vrot.slane %v1562_v54, 2  ;;  %v5595_v3 = vmul.f32 %v4327_v9, %v4772_v48 }
 0x160   : > { %v1891_v61 = vrot.slane %v1795_v45, 3  ;;  %v1980_v32 = vadd.f32 %v1896_v60, %v1746_v24  ;;  %v2125_v58 = vrot.slane %v2029_v10, 4  ;;  %v5598_v28 = vmul.f32 %v4327_v9, %v4799_v25  ;;  %v4320_v45 = vpop.permute.xlu0 %4319  ;;  %v4335_v60 = vpop.permute.xlu1 %4334 }
 0x161   : > { %v2132_v20 = vsel %vm2081_vm3, %v2129_v14, %v6483_v4  ;;  %v2130_v56 = vsel %vm2081_vm3, %v2127_v50, %v2129_v14  ;;  %v1658_v47 = vsel %vm1128_vm1, %v1655_v42, %v1657_v16  ;;  %v1660_v34 = vsel %vm1128_vm1, %v1657_v16, %v1659_v38 }
 0x162   : > { %v5608_v5 = vadd.f32 %v2132_v20, %v1981_v17  ;;  %v1744_v54 = vadd.f32 %v1658_v47, %v5114_v44  ;;  %v1745_v52 = vadd.f32 %v1660_v34, %v5084_v63  ;;  %v5613_v24 = vmul.f32 %v4327_v9, %v5220_v43 }
 0x163   : > { %v6564_v10 = vrot.slane %v5498_v0, 3  ;;  %v1894_v59 = vsel %vm1847_vm2, %v1891_v61, %v1893_v39  ;;  %v6565_v42 = vrot.slane %v5503_v21, 4  ;;  %v6486_v17 = vrot.slane %v5595_v3, 2 }
 0x164   : > { %v2128_v44 = vsel %vm2081_vm3, %v2125_v58, %v2127_v50  ;;  %v5624_v63 = vadd.f32 %v2130_v56, %v1980_v32  ;;  %v4326_v16 = vunpack.i.l.bf16 %v4325_v18  ;;  %v1979_v0 = vadd.f32 %v1894_v59, %v1745_v52 }
 0x165   : > { %v1892_v14 = vsel %vm1847_vm2, %v6564_v10, %v1891_v61  ;;  %v2126_v38 = vsel %vm2081_vm3, %v6565_v42, %v2125_v58  ;;  %v4322_v47 = vunpack.i.h.bf16 %v4320_v45  ;;  %v4321_v34 = vunpack.i.l.bf16 %v4320_v45 }
 0x166   : > { %v1978_v20 = vadd.f32 %v1892_v14, %v1744_v54  ;;  %v1568_v21 = vmul.f32 %v4326_v16, %v4772_v48  ;;  %v1801_v61 = vmul.f32 %v4326_v16, %v4799_v25  ;;  %v4337_v10 = vunpack.i.h.bf16 %v4335_v60 }
 0x167   : > { %v2035_v42 = vmul.f32 %v4326_v16, %v5220_v43  ;;  %v1567_v50 = vmul.f32 %v4322_v47, %v4772_v48  ;;  %v1800_v32 = vmul.f32 %v4322_v47, %v4799_v25  ;;  %v2034_v58 = vmul.f32 %v4322_v47, %v5220_v43 }
 0x168   : > { %v1669_v18 = vrot.slane %v1568_v21, 2  ;;  %v1903_v56 = vrot.slane %v1801_v61, 3  ;;  %v1566_v54 = vmul.f32 %v4321_v34, %v4772_v48  ;;  %v1799_v52 = vmul.f32 %v4321_v34, %v4799_v25 }
 0x169   : > { %v2137_v45 = vrot.slane %v2035_v42, 4  ;;  %v1667_v14 = vrot.slane %v1567_v50, 2  ;;  %v1901_v59 = vrot.slane %v1800_v32, 3  ;;  %v4336_v4 = vunpack.i.l.bf16 %v4335_v60 }
 0x16a   : > { %v5636_v1 = vadd.f32 %v2126_v38, %v1978_v20  ;;  %v5638_v39 = vadd.f32 %v2128_v44, %v1979_v0  ;;  %v1672_v16 = vsel %vm1128_vm1, %v1669_v18, %v6486_v17  ;;  %v1665_v49 = vrot.slane %v1566_v54, 2 }
 0x16b   : > { %v1751_v47 = vadd.f32 %v1672_v16, %v5203_v53  ;;  %v1670_v21 = vsel %vm1128_vm1, %v1667_v14, %v1669_v18  ;;  %v2135_v61 = vrot.slane %v2034_v58, 4  ;;  %v1899_v9 = vrot.slane %v1799_v52, 3 }
 0x16c   : > { %v6566_v42 = vrot.slane %v5598_v28, 3  ;;  %v6567_v38 = vrot.slane %v5534_v41, 2  ;;  %v1668_v44 = vsel %vm1128_vm1, %v1665_v49, %v1667_v14  ;;  %v1750_v20 = vadd.f32 %v1670_v21, %v5201_v37 }
 0x16d   : > { %v6568_v32 = vrot.slane %v5613_v24, 4  ;;  %v1904_v58 = vsel %vm1847_vm2, %v1901_v59, %v1903_v56  ;;  %v1749_v54 = vadd.f32 %v1668_v44, %v5126_v8  ;;  %v2033_v41 = vmul.f32 %v4321_v34, %v5220_v43 }
 0x16e   : > { %v1906_v50 = vsel %vm1847_vm2, %v1903_v56, %v6566_v42  ;;  %v1666_v60 = vsel %vm1128_vm1, %v6567_v38, %v1665_v49  ;;  %v1984_v52 = vadd.f32 %v1904_v58, %v1750_v20  ;;  %v5661_v16 = vmul.f32 %v4337_v10, %v4772_v48  ;;  %v4345_v20 = vpop.permute.xlu1 %4344 }
 0x16f   : > { %v1985_v0 = vadd.f32 %v1906_v50, %v1751_v47  ;;  %v2140_v53 = vsel %vm2081_vm3, %v2137_v45, %v6568_v32  ;;  %v1748_v18 = vadd.f32 %v1666_v60, %v5156_v27  ;;  %v2138_v49 = vsel %vm2081_vm3, %v2135_v61, %v2137_v45  ;;  %v4330_v27 = vpop.permute.xlu0 %4329 }
 0x170   : > { %v6569_v37 = vrot.slane %v5554_v35, 3  ;;  %v1902_v47 = vsel %vm1847_vm2, %v1899_v9, %v1901_v59  ;;  %v5669_v56 = vmul.f32 %v4337_v10, %v4799_v25  ;;  %v2133_v42 = vrot.slane %v2033_v41, 4 }
 0x171   : > { %v5671_v21 = vadd.f32 %v2140_v53, %v1985_v0  ;;  %v5674_v34 = vmul.f32 %v4337_v10, %v5220_v43  ;;  %v6487_v50 = vrot.slane %v5661_v16, 2  ;;  %v1572_v45 = vmul.f32 %v4336_v4, %v4772_v48 }
 0x172   : > { %v1900_v14 = vsel %vm1847_vm2, %v6569_v37, %v1899_v9  ;;  %v1805_v35 = vmul.f32 %v4336_v4, %v4799_v25  ;;  %v2039_v38 = vmul.f32 %v4336_v4, %v5220_v43  ;;  %v1983_v9 = vadd.f32 %v1902_v47, %v1749_v54 }
 0x173   : > { %v1982_v8 = vadd.f32 %v1900_v14, %v1748_v18  ;;  %v5680_v59 = vadd.f32 %v2138_v49, %v1984_v52  ;;  %v6488_v60 = vrot.slane %v5669_v56, 3  ;;  %v4332_v44 = vunpack.i.h.bf16 %v4330_v27 }
 0x174   : > { %v6570_v0 = vrot.slane %v5561_v33, 4  ;;  %v2136_v32 = vsel %vm2081_vm3, %v2133_v42, %v2135_v61  ;;  %v1677_v53 = vrot.slane %v1572_v45, 2  ;;  %v1911_v58 = vrot.slane %v1805_v35, 3 }
 0x175   : > { %v2147_v18 = vrot.slane %v5674_v34, 4  ;;  %v1571_v41 = vmul.f32 %v4332_v44, %v4772_v48  ;;  %v1804_v4 = vmul.f32 %v4332_v44, %v4799_v25  ;;  %v2038_v54 = vmul.f32 %v4332_v44, %v5220_v43 }
 0x176   : > { %v2134_v10 = vsel %vm2081_vm3, %v6570_v0, %v2133_v42  ;;  %v1680_v52 = vsel %vm1128_vm1, %v1677_v53, %v6487_v50  ;;  %v2145_v49 = vrot.slane %v2039_v38, 4  ;;  %v4331_v33 = vunpack.i.l.bf16 %v4330_v27 }
 0x177   : > { %v4347_v37 = vunpack.i.h.bf16 %v4345_v20  ;;  %v1755_v14 = vadd.f32 %v1680_v52, %v5246_v51  ;;  %v1914_v61 = vsel %vm1847_vm2, %v1911_v58, %v6488_v60  ;;  %v1675_v47 = vrot.slane %v1571_v41, 2 }
 0x178   : > { %v1909_v42 = vrot.slane %v1804_v4, 3  ;;  %v2143_v45 = vrot.slane %v2038_v54, 4  ;;  %v1570_v35 = vmul.f32 %v4331_v33, %v4772_v48  ;;  %v1803_v44 = vmul.f32 %v4331_v33, %v4799_v25 }
 0x179   : > { %v2037_v0 = vmul.f32 %v4331_v33, %v5220_v43  ;;  %v5701_v17 = vadd.f32 %v2134_v10, %v1982_v8  ;;  %v1989_v38 = vadd.f32 %v1914_v61, %v1755_v14  ;;  %v1678_v27 = vsel %vm1128_vm1, %v1675_v47, %v1677_v53  ;;  %v4340_v33 = vpop.permute.xlu0 %4339 }
 0x17a   : > { %v1809_v51 = vmul.f32 %v4347_v37, %v4799_v25  ;;  %v5705_v52 = vadd.f32 %v2136_v32, %v1983_v9  ;;  %v1673_v50 = vrot.slane %v1570_v35, 2  ;;  %v1754_v41 = vadd.f32 %v1678_v27, %v5244_v62 }
 0x17b   : > { %v1907_v4 = vrot.slane %v1803_v44, 3  ;;  %v2148_v54 = vsel %vm2081_vm3, %v2145_v49, %v2147_v18  ;;  %v1912_v60 = vsel %vm1847_vm2, %v1909_v42, %v1911_v58  ;;  %v2146_v8 = vsel %vm2081_vm3, %v2143_v45, %v2145_v49 }
 0x17c   : > { %v2141_v10 = vrot.slane %v2037_v0, 4  ;;  %v5713_v14 = vadd.f32 %v2148_v54, %v1989_v38  ;;  %v6572_v53 = vrot.slane %v5595_v3, 2  ;;  %v1676_v32 = vsel %vm1128_vm1, %v1673_v50, %v1675_v47 }
 0x17d   : > { %v1919_v62 = vrot.slane %v1809_v51, 3  ;;  %v1753_v35 = vadd.f32 %v1676_v32, %v5168_v31  ;;  %v6573_v44 = vrot.slane %v5598_v28, 3  ;;  %v2043_v49 = vmul.f32 %v4347_v37, %v5220_v43 }
 0x17e   : > { %6571 = vst [vmem:[#allocation9_spill] sm:$0xff] %v5713_v14  ;;  %v1674_v9 = vsel %vm1128_vm1, %v6572_v53, %v1673_v50  ;;  %v1910_v0 = vsel %vm1847_vm2, %v1907_v4, %v1909_v42  ;;  %v1988_v38 = vadd.f32 %v1912_v60, %v1754_v41  ;;  %v4346_v27 = vunpack.i.l.bf16 %v4345_v20  ;;  %v3612_v60 = vld [vmem:[%s6458_s1 + $0x6] sm:$0x1] }
 0x17f   : > { %v1752_v61 = vadd.f32 %v1674_v9, %v5198_v57  ;;  %v1908_v58 = vsel %vm1847_vm2, %v6573_v44, %v1907_v4  ;;  %v4342_v3 = vunpack.i.h.bf16 %v4340_v33  ;;  %v6574_v53 = vrot.slane %v5613_v24, 4 }
 0x180   : > { %v2144_v57 = vsel %vm2081_vm3, %v2141_v10, %v2143_v45  ;;  %v4341_v47 = vunpack.i.l.bf16 %v4340_v33  ;;  %v1576_v31 = vmul.f32 %v4346_v27, %v4772_v48  ;;  %v1987_v20 = vadd.f32 %v1910_v0, %v1753_v35  ;;  %v3613_v45 = vld [vmem:[%s6458_s1 + $0x7] sm:$0x1]  ;;  %v4355_v27 = vpop.permute.xlu1 %4354 }
 0x181   : > { %v1986_v54 = vadd.f32 %v1908_v58, %v1752_v61  ;;  %v2142_v50 = vsel %vm2081_vm3, %v6574_v53, %v2141_v10  ;;  %v1575_v28 = vmul.f32 %v4342_v3, %v4772_v48  ;;  %v1808_v51 = vmul.f32 %v4342_v3, %v4799_v25 }
 0x182   : > { %v2042_v37 = vmul.f32 %v4342_v3, %v5220_v43  ;;  %v2153_v42 = vrot.slane %v2043_v49, 4  ;;  %v1574_v24 = vmul.f32 %v4341_v47, %v4772_v48  ;;  %v1807_v41 = vmul.f32 %v4341_v47, %v4799_v25 }
 0x183   : > { %v1685_v4 = vrot.slane %v1576_v31, 2  ;;  %v1683_v10 = vrot.slane %v1575_v28, 2  ;;  %v1917_v33 = vrot.slane %v1808_v51, 3  ;;  %v2041_v44 = vmul.f32 %v4341_v47, %v5220_v43  ;;  %v6578_v28 = vld [vmem:[#allocation5_spill] sm:$0xff] }
 0x184   : > { %v2151_v9 = vrot.slane %v2042_v37, 4  ;;  %v1681_v32 = vrot.slane %v1574_v24, 2  ;;  %v1915_v61 = vrot.slane %v1807_v41, 3  ;;  %v2303_v58 = vunpack.c.l.bf16 %v3612_v60  ;;  %v6579_v37 = vld [vmem:[#allocation4_spill] sm:$0xff]  ;;  %v6583_v24 = vld [vmem:[#allocation2_spill] sm:$0xff] }
 0x185   : > { %v5743_v35 = vadd.f32 %v2142_v50, %v1986_v54  ;;  %v5745_v49 = vadd.f32 %v2146_v8, %v1988_v38  ;;  %v1686_v48 = vsel %vm1128_vm1, %v1683_v10, %v1685_v4  ;;  %v2716_v25 = vunpack.c.l.bf16 %v3613_v45  ;;  %v6580_v50 = vld [vmem:[#allocation10_spill] sm:$0xff]  ;;  %v4350_v45 = vpop.permute.xlu0 %4349 }
 0x186   : > { %v5748_v0 = vadd.f32 %v2144_v57, %v1987_v20  ;;  %v6577_v3 = vrot.slane %v5661_v16, 2  ;;  %v1684_v31 = vsel %vm1128_vm1, %v1681_v32, %v1683_v10  ;;  %v1758_v51 = vadd.f32 %v1686_v48, %v6578_v28  ;;  %v3614_v57 = vld [vmem:[%s6458_s1 + $0x8] sm:$0x1] }
 0x187   : > { %6575 = vst [vmem:[#allocation13_spill] sm:$0xff] %v5745_v49  ;;  %v1920_v47 = vsel %vm1847_vm2, %v1917_v33, %v1919_v62  ;;  %v1757_v8 = vadd.f32 %v1684_v31, %v6580_v50  ;;  %v2149_v38 = vrot.slane %v2041_v44, 4  ;;  %v5762_v60 = vsel %vm2081_vm3, %v2151_v9, %v2153_v42 }
 0x188   : > { %6576 = vst [vmem:[#allocation14_spill] sm:$0xff] %v5748_v0  ;;  %v1682_v53 = vsel %vm1128_vm1, %v6577_v3, %v1681_v32  ;;  %6581 = vst [vmem:[#allocation5_spill] sm:$0xff] %v5762_v60  ;;  %v6582_v16 = vrot.slane %v5669_v56, 3  ;;  %v5768_v41 = vrot.slane %v2303_v58, %v6583_v24  ;;  %v5771_v62 = vrot.slane %v2716_v25, %v6583_v24  ;;  %v4365_v58 = vpop.permute.xlu1 %4364 }
 0x189   : > { %v1756_v54 = vadd.f32 %v1682_v53, %v6579_v37  ;;  %v1918_v4 = vsel %vm1847_vm2, %v1915_v61, %v1917_v33  ;;  %v5774_v32 = vadd.f32 %v1920_v47, %v1758_v51  ;;  %v2150_v56 = vsel %vm2081_vm3, %v2147_v18, %v2149_v38 }
 0x18a   : > { %v1916_v20 = vsel %vm1847_vm2, %v6582_v16, %v1915_v61  ;;  %v5776_v44 = vadd.f32 %v1918_v4, %v1757_v8  ;;  %v2950_v42 = vunpack.c.l.bf16 %v3614_v57  ;;  %v4357_v48 = vunpack.i.h.bf16 %v4355_v27 }
 0x18b   : > { %v1990_v10 = vadd.f32 %v1916_v20, %v1756_v54  ;;  %6584 = vst [vmem:[#allocation4_spill] sm:$0xff] %v5774_v32  ;;  %v5782_v3 = vsel %vm2081_vm3, %v2149_v38, %v2151_v9  ;;  %v4356_v25 = vunpack.i.l.bf16 %v4355_v27  ;;  %v4352_v53 = vunpack.i.h.bf16 %v4350_v45 }
 0x18c   : > { %6585 = vst [vmem:[#allocation10_spill] sm:$0xff] %v5782_v3  ;;  %v5785_v33 = vrot.slane %v2950_v42, %v6583_v24  ;;  %v5788_v61 = vmul.f32 %v4357_v48, %v5768_v41  ;;  %v5791_v31 = vmul.f32 %v4357_v48, %v5771_v62  ;;  %v4351_v34 = vunpack.i.l.bf16 %v4350_v45  ;;  %v6589_v24 = vld [vmem:[#allocation3_spill] sm:$0xff] }
 0x18d   : > { %v2494_v18 = vmul.f32 %v4356_v25, %v5768_v41  ;;  %v5795_v28 = vmul.f32 %v4356_v25, %v5771_v62  ;;  %v2493_v9 = vmul.f32 %v4352_v53, %v5768_v41  ;;  %v5799_v27 = vmul.f32 %v4352_v53, %v5771_v62  ;;  %v6590_v45 = vld [vmem:[#allocation11_spill] sm:$0xff]  ;;  %v5817_v53 = vpop.permute.xlu1 %4374 }
 0x18e   : > { %v6489_v51 = vrot.slane %v5788_v61, 4  ;;  %v6491_v47 = vrot.slane %v5791_v31, 5  ;;  %v5804_v37 = vmul.f32 %v4357_v48, %v5785_v33  ;;  %v5807_v54 = vmul.f32 %v4356_v25, %v5785_v33  ;;  %v4360_v48 = vpop.permute.xlu0 %4359 }
 0x18f   : > { %6586 = vst [vmem:[#allocation2_spill] sm:$0xff] %v5795_v28  ;;  %6587 = vst [vmem:[#allocation15_spill] sm:$0xff] %v5799_v27  ;;  %v5809_v50 = vadd.f32 %v2150_v56, %v1990_v10  ;;  %v2568_v8 = vrot.slane %v2494_v18, 4  ;;  %v6490_v38 = vrot.slane %v5795_v28, 5  ;;  %v2567_v57 = vrot.slane %v2493_v9, 4 }
 0x190   : > { %6588 = vst [vmem:[#allocation16_spill] sm:$0xff] %v5807_v54  ;;  %v6493_v16 = vrot.slane %v5804_v37, 6  ;;  %v6492_v20 = vrot.slane %v5807_v54, 6  ;;  %v1957_v4 = vadd.f32 %v6590_v45, %v6589_v24  ;;  %v2007_v42 = vmul.f32 %v4351_v34, %v5220_v43  ;;  %v5861_v18 = vld [vmem:[%s6460_s3] ss:$0 sm:$0xff] }
 0x191   : > { %v2571_v10 = vsel %vm2081_vm3, %v2568_v8, %v6489_v51  ;;  %v2805_v56 = vsel %vm2800_vm4, %v6490_v38, %v6491_v47  ;;  %v2569_v25 = vsel %vm2081_vm3, %v2567_v57, %v2568_v8  ;;  %v4367_v24 = vunpack.i.h.bf16 %v4365_v58  ;;  %v6591_v47 = vld [vmem:[#allocation12_spill] sm:$0xff] }
 0x192   : > { %v2677_v9 = vadd.f32 %v2571_v10, %v5349_v15  ;;  %v3039_v43 = vsel %vm3034_vm5, %v6492_v20, %v6493_v16  ;;  %v2082_v34 = vrot.slane %v2007_v42, 4  ;;  %v4366_v45 = vunpack.i.l.bf16 %v4365_v58  ;;  %v5848_v42 = vld [vmem:[%s6459_s2] ss:$0 sm:$0xff] }
 0x193   : > { %v4362_v51 = vunpack.i.h.bf16 %v4360_v48  ;;  %v4361_v60 = vunpack.i.l.bf16 %v4360_v48  ;;  %v4377_v32 = vunpack.i.h.bf16 %v5817_v53  ;;  %v6592_v8 = vrot.slane %v6591_v47, 4 }
 0x194   : > { %v2911_v38 = vadd.f32 %v2805_v56, %v2677_v9  ;;  %v5840_v15 = vmul.f32 %v4367_v24, %v5768_v41  ;;  %v5843_v10 = vmul.f32 %v4367_v24, %v5771_v62  ;;  %v5851_v48 = vmul.f32 %v4367_v24, %v5785_v33 }
 0x195   : > { %v2084_v57 = vsel %vm2081_vm3, %v2082_v34, %v6592_v8  ;;  %v2498_v47 = vmul.f32 %v4366_v45, %v5768_v41  ;;  %v2731_v56 = vmul.f32 %v4366_v45, %v5771_v62  ;;  %v2965_v20 = vmul.f32 %v4366_v45, %v5785_v33 }
 0x196   : > { %v2191_v58 = vadd.f32 %v2084_v57, %v1957_v4  ;;  %v3145_v9 = vadd.f32 %v3039_v43, %v2911_v38  ;;  %v6495_v34 = vrot.slane %v5840_v15, 4  ;;  %v6498_v24 = vrot.slane %v5851_v48, 6 }
 0x197   : > { %v2576_v57 = vrot.slane %v2498_v47, 4  ;;  %v2810_v16 = vrot.slane %v2731_v56, 5  ;;  %v3044_v38 = vrot.slane %v2965_v20, 6  ;;  %v2497_v43 = vmul.f32 %v4362_v51, %v5768_v41 }
 0x198   : > { %v5863_v4 = vadd.f32 %v2569_v25, %v2191_v58  ;;  %v3188_v54 = vmul.f32 %v5848_v42, %v3145_v9  ;;  %v2730_v8 = vmul.f32 %v4362_v51, %v5771_v62  ;;  %v6594_v49 = vrot.slane %v5843_v10, 5 }
 0x199   : > { %v2579_v45 = vsel %vm2081_vm3, %v2576_v57, %v6495_v34  ;;  %v2964_v58 = vmul.f32 %v4362_v51, %v5785_v33  ;;  %v2496_v47 = vmul.f32 %v4361_v60, %v5768_v41  ;;  %v3047_v9 = vsel %vm3034_vm5, %v3044_v38, %v6498_v24 }
 0x19a   : > { %6593 = vst [vmem:[#allocation3_spill] sm:$0xff] %v5863_v4  ;;  %v2813_v25 = vsel %vm2800_vm4, %v2810_v16, %v6594_v49  ;;  %v3231_v56 = vadd.f32 %v5861_v18, %v3188_v54  ;;  %v2681_v20 = vadd.f32 %v2579_v45, %v5406_v30  ;;  %v2574_v4 = vrot.slane %v2497_v43, 4 }
 0x19b   : > { %v2808_v0 = vrot.slane %v2730_v8, 5  ;;  %v3042_v14 = vrot.slane %v2964_v58, 6  ;;  %v2572_v34 = vrot.slane %v2496_v47, 4  ;;  %v2729_v27 = vmul.f32 %v4361_v60, %v5771_v62  ;;  %v6596_v47 = vld [vmem:[#allocation6_spill] sm:$0xff] }
 0x19c   : > { %v3267_v28 = vmax.f32 %v3231_v56, 0.0  ;;  %v2915_v49 = vadd.f32 %v2813_v25, %v2681_v20  ;;  %v2577_v51 = vsel %vm2081_vm3, %v2574_v4, %v2576_v57  ;;  %v2963_v3 = vmul.f32 %v4361_v60, %v5785_v33 }
 0x19d   : > { %v2811_v30 = vsel %vm2800_vm4, %v2808_v0, %v2810_v16  ;;  %v3045_v54 = vsel %vm3034_vm5, %v3042_v14, %v3044_v38  ;;  %v6595_v8 = vrot.slane %v5788_v61, 4  ;;  %v2575_v45 = vsel %vm2081_vm3, %v2572_v34, %v2574_v4 }
 0x19e   : > { %v3656_v25 = vpack.c.bf16 %v3267_v28, %v3267_v28  ;;  %v3149_v57 = vadd.f32 %v3047_v9, %v2915_v49  ;;  %v2679_v58 = vadd.f32 %v2575_v45, %v5351_v22  ;;  %v2680_v56 = vadd.f32 %v2577_v51, %v6596_v47 }
 0x19f   : > { %v2573_v43 = vsel %vm2081_vm3, %v6595_v8, %v2572_v34  ;;  %v2806_v20 = vrot.slane %v2729_v27, 5  ;;  %v3040_v24 = vrot.slane %v2963_v3, 6  ;;  %v5901_v16 = vmul.f32 %v4377_v32, %v5768_v41 }
 0x1a0   : > { %v2678_v60 = vadd.f32 %v2573_v43, %v5353_v12  ;;  %3448 = vst.msk [vmem:[%s5889_s25 + $0x4] sm:$0xf] %vm3446_vm6, %v3656_v25  ;;  %v3192_v61 = vmul.f32 %v5848_v42, %v3149_v57  ;;  %v5907_v38 = vmul.f32 %v4377_v32, %v5771_v62  ;;  %v5910_v28 = vmul.f32 %v4377_v32, %v5785_v33  ;;  %v4370_v43 = vpop.permute.xlu0 %4369 }
 0x1a1   : > { %v4376_v12 = vunpack.i.l.bf16 %v5817_v53  ;;  %v6597_v22 = vrot.slane %v5791_v31, 5  ;;  %v2809_v3 = vsel %vm2800_vm4, %v2806_v20, %v2808_v0  ;;  %v2914_v34 = vadd.f32 %v2811_v30, %v2680_v56 }
 0x1a2   : > { %v6598_v4 = vrot.slane %v5804_v37, 6  ;;  %v3235_v49 = vadd.f32 %v5861_v18, %v3192_v61  ;;  %v2913_v8 = vadd.f32 %v2809_v3, %v2679_v58  ;;  %v3043_v32 = vsel %vm3034_vm5, %v3040_v24, %v3042_v14 }
 0x1a3   : > { %v2807_v27 = vsel %vm2800_vm4, %v6597_v22, %v2806_v20  ;;  %v3148_v45 = vadd.f32 %v3045_v54, %v2914_v34  ;;  %v2586_v53 = vrot.slane %v5901_v16, 4  ;;  %v2820_v31 = vrot.slane %v5907_v38, 5 }
 0x1a4   : > { %v3041_v9 = vsel %vm3034_vm5, %v6598_v4, %v3040_v24  ;;  %v2912_v51 = vadd.f32 %v2807_v27, %v2678_v60  ;;  %v3054_v25 = vrot.slane %v5910_v28, 6  ;;  %v3271_v0 = vmax.f32 %v3235_v49, 0.0 }
 0x1a5   : > { %v3147_v37 = vadd.f32 %v3043_v32, %v2913_v8  ;;  %v2502_v57 = vmul.f32 %v4376_v12, %v5768_v41  ;;  %v3191_v47 = vmul.f32 %v5848_v42, %v3148_v45  ;;  %v2735_v60 = vmul.f32 %v4376_v12, %v5771_v62 }
 0x1a6   : > { %v3146_v30 = vadd.f32 %v3041_v9, %v2912_v51  ;;  %v2969_v14 = vmul.f32 %v4376_v12, %v5785_v33  ;;  %v4372_v24 = vunpack.i.h.bf16 %v4370_v43  ;;  %v3660_v54 = vpack.c.bf16 %v3271_v0, %v3271_v0 }
 0x1a7   : > { %v3190_v56 = vmul.f32 %v5848_v42, %v3147_v37  ;;  %v2584_v20 = vrot.slane %v2502_v57, 4  ;;  %v3234_v61 = vadd.f32 %v5861_v18, %v3191_v47  ;;  %v2818_v22 = vrot.slane %v2735_v60, 5 }
 0x1a8   : > { %v3189_v58 = vmul.f32 %v5848_v42, %v3146_v30  ;;  %v3052_v27 = vrot.slane %v2969_v14, 6  ;;  %v2501_v3 = vmul.f32 %v4372_v24, %v5768_v41  ;;  %3452 = vst.msk [vmem:[%s5889_s25 + $0x14] sm:$0xf] %vm3446_vm6, %v3660_v54  ;;  %v2734_v9 = vmul.f32 %v4372_v24, %v5771_v62  ;;  %v4385_v14 = vpop.permute.xlu1 %4384 }
 0x1a9   : > { %v3233_v4 = vadd.f32 %v5861_v18, %v3190_v56  ;;  %v2587_v12 = vsel %vm2081_vm3, %v2584_v20, %v2586_v53  ;;  %v3270_v49 = vmax.f32 %v3234_v61, 0.0  ;;  %v2821_v8 = vsel %vm2800_vm4, %v2818_v22, %v2820_v31 }
 0x1aa   : > { %v3232_v34 = vadd.f32 %v5861_v18, %v3189_v58  ;;  %v2685_v51 = vadd.f32 %v2587_v12, %v5465_v29  ;;  %v3055_v32 = vsel %vm3034_vm5, %v3052_v27, %v3054_v25  ;;  %v2582_v30 = vrot.slane %v2501_v3, 4 }
 0x1ab   : > { %v3269_v0 = vmax.f32 %v3233_v4, 0.0  ;;  %v2816_v37 = vrot.slane %v2734_v9, 5  ;;  %v3659_v57 = vpack.c.bf16 %v3270_v49, %v3270_v49  ;;  %v2968_v60 = vmul.f32 %v4372_v24, %v5785_v33 }
 0x1ac   : > { %v3268_v45 = vmax.f32 %v3232_v34, 0.0  ;;  %v2919_v47 = vadd.f32 %v2821_v8, %v2685_v51  ;;  %v4371_v29 = vunpack.i.l.bf16 %v4370_v43  ;;  %v2585_v56 = vsel %vm2081_vm3, %v2582_v30, %v2584_v20 }
 0x1ad   : > { %v3658_v58 = vpack.c.bf16 %v3269_v0, %v3269_v0  ;;  %v2819_v61 = vsel %vm2800_vm4, %v2816_v37, %v2818_v22  ;;  %3451 = vst.msk [vmem:[%s5889_s25 + $0x10] sm:$0xf] %vm3446_vm6, %v3659_v57  ;;  %v3050_v4 = vrot.slane %v2968_v60, 6  ;;  %v2684_v12 = vadd.f32 %v2585_v56, %v5389_v6 }
 0x1ae   : > { %v3657_v54 = vpack.c.bf16 %v3268_v45, %v3268_v45  ;;  %v3153_v34 = vadd.f32 %v3055_v32, %v2919_v47  ;;  %v2500_v3 = vmul.f32 %v4371_v29, %v5768_v41  ;;  %v2733_v43 = vmul.f32 %v4371_v29, %v5771_v62 }
 0x1af   : > { %3450 = vst.msk [vmem:[%s5889_s25 + $0xc] sm:$0xf] %vm3446_vm6, %v3658_v58  ;;  %v2967_v24 = vmul.f32 %v4371_v29, %v5785_v33  ;;  %v4387_v9 = vunpack.i.h.bf16 %v4385_v14  ;;  %v4386_v20 = vunpack.i.l.bf16 %v4385_v14  ;;  %v3053_v49 = vsel %vm3034_vm5, %v3050_v4, %v3052_v27 }
 0x1b0   : > { %3449 = vst.msk [vmem:[%s5889_s25 + $0x8] sm:$0xf] %vm3446_vm6, %v3657_v54  ;;  %v3196_v22 = vmul.f32 %v5848_v42, %v3153_v34  ;;  %v2580_v51 = vrot.slane %v2500_v3, 4  ;;  %v2918_v8 = vadd.f32 %v2819_v61, %v2684_v12  ;;  %v2814_v32 = vrot.slane %v2733_v43, 5  ;;  %v6600_v54 = vld [vmem:[#allocation8_spill] sm:$0xff] }
 0x1b1   : > { %v3048_v45 = vrot.slane %v2967_v24, 6  ;;  %v5964_v6 = vmul.f32 %v4387_v9, %v5768_v41  ;;  %v5967_v0 = vmul.f32 %v4387_v9, %v5771_v62  ;;  %v6599_v47 = vrot.slane %v5840_v15, 4 }
 0x1b2   : > { %v3239_v57 = vadd.f32 %v5861_v18, %v3196_v22  ;;  %v2583_v29 = vsel %vm2081_vm3, %v2580_v51, %v2582_v30  ;;  %v3152_v14 = vadd.f32 %v3053_v49, %v2918_v8  ;;  %v6601_v56 = vrot.slane %v5843_v10, 5  ;;  %v4380_v49 = vpop.permute.xlu0 %4379 }
 0x1b3   : > { %v2581_v60 = vsel %vm2081_vm3, %v6599_v47, %v2580_v51  ;;  %v2683_v58 = vadd.f32 %v2583_v29, %v6600_v54  ;;  %v2817_v34 = vsel %vm2800_vm4, %v2814_v32, %v2816_v37  ;;  %v6602_v12 = vrot.slane %v5851_v48, 6 }
 0x1b4   : > { %v2682_v27 = vadd.f32 %v2581_v60, %v5423_v11  ;;  %v2815_v61 = vsel %vm2800_vm4, %v6601_v56, %v2814_v32  ;;  %v3275_v3 = vmax.f32 %v3239_v57, 0.0  ;;  %v3051_v43 = vsel %vm3034_vm5, %v3048_v45, %v3050_v4 }
 0x1b5   : > { %v3049_v15 = vsel %vm3034_vm5, %v6602_v12, %v3048_v45  ;;  %v3195_v30 = vmul.f32 %v5848_v42, %v3152_v14  ;;  %v2917_v11 = vadd.f32 %v2817_v34, %v2683_v58  ;;  %v2594_v22 = vrot.slane %v5964_v6, 4 }
 0x1b6   : > { %v2916_v24 = vadd.f32 %v2815_v61, %v2682_v27  ;;  %v2828_v10 = vrot.slane %v5967_v0, 5  ;;  %v3664_v51 = vpack.c.bf16 %v3275_v3, %v3275_v3  ;;  %v5989_v8 = vmul.f32 %v4387_v9, %v5785_v33 }
 0x1b7   : > { %v3238_v37 = vadd.f32 %v5861_v18, %v3195_v30  ;;  %v2506_v48 = vmul.f32 %v4386_v20, %v5768_v41  ;;  %v3151_v57 = vadd.f32 %v3051_v43, %v2917_v11  ;;  %v2739_v4 = vmul.f32 %v4386_v20, %v5771_v62  ;;  %v4395_v30 = vpop.permute.xlu1 %4394 }
 0x1b8   : > { %v3150_v32 = vadd.f32 %v3049_v15, %v2916_v24  ;;  %v2973_v45 = vmul.f32 %v4386_v20, %v5785_v33  ;;  %3456 = vst.msk [vmem:[%s5889_s25 + $0x24] sm:$0xf] %vm3446_vm6, %v3664_v51  ;;  %v3062_v60 = vrot.slane %v5989_v8, 6  ;;  %v4382_v14 = vunpack.i.h.bf16 %v4380_v49 }
 0x1b9   : > { %v3274_v47 = vmax.f32 %v3238_v37, 0.0  ;;  %v2592_v29 = vrot.slane %v2506_v48, 4  ;;  %v3194_v9 = vmul.f32 %v5848_v42, %v3151_v57  ;;  %v2826_v54 = vrot.slane %v2739_v4, 5 }
 0x1ba   : > { %v3193_v27 = vmul.f32 %v5848_v42, %v3150_v32  ;;  %v3060_v58 = vrot.slane %v2973_v45, 6  ;;  %v2505_v20 = vmul.f32 %v4382_v14, %v5768_v41  ;;  %v2738_v34 = vmul.f32 %v4382_v14, %v5771_v62 }
 0x1bb   : > { %v3663_v56 = vpack.c.bf16 %v3274_v47, %v3274_v47  ;;  %v2595_v61 = vsel %vm2081_vm3, %v2592_v29, %v2594_v22  ;;  %v3237_v12 = vadd.f32 %v5861_v18, %v3194_v9  ;;  %v2829_v43 = vsel %vm2800_vm4, %v2826_v54, %v2828_v10 }
 0x1bc   : > { %v3236_v3 = vadd.f32 %v5861_v18, %v3193_v27  ;;  %v2689_v15 = vadd.f32 %v2595_v61, %v5530_v23  ;;  %v3063_v24 = vsel %vm3034_vm5, %v3060_v58, %v3062_v60  ;;  %v2590_v11 = vrot.slane %v2505_v20, 4 }
 0x1bd   : > { %3455 = vst.msk [vmem:[%s5889_s25 + $0x20] sm:$0xf] %vm3446_vm6, %v3663_v56  ;;  %v2824_v51 = vrot.slane %v2738_v34, 5  ;;  %v2972_v37 = vmul.f32 %v4382_v14, %v5785_v33  ;;  %v3273_v32 = vmax.f32 %v3237_v12, 0.0  ;;  %v4381_v57 = vunpack.i.l.bf16 %v4380_v49 }
 0x1be   : > { %v3272_v48 = vmax.f32 %v3236_v3, 0.0  ;;  %v2923_v23 = vadd.f32 %v2829_v43, %v2689_v15  ;;  %v2593_v4 = vsel %vm2081_vm3, %v2590_v11, %v2592_v29  ;;  %v4397_v27 = vunpack.i.h.bf16 %v4395_v30 }
 0x1bf   : > { %v2827_v45 = vsel %vm2800_vm4, %v2824_v51, %v2826_v54  ;;  %v3058_v47 = vrot.slane %v2972_v37, 6  ;;  %v3662_v56 = vpack.c.bf16 %v3273_v32, %v3273_v32  ;;  %v2504_v20 = vmul.f32 %v4381_v57, %v5768_v41 }
 0x1c0   : > { %v3661_v9 = vpack.c.bf16 %v3272_v48, %v3272_v48  ;;  %v3157_v61 = vadd.f32 %v3063_v24, %v2923_v23  ;;  %v2688_v14 = vadd.f32 %v2593_v4, %v5425_v7  ;;  %v2737_v3 = vmul.f32 %v4381_v57, %v5771_v62  ;;  %v6603_v4 = vld [vmem:[#allocation7_spill] sm:$0xff] }
 0x1c1   : > { %v3061_v34 = vsel %vm3034_vm5, %v3058_v47, %v3060_v58  ;;  %v2971_v12 = vmul.f32 %v4381_v57, %v5785_v33  ;;  %3454 = vst.msk [vmem:[%s5889_s25 + $0x1c] sm:$0xf] %vm3446_vm6, %v3662_v56  ;;  %v2588_v29 = vrot.slane %v2504_v20, 4  ;;  %v6029_v54 = vmul.f32 %v4397_v27, %v5768_v41  ;;  %v4390_v56 = vpop.permute.xlu0 %4389  ;;  %v6053_v20 = vpop.permute.xlu1 %4404 }
 0x1c2   : > { %3453 = vst.msk [vmem:[%s5889_s25 + $0x18] sm:$0xf] %vm3446_vm6, %v3661_v9  ;;  %v3200_v49 = vmul.f32 %v5848_v42, %v3157_v61  ;;  %v6032_v15 = vmul.f32 %v4397_v27, %v5771_v62  ;;  %v2822_v58 = vrot.slane %v2737_v3, 5  ;;  %v2922_v43 = vadd.f32 %v2827_v45, %v2688_v14 }
 0x1c3   : > { %v3056_v7 = vrot.slane %v2971_v12, 6  ;;  %v6035_v24 = vmul.f32 %v4397_v27, %v5785_v33  ;;  %v2589_v48 = vsel %vm2081_vm3, %v2586_v53, %v2588_v29  ;;  %v2591_v32 = vsel %vm2081_vm3, %v2588_v29, %v2590_v11 }
 0x1c4   : > { %v3243_v37 = vadd.f32 %v5861_v18, %v3200_v49  ;;  %v2602_v23 = vrot.slane %v6029_v54, 4  ;;  %v2686_v57 = vadd.f32 %v2589_v48, %v5467_v40  ;;  %v2687_v9 = vadd.f32 %v2591_v32, %v6603_v4 }
 0x1c5   : > { %v2823_v45 = vsel %vm2800_vm4, %v2820_v31, %v2822_v58  ;;  %v2825_v27 = vsel %vm2800_vm4, %v2822_v58, %v2824_v51  ;;  %v3057_v16 = vsel %vm3034_vm5, %v3054_v25, %v3056_v7  ;;  %v3059_v53 = vsel %vm3034_vm5, %v3056_v7, %v3058_v47 }
 0x1c6   : > { %v3279_v61 = vmax.f32 %v3243_v37, 0.0  ;;  %v3156_v11 = vadd.f32 %v3061_v34, %v2922_v43  ;;  %v2920_v40 = vadd.f32 %v2823_v45, %v2686_v57  ;;  %v2921_v14 = vadd.f32 %v2825_v27, %v2687_v9 }
 0x1c7   : > { %v2836_v38 = vrot.slane %v6032_v15, 5  ;;  %v3070_v31 = vrot.slane %v6035_v24, 6  ;;  %v4396_v12 = vunpack.i.l.bf16 %v4395_v30  ;;  %v4392_v49 = vunpack.i.h.bf16 %v4390_v56 }
 0x1c8   : > { %v3668_v3 = vpack.c.bf16 %v3279_v61, %v3279_v61  ;;  %v3199_v51 = vmul.f32 %v5848_v42, %v3156_v11  ;;  %v3154_v28 = vadd.f32 %v3057_v16, %v2920_v40  ;;  %v3155_v29 = vadd.f32 %v3059_v53, %v2921_v14 }
 0x1c9   : > { %v4391_v25 = vunpack.i.l.bf16 %v4390_v56  ;;  %v6059_v58 = vunpack.i.h.bf16 %v6053_v20  ;;  %v2510_v34 = vmul.f32 %v4396_v12, %v5768_v41  ;;  %v2743_v43 = vmul.f32 %v4396_v12, %v5771_v62 }
 0x1ca   : > { %3460 = vst.msk [vmem:[%s5889_s25 + $0x34] sm:$0xf] %vm3446_vm6, %v3668_v3  ;;  %v3242_v47 = vadd.f32 %v5861_v18, %v3199_v51  ;;  %v2977_v7 = vmul.f32 %v4396_v12, %v5785_v33  ;;  %v3197_v37 = vmul.f32 %v5848_v42, %v3154_v28  ;;  %v3198_v30 = vmul.f32 %v5848_v42, %v3155_v29 }
 0x1cb   : > { %v2509_v48 = vmul.f32 %v4392_v49, %v5768_v41  ;;  %v2742_v32 = vmul.f32 %v4392_v49, %v5771_v62  ;;  %v2600_v4 = vrot.slane %v2510_v34, 4  ;;  %v2834_v9 = vrot.slane %v2743_v43, 5 }
 0x1cc   : > { %v3278_v57 = vmax.f32 %v3242_v47, 0.0  ;;  %v3068_v45 = vrot.slane %v2977_v7, 6  ;;  %v3240_v27 = vadd.f32 %v5861_v18, %v3197_v37  ;;  %v3241_v56 = vadd.f32 %v5861_v18, %v3198_v30 }
 0x1cd   : > { %v2598_v61 = vrot.slane %v2509_v48, 4  ;;  %v2832_v16 = vrot.slane %v2742_v32, 5  ;;  %v2603_v11 = vsel %vm2081_vm3, %v2600_v4, %v2602_v23  ;;  %v2837_v40 = vsel %vm2800_vm4, %v2834_v9, %v2836_v38 }
 0x1ce   : > { %v3667_v53 = vpack.c.bf16 %v3278_v57, %v3278_v57  ;;  %v3071_v14 = vsel %vm3034_vm5, %v3068_v45, %v3070_v31  ;;  %v3276_v3 = vmax.f32 %v3240_v27, 0.0  ;;  %v3277_v51 = vmax.f32 %v3241_v56, 0.0 }
 0x1cf   : > { %v2693_v12 = vadd.f32 %v2603_v11, %v5577_v36  ;;  %v2601_v28 = vsel %vm2081_vm3, %v2598_v61, %v2600_v4  ;;  %v2835_v29 = vsel %vm2800_vm4, %v2832_v16, %v2834_v9  ;;  %v2976_v47 = vmul.f32 %v4392_v49, %v5785_v33 }
 0x1d0   : > { %3459 = vst.msk [vmem:[%s5889_s25 + $0x30] sm:$0xf] %vm3446_vm6, %v3667_v53  ;;  %v2508_v34 = vmul.f32 %v4391_v25, %v5768_v41  ;;  %v2692_v43 = vadd.f32 %v2601_v28, %v5500_v2  ;;  %v3665_v7 = vpack.c.bf16 %v3276_v3, %v3276_v3  ;;  %v3666_v37 = vpack.c.bf16 %v3277_v51, %v3277_v51 }
 0x1d1   : > { %v2927_v30 = vadd.f32 %v2837_v40, %v2693_v12  ;;  %v2741_v48 = vmul.f32 %v4391_v25, %v5771_v62  ;;  %v3066_v32 = vrot.slane %v2976_v47, 6  ;;  %v2975_v4 = vmul.f32 %v4391_v25, %v5785_v33 }
 0x1d2   : > { %v2596_v36 = vrot.slane %v2508_v34, 4  ;;  %v2926_v57 = vadd.f32 %v2835_v29, %v2692_v43  ;;  %3457 = vst.msk [vmem:[%s5889_s25 + $0x28] sm:$0xf] %vm3446_vm6, %v3665_v7  ;;  %3458 = vst.msk [vmem:[%s5889_s25 + $0x2c] sm:$0xf] %vm3446_vm6, %v3666_v37  ;;  %v6098_v27 = vmul.f32 %v6059_v58, %v5768_v41  ;;  %v6102_v2 = vmul.f32 %v6059_v58, %v5771_v62 }
 0x1d3   : > { %v3161_v9 = vadd.f32 %v3071_v14, %v2927_v30  ;;  %v2830_v49 = vrot.slane %v2741_v48, 5  ;;  %v3069_v56 = vsel %vm3034_vm5, %v3066_v32, %v3068_v45  ;;  %v3064_v11 = vrot.slane %v2975_v4, 6 }
 0x1d4   : > { %v2597_v25 = vsel %vm2081_vm3, %v2594_v22, %v2596_v36  ;;  %v2599_v53 = vsel %vm2081_vm3, %v2596_v36, %v2598_v61  ;;  %v3160_v45 = vadd.f32 %v3069_v56, %v2926_v57  ;;  %v4400_v61 = vpop.permute.xlu0 %4399  ;;  %v4406_v8 = vunpack.i.l.bf16 %v6053_v20 }
 0x1d5   : > { %v3204_v40 = vmul.f32 %v5848_v42, %v3161_v9  ;;  %v2690_v14 = vadd.f32 %v2597_v25, %v5536_v19  ;;  %v2691_v3 = vadd.f32 %v2599_v53, %v5509_v26  ;;  %v2831_v51 = vsel %vm2800_vm4, %v2828_v10, %v2830_v49 }
 0x1d6   : > { %v2833_v12 = vsel %vm2800_vm4, %v2830_v49, %v2832_v16  ;;  %v3065_v6 = vsel %vm3034_vm5, %v3062_v60, %v3064_v11  ;;  %v3067_v22 = vsel %vm3034_vm5, %v3064_v11, %v3066_v32  ;;  %v2610_v26 = vrot.slane %v6098_v27, 4 }
 0x1d7   : > { %v3247_v28 = vadd.f32 %v5861_v18, %v3204_v40  ;;  %v2924_v29 = vadd.f32 %v2831_v51, %v2690_v14  ;;  %v2925_v19 = vadd.f32 %v2833_v12, %v2691_v3  ;;  %v3203_v0 = vmul.f32 %v5848_v42, %v3160_v45 }
 0x1d8   : > { %v2844_v10 = vrot.slane %v6102_v2, 5  ;;  %v6126_v16 = vmul.f32 %v6059_v58, %v5785_v33  ;;  %v4402_v43 = vunpack.i.h.bf16 %v4400_v61  ;;  %v2514_v30 = vmul.f32 %v4406_v8, %v5768_v41 }
 0x1d9   : > { %v3283_v60 = vmax.f32 %v3247_v28, 0.0  ;;  %v3158_v47 = vadd.f32 %v3065_v6, %v2924_v29  ;;  %v3159_v34 = vadd.f32 %v3067_v22, %v2925_v19  ;;  %v3246_v7 = vadd.f32 %v5861_v18, %v3203_v0 }
 0x1da   : > { %v3078_v37 = vrot.slane %v6126_v16, 6  ;;  %v2747_v48 = vmul.f32 %v4406_v8, %v5771_v62  ;;  %v2981_v20 = vmul.f32 %v4406_v8, %v5785_v33  ;;  %v2608_v4 = vrot.slane %v2514_v30, 4  ;;  %v4415_v8 = vpop.permute.xlu1 %4414 }
 0x1db   : > { %v3672_v32 = vpack.c.bf16 %v3283_v60, %v3283_v60  ;;  %v3201_v36 = vmul.f32 %v5848_v42, %v3158_v47  ;;  %v3202_v58 = vmul.f32 %v5848_v42, %v3159_v34  ;;  %v3282_v57 = vmax.f32 %v3246_v7, 0.0 }
 0x1dc   : > { %v2842_v9 = vrot.slane %v2747_v48, 5  ;;  %v2513_v49 = vmul.f32 %v4402_v43, %v5768_v41  ;;  %v3076_v53 = vrot.slane %v2981_v20, 6  ;;  %v2746_v11 = vmul.f32 %v4402_v43, %v5771_v62 }
 0x1dd   : > { %3464 = vst.msk [vmem:[%s5889_s25 + $0x44] sm:$0xf] %vm3446_vm6, %v3672_v32  ;;  %v3244_v56 = vadd.f32 %v5861_v18, %v3201_v36  ;;  %v3245_v25 = vadd.f32 %v5861_v18, %v3202_v58  ;;  %v3671_v40 = vpack.c.bf16 %v3282_v57, %v3282_v57  ;;  %v2611_v14 = vsel %vm2081_vm3, %v2608_v4, %v2610_v26 }
 0x1de   : > { %v2845_v3 = vsel %vm2800_vm4, %v2842_v9, %v2844_v10  ;;  %v2606_v51 = vrot.slane %v2513_v49, 4  ;;  %v2697_v22 = vadd.f32 %v2611_v14, %v5636_v1  ;;  %v3079_v45 = vsel %vm3034_vm5, %v3076_v53, %v3078_v37 }
 0x1df   : > { %v3280_v12 = vmax.f32 %v3244_v56, 0.0  ;;  %v3281_v6 = vmax.f32 %v3245_v25, 0.0  ;;  %3463 = vst.msk [vmem:[%s5889_s25 + $0x40] sm:$0xf] %vm3446_vm6, %v3671_v40  ;;  %v2840_v29 = vrot.slane %v2746_v11, 5  ;;  %v2980_v19 = vmul.f32 %v4402_v43, %v5785_v33 }
 0x1e0   : > { %v2609_v28 = vsel %vm2081_vm3, %v2606_v51, %v2608_v4  ;;  %v4401_v0 = vunpack.i.l.bf16 %v4400_v61  ;;  %v2931_v34 = vadd.f32 %v2845_v3, %v2697_v22  ;;  %v4417_v58 = vunpack.i.h.bf16 %v4415_v8 }
 0x1e1   : > { %v3669_v60 = vpack.c.bf16 %v3280_v12, %v3280_v12  ;;  %v3670_v47 = vpack.c.bf16 %v3281_v6, %v3281_v6  ;;  %v2696_v1 = vadd.f32 %v2609_v28, %v5544_v13  ;;  %v2843_v7 = vsel %vm2800_vm4, %v2840_v29, %v2842_v9 }
 0x1e2   : > { %v3074_v30 = vrot.slane %v2980_v19, 6  ;;  %v2512_v48 = vmul.f32 %v4401_v0, %v5768_v41  ;;  %v2745_v32 = vmul.f32 %v4401_v0, %v5771_v62  ;;  %v3165_v36 = vadd.f32 %v3079_v45, %v2931_v34  ;;  %v4410_v19 = vpop.permute.xlu0 %4409 }
 0x1e3   : > { %3461 = vst.msk [vmem:[%s5889_s25 + $0x38] sm:$0xf] %vm3446_vm6, %v3669_v60  ;;  %3462 = vst.msk [vmem:[%s5889_s25 + $0x3c] sm:$0xf] %vm3446_vm6, %v3670_v47  ;;  %v2930_v43 = vadd.f32 %v2843_v7, %v2696_v1  ;;  %v2979_v61 = vmul.f32 %v4401_v0, %v5785_v33  ;;  %v4416_v4 = vunpack.i.l.bf16 %v4415_v8  ;;  %v6168_v25 = vmul.f32 %v4417_v58, %v5768_v41 }
 0x1e4   : > { %v3077_v20 = vsel %vm3034_vm5, %v3074_v30, %v3076_v53  ;;  %v2604_v57 = vrot.slane %v2512_v48, 4  ;;  %v2838_v13 = vrot.slane %v2745_v32, 5  ;;  %v3208_v9 = vmul.f32 %v5848_v42, %v3165_v36 }
 0x1e5   : > { %v3072_v49 = vrot.slane %v2979_v61, 6  ;;  %v3164_v56 = vadd.f32 %v3077_v20, %v2930_v43  ;;  %v2618_v15 = vrot.slane %v6168_v25, 4  ;;  %v4412_v36 = vunpack.i.h.bf16 %v4410_v19 }
 0x1e6   : > { %v2605_v11 = vsel %vm2081_vm3, %v2602_v23, %v2604_v57  ;;  %v2607_v40 = vsel %vm2081_vm3, %v2604_v57, %v2606_v51  ;;  %v2839_v53 = vsel %vm2800_vm4, %v2836_v38, %v2838_v13  ;;  %v2841_v14 = vsel %vm2800_vm4, %v2838_v13, %v2840_v29 }
 0x1e7   : > { %v3251_v3 = vadd.f32 %v5861_v18, %v3208_v9  ;;  %v2694_v12 = vadd.f32 %v2605_v11, %v5579_v46  ;;  %v2695_v6 = vadd.f32 %v2607_v40, %v5570_v55  ;;  %v3073_v54 = vsel %vm3034_vm5, %v3070_v31, %v3072_v49 }
 0x1e8   : > { %v3075_v23 = vsel %vm3034_vm5, %v3072_v49, %v3074_v30  ;;  %v3207_v51 = vmul.f32 %v5848_v42, %v3164_v56  ;;  %v6188_v38 = vmul.f32 %v4417_v58, %v5771_v62  ;;  %v6191_v46 = vmul.f32 %v4417_v58, %v5785_v33 }
 0x1e9   : > { %v3287_v22 = vmax.f32 %v3251_v3, 0.0  ;;  %v2928_v45 = vadd.f32 %v2839_v53, %v2694_v12  ;;  %v2929_v28 = vadd.f32 %v2841_v14, %v2695_v6  ;;  %v2518_v31 = vmul.f32 %v4416_v4, %v5768_v41 }
 0x1ea   : > { %v3250_v55 = vadd.f32 %v5861_v18, %v3207_v51  ;;  %v2852_v24 = vrot.slane %v6188_v38, 5  ;;  %v2751_v29 = vmul.f32 %v4416_v4, %v5771_v62  ;;  %v3086_v47 = vrot.slane %v6191_v46, 6 }
 0x1eb   : > { %v3676_v0 = vpack.c.bf16 %v3287_v22, %v3287_v22  ;;  %v3162_v8 = vadd.f32 %v3073_v54, %v2928_v45  ;;  %v3163_v60 = vadd.f32 %v3075_v23, %v2929_v28  ;;  %v2616_v1 = vrot.slane %v2518_v31, 4  ;;  %v4425_v31 = vpop.permute.xlu1 %4424 }
 0x1ec   : > { %v3286_v34 = vmax.f32 %v3250_v55, 0.0  ;;  %v2850_v7 = vrot.slane %v2751_v29, 5  ;;  %v2985_v30 = vmul.f32 %v4416_v4, %v5785_v33  ;;  %v4411_v43 = vunpack.i.l.bf16 %v4410_v19 }
 0x1ed   : > { %3468 = vst.msk [vmem:[%s5889_s25 + $0x54] sm:$0xf] %vm3446_vm6, %v3676_v0  ;;  %v3205_v48 = vmul.f32 %v5848_v42, %v3162_v8  ;;  %v3206_v32 = vmul.f32 %v5848_v42, %v3163_v60  ;;  %v2619_v58 = vsel %vm2081_vm3, %v2616_v1, %v2618_v15  ;;  %v2517_v49 = vmul.f32 %v4412_v36, %v5768_v41  ;;  %v4420_v60 = vpop.permute.xlu0 %4419 }
 0x1ee   : > { %v3675_v61 = vpack.c.bf16 %v3286_v34, %v3286_v34  ;;  %v2853_v20 = vsel %vm2800_vm4, %v2850_v7, %v2852_v24  ;;  %v3084_v57 = vrot.slane %v2985_v30, 6  ;;  %v2701_v9 = vadd.f32 %v2619_v58, %v5701_v17 }
 0x1ef   : > { %v3248_v13 = vadd.f32 %v5861_v18, %v3205_v48  ;;  %v3249_v4 = vadd.f32 %v5861_v18, %v3206_v32  ;;  %v2750_v11 = vmul.f32 %v4412_v36, %v5771_v62  ;;  %v2984_v40 = vmul.f32 %v4412_v36, %v5785_v33 }
 0x1f0   : > { %3467 = vst.msk [vmem:[%s5889_s25 + $0x50] sm:$0xf] %vm3446_vm6, %v3675_v61  ;;  %v3087_v56 = vsel %vm3034_vm5, %v3084_v57, %v3086_v47  ;;  %v2516_v53 = vmul.f32 %v4411_v43, %v5768_v41  ;;  %v2935_v12 = vadd.f32 %v2853_v20, %v2701_v9  ;;  %v2614_v6 = vrot.slane %v2517_v49, 4 }
 0x1f1   : > { %v3284_v14 = vmax.f32 %v3248_v13, 0.0  ;;  %v3285_v3 = vmax.f32 %v3249_v4, 0.0  ;;  %v2848_v17 = vrot.slane %v2750_v11, 5  ;;  %v3082_v54 = vrot.slane %v2984_v40, 6 }
 0x1f2   : > { %v2612_v23 = vrot.slane %v2516_v53, 4  ;;  %v2749_v51 = vmul.f32 %v4411_v43, %v5771_v62  ;;  %v3169_v28 = vadd.f32 %v3087_v56, %v2935_v12  ;;  %v2617_v55 = vsel %vm2081_vm3, %v2614_v6, %v2616_v1 }
 0x1f3   : > { %v3673_v22 = vpack.c.bf16 %v3284_v14, %v3284_v14  ;;  %v3674_v45 = vpack.c.bf16 %v3285_v3, %v3285_v3  ;;  %v2851_v29 = vsel %vm2800_vm4, %v2848_v17, %v2850_v7  ;;  %v3085_v19 = vsel %vm3034_vm5, %v3082_v54, %v3084_v57 }
 0x1f4   : > { %v2613_v0 = vsel %vm2081_vm3, %v2610_v26, %v2612_v23  ;;  %v2615_v8 = vsel %vm2081_vm3, %v2612_v23, %v2614_v6  ;;  %v3212_v34 = vmul.f32 %v5848_v42, %v3169_v28  ;;  %v2700_v7 = vadd.f32 %v2617_v55, %v5608_v5 }
 0x1f5   : > { %3465 = vst.msk [vmem:[%s5889_s25 + $0x48] sm:$0xf] %vm3446_vm6, %v3673_v22  ;;  %3466 = vst.msk [vmem:[%s5889_s25 + $0x4c] sm:$0xf] %vm3446_vm6, %v3674_v45  ;;  %v2698_v1 = vadd.f32 %v2613_v0, %v5638_v39  ;;  %v2699_v30 = vadd.f32 %v2615_v8, %v5624_v63  ;;  %v2846_v48 = vrot.slane %v2749_v51, 5  ;;  %v2983_v27 = vmul.f32 %v4411_v43, %v5785_v33 }
 0x1f6   : > { %v4427_v32 = vunpack.i.h.bf16 %v4425_v31  ;;  %v4426_v26 = vunpack.i.l.bf16 %v4425_v31  ;;  %v3255_v36 = vadd.f32 %v5861_v18, %v3212_v34  ;;  %v2934_v61 = vadd.f32 %v2851_v29, %v2700_v7 }
 0x1f7   : > { %v4422_v58 = vunpack.i.h.bf16 %v4420_v60  ;;  %v4421_v20 = vunpack.i.l.bf16 %v4420_v60  ;;  %v2847_v57 = vsel %vm2800_vm4, %v2844_v10, %v2846_v48  ;;  %v2849_v39 = vsel %vm2800_vm4, %v2846_v48, %v2848_v17 }
 0x1f8   : > { %v3080_v13 = vrot.slane %v2983_v27, 6  ;;  %v6244_v63 = vmul.f32 %v4427_v32, %v5768_v41  ;;  %v3291_v5 = vmax.f32 %v3255_v36, 0.0  ;;  %v2932_v43 = vadd.f32 %v2847_v57, %v2698_v1 }
 0x1f9   : > { %v2933_v4 = vadd.f32 %v2849_v39, %v2699_v30  ;;  %v3168_v9 = vadd.f32 %v3085_v19, %v2934_v61  ;;  %v6252_v10 = vmul.f32 %v4427_v32, %v5771_v62  ;;  %v6257_v12 = vmul.f32 %v4427_v32, %v5785_v33  ;;  %v4435_v61 = vpop.permute.xlu1 %4434 }
 0x1fa   : > { %v3081_v49 = vsel %vm3034_vm5, %v3078_v37, %v3080_v13  ;;  %v3083_v56 = vsel %vm3034_vm5, %v3080_v13, %v3082_v54  ;;  %v2626_v2 = vrot.slane %v6244_v63, 4  ;;  %v3680_v11 = vpack.c.bf16 %v3291_v5, %v3291_v5 }
 0x1fb   : > { %v3166_v40 = vadd.f32 %v3081_v49, %v2932_v43  ;;  %v3167_v53 = vadd.f32 %v3083_v56, %v2933_v4  ;;  %v3211_v14 = vmul.f32 %v5848_v42, %v3168_v9  ;;  %v2860_v3 = vrot.slane %v6252_v10, 5 }
 0x1fc   : > { %v2522_v16 = vmul.f32 %v4426_v26, %v5768_v41  ;;  %v2755_v37 = vmul.f32 %v4426_v26, %v5771_v62  ;;  %3472 = vst.msk [vmem:[%s5889_s25 + $0x64] sm:$0xf] %vm3446_vm6, %v3680_v11  ;;  %v2989_v23 = vmul.f32 %v4426_v26, %v5785_v33  ;;  %v3094_v51 = vrot.slane %v6257_v12, 6 }
 0x1fd   : > { %v3209_v6 = vmul.f32 %v5848_v42, %v3166_v40  ;;  %v3210_v17 = vmul.f32 %v5848_v42, %v3167_v53  ;;  %v3254_v54 = vadd.f32 %v5861_v18, %v3211_v14  ;;  %v2521_v28 = vmul.f32 %v4422_v58, %v5768_v41 }
 0x1fe   : > { %v2624_v22 = vrot.slane %v2522_v16, 4  ;;  %v2858_v45 = vrot.slane %v2755_v37, 5  ;;  %v3092_v19 = vrot.slane %v2989_v23, 6  ;;  %v2754_v34 = vmul.f32 %v4422_v58, %v5771_v62 }
 0x1ff   : > { %v3252_v55 = vadd.f32 %v5861_v18, %v3209_v6  ;;  %v3253_v31 = vadd.f32 %v5861_v18, %v3210_v17  ;;  %v3290_v29 = vmax.f32 %v3254_v54, 0.0  ;;  %v2622_v60 = vrot.slane %v2521_v28, 4 }
 0x200   : > { %v2627_v0 = vsel %vm2081_vm3, %v2624_v22, %v2626_v2  ;;  %v2861_v8 = vsel %vm2800_vm4, %v2858_v45, %v2860_v3  ;;  %v3095_v27 = vsel %vm3034_vm5, %v3092_v19, %v3094_v51  ;;  %v2856_v26 = vrot.slane %v2754_v34, 5 }
 0x201   : > { %v3288_v1 = vmax.f32 %v3252_v55, 0.0  ;;  %v3289_v30 = vmax.f32 %v3253_v31, 0.0  ;;  %v3679_v7 = vpack.c.bf16 %v3290_v29, %v3290_v29  ;;  %v2705_v48 = vadd.f32 %v2627_v0, %v5743_v35 }
 0x202   : > { %v2625_v32 = vsel %vm2081_vm3, %v2622_v60, %v2624_v22  ;;  %v2988_v36 = vmul.f32 %v4422_v58, %v5785_v33  ;;  %v2520_v5 = vmul.f32 %v4421_v20, %v5768_v41  ;;  %v2859_v35 = vsel %vm2800_vm4, %v2856_v26, %v2858_v45 }
 0x203   : > { %v3677_v57 = vpack.c.bf16 %v3288_v1, %v3288_v1  ;;  %v3678_v39 = vpack.c.bf16 %v3289_v30, %v3289_v30  ;;  %3471 = vst.msk [vmem:[%s5889_s25 + $0x60] sm:$0xf] %vm3446_vm6, %v3679_v7  ;;  %v2939_v13 = vadd.f32 %v2861_v8, %v2705_v48  ;;  %v2704_v4 = vadd.f32 %v2625_v32, %v5671_v21 }
 0x204   : > { %v3090_v43 = vrot.slane %v2988_v36, 6  ;;  %v2753_v9 = vmul.f32 %v4421_v20, %v5771_v62  ;;  %v2620_v49 = vrot.slane %v2520_v5, 4  ;;  %v2987_v56 = vmul.f32 %v4421_v20, %v5785_v33 }
 0x205   : > { %3469 = vst.msk [vmem:[%s5889_s25 + $0x58] sm:$0xf] %vm3446_vm6, %v3677_v57  ;;  %3470 = vst.msk [vmem:[%s5889_s25 + $0x5c] sm:$0xf] %vm3446_vm6, %v3678_v39  ;;  %v3173_v58 = vadd.f32 %v3095_v27, %v2939_v13  ;;  %v4437_v11 = vunpack.i.h.bf16 %v4435_v61  ;;  %v2938_v14 = vadd.f32 %v2859_v35, %v2704_v4  ;;  %v4436_v16 = vunpack.i.l.bf16 %v4435_v61  ;;  %v6344_v39 = vld [vmem:[%s6460_s3] ss:$0 sm:$0xff] }
 0x206   : > { %v3093_v40 = vsel %vm3034_vm5, %v3090_v43, %v3092_v19  ;;  %v2854_v53 = vrot.slane %v2753_v9, 5  ;;  %v2621_v21 = vsel %vm2081_vm3, %v2618_v15, %v2620_v49  ;;  %v2623_v6 = vsel %vm2081_vm3, %v2620_v49, %v2622_v60  ;;  %v4430_v60 = vpop.permute.xlu0 %4429 }
 0x207   : > { %v3216_v37 = vmul.f32 %v5848_v42, %v3173_v58  ;;  %v3088_v17 = vrot.slane %v2987_v56, 6  ;;  %v2702_v54 = vadd.f32 %v2621_v21, %v5705_v52  ;;  %v2703_v23 = vadd.f32 %v2623_v6, %v5680_v59 }
 0x208   : > { %v2855_v20 = vsel %vm2800_vm4, %v2852_v24, %v2854_v53  ;;  %v2857_v22 = vsel %vm2800_vm4, %v2854_v53, %v2856_v26  ;;  %v3172_v28 = vadd.f32 %v3093_v40, %v2938_v14  ;;  %v6313_v52 = vmul.f32 %v4437_v11, %v5768_v41 }
 0x209   : > { %v3259_v45 = vadd.f32 %v5861_v18, %v3216_v37  ;;  %v3089_v25 = vsel %vm3034_vm5, %v3086_v47, %v3088_v17  ;;  %v3091_v15 = vsel %vm3034_vm5, %v3088_v17, %v3090_v43  ;;  %v2936_v55 = vadd.f32 %v2855_v20, %v2702_v54 }
 0x20a   : > { %v2937_v31 = vadd.f32 %v2857_v22, %v2703_v23  ;;  %v6316_v59 = vmul.f32 %v4437_v11, %v5771_v62  ;;  %v3215_v24 = vmul.f32 %v5848_v42, %v3172_v28  ;;  %v6320_v29 = vmul.f32 %v4437_v11, %v5785_v33  ;;  %v6330_v42 = vld [vmem:[%s6459_s2] ss:$0 sm:$0xff]  ;;  %v6604_v23 = vld [vmem:[#allocation10_spill] sm:$0xff] }
 0x20b   : > { %v3295_v38 = vmax.f32 %v3259_v45, 0.0  ;;  %v2526_v46 = vmul.f32 %v4436_v16, %v5768_v41  ;;  %v3170_v47 = vadd.f32 %v3089_v25, %v2936_v55  ;;  %v2634_v0 = vrot.slane %v6313_v52, 4  ;;  %v6607_v55 = vld [vmem:[#allocation15_spill] sm:$0xff] }
 0x20c   : > { %v3171_v19 = vadd.f32 %v3091_v15, %v2937_v31  ;;  %v2868_v8 = vrot.slane %v6316_v59, 5  ;;  %v3258_v1 = vadd.f32 %v5861_v18, %v3215_v24  ;;  %v3102_v30 = vrot.slane %v6320_v29, 6  ;;  %v6605_v15 = vld [vmem:[#allocation2_spill] sm:$0xff] }
 0x20d   : > { %v3684_v34 = vpack.c.bf16 %v3295_v38, %v3295_v38  ;;  %v2632_v7 = vrot.slane %v2526_v46, 4  ;;  %v3213_v48 = vmul.f32 %v6330_v42, %v3170_v47  ;;  %v2759_v32 = vmul.f32 %v4436_v16, %v5771_v62  ;;  %v6609_v46 = vld [vmem:[#allocation9_spill] sm:$0xff] }
 0x20e   : > { %v3214_v27 = vmul.f32 %v6330_v42, %v3171_v19  ;;  %v2993_v26 = vmul.f32 %v4436_v16, %v5785_v33  ;;  %v3294_v36 = vmax.f32 %v3258_v1, 0.0  ;;  %v4432_v61 = vunpack.i.h.bf16 %v4430_v60  ;;  %v2720_v19 = vpop.permute.xlu1 %2719 }
 0x20f   : > { %3476 = vst.msk [vmem:[%s5889_s25 + $0x74] sm:$0xf] %vm3446_vm6, %v3684_v34  ;;  %v2635_v18 = vsel %vm2081_vm3, %v2632_v7, %v2634_v0  ;;  %v4431_v57 = vunpack.i.l.bf16 %v4430_v60  ;;  %v3256_v13 = vadd.f32 %v6344_v39, %v3213_v48  ;;  %v2866_v43 = vrot.slane %v2759_v32, 5 }
 0x210   : > { %v3257_v5 = vadd.f32 %v6344_v39, %v3214_v27  ;;  %v2709_v35 = vadd.f32 %v2635_v18, %v5809_v50  ;;  %v3683_v4 = vpack.c.bf16 %v3294_v36, %v3294_v36  ;;  %v3100_v9 = vrot.slane %v2993_v26, 6  ;;  %v4440_v36 = vpop.permute.xlu0 %4439 }
 0x211   : > { %v2525_v58 = vmul.f32 %v4432_v61, %v5768_v41  ;;  %v2758_v49 = vmul.f32 %v4432_v61, %v5771_v62  ;;  %v3292_v56 = vmax.f32 %v3256_v13, 0.0  ;;  %v2869_v40 = vsel %vm2800_vm4, %v2866_v43, %v2868_v8  ;;  %v6611_v13 = vld [vmem:[#allocation13_spill] sm:$0xff] }
 0x212   : > { %v3293_v11 = vmax.f32 %v3257_v5, 0.0  ;;  %v2992_v53 = vmul.f32 %v4432_v61, %v5785_v33  ;;  %3475 = vst.msk [vmem:[%s5889_s25 + $0x70] sm:$0xf] %vm3446_vm6, %v3683_v4  ;;  %v2943_v50 = vadd.f32 %v2869_v40, %v2709_v35  ;;  %v3103_v14 = vsel %vm3034_vm5, %v3100_v9, %v3102_v30  ;;  %v6610_v61 = vld [vmem:[#allocation14_spill] sm:$0xff] }
 0x213   : > { %v2630_v16 = vrot.slane %v2525_v58, 4  ;;  %v2864_v37 = vrot.slane %v2758_v49, 5  ;;  %v3681_v21 = vpack.c.bf16 %v3292_v56, %v3292_v56  ;;  %v2524_v54 = vmul.f32 %v4431_v57, %v5768_v41 }
 0x214   : > { %v3682_v6 = vpack.c.bf16 %v3293_v11, %v3293_v11  ;;  %v3098_v17 = vrot.slane %v2992_v53, 6  ;;  %v6363_v20 = vadd.f32 %v6604_v23, %v5776_v44  ;;  %v3177_v22 = vadd.f32 %v3103_v14, %v2943_v50 }
 0x215   : > { %v2633_v45 = vsel %vm2081_vm3, %v2630_v16, %v2632_v7  ;;  %v2757_v25 = vmul.f32 %v4431_v57, %v5771_v62  ;;  %v6606_v28 = vrot.slane %v6605_v15, 5  ;;  %v6608_v31 = vrot.slane %v6607_v55, 5  ;;  %3473 = vst.msk [vmem:[%s5889_s25 + $0x68] sm:$0xf] %vm3446_vm6, %v3681_v21 }
 0x216   : > { %3474 = vst.msk [vmem:[%s5889_s25 + $0x6c] sm:$0xf] %vm3446_vm6, %v3682_v6  ;;  %v2628_v24 = vrot.slane %v2524_v54, 4  ;;  %v2708_v47 = vadd.f32 %v2633_v45, %v6609_v46  ;;  %v2991_v44 = vmul.f32 %v4431_v57, %v5785_v33  ;;  %v3220_v60 = vmul.f32 %v6330_v42, %v3177_v22  ;;  %v2954_v54 = vpop.permute.xlu0 %2953  ;;  %v6612_v22 = vld [vmem:[#allocation3_spill] sm:$0xff] }
 0x217   : > { %v2803_v38 = vsel %vm2800_vm4, %v6608_v31, %v6606_v28  ;;  %v2867_v34 = vsel %vm2800_vm4, %v2864_v37, %v2866_v43  ;;  %v3101_v1 = vsel %vm3034_vm5, %v3098_v17, %v3100_v9  ;;  %v2862_v7 = vrot.slane %v2757_v25, 5  ;;  %v6613_v31 = vld [vmem:[#allocation4_spill] sm:$0xff] }
 0x218   : > { %v2629_v48 = vsel %vm2081_vm3, %v2626_v2, %v2628_v24  ;;  %v2631_v27 = vsel %vm2081_vm3, %v2628_v24, %v2630_v16  ;;  %v2942_v32 = vadd.f32 %v2867_v34, %v2708_v47  ;;  %v3096_v26 = vrot.slane %v2991_v44, 6  ;;  %v6614_v24 = vld [vmem:[#allocation5_spill] sm:$0xff] }
 0x219   : > { %v3263_v18 = vadd.f32 %v6344_v39, %v3220_v60  ;;  %v2706_v57 = vadd.f32 %v2629_v48, %v6610_v61  ;;  %v2707_v5 = vadd.f32 %v2631_v27, %v6611_v13  ;;  %v2762_v35 = vmul.f32 %v5771_v62, %v2720_v19 }
 0x21a   : > { %v2863_v43 = vsel %vm2800_vm4, %v2860_v3, %v2862_v7  ;;  %v2865_v63 = vsel %vm2800_vm4, %v2862_v7, %v2864_v37  ;;  %v3176_v2 = vadd.f32 %v3101_v1, %v2942_v32  ;;  %v2996_v4 = vmul.f32 %v5785_v33, %v2720_v19 }
 0x21b   : > { %v3299_v9 = vmax.f32 %v3263_v18, 0.0  ;;  %v2940_v58 = vadd.f32 %v2863_v43, %v2706_v57  ;;  %v2941_v49 = vadd.f32 %v2865_v63, %v2707_v5  ;;  %v3097_v56 = vsel %vm3034_vm5, %v3094_v51, %v3096_v26  ;;  %v6615_v57 = vld [vmem:[#allocation16_spill] sm:$0xff] }
 0x21c   : > { %v3099_v11 = vsel %vm3034_vm5, %v3096_v26, %v3098_v17  ;;  %v3219_v40 = vmul.f32 %v6330_v42, %v3176_v2  ;;  %v4442_v10 = vunpack.i.h.bf16 %v4440_v36  ;;  %v4441_v53 = vunpack.i.l.bf16 %v4440_v36 }
 0x21d   : > { %v3688_v3 = vpack.c.bf16 %v3299_v9, %v3299_v9  ;;  %v3174_v50 = vadd.f32 %v3097_v56, %v2940_v58  ;;  %v3175_v14 = vadd.f32 %v3099_v11, %v2941_v49  ;;  %v2872_v16 = vrot.slane %v2762_v35, 5 }
 0x21e   : > { %v3262_v37 = vadd.f32 %v6344_v39, %v3219_v40  ;;  %v2529_v21 = vmul.f32 %v4442_v10, %v5768_v41  ;;  %v2528_v6 = vmul.f32 %v4441_v53, %v5768_v41  ;;  %v2761_v12 = vmul.f32 %v4441_v53, %v5771_v62 }
 0x21f   : > { %3480 = vst.msk [vmem:[%s5889_s25 + $0x84] sm:$0xf] %vm3446_vm6, %v3688_v3  ;;  %v3217_v51 = vmul.f32 %v6330_v42, %v3174_v50  ;;  %v3218_v17 = vmul.f32 %v6330_v42, %v3175_v14  ;;  %v2995_v23 = vmul.f32 %v4441_v53, %v5785_v33  ;;  %v2910_v45 = vadd.f32 %v2803_v38, %v6612_v22 }
 0x220   : > { %v3298_v25 = vmax.f32 %v3262_v37, 0.0  ;;  %v2638_v15 = vrot.slane %v2529_v21, 4  ;;  %v2636_v28 = vrot.slane %v2528_v6, 4  ;;  %v2870_v55 = vrot.slane %v2761_v12, 5 }
 0x221   : > { %v3260_v41 = vadd.f32 %v6344_v39, %v3217_v51  ;;  %v3261_v62 = vadd.f32 %v6344_v39, %v3218_v17  ;;  %v2226_v46 = vadd.f32 %v6614_v24, %v6613_v31  ;;  %v2960_v47 = vmul.f32 %v5785_v33, %v2954_v54 }
 0x222   : > { %v3687_v44 = vpack.c.bf16 %v3298_v25, %v3298_v25  ;;  %v2637_v19 = vsel %vm2081_vm3, %v2634_v0, %v2636_v28  ;;  %v2639_v38 = vsel %vm2081_vm3, %v2636_v28, %v2638_v15  ;;  %v3104_v60 = vrot.slane %v2995_v23, 6 }
 0x223   : > { %v3296_v34 = vmax.f32 %v3260_v41, 0.0  ;;  %v3297_v1 = vmax.f32 %v3261_v62, 0.0  ;;  %v2710_v7 = vadd.f32 %v2637_v19, %v6363_v20  ;;  %v2711_v48 = vadd.f32 %v2639_v38, %v2226_v46 }
 0x224   : > { %3479 = vst.msk [vmem:[%s5889_s25 + $0x80] sm:$0xf] %vm3446_vm6, %v3687_v44  ;;  %v3106_v27 = vrot.slane %v2996_v4, 6  ;;  %v2871_v33 = vsel %vm2800_vm4, %v2868_v8, %v2870_v55  ;;  %v2873_v52 = vsel %vm2800_vm4, %v2870_v55, %v2872_v16  ;;  %v3035_v0 = vrot.slane %v2960_v47, 6 }
 0x225   : > { %v3685_v32 = vpack.c.bf16 %v3296_v34, %v3296_v34  ;;  %v3686_v26 = vpack.c.bf16 %v3297_v1, %v3297_v1  ;;  %v2944_v36 = vadd.f32 %v2871_v33, %v2710_v7  ;;  %v2945_v18 = vadd.f32 %v2873_v52, %v2711_v48 }
 0x226   : > { %v3105_v61 = vsel %vm3034_vm5, %v3102_v30, %v3104_v60  ;;  %v3107_v20 = vsel %vm3034_vm5, %v3104_v60, %v3106_v27  ;;  %v6616_v13 = vrot.slane %v6615_v57, 6 }
 0x227   : > { %3477 = vst.msk [vmem:[%s5889_s25 + $0x78] sm:$0xf] %vm3446_vm6, %v3685_v32  ;;  %3478 = vst.msk [vmem:[%s5889_s25 + $0x7c] sm:$0xf] %vm3446_vm6, %v3686_v26  ;;  %v3178_v59 = vadd.f32 %v3105_v61, %v2944_v36  ;;  %v3179_v8 = vadd.f32 %v3107_v20, %v2945_v18 }
 0x228   : > { %v3037_v5 = vsel %vm3034_vm5, %v3035_v0, %v6616_v13 }
 0x229   : > { %v3144_v35 = vadd.f32 %v3037_v5, %v2910_v45  ;;  %v3221_v29 = vmul.f32 %v6330_v42, %v3178_v59  ;;  %v3222_v30 = vmul.f32 %v6330_v42, %v3179_v8 }
 0x22b   : > { %v3187_v43 = vmul.f32 %v6330_v42, %v3144_v35  ;;  %v3264_v63 = vadd.f32 %v6344_v39, %v3221_v29  ;;  %v3265_v2 = vadd.f32 %v6344_v39, %v3222_v30 }
 0x22d   : > { %v3230_v4 = vadd.f32 %v6344_v39, %v3187_v43  ;;  %v3300_v9 = vmax.f32 %v3264_v63, 0.0  ;;  %v3301_v58 = vmax.f32 %v3265_v2, 0.0 }
 0x22f   : > { %v3266_v49 = vmax.f32 %v3230_v4, 0.0  ;;  %v3689_v56 = vpack.c.bf16 %v3300_v9, %v3300_v9  ;;  %v3690_v11 = vpack.c.bf16 %v3301_v58, %v3301_v58 }
 0x231   : > { %v3655_v40 = vpack.c.bf16 %v3266_v49, %v3266_v49  ;;  %3481 = vst.msk [vmem:[%s5889_s25 + $0x88] sm:$0xf] %vm3446_vm6, %v3689_v56  ;;  %3482 = vst.msk [vmem:[%s5889_s25 + $0x8c] sm:$0xf] %vm3446_vm6, %v3690_v11 }
 0x233   : > { %3447 = vst.msk [vmem:[%s5889_s25] sm:$0xf] %vm3446_vm6, %v3655_v40 }
 0x234 PF: > { %s14_s17 = sadd.s32 1, %s4467_s17   ;;  %s6617_s15 = smov %s4463_s16 }
 0x235   : > { %p11_p5 = scmp.ge.s32.totalorder %s14_s17, 4   ;;  %s6618_s16 = smov %s6620_s18 }
 0x237   :  { %13 = sbr.rel (!%p11_p5) target bundleno = 2 (0x2), region = 83 }

// kernel: acdnet_forward.16
= control target key start
LH: loop header
LB: loop body
LE: loop exit
PB: predicated region body
PF: predicated region fallthrough
CT: control target
= control target key end

     0   :  { %s2193_s15 = smov 0   ;;  %s2195_s16 = smov 0   ;;  %s2702_s0 = inlined_call_operand.vmem [shape: bf16[2,110,8], index: 0, kind: input, shape index: {}]   ;;  %s2703_s1 = inlined_call_operand.vmem [shape: bf16[9,8,8], index: 1, kind: input, shape index: {}]   ;;  %s2704_s2 = inlined_call_operand.vmem [shape: f32[1,8], index: 2, kind: input, shape index: {}]   ;;  %s2705_s3 = inlined_call_operand.vmem [shape: f32[1,8], index: 3, kind: input, shape index: {}]   ;;  %s2706_s4 = inlined_call_operand.vmem [shape: bf16[2,80,8], index: 4, kind: output, shape index: {}]  }
   0x1   :  { %s2197_s17 = smov 0  }
   0x2 LB: > { %s26_s18 = sadd.s32 1, %s2160_s16  ;;  %p1734_p0 = scmp.ge.s32.totalorder %s2164_s17, 1  ;;  %s2164_s17 = sphi %s2197_s17, %s14_s17   ;;  %s2160_s16 = sphi %s2195_s16, %s2708_s16   ;;  %s2156_s15 = sphi %s2193_s15, %s2707_s15  }
   0x3   : > { %p28_p1 = scmp.ge.s32.totalorder %s26_s18, 2  ;;  %p201_p2 = scmp.lt.s32.totalorder %s2164_s17, 3 }
   0x5   : > { %s2710_s18 = smov (%p28_p1, %s26_s18), 0  ;;  %p202_p3 = pnand %p1734_p0, %p201_p2 }
   0x6   : > { %p240_p4 = scmp.lt.s32.totalorder (!%p202_p3), %s2156_s15, 1 }
   0x7   : > { %205 = sbr.rel (%p202_p3) target bundleno = 410 (0x19a), region = 36 }
   0xc   : > { %v1737_v0 = vld [vmem:[%s2703_s1 + $0x4] sm:$0xf]  ;;  %vm367_vm0 = vcmask 1043456   ;;  %v2166_v1 = vmov 0.0   ;;  %s2712_s15 = smov (!%p240_p4, %s2156_s15), 1  ;;  %vm2167_vm1 = vmmov 0  }
   0xd   : > { %1891 = vmatprep.subr.bf16.mxu0 %v2166_v1  ;;  %2089 = vmatprep.subr.bf16.mxu1 %v2166_v1  ;;  %v369_v2 = vsel %vm367_vm0, %v1737_v0, 0  ;;  %s2091_s21 = smul.u32 56, %s2712_s15  ;;  %vm306_vm2 = vsmask.f32 7424  ;;  %v1754_v13 = vld [vmem:[%s2703_s1 + $0x8] sm:$0xf] }
   0xe   : > { %1892 = vmatpush3.bf16.msra.mxu0 %v369_v2  ;;  %2090 = vmatpush3.bf16.msra.mxu1 %v369_v2  ;;  %vm351_vm3 = vcmask 64512   ;;  %v274_v22 = vld [vmem:[%s2703_s1] sm:$0xf]  ;;  %v564_v26 = vsel %vm367_vm0, %v1754_v13, 0  ;;  %vm536_vm4 = vcmask 1046528   ;;  %vm969_vm6 = vcmask 1045504  }
   0xf   : > { %1893 = vmatprep.mubr.msk.bf16.mxu0 %vm2167_vm1, %v2166_v1  ;;  %1905 = vmatprep.mubr.msk.bf16.mxu1 %vm2167_vm1, %v2166_v1  ;;  %s2229_s24 = scalar_lea.vmem %s2702_s0, %s2091_s21  ;;  %v455_v31 = vsel %vm367_vm0, %v274_v22, 0  ;;  %v1761_v48 = vld [vmem:[%s2703_s1 + $0xc] sm:$0xf]  ;;  %v1773_v53 = vld [vmem:[%s2703_s1 + $0x10] sm:$0xf]  ;;  %vm1402_vm8 = vcmask 1044480  }
  0x10   : > { %1935 = vmatprep.subr.bf16.mxu0 %v2166_v1  ;;  %1913 = vmatprep.subr.bf16.mxu1 %v2166_v1  ;;  %v264_v3 = vld [vmem:[%s2229_s24] sm:$0xf]  ;;  %v2233_v4 = vld [vmem:[%s2229_s24 + $0x4] sm:$0xf]  ;;  %v2239_v6 = vld [vmem:[%s2229_s24 + $0x8] sm:$0xff]   ;;  %v717_v50 = vsel %vm367_vm0, %v1761_v48, 0 }
  0x11   : > { %v2236_v5 = vcombine.low %v264_v3, %v2233_v4  ;;  %v315_v9 = vshll.u32 %v2239_v6, 16  ;;  %v2245_v10 = vld [vmem:[%s2229_s24 + $0x18] sm:$0xff]   ;;  %v2248_v11 = vld [vmem:[%s2229_s24 + $0x20] sm:$0xff]   ;;  %v2251_v12 = vld [vmem:[%s2229_s24 + $0x10] sm:$0xff]   ;;  %v319_v23 = vshrl.u32 %v2239_v6, 16  ;;  %v538_v52 = vrot.slane %v2239_v6, 1 }
  0x12   : > { %v331_v16 = vshll.u32 %v2245_v10, 16  ;;  %v335_v17 = vshrl.u32 %v2245_v10, 16  ;;  %v339_v18 = vshll.u32 %v2248_v11, 16  ;;  %v2260_v19 = vld [vmem:[%s2229_s24 + $0x28] ss:$0 sps:$4 sm:$0x11]  }
  0x13   : > { %v308_v7 = vshrl.u32 %v2236_v5, 16  ;;  %v310_v8 = vshll.u32 %v2236_v5, 16  ;;  %v317_v15 = vrot.slane %v315_v9, 1  ;;  %v323_v24 = vshll.u32 %v2251_v12, 16  ;;  %v2284_v39 = vld [vmem:[%s2229_s24 + $0x24] sm:$0xff]   ;;  %v2355_v2 = vld [vmem:[%s2229_s24 + $0xc] sm:$0xff]  }
  0x14   : > { %v333_v21 = vrot.slane %v331_v16, 1  ;;  %v341_v25 = vrot.slane %v339_v18, 1  ;;  %v343_v29 = vshrl.u32 %v2248_v11, 16  ;;  %v347_v30 = vshll.u32 %v2260_v19, 16  ;;  %v530_v43 = vld [vmem:[%s2229_s24] sm:$0xe] }
  0x15   : > { %v312_v14 = vrot.slane %v310_v8, 1  ;;  %v321_v33 = vor.u32 %v319_v23, %v317_v15  ;;  %v325_v34 = vrot.slane %v323_v24, 1  ;;  %v327_v38 = vshrl.u32 %v2251_v12, 16  ;;  %v2131_v40 = vld [vmem:[%s2229_s24 + $0x2c] ss:$0 sps:$4 sm:$0x11]  }
  0x16   : > { %v337_v28 = vor.u32 %v335_v17, %v333_v21  ;;  %v345_v35 = vor.u32 %v343_v29, %v341_v25  ;;  %v349_v36 = vrot.slane %v347_v30, 1  ;;  %v697_v44 = vrot.slane %v2284_v39, 1  ;;  %v649_v61 = vld [vmem:[%s2229_s24 + $0x4] sm:$0xe]  ;;  %v2350_v62 = vld [vmem:[%s2229_s24 + $0x8] sm:$0xf] }
  0x17   : > { %v313_v20 = vor.u32 %v312_v14, %v308_v7  ;;  %v326_v37 = vsel %vm306_vm2, %v321_v33, %v325_v34  ;;  %v329_v42 = vor.u32 %v327_v38, %v325_v34  ;;  %v699_v45 = vrot.slane %v2131_v40, 1  ;;  %v2374_v18 = vld [vmem:[%s2229_s24 + $0x14] sm:$0xff]   ;;  %v2394_v30 = vld [vmem:[%s2229_s24 + $0x1c] sm:$0xff]   ;;  %v2418_v48 = vld [vmem:[%s2229_s24 + $0x2c] ss:$0 sps:$4 sm:$0x33]  }
  0x18   : > { %v342_v32 = vsel %vm306_vm2, %v337_v28, %v341_v25  ;;  %v350_v41 = vsel %vm306_vm2, %v345_v35, %v349_v36  ;;  %v1755_v49 = vcombine.low %v530_v43, %v2233_v4  ;;  %v878_v55 = vsel %vm367_vm0, %v1773_v53, 0  ;;  %v1787_v24 = vld [vmem:[%s2703_s1 + $0x18] sm:$0xf]  ;;  %v963_v53 = vld [vmem:[%s2229_s24 + $0x4] sm:$0xc]  ;;  %s2092_s23 = smul.u32 40, %s2712_s15 }
  0x19   : > { %v318_v27 = vsel %vm306_vm2, %v313_v20, %v317_v15  ;;  %1906 = vmatmul.mubr.msk.bf16.vlgmr.msra.gmra.mxu1 %vm351_vm3, %v342_v32  ;;  %v2299_v46 = vsel %vm536_vm4, %v697_v44, %v699_v45  ;;  %v334_v47 = vsel %vm306_vm2, %v329_v42, %v333_v21  ;;  %v540_v56 = vrot.slane %v2251_v12, 1 }
  0x1a   : > { %1894 = vmatmul.mubr.msk.bf16.vlgmr.msra.gmra.mxu0 %vm351_vm3, %v318_v27  ;;  %1914 = vmatpush3.bf16.msra.mxu1 %v455_v31  ;;  %v537_v51 = vrot.slane %v1755_v49, 1  ;;  %v542_v58 = vrot.slane %v2245_v10, 1  ;;  %v544_v60 = vrot.slane %v2248_v11, 1  ;;  %v1762_v0 = vcombine.low %v649_v61, %v2350_v62  ;;  %s2636_s26 = scalar_lea.vmem %s2706_s4, %s2092_s23 }
  0x1b   : > { %1936 = vmatpush3.bf16.msra.mxu0 %v564_v26  ;;  %1897 = vmatprep.mubr.msk.bf16.mxu0 %vm2167_vm1, %v2166_v1  ;;  %v541_v57 = vsel %vm536_vm4, %v538_v52, %v540_v56  ;;  %v546_v3 = vrot.slane %v2260_v19, 1  ;;  %v821_v7 = vshll.u32 %v2355_v2, 16  ;;  %v691_v9 = vrot.slane %v2355_v2, 1 }
  0x1c   : > { %1979 = vmatprep.subr.bf16.mxu0 %v2166_v1  ;;  %1909 = vmatprep.mubr.msk.bf16.mxu1 %vm2167_vm1, %v2166_v1  ;;  %v539_v54 = vsel %vm536_vm4, %v537_v51, %v538_v52  ;;  %v543_v59 = vsel %vm536_vm4, %v540_v56, %v542_v58  ;;  %v545_v63 = vsel %vm536_vm4, %v542_v58, %v544_v60  ;;  %v810_v4 = vshrl.u32 %v1762_v0, 16  ;;  %v1082_v58 = vld [vmem:[%s2229_s24 + $0x8] sm:$0xc] }
  0x1d   : > { %1957 = vmatprep.subr.bf16.mxu1 %v2166_v1  ;;  %v690_v8 = vrot.slane %v1762_v0, 1  ;;  %v823_v16 = vrot.slane %v821_v7, 2  ;;  %v827_v21 = vshrl.u32 %v2374_v18, 16  ;;  %v830_v22 = vshll.u32 %v2374_v18, 16  ;;  %v1806_v7 = vld [vmem:[%s2703_s1 + $0x20] sm:$0xf] }
  0x1e   : > { %v812_v13 = vrot.slane %v810_v4, 1  ;;  %vm808_vm5 = vsmask.f32 6400  ;;  %v693_v23 = vrot.slane %v2374_v18, 1  ;;  %v1150_v28 = vsel %vm367_vm0, %v1787_v24, 0 }
  0x1f   : > { %v692_v17 = vsel %vm536_vm4, %v690_v8, %v691_v9  ;;  %v829_v26 = vrot.slane %v827_v21, 1  ;;  %v832_v27 = vrot.slane %v830_v22, 2  ;;  %v836_v32 = vshrl.u32 %v2394_v30, 16 }
  0x20   : > { %v694_v29 = vsel %vm536_vm4, %v691_v9, %v693_v23  ;;  %v839_v33 = vshll.u32 %v2394_v30, 16  ;;  %v695_v34 = vrot.slane %v2394_v30, 1  ;;  %v848_v42 = vshll.u32 %v2284_v39, 16  ;;  %v2469_v9 = vld [vmem:[%s2229_s24 + $0x18] sm:$0xff]  }
  0x21   : > { %1910 = vmatmul.mubr.msk.bf16.gmra.mxu1 %vm351_vm3, %v350_v41  ;;  %v833_v31 = vor.u32 %v832_v27, %v829_v26  ;;  %v838_v36 = vrot.slane %v836_v32, 1  ;;  %v845_v41 = vshrl.u32 %v2284_v39, 16  ;;  %v854_v51 = vshrl.u32 %v2418_v48, 16 }
  0x22   : > { %1898 = vmatmul.mubr.msk.bf16.gmra.mxu0 %vm351_vm3, %v326_v37  ;;  %1915 = vmatprep.mubr.msk.bf16.mxu1 %vm2167_vm1, %v2166_v1  ;;  %v841_v37 = vrot.slane %v839_v33, 2  ;;  %v696_v38 = vsel %vm536_vm4, %v693_v23, %v695_v34  ;;  %v698_v49 = vsel %vm536_vm4, %v695_v34, %v697_v44  ;;  %v857_v52 = vshll.u32 %v2418_v48, 16 }
  0x23   : > { %1901 = vmatprep.mubr.msk.bf16.mxu0 %vm2167_vm1, %v2166_v1  ;;  %v847_v45 = vrot.slane %v845_v41, 1  ;;  %v1781_v56 = vcombine.low %v963_v53, %v2350_v62  ;;  %v971_v61 = vrot.slane %v2355_v2, 2  ;;  %v979_v23 = vrot.slane %v2418_v48, 2 }
  0x24   : > { %v842_v40 = vor.u32 %v841_v37, %v838_v36  ;;  %vm1241_vm7 = vsmask.f32 5376  ;;  %vm1599_vm9 = vcmask 60416  }
  0x26   : > { %v843_v43 = vsel %vm808_vm5, %v833_v31, %v842_v40 }
  0x29   : > { %1916 = vmatmul.mubr.msk.bf16.vlgmr.msra.gmra.mxu1 %vm351_vm3, %v2236_v5  ;;  %v813_v5 = vshll.u32 %v1762_v0, 16 }
  0x2a   : > { %1902 = vmatmul.mubr.msk.bf16.gmra.mxu0 %vm351_vm3, %v334_v47  ;;  %1958 = vmatpush3.bf16.msra.mxu1 %v717_v50  ;;  %v850_v47 = vrot.slane %v848_v42, 2 }
  0x2b   : > { %1937 = vmatprep.mubr.msk.bf16.mxu0 %vm2167_vm1, %v2166_v1  ;;  %1919 = vmatprep.mubr.msk.bf16.mxu1 %vm2167_vm1, %v2166_v1  ;;  %v815_v14 = vrot.slane %v813_v5, 2 }
  0x2c   : > { %2001 = vmatprep.subr.bf16.mxu1 %v2166_v1  ;;  %v851_v50 = vor.u32 %v850_v47, %v847_v45 }
  0x2d   : > { %v816_v19 = vor.u32 %v815_v14, %v812_v13  ;;  %v1126_v13 = vrot.slane %v2469_v9, 2  ;;  %v975_v14 = vrot.slane %v2394_v30, 2 }
  0x2e   : > { %v852_v44 = vsel %vm808_vm5, %v842_v40, %v851_v50  ;;  %v1263_v40 = vshll.u32 %v2469_v9, 16 }
  0x30   : > { %v1265_v47 = vrot.slane %v1263_v40, 3 }
  0x31   : > { %1920 = vmatmul.mubr.msk.bf16.gmra.mxu1 %vm351_vm3, %v2239_v6  ;;  %v818_v6 = vshrl.u32 %v2355_v2, 16 }
  0x32   : > { %1938 = vmatmul.mubr.msk.bf16.vlgmr.msra.gmra.mxu0 %vm351_vm3, %v539_v54  ;;  %1923 = vmatprep.mubr.msk.bf16.mxu1 %vm2167_vm1, %v2166_v1  ;;  %v856_v54 = vrot.slane %v854_v51, 1 }
  0x33   : > { %1980 = vmatpush3.bf16.msra.mxu0 %v878_v55  ;;  %1941 = vmatprep.mubr.msk.bf16.mxu0 %vm2167_vm1, %v2166_v1  ;;  %v820_v15 = vrot.slane %v818_v6, 1  ;;  %v859_v55 = vrot.slane %v857_v52, 2  ;;  %v973_v6 = vrot.slane %v2374_v18, 2 }
  0x34   : > { %2023 = vmatprep.subr.bf16.mxu0 %v2166_v1 }
  0x35   : > { %v824_v20 = vor.u32 %v823_v16, %v820_v15  ;;  %v2483_v16 = vld [vmem:[%s2229_s24 + $0x20] sm:$0xff]  }
  0x36   : > { %v1128_v18 = vrot.slane %v2483_v16, 2  ;;  %v1269_v51 = vshrl.u32 %v2483_v16, 16  ;;  %v1272_v52 = vshll.u32 %v2483_v16, 16 }
  0x37   : > { %v825_v25 = vsel %vm808_vm5, %v816_v19, %v824_v20  ;;  %v834_v35 = vsel %vm808_vm5, %v824_v20, %v833_v31  ;;  %v2496_v20 = vld [vmem:[%s2229_s24 + $0x28] sm:$0xff]  }
  0x38   : > { %v1129_v19 = vsel %vm969_vm6, %v1126_v13, %v1128_v18  ;;  %v1130_v22 = vrot.slane %v2496_v20, 2 }
  0x39   : > { %1924 = vmatmul.mubr.msk.bf16.gmra.mxu1 %vm351_vm3, %v2251_v12  ;;  %v1780_v12 = vld [vmem:[%s2703_s1 + $0x14] sm:$0xf] }
  0x3a   : > { %1942 = vmatmul.mubr.msk.bf16.gmra.mxu0 %vm351_vm3, %v541_v57  ;;  %1927 = vmatprep.mubr.msk.bf16.mxu1 %vm2167_vm1, %v2166_v1  ;;  %v860_v57 = vor.u32 %v859_v55, %v856_v54  ;;  %v1131_v27 = vsel %vm969_vm6, %v1128_v18, %v1130_v22  ;;  %v1271_v54 = vrot.slane %v1269_v51, 2  ;;  %v1274_v55 = vrot.slane %v1272_v52, 3 }
  0x3b   : > { %1945 = vmatprep.mubr.msk.bf16.mxu0 %vm2167_vm1, %v2166_v1 }
  0x3c   : > { %v861_v62 = vsel %vm808_vm5, %v851_v50, %v860_v57  ;;  %v1275_v57 = vor.u32 %v1274_v55, %v1271_v54 }
  0x41   : > { %1928 = vmatmul.mubr.msk.bf16.gmra.mxu1 %vm351_vm3, %v2245_v10  ;;  %v547_v10 = vsel %vm536_vm4, %v544_v60, %v546_v3  ;;  %v970_v60 = vrot.slane %v1781_v56, 2  ;;  %v1406_v56 = vrot.slane %v2469_v9, 3 }
  0x42   : > { %1946 = vmatmul.mubr.msk.bf16.gmra.mxu0 %vm351_vm3, %v543_v59  ;;  %1931 = vmatprep.mubr.msk.bf16.mxu1 %vm2167_vm1, %v2166_v1  ;;  %v2441_v59 = vld [vmem:[%s2229_s24 + $0xc] sm:$0xf] }
  0x43   : > { %1949 = vmatprep.mubr.msk.bf16.mxu0 %vm2167_vm1, %v2166_v1  ;;  %v1788_v0 = vcombine.low %v1082_v58, %v2441_v59  ;;  %v972_v3 = vsel %vm969_vm6, %v970_v60, %v971_v61  ;;  %v1278_v58 = vshrl.u32 %v2496_v20, 16 }
  0x45   : > { %v1123_v2 = vrot.slane %v1788_v0, 2  ;;  %v1246_v24 = vshll.u32 %v1788_v0, 16 }
  0x47   : > { %v1248_v31 = vrot.slane %v1246_v24, 3 }
  0x49   : > { %1932 = vmatmul.mubr.msk.bf16.gmra.mxu1 %vm351_vm3, %v2248_v11  ;;  %v997_v11 = vsel %vm367_vm0, %v1780_v12, 0  ;;  %v974_v12 = vsel %vm969_vm6, %v971_v61, %v973_v6 }
  0x4a   : > { %1950 = vmatmul.mubr.msk.bf16.gmra.mxu0 %vm351_vm3, %v545_v63  ;;  %1959 = vmatprep.mubr.msk.bf16.mxu1 %vm2167_vm1, %v2166_v1  ;;  %v1799_v63 = vld [vmem:[%s2703_s1 + $0x1c] sm:$0xf] }
  0x4b   : > { %1953 = vmatprep.mubr.msk.bf16.mxu0 %vm2167_vm1, %v2166_v1  ;;  %v1311_v4 = vsel %vm367_vm0, %v1799_v63, 0 }
  0x51   : > { %1960 = vmatmul.mubr.msk.bf16.vlgmr.msra.gmra.mxu1 %vm351_vm3, %v692_v17  ;;  %v976_v17 = vsel %vm969_vm6, %v973_v6, %v975_v14 }
  0x52   : > { %1954 = vmatmul.mubr.msk.bf16.gmra.mxu0 %vm351_vm3, %v547_v10  ;;  %2002 = vmatpush3.bf16.msra.mxu1 %v997_v11  ;;  %v1430_v10 = vsel %vm367_vm0, %v1806_v7, 0  ;;  %v977_v11 = vrot.slane %v2284_v39, 2  ;;  %v1243_v39 = vshrl.u32 %v1788_v0, 16  ;;  %v2141_v0 = vld [vmem:[%s2229_s24 + $0x30] ss:$0 sps:$4 sm:$0x77]  }
  0x53   : > { %1981 = vmatprep.mubr.msk.bf16.mxu0 %vm2167_vm1, %v2166_v1  ;;  %1963 = vmatprep.mubr.msk.bf16.mxu1 %vm2167_vm1, %v2166_v1 }
  0x54   : > { %2045 = vmatprep.subr.bf16.mxu1 %v2166_v1  ;;  %v978_v21 = vsel %vm969_vm6, %v975_v14, %v977_v11  ;;  %v1245_v30 = vrot.slane %v1243_v39, 2  ;;  %v1412_v14 = vrot.slane %v2141_v0, 3 }
  0x56   : > { %v1249_v36 = vor.u32 %v1248_v31, %v1245_v30 }
  0x59   : > { %1964 = vmatmul.mubr.msk.bf16.gmra.mxu1 %vm351_vm3, %v694_v29  ;;  %v980_v29 = vsel %vm969_vm6, %v977_v11, %v979_v23 }
  0x5a   : > { %1982 = vmatmul.mubr.msk.bf16.vlgmr.msra.gmra.mxu0 %vm351_vm3, %v825_v25  ;;  %1967 = vmatprep.mubr.msk.bf16.mxu1 %vm2167_vm1, %v2166_v1 }
  0x5b   : > { %2024 = vmatpush3.bf16.msra.mxu0 %v1150_v28  ;;  %1985 = vmatprep.mubr.msk.bf16.mxu0 %vm2167_vm1, %v2166_v1  ;;  %v2139_v28 = vld [vmem:[%s2229_s24 + $0x30] ss:$0 sps:$4 sm:$0x33]  }
  0x5c   : > { %2067 = vmatprep.subr.bf16.mxu0 %v2166_v1  ;;  %v1132_v34 = vrot.slane %v2139_v28, 2 }
  0x5e   : > { %v1133_v41 = vsel %vm969_vm6, %v1130_v22, %v1132_v34 }
  0x61   : > { %1968 = vmatmul.mubr.msk.bf16.gmra.mxu1 %vm351_vm3, %v696_v38  ;;  %v1260_v38 = vshrl.u32 %v2469_v9, 16  ;;  %v1410_v9 = vrot.slane %v2496_v20, 3 }
  0x62   : > { %1986 = vmatmul.mubr.msk.bf16.gmra.mxu0 %vm351_vm3, %v834_v35  ;;  %1971 = vmatprep.mubr.msk.bf16.mxu1 %vm2167_vm1, %v2166_v1  ;;  %v1396_v35 = vld [vmem:[%s2229_s24 + $0x8] sm:$0x8] }
  0x63   : > { %1989 = vmatprep.mubr.msk.bf16.mxu0 %vm2167_vm1, %v2166_v1  ;;  %v1807_v42 = vcombine.low %v1396_v35, %v2441_v59  ;;  %v1262_v45 = vrot.slane %v1260_v38, 2  ;;  %v1281_v59 = vshll.u32 %v2496_v20, 16 }
  0x65   : > { %v1403_v48 = vrot.slane %v1807_v42, 3  ;;  %v1266_v50 = vor.u32 %v1265_v47, %v1262_v45  ;;  %v1283_v63 = vrot.slane %v1281_v59, 3 }
  0x67   : > { %v1276_v61 = vsel %vm1241_vm7, %v1266_v50, %v1275_v57 }
  0x69   : > { %1972 = vmatmul.mubr.msk.bf16.gmra.mxu1 %vm351_vm3, %v698_v49 }
  0x6a   : > { %1990 = vmatmul.mubr.msk.bf16.gmra.mxu0 %vm351_vm3, %v843_v43  ;;  %1975 = vmatprep.mubr.msk.bf16.mxu1 %vm2167_vm1, %v2166_v1 }
  0x6b   : > { %1993 = vmatprep.mubr.msk.bf16.mxu0 %vm2167_vm1, %v2166_v1 }
  0x71   : > { %1976 = vmatmul.mubr.msk.bf16.gmra.mxu1 %vm351_vm3, %v2299_v46  ;;  %v2452_v46 = vld [vmem:[%s2229_s24 + $0x10] sm:$0xff]  }
  0x72   : > { %1994 = vmatmul.mubr.msk.bf16.gmra.mxu0 %vm351_vm3, %v852_v44  ;;  %2003 = vmatprep.mubr.msk.bf16.mxu1 %vm2167_vm1, %v2166_v1  ;;  %v1124_v5 = vrot.slane %v2452_v46, 2  ;;  %v1251_v25 = vshrl.u32 %v2452_v46, 16  ;;  %v1254_v26 = vshll.u32 %v2452_v46, 16  ;;  %v1404_v49 = vrot.slane %v2452_v46, 3 }
  0x73   : > { %1997 = vmatprep.mubr.msk.bf16.mxu0 %vm2167_vm1, %v2166_v1  ;;  %v1408_v46 = vrot.slane %v2483_v16, 3 }
  0x74   : > { %v1125_v8 = vsel %vm969_vm6, %v1123_v2, %v1124_v5  ;;  %v1127_v15 = vsel %vm969_vm6, %v1124_v5, %v1126_v13  ;;  %v1253_v32 = vrot.slane %v1251_v25, 2  ;;  %v1256_v33 = vrot.slane %v1254_v26, 3 }
  0x75   : > { %v1405_v53 = vsel %vm1402_vm8, %v1403_v48, %v1404_v49  ;;  %v1407_v60 = vsel %vm1402_vm8, %v1404_v49, %v1406_v56  ;;  %v1290_v2 = vshll.u32 %v2141_v0, 16  ;;  %v1409_v5 = vsel %vm1402_vm8, %v1406_v56, %v1408_v46 }
  0x76   : > { %v1257_v37 = vor.u32 %v1256_v33, %v1253_v32 }
  0x78   : > { %v1258_v43 = vsel %vm1241_vm7, %v1249_v36, %v1257_v37  ;;  %v1267_v44 = vsel %vm1241_vm7, %v1257_v37, %v1266_v50 }
  0x79   : > { %2004 = vmatmul.mubr.msk.bf16.vlgmr.msra.gmra.mxu1 %vm351_vm3, %v972_v3 }
  0x7a   : > { %1998 = vmatmul.mubr.msk.bf16.gmra.mxu0 %vm351_vm3, %v861_v62  ;;  %2046 = vmatpush3.bf16.msra.mxu1 %v1311_v4  ;;  %v1280_v62 = vrot.slane %v1278_v58, 2  ;;  %v1287_v4 = vshrl.u32 %v2141_v0, 16 }
  0x7b   : > { %2025 = vmatprep.mubr.msk.bf16.mxu0 %vm2167_vm1, %v2166_v1  ;;  %2007 = vmatprep.mubr.msk.bf16.mxu1 %vm2167_vm1, %v2166_v1 }
  0x7c   : > { %v1284_v3 = vor.u32 %v1283_v63, %v1280_v62  ;;  %v1289_v7 = vrot.slane %v1287_v4, 2 }
  0x7e   : > { %v1285_v6 = vsel %vm1241_vm7, %v1275_v57, %v1284_v3 }
  0x81   : > { %2008 = vmatmul.mubr.msk.bf16.gmra.mxu1 %vm351_vm3, %v974_v12  ;;  %v1411_v12 = vsel %vm1402_vm8, %v1408_v46, %v1410_v9 }
  0x82   : > { %2026 = vmatmul.mubr.msk.bf16.vlgmr.msra.gmra.mxu0 %vm351_vm3, %v1125_v8  ;;  %2011 = vmatprep.mubr.msk.bf16.mxu1 %vm2167_vm1, %v2166_v1  ;;  %v1292_v8 = vrot.slane %v1290_v2, 3 }
  0x83   : > { %2068 = vmatpush3.bf16.msra.mxu0 %v1430_v10  ;;  %2029 = vmatprep.mubr.msk.bf16.mxu0 %vm2167_vm1, %v2166_v1 }
  0x84   : > { %v1293_v10 = vor.u32 %v1292_v8, %v1289_v7 }
  0x86   : > { %v1294_v13 = vsel %vm1241_vm7, %v1284_v3, %v1293_v10 }
  0x89   : > { %2012 = vmatmul.mubr.msk.bf16.gmra.mxu1 %vm351_vm3, %v976_v17 }
  0x8a   : > { %2030 = vmatmul.mubr.msk.bf16.gmra.mxu0 %vm351_vm3, %v1127_v15  ;;  %2015 = vmatprep.mubr.msk.bf16.mxu1 %vm2167_vm1, %v2166_v1  ;;  %v1413_v15 = vsel %vm1402_vm8, %v1410_v9, %v1412_v14 }
  0x8b   : > { %2033 = vmatprep.mubr.msk.bf16.mxu0 %vm2167_vm1, %v2166_v1 }
  0x91   : > { %2016 = vmatmul.mubr.msk.bf16.gmra.mxu1 %vm351_vm3, %v978_v21 }
  0x92   : > { %2034 = vmatmul.mubr.msk.bf16.gmra.mxu0 %vm351_vm3, %v1129_v19  ;;  %2019 = vmatprep.mubr.msk.bf16.mxu1 %vm2167_vm1, %v2166_v1 }
  0x93   : > { %2037 = vmatprep.mubr.msk.bf16.mxu0 %vm2167_vm1, %v2166_v1 }
  0x99   : > { %2020 = vmatmul.mubr.msk.bf16.gmra.mxu1 %vm351_vm3, %v980_v29 }
  0x9a   : > { %2038 = vmatmul.mubr.msk.bf16.gmra.mxu0 %vm351_vm3, %v1131_v27  ;;  %2047 = vmatprep.mubr.msk.bf16.mxu1 %vm2167_vm1, %v2166_v1 }
  0x9b   : > { %2041 = vmatprep.mubr.msk.bf16.mxu0 %vm2167_vm1, %v2166_v1 }
  0xa1   : > { %2048 = vmatmul.mubr.msk.bf16.vlgmr.msra.gmra.mxu1 %vm351_vm3, %v1258_v43 }
  0xa2   : > { %2042 = vmatmul.mubr.msk.bf16.gmra.mxu0 %vm351_vm3, %v1133_v41  ;;  %2051 = vmatprep.mubr.msk.bf16.mxu1 %vm2167_vm1, %v2166_v1 }
  0xa3   : > { %2069 = vmatprep.mubr.msk.bf16.mxu0 %vm2167_vm1, %v2166_v1 }
  0xa9   : > { %2052 = vmatmul.mubr.msk.bf16.gmra.mxu1 %vm351_vm3, %v1267_v44 }
  0xaa   : > { %2070 = vmatmul.mubr.msk.bf16.vlgmr.msra.gmra.mxu0 %vm351_vm3, %v1405_v53  ;;  %2055 = vmatprep.mubr.msk.bf16.mxu1 %vm2167_vm1, %v2166_v1 }
  0xab   : > { %2073 = vmatprep.mubr.msk.bf16.mxu0 %vm2167_vm1, %v2166_v1 }
  0xb1   : > { %2056 = vmatmul.mubr.msk.bf16.gmra.mxu1 %vm351_vm3, %v1276_v61 }
  0xb2   : > { %2074 = vmatmul.mubr.msk.bf16.gmra.mxu0 %vm351_vm3, %v1407_v60  ;;  %2059 = vmatprep.mubr.msk.bf16.mxu1 %vm2167_vm1, %v2166_v1 }
  0xb3   : > { %2077 = vmatprep.mubr.msk.bf16.mxu0 %vm2167_vm1, %v2166_v1 }
  0xb9   : > { %2060 = vmatmul.mubr.msk.bf16.gmra.mxu1 %vm351_vm3, %v1285_v6 }
  0xba   : > { %2078 = vmatmul.mubr.msk.bf16.gmra.mxu0 %vm351_vm3, %v1409_v5  ;;  %2063 = vmatprep.mubr.msk.bf16.mxu1 %vm2167_vm1, %v2166_v1 }
  0xbb   : > { %2081 = vmatprep.mubr.msk.bf16.mxu0 %vm2167_vm1, %v2166_v1 }
  0xc1   : > { %2064 = vmatmul.mubr.msk.bf16.gmra.mxu1 %vm351_vm3, %v1294_v13 }
  0xc2   : > { %2082 = vmatmul.mubr.msk.bf16.gmra.mxu0 %vm351_vm3, %v1411_v12 }
  0xc3   : > { %2085 = vmatprep.mubr.msk.bf16.mxu0 %vm2167_vm1, %v2166_v1 }
  0xca   : > { %2086 = vmatmul.mubr.msk.bf16.gmra.mxu0 %vm351_vm3, %v1413_v15 }
  0xd9   : > { %v429_v17 = vpop.f32.mrf.mxu1 }
  0xda   : > { %v405_v16 = vpop.f32.mrf.mxu0 }
  0xdb   : > { %v1907_v11 = vpop.f32.mrf.mxu1 }
  0xdc   : > { %v1895_v18 = vpop.f32.mrf.mxu0 }
  0xdd   : > { %v432_v20 = vpop.f32.mrf.mxu1 }
  0xde   : > { %v408_v19 = vpop.f32.mrf.mxu0 }
  0xdf   : > { %v1908_v22 = vpop.f32.mrf.mxu1 }
  0xe0   : > { %v1896_v21 = vpop.f32.mrf.mxu0 }
  0xe1   : > { %v437_v39 = vpop.f32.mrf.mxu1 }
  0xe2   : > { %v413_v23 = vpop.f32.mrf.mxu0 }
  0xe3   : > { %v1911_v25 = vpop.f32.mrf.mxu1 }
  0xe4   : > { %v1899_v24 = vpop.f32.mrf.mxu0 }
  0xe5   : > { %v440_v26 = vpop.f32.mrf.mxu1 }
  0xe6   : > { %v416_v1 = vpop.f32.mrf.mxu0 }
  0xe7   : > { %v1912_v28 = vpop.f32.mrf.mxu1 }
  0xe8   : > { %v1900_v27 = vpop.f32.mrf.mxu0 }
  0xe9   : > { %v491_v30 = vpop.f32.mrf.mxu1 }
  0xea   : > { %v421_v29 = vpop.f32.mrf.mxu0  ;;  %v492_v32 = vadd.f32 %v491_v30, %v405_v16 }
  0xeb   : > { %v1917_v33 = vpop.f32.mrf.mxu1 }
  0xec   : > { %v1903_v31 = vpop.f32.mrf.mxu0 }
  0xed   : > { %v494_v35 = vpop.f32.mrf.mxu1 }
  0xee   : > { %v424_v34 = vpop.f32.mrf.mxu0  ;;  %v495_v37 = vadd.f32 %v494_v35, %v408_v19 }
  0xef   : > { %v1918_v38 = vpop.f32.mrf.mxu1 }
  0xf0   : > { %v1904_v36 = vpop.f32.mrf.mxu0 }
  0xf1   : > { %v499_v42 = vpop.f32.mrf.mxu1 }
  0xf2   : > { %v600_v40 = vpop.f32.mrf.mxu0  ;;  %v500_v45 = vadd.f32 %v499_v42, %v413_v23 }
  0xf3   : > { %v639_v41 = vadd.f32 %v600_v40, %v492_v32  ;;  %v1921_v47 = vpop.f32.mrf.mxu1 }
  0xf4   : > { %v1939_v43 = vpop.f32.mrf.mxu0 }
  0xf5   : > { %v502_v50 = vpop.f32.mrf.mxu1 }
  0xf6   : > { %v603_v48 = vpop.f32.mrf.mxu0  ;;  %v503_v52 = vadd.f32 %v502_v50, %v416_v1 }
  0xf7   : > { %v640_v49 = vadd.f32 %v603_v48, %v495_v37  ;;  %v1922_v53 = vpop.f32.mrf.mxu1 }
  0xf8   : > { %v1940_v51 = vpop.f32.mrf.mxu0 }
  0xf9   : > { %v507_v55 = vpop.f32.mrf.mxu1 }
  0xfa   : > { %v608_v44 = vpop.f32.mrf.mxu0  ;;  %v508_v57 = vadd.f32 %v507_v55, %v421_v29 }
  0xfb   : > { %v641_v54 = vadd.f32 %v608_v44, %v500_v45  ;;  %v1925_v58 = vpop.f32.mrf.mxu1 }
  0xfc   : > { %v1943_v56 = vpop.f32.mrf.mxu0 }
  0xfd   : > { %v510_v61 = vpop.f32.mrf.mxu1 }
  0xfe   : > { %v611_v59 = vpop.f32.mrf.mxu0  ;;  %v511_v63 = vadd.f32 %v510_v61, %v424_v34 }
  0xff   : > { %v642_v60 = vadd.f32 %v611_v59, %v503_v52  ;;  %v1926_v0 = vpop.f32.mrf.mxu1 }
 0x100   : > { %v1944_v62 = vpop.f32.mrf.mxu0 }
 0x101   : > { %v515_v4 = vpop.f32.mrf.mxu1 }
 0x102   : > { %v616_v46 = vpop.f32.mrf.mxu0  ;;  %v516_v5 = vadd.f32 %v515_v4, %v429_v17 }
 0x103   : > { %v643_v3 = vadd.f32 %v616_v46, %v508_v57  ;;  %v1929_v6 = vpop.f32.mrf.mxu1 }
 0x104   : > { %v1947_v2 = vpop.f32.mrf.mxu0 }
 0x105   : > { %v518_v9 = vpop.f32.mrf.mxu1 }
 0x106   : > { %v619_v7 = vpop.f32.mrf.mxu0  ;;  %v519_v12 = vadd.f32 %v518_v9, %v432_v20 }
 0x107   : > { %v644_v8 = vadd.f32 %v619_v7, %v511_v63  ;;  %v1930_v13 = vpop.f32.mrf.mxu1 }
 0x108   : > { %v1948_v10 = vpop.f32.mrf.mxu0 }
 0x109   : > { %v523_v16 = vpop.f32.mrf.mxu1 }
 0x10a   : > { %v624_v14 = vpop.f32.mrf.mxu0  ;;  %v524_v11 = vadd.f32 %v523_v16, %v437_v39 }
 0x10b   : > { %v645_v15 = vadd.f32 %v624_v14, %v516_v5  ;;  %v1933_v19 = vpop.f32.mrf.mxu1 }
 0x10c   : > { %v1951_v18 = vpop.f32.mrf.mxu0 }
 0x10d   : > { %v526_v23 = vpop.f32.mrf.mxu1 }
 0x10e   : > { %v627_v21 = vpop.f32.mrf.mxu0  ;;  %v527_v25 = vadd.f32 %v526_v23, %v440_v26 }
 0x10f   : > { %v646_v22 = vadd.f32 %v627_v21, %v519_v12  ;;  %v1934_v1 = vpop.f32.mrf.mxu1 }
 0x110   : > { %v1952_v24 = vpop.f32.mrf.mxu0 }
 0x111   : > { %v753_v28 = vpop.f32.mrf.mxu1 }
 0x112   : > { %v632_v17 = vpop.f32.mrf.mxu0  ;;  %v792_v30 = vadd.f32 %v753_v28, %v639_v41 }
 0x113   : > { %v647_v27 = vadd.f32 %v632_v17, %v524_v11  ;;  %v1961_v31 = vpop.f32.mrf.mxu1 }
 0x114   : > { %v1955_v29 = vpop.f32.mrf.mxu0 }
 0x115   : > { %v756_v33 = vpop.f32.mrf.mxu1 }
 0x116   : > { %v635_v20 = vpop.f32.mrf.mxu0  ;;  %v793_v35 = vadd.f32 %v756_v33, %v640_v49 }
 0x117   : > { %v648_v32 = vadd.f32 %v635_v20, %v527_v25  ;;  %v1962_v36 = vpop.f32.mrf.mxu1 }
 0x118   : > { %v1956_v34 = vpop.f32.mrf.mxu0 }
 0x119   : > { %v761_v38 = vpop.f32.mrf.mxu1 }
 0x11a   : > { %v914_v39 = vpop.f32.mrf.mxu0  ;;  %v794_v42 = vadd.f32 %v761_v38, %v641_v54 }
 0x11b   : > { %v2571_v37 = vadd.f32 %v914_v39, %v792_v30  ;;  %v1965_v26 = vpop.f32.mrf.mxu1 }
 0x11c   : > { %v1983_v40 = vpop.f32.mrf.mxu0 }
 0x11d   : > { %v764_v47 = vpop.f32.mrf.mxu1 }
 0x11e   : > { %v917_v43 = vpop.f32.mrf.mxu0  ;;  %v795_v41 = vadd.f32 %v764_v47, %v642_v60 }
 0x11f   : > { %v2573_v45 = vadd.f32 %v917_v43, %v793_v35  ;;  %v1966_v50 = vpop.f32.mrf.mxu1 }
 0x120   : > { %v1984_v48 = vpop.f32.mrf.mxu0 }
 0x121   : > { %v769_v53 = vpop.f32.mrf.mxu1 }
 0x122   : > { %v922_v51 = vpop.f32.mrf.mxu0  ;;  %v796_v44 = vadd.f32 %v769_v53, %v643_v3 }
 0x123   : > { %v2575_v52 = vadd.f32 %v922_v51, %v794_v42  ;;  %v1969_v55 = vpop.f32.mrf.mxu1 }
 0x124   : > { %v1987_v49 = vpop.f32.mrf.mxu0 }
 0x125   : > { %v772_v58 = vpop.f32.mrf.mxu1 }
 0x126   : > { %v925_v56 = vpop.f32.mrf.mxu0  ;;  %v797_v59 = vadd.f32 %v772_v58, %v644_v8 }
 0x127   : > { %v2577_v57 = vadd.f32 %v925_v56, %v795_v41  ;;  %v1970_v61 = vpop.f32.mrf.mxu1 }
 0x128   : > { %v1988_v54 = vpop.f32.mrf.mxu0 }
 0x129   : > { %v777_v0 = vpop.f32.mrf.mxu1 }
 0x12a   : > { %v930_v62 = vpop.f32.mrf.mxu0  ;;  %v798_v46 = vadd.f32 %v777_v0, %v645_v15 }
 0x12b   : > { %v2579_v63 = vadd.f32 %v930_v62, %v796_v44  ;;  %v1973_v4 = vpop.f32.mrf.mxu1 }
 0x12c   : > { %v1991_v60 = vpop.f32.mrf.mxu0 }
 0x12d   : > { %v780_v6 = vpop.f32.mrf.mxu1 }
 0x12e   : > { %v933_v2 = vpop.f32.mrf.mxu0  ;;  %v799_v7 = vadd.f32 %v780_v6, %v646_v22 }
 0x12f   : > { %v2581_v5 = vadd.f32 %v933_v2, %v797_v59  ;;  %v1974_v9 = vpop.f32.mrf.mxu1 }
 0x130   : > { %v1992_v3 = vpop.f32.mrf.mxu0 }
 0x131   : > { %v785_v13 = vpop.f32.mrf.mxu1 }
 0x132   : > { %v938_v10 = vpop.f32.mrf.mxu0  ;;  %v800_v14 = vadd.f32 %v785_v13, %v647_v27 }
 0x133   : > { %v2583_v12 = vadd.f32 %v938_v10, %v798_v46  ;;  %v1977_v16 = vpop.f32.mrf.mxu1 }
 0x134   : > { %v1995_v8 = vpop.f32.mrf.mxu0 }
 0x135   : > { %v788_v19 = vpop.f32.mrf.mxu1 }
 0x136   : > { %v941_v18 = vpop.f32.mrf.mxu0  ;;  %v801_v21 = vadd.f32 %v788_v19, %v648_v32 }
 0x137   : > { %v2585_v11 = vadd.f32 %v941_v18, %v799_v7  ;;  %v1978_v23 = vpop.f32.mrf.mxu1 }
 0x138   : > { %v1996_v15 = vpop.f32.mrf.mxu0  ;;  %v2620_v23 = vld [vmem:[%s2704_s2] ss:$0 sm:$0xff] }
 0x139   : > { %v1033_v1 = vpop.f32.mrf.mxu1 }
 0x13a   : > { %v946_v24 = vpop.f32.mrf.mxu0  ;;  %v1072_v9 = vadd.f32 %v1033_v1, %v2571_v37  ;;  %v2625_v1 = vld [vmem:[%s2705_s3] ss:$0 sm:$0xff] }
 0x13b   : > { %v2587_v25 = vadd.f32 %v946_v24, %v800_v14  ;;  %v2005_v17 = vpop.f32.mrf.mxu1 }
 0x13c   : > { %v1999_v22 = vpop.f32.mrf.mxu0 }
 0x13d   : > { %v1036_v30 = vpop.f32.mrf.mxu1 }
 0x13e   : > { %v949_v28 = vpop.f32.mrf.mxu0  ;;  %v1073_v18 = vadd.f32 %v1036_v30, %v2573_v45 }
 0x13f   : > { %v2589_v29 = vadd.f32 %v949_v28, %v801_v21  ;;  %v2006_v27 = vpop.f32.mrf.mxu1 }
 0x140   : > { %v2000_v31 = vpop.f32.mrf.mxu0 }
 0x141   : > { %v1041_v33 = vpop.f32.mrf.mxu1 }
 0x142   : > { %v1186_v20 = vpop.f32.mrf.mxu0  ;;  %v1074_v28 = vadd.f32 %v1041_v33, %v2575_v52 }
 0x143   : > { %v2009_v35 = vpop.f32.mrf.mxu1  ;;  %v1225_v8 = vadd.f32 %v1186_v20, %v1072_v9 }
 0x144   : > { %v2027_v34 = vpop.f32.mrf.mxu0 }
 0x145   : > { %v1044_v39 = vpop.f32.mrf.mxu1 }
 0x146   : > { %v1189_v36 = vpop.f32.mrf.mxu0 }
 0x147   : > { %v2010_v38 = vpop.f32.mrf.mxu1  ;;  %v1226_v24 = vadd.f32 %v1189_v36, %v1073_v18 }
 0x148   : > { %v2028_v32 = vpop.f32.mrf.mxu0  ;;  %v1075_v38 = vadd.f32 %v1044_v39, %v2577_v57 }
 0x149   : > { %v2591_v42 = vpop.f32.mrf.mxu1 }
 0x14a   : > { %v1194_v40 = vpop.f32.mrf.mxu0  ;;  %v1076_v39 = vadd.f32 %v2591_v42, %v2579_v63 }
 0x14b   : > { %v2013_v43 = vpop.f32.mrf.mxu1  ;;  %v1227_v20 = vadd.f32 %v1194_v40, %v1074_v28 }
 0x14c   : > { %v2031_v26 = vpop.f32.mrf.mxu0 }
 0x14d   : > { %v2593_v48 = vpop.f32.mrf.mxu1 }
 0x14e   : > { %v1197_v47 = vpop.f32.mrf.mxu0  ;;  %v1077_v63 = vadd.f32 %v2593_v48, %v2581_v5 }
 0x14f   : > { %v2014_v50 = vpop.f32.mrf.mxu1  ;;  %v1228_v40 = vadd.f32 %v1197_v47, %v1075_v38 }
 0x150   : > { %v2032_v41 = vpop.f32.mrf.mxu0 }
 0x151   : > { %v2597_v53 = vpop.f32.mrf.mxu1 }
 0x152   : > { %v2595_v51 = vpop.f32.mrf.mxu0  ;;  %v1078_v5 = vadd.f32 %v2597_v53, %v2583_v12 }
 0x153   : > { %v2017_v44 = vpop.f32.mrf.mxu1  ;;  %v1229_v47 = vadd.f32 %v2595_v51, %v1076_v39 }
 0x154   : > { %v2035_v49 = vpop.f32.mrf.mxu0 }
 0x155   : > { %v2601_v56 = vpop.f32.mrf.mxu1 }
 0x156   : > { %v2599_v55 = vpop.f32.mrf.mxu0  ;;  %v1079_v12 = vadd.f32 %v2601_v56, %v2585_v11 }
 0x157   : > { %v2018_v54 = vpop.f32.mrf.mxu1  ;;  %v1230_v51 = vadd.f32 %v2599_v55, %v1077_v63 }
 0x158   : > { %v2036_v58 = vpop.f32.mrf.mxu0 }
 0x159   : > { %v2605_v61 = vpop.f32.mrf.mxu1 }
 0x15a   : > { %v2603_v59 = vpop.f32.mrf.mxu0  ;;  %v1080_v11 = vadd.f32 %v2605_v61, %v2587_v25 }
 0x15b   : > { %v2021_v0 = vpop.f32.mrf.mxu1  ;;  %v1231_v55 = vadd.f32 %v2603_v59, %v1078_v5 }
 0x15c   : > { %v2039_v62 = vpop.f32.mrf.mxu0 }
 0x15d   : > { %v2609_v46 = vpop.f32.mrf.mxu1 }
 0x15e   : > { %v2607_v60 = vpop.f32.mrf.mxu0  ;;  %v1081_v25 = vadd.f32 %v2609_v46, %v2589_v29 }
 0x15f   : > { %v2022_v2 = vpop.f32.mrf.mxu1  ;;  %v1232_v59 = vadd.f32 %v2607_v60, %v1079_v12 }
 0x160   : > { %v2040_v4 = vpop.f32.mrf.mxu0 }
 0x161   : > { %v1347_v3 = vpop.f32.mrf.mxu1 }
 0x162   : > { %v2611_v6 = vpop.f32.mrf.mxu0  ;;  %v1386_v19 = vadd.f32 %v1347_v3, %v1225_v8 }
 0x163   : > { %v2049_v10 = vpop.f32.mrf.mxu1  ;;  %v1233_v60 = vadd.f32 %v2611_v6, %v1080_v11 }
 0x164   : > { %v2043_v7 = vpop.f32.mrf.mxu0 }
 0x165   : > { %v1350_v14 = vpop.f32.mrf.mxu1 }
 0x166   : > { %v2614_v13 = vpop.f32.mrf.mxu0  ;;  %v1387_v45 = vadd.f32 %v1350_v14, %v1226_v24 }
 0x167   : > { %v2050_v15 = vpop.f32.mrf.mxu1  ;;  %v1234_v6 = vadd.f32 %v2614_v13, %v1081_v25 }
 0x168   : > { %v2044_v16 = vpop.f32.mrf.mxu0 }
 0x169   : > { %v1355_v37 = vpop.f32.mrf.mxu1 }
 0x16a   : > { %v1466_v21 = vpop.f32.mrf.mxu0  ;;  %v1388_v26 = vadd.f32 %v1355_v37, %v1227_v20 }
 0x16b   : > { %v1505_v22 = vadd.f32 %v1466_v21, %v1386_v19  ;;  %v2053_v31 = vpop.f32.mrf.mxu1 }
 0x16c   : > { %v2071_v17 = vpop.f32.mrf.mxu0 }
 0x16d   : > { %v1522_v30 = vmul.f32 %v2620_v23, %v1505_v22  ;;  %v1358_v36 = vpop.f32.mrf.mxu1 }
 0x16e   : > { %v1469_v27 = vpop.f32.mrf.mxu0  ;;  %v1389_v54 = vadd.f32 %v1358_v36, %v1228_v40 }
 0x16f   : > { %v1539_v34 = vadd.f32 %v2625_v1, %v1522_v30  ;;  %v1506_v35 = vadd.f32 %v1469_v27, %v1387_v45  ;;  %v2054_v52 = vpop.f32.mrf.mxu1 }
 0x170   : > { %v2072_v32 = vpop.f32.mrf.mxu0 }
 0x171   : > { %v1549_v43 = vmax.f32 %v1539_v34, 0.0  ;;  %v1523_v41 = vmul.f32 %v2620_v23, %v1506_v35  ;;  %v1363_v58 = vpop.f32.mrf.mxu1 }
 0x172   : > { %v1474_v33 = vpop.f32.mrf.mxu0  ;;  %v1390_v42 = vadd.f32 %v1363_v58, %v1229_v47 }
 0x173   : > { %v1827_v50 = vpack.c.bf16 %v1549_v43, %v1549_v43  ;;  %v1540_v49 = vadd.f32 %v2625_v1, %v1523_v41  ;;  %v1507_v44 = vadd.f32 %v1474_v33, %v1388_v26  ;;  %v2057_v4 = vpop.f32.mrf.mxu1 }
 0x174   : > { %v2075_v57 = vpop.f32.mrf.mxu0 }
 0x175   : > { %1600 = vst.msk [vmem:[%s2636_s26] sm:$0xf] %vm1599_vm9, %v1827_v50  ;;  %v1550_v62 = vmax.f32 %v1540_v49, 0.0  ;;  %v1524_v0 = vmul.f32 %v2620_v23, %v1507_v44  ;;  %v1366_v10 = vpop.f32.mrf.mxu1 }
 0x176   : > { %v1477_v2 = vpop.f32.mrf.mxu0  ;;  %v1391_v48 = vadd.f32 %v1366_v10, %v1230_v51 }
 0x177   : > { %v1828_v3 = vpack.c.bf16 %v1550_v62, %v1550_v62  ;;  %v1541_v7 = vadd.f32 %v2625_v1, %v1524_v0  ;;  %v1508_v9 = vadd.f32 %v1477_v2, %v1389_v54  ;;  %v2058_v18 = vpop.f32.mrf.mxu1 }
 0x178   : > { %v2076_v8 = vpop.f32.mrf.mxu0 }
 0x179   : > { %1601 = vst.msk [vmem:[%s2636_s26 + $0x4] sm:$0xf] %vm1599_vm9, %v1828_v3  ;;  %v1551_v14 = vmax.f32 %v1541_v7, 0.0  ;;  %v1525_v16 = vmul.f32 %v2620_v23, %v1508_v9  ;;  %v1371_v22 = vpop.f32.mrf.mxu1 }
 0x17a   : > { %v1482_v19 = vpop.f32.mrf.mxu0  ;;  %v1392_v53 = vadd.f32 %v1371_v22, %v1231_v55 }
 0x17b   : > { %v1829_v15 = vpack.c.bf16 %v1551_v14, %v1551_v14  ;;  %v1542_v21 = vadd.f32 %v2625_v1, %v1525_v16  ;;  %v1509_v24 = vadd.f32 %v1482_v19, %v1390_v42  ;;  %v2061_v45 = vpop.f32.mrf.mxu1 }
 0x17c   : > { %v2079_v37 = vpop.f32.mrf.mxu0 }
 0x17d   : > { %1602 = vst.msk [vmem:[%s2636_s26 + $0x8] sm:$0xf] %vm1599_vm9, %v1829_v15  ;;  %v1552_v17 = vmax.f32 %v1542_v21, 0.0  ;;  %v1526_v28 = vmul.f32 %v2620_v23, %v1509_v24  ;;  %v1374_v34 = vpop.f32.mrf.mxu1 }
 0x17e   : > { %v1485_v30 = vpop.f32.mrf.mxu0  ;;  %v1393_v56 = vadd.f32 %v1374_v34, %v1232_v59 }
 0x17f   : > { %v1830_v31 = vpack.c.bf16 %v1552_v17, %v1552_v17  ;;  %v1543_v27 = vadd.f32 %v2625_v1, %v1526_v28  ;;  %v1510_v20 = vadd.f32 %v1485_v30, %v1391_v48  ;;  %v2062_v38 = vpop.f32.mrf.mxu1 }
 0x180   : > { %v2080_v35 = vpop.f32.mrf.mxu0 }
 0x181   : > { %1603 = vst.msk [vmem:[%s2636_s26 + $0xc] sm:$0xf] %vm1599_vm9, %v1830_v31  ;;  %v1553_v36 = vmax.f32 %v1543_v27, 0.0  ;;  %v1527_v32 = vmul.f32 %v2620_v23, %v1510_v20  ;;  %v1379_v33 = vpop.f32.mrf.mxu1 }
 0x182   : > { %v1490_v26 = vpop.f32.mrf.mxu0  ;;  %v1394_v61 = vadd.f32 %v1379_v33, %v1233_v60 }
 0x183   : > { %v1831_v43 = vpack.c.bf16 %v1553_v36, %v1553_v36  ;;  %v1544_v41 = vadd.f32 %v2625_v1, %v1527_v32  ;;  %v1511_v52 = vadd.f32 %v1490_v26, %v1392_v53  ;;  %v2065_v44 = vpop.f32.mrf.mxu1 }
 0x184   : > { %v2083_v40 = vpop.f32.mrf.mxu0 }
 0x185   : > { %1604 = vst.msk [vmem:[%s2636_s26 + $0x10] sm:$0xf] %vm1599_vm9, %v1831_v43  ;;  %v1554_v50 = vmax.f32 %v1544_v41, 0.0  ;;  %v1528_v49 = vmul.f32 %v2620_v23, %v1511_v52  ;;  %v1382_v62 = vpop.f32.mrf.mxu1 }
 0x186   : > { %v1493_v58 = vpop.f32.mrf.mxu0  ;;  %v1395_v29 = vadd.f32 %v1382_v62, %v1234_v6 }
 0x187   : > { %v1832_v57 = vpack.c.bf16 %v1554_v50, %v1554_v50  ;;  %v1545_v39 = vadd.f32 %v2625_v1, %v1528_v49  ;;  %v1512_v54 = vadd.f32 %v1493_v58, %v1393_v56  ;;  %v2066_v47 = vpop.f32.mrf.mxu1 }
 0x188   : > { %v2084_v0 = vpop.f32.mrf.mxu0 }
 0x189   : > { %1605 = vst.msk [vmem:[%s2636_s26 + $0x14] sm:$0xf] %vm1599_vm9, %v1832_v57  ;;  %v1555_v4 = vmax.f32 %v1545_v39, 0.0  ;;  %v1529_v2 = vmul.f32 %v2620_v23, %v1512_v54 }
 0x18a   : > { %v1498_v3 = vpop.f32.mrf.mxu0 }
 0x18b   : > { %v1833_v7 = vpack.c.bf16 %v1555_v4, %v1555_v4  ;;  %v1546_v9 = vadd.f32 %v2625_v1, %v1529_v2  ;;  %v1513_v10 = vadd.f32 %v1498_v3, %v1394_v61 }
 0x18c   : > { %v2087_v8 = vpop.f32.mrf.mxu0 }
 0x18d   : > { %1606 = vst.msk [vmem:[%s2636_s26 + $0x18] sm:$0xf] %vm1599_vm9, %v1833_v7  ;;  %v1556_v46 = vmax.f32 %v1546_v9, 0.0  ;;  %v1530_v63 = vmul.f32 %v2620_v23, %v1513_v10 }
 0x18e   : > { %v1501_v42 = vpop.f32.mrf.mxu0 }
 0x18f   : > { %v1834_v14 = vpack.c.bf16 %v1556_v46, %v1556_v46  ;;  %v1547_v16 = vadd.f32 %v2625_v1, %v1530_v63  ;;  %v1514_v18 = vadd.f32 %v1501_v42, %v1395_v29 }
 0x190   : > { %v2088_v19 = vpop.f32.mrf.mxu0 }
 0x191   : > { %1607 = vst.msk [vmem:[%s2636_s26 + $0x1c] sm:$0xf] %vm1599_vm9, %v1834_v14  ;;  %v1557_v13 = vmax.f32 %v1547_v16, 0.0  ;;  %v1531_v51 = vmul.f32 %v2620_v23, %v1514_v18 }
 0x193   : > { %v1835_v15 = vpack.c.bf16 %v1557_v13, %v1557_v13  ;;  %v1548_v21 = vadd.f32 %v2625_v1, %v1531_v51 }
 0x195   : > { %1608 = vst.msk [vmem:[%s2636_s26 + $0x20] sm:$0xf] %vm1599_vm9, %v1835_v15  ;;  %v1558_v24 = vmax.f32 %v1548_v21, 0.0 }
 0x197   : > { %v1836_v22 = vpack.c.bf16 %v1558_v24, %v1558_v24 }
 0x199   : > { %1609 = vst.msk [vmem:[%s2636_s26 + $0x24] sm:$0xf] %vm1599_vm9, %v1836_v22 }
 0x19a PF: > { %s14_s17 = sadd.s32 1, %s2164_s17   ;;  %s2707_s15 = smov %s2160_s16 }
 0x19b   : > { %p11_p5 = scmp.ge.s32.totalorder %s14_s17, 4   ;;  %s2708_s16 = smov %s2710_s18 }
 0x19d   :  { %13 = sbr.rel (!%p11_p5) target bundleno = 2 (0x2), region = 83 }

// kernel: acdnet_forward.19
= control target key start
LH: loop header
LB: loop body
LE: loop exit
PB: predicated region body
PF: predicated region fallthrough
CT: control target
= control target key end

     0   :  { %s1384_s15 = smov 0   ;;  %s1386_s16 = smov 0   ;;  %s1528_s0 = inlined_call_operand.vmem [shape: bf16[2,42,16], index: 0, kind: input, shape index: {}]   ;;  %s1529_s1 = inlined_call_operand.vmem [shape: bf16[9,16,16], index: 1, kind: input, shape index: {}]   ;;  %s1530_s2 = inlined_call_operand.vmem [shape: f32[1,16], index: 2, kind: input, shape index: {}]   ;;  %s1531_s3 = inlined_call_operand.vmem [shape: f32[1,16], index: 3, kind: input, shape index: {}]   ;;  %s1532_s4 = inlined_call_operand.vmem [shape: bf16[2,24,16], index: 4, kind: output, shape index: {}]  }
   0x1   :  { %s1388_s17 = smov 0  }
   0x2 LB: > { %s26_s18 = sadd.s32 1, %s1353_s16  ;;  %p1137_p0 = scmp.ge.s32.totalorder %s1357_s17, 1  ;;  %s1357_s17 = sphi %s1388_s17, %s14_s17   ;;  %s1353_s16 = sphi %s1386_s16, %s1534_s16   ;;  %s1349_s15 = sphi %s1384_s15, %s1533_s15  }
   0x3   : > { %p28_p1 = scmp.ge.s32.totalorder %s26_s18, 2  ;;  %p201_p2 = scmp.lt.s32.totalorder %s1357_s17, 3 }
   0x5   : > { %s1536_s18 = smov (%p28_p1, %s26_s18), 0  ;;  %p202_p3 = pnand %p1137_p0, %p201_p2 }
   0x6   : > { %p240_p4 = scmp.lt.s32.totalorder (!%p202_p3), %s1349_s15, 1 }
   0x7   : > { %205 = sbr.rel (%p202_p3) target bundleno = 269 (0x10d), region = 36 }
   0xc   : > { %v1313_v0 = vld [vmem:[%s1529_s1 + $0x8] sm:$0xff]   ;;  %v1314_v1 = vld [vmem:[%s1529_s1] sm:$0xff]   ;;  %s1538_s15 = smov (!%p240_p4, %s1349_s15), 1  ;;  %v1413_v2 = vld [vmem:[%s1529_s1 + $0x10] sm:$0xff]   ;;  %vm305_vm0 = vcmask 130048   ;;  %vm427_vm2 = vcmask 1046528  }
   0xd   : > { %1233 = vmatprep.subr.bf16.mxu0 %v1313_v0  ;;  %1239 = vmatprep.subr.bf16.mxu1 %v1314_v1  ;;  %s1287_s25 = smul.u32 24, %s1538_s15  ;;  %v1319_v3 = vld [vmem:[%s1529_s1 + $0x18] sm:$0xff]   ;;  %vm283_vm1 = vsmask.f32 7424  ;;  %vm505_vm3 = vcmask 1044480   ;;  %v1435_v7 = vld [vmem:[%s1529_s1 + $0x28] sm:$0xff]  }
   0xe   : > { %1234 = vmatpush3.bf16.msra.mxu0 %v1313_v0  ;;  %1240 = vmatpush3.bf16.msra.mxu1 %v1314_v1  ;;  %v1323_v41 = vld [vmem:[%s1529_s1 + $0x20] sm:$0xff]   ;;  %v1329_v51 = vld [vmem:[%s1529_s1 + $0x38] sm:$0xff]   ;;  %vm579_vm4 = vsmask.f32 4352  ;;  %vm819_vm5 = vsmask.f32 5376 }
   0xf   : > { %1245 = vmatprep.subr.bf16.mxu0 %v1413_v2  ;;  %s1423_s30 = scalar_lea.vmem %s1528_s0, %s1287_s25  ;;  %1251 = vmatprep.subr.bf16.mxu1 %v1319_v3  ;;  %vm745_vm6 = vcmask 1045504   ;;  %s1288_s23 = smul.u32 12, %s1538_s15  ;;  %vm1009_vm7 = vcmask 125952  }
  0x10   : > { %v264_v4 = vld [vmem:[%s1423_s30] sm:$0xf]  ;;  %v1427_v5 = vld [vmem:[%s1423_s30 + $0x4] sm:$0xf]  ;;  %v1430_v6 = vld [vmem:[%s1423_s30 + $0x8] sm:$0xf] }
  0x11   : > { %v269_v8 = vld [vmem:[%s1423_s30 + $0xc] sm:$0x1]  ;;  %v1142_v9 = vcombine.low %v264_v4, %v1427_v5  ;;  %v1147_v10 = vcombine.low %v1430_v6, %v1430_v6  ;;  %v420_v11 = vld [vmem:[%s1423_s30] sm:$0xe]  ;;  %v728_v33 = vld [vmem:[%s1423_s30 + $0x4] sm:$0xc]  ;;  %v1172_v49 = vcombine.low %v1427_v5, %v1430_v6  ;;  %s262_s26 = scalar_lea.vmem %s1532_s4, %s1288_s23 }
  0x12   : > { %v494_v12 = vld [vmem:[%s1423_s30] sm:$0x8]  ;;  %v1444_v13 = vcombine.low %v1430_v6, %v269_v8  ;;  %v1153_v14 = vcombine.low %v420_v11, %v1427_v5  ;;  %v495_v15 = vld [vmem:[%s1423_s30 + $0xc] sm:$0x7]  ;;  %v1464_v37 = vld [vmem:[%s1423_s30 + $0x8] sm:$0xf] }
  0x13   : > { %v1159_v16 = vcombine.low %v494_v12, %v1427_v5  ;;  %v1450_v17 = vld [vmem:[%s1423_s30 + $0xc] sm:$0xf]  ;;  %v285_v18 = vshrl.u32 %v1142_v9, 16  ;;  %v287_v19 = vshll.u32 %v1142_v9, 16  ;;  %1241 = vmatprep.mubr.msk.bf16.mxu1 %vm305_vm0, %v1142_v9  ;;  %v1160_v20 = vcombine.low %v1430_v6, %v495_v15  ;;  %v812_v44 = vld [vmem:[%s1423_s30 + $0x10] sm:$0x7] }
  0x14   : > { %v1166_v21 = vcombine.low %v1430_v6, %v1450_v17  ;;  %v292_v22 = vshll.u32 %v1444_v13, 16  ;;  %v296_v23 = vshrl.u32 %v1444_v13, 16  ;;  %1242 = vmatmul.mubr.msk.bf16.vlgmr.msra.gmra.mxu1 %vm305_vm0, %v1147_v10  ;;  %v428_v24 = vrot.slane %v1153_v14, 1  ;;  %v730_v38 = vld [vmem:[%s1423_s30 + $0xc] sm:$0xf]  ;;  %v1333_v10 = vld [vmem:[%s1529_s1 + $0x40] sm:$0xff]  }
  0x15   : > { %v429_v25 = vrot.slane %v1444_v13, 1  ;;  %v289_v26 = vrot.slane %v287_v19, 1  ;;  %1252 = vmatpush3.bf16.msra.mxu1 %v1319_v3  ;;  %v506_v27 = vrot.slane %v1159_v16, 3  ;;  %v507_v28 = vrot.slane %v1160_v20, 3  ;;  %v731_v59 = vld [vmem:[%s1423_s30 + $0x10] sm:$0x3] }
  0x16   : > { %v581_v29 = vshrl.u32 %v1159_v16, 16  ;;  %v294_v30 = vrot.slane %v292_v22, 1  ;;  %1263 = vmatprep.subr.bf16.mxu1 %v1435_v7  ;;  %v584_v31 = vshll.u32 %v1159_v16, 16  ;;  %v589_v32 = vshrl.u32 %v1166_v21, 16  ;;  %v900_v8 = vld [vmem:[%s1423_s30 + $0x4] sm:$0x8] }
  0x17   : > { %v290_v34 = vor.u32 %v289_v26, %v285_v18  ;;  %v508_v35 = vsel %vm505_vm3, %v506_v27, %v507_v28  ;;  %v592_v36 = vshll.u32 %v1166_v21, 16  ;;  %v430_v40 = vsel %vm427_vm2, %v428_v24, %v429_v25 }
  0x18   : > { %v298_v39 = vor.u32 %v296_v23, %v294_v30  ;;  %1253 = vmatprep.mubr.msk.bf16.mxu1 %vm305_vm0, %v508_v35  ;;  %v583_v42 = vrot.slane %v581_v29, 3  ;;  %v586_v43 = vrot.slane %v584_v31, 4  ;;  %v591_v46 = vrot.slane %v589_v32, 3 }
  0x19   : > { %v295_v45 = vsel %vm283_vm1, %v290_v34, %v294_v30  ;;  %v594_v47 = vrot.slane %v592_v36, 4  ;;  %v1179_v48 = vcombine.low %v728_v33, %v1464_v37  ;;  %v1186_v50 = vcombine.low %v730_v38, %v812_v44 }
  0x1a   : > { %1235 = vmatprep.mubr.msk.bf16.mxu0 %vm305_vm0, %v295_v45  ;;  %v587_v56 = vor.u32 %v586_v43, %v583_v42  ;;  %v1173_v3 = vcombine.low %v1450_v17, %v1450_v17  ;;  %v1180_v4 = vcombine.low %v730_v38, %v731_v59  ;;  %v1192_v11 = vcombine.low %v900_v8, %v1464_v37 }
  0x1b   : > { %1236 = vmatmul.mubr.msk.bf16.vlgmr.msra.gmra.mxu0 %vm305_vm0, %v298_v39  ;;  %v821_v52 = vshrl.u32 %v1179_v48, 16  ;;  %v824_v53 = vshll.u32 %v1179_v48, 16  ;;  %v829_v54 = vshrl.u32 %v1186_v50, 16  ;;  %v832_v55 = vshll.u32 %v1186_v50, 16 }
  0x1c   : > { %1246 = vmatpush3.bf16.msra.mxu0 %v1413_v2  ;;  %1247 = vmatprep.mubr.msk.bf16.mxu0 %vm305_vm0, %v430_v40  ;;  %v595_v57 = vor.u32 %v594_v47, %v591_v46  ;;  %v1327_v2 = vld [vmem:[%s1529_s1 + $0x30] sm:$0xff]   ;;  %v746_v6 = vrot.slane %v1179_v48, 2  ;;  %v907_v12 = vrot.slane %v1192_v11, 3  ;;  %v908_v13 = vrot.slane %v1186_v50, 3 }
  0x1d   : > { %1257 = vmatprep.subr.bf16.mxu0 %v1323_v41  ;;  %1254 = vmatmul.mubr.msk.bf16.vlgmr.msra.gmra.mxu1 %vm305_vm0, %v507_v28  ;;  %v823_v58 = vrot.slane %v821_v52, 2  ;;  %v826_v60 = vrot.slane %v824_v53, 3  ;;  %v831_v61 = vrot.slane %v829_v54, 2  ;;  %v834_v62 = vrot.slane %v832_v55, 3 }
  0x1e   : > { %1264 = vmatpush3.bf16.msra.mxu1 %v1435_v7  ;;  %1265 = vmatprep.mubr.msk.bf16.mxu1 %vm305_vm0, %v1172_v49  ;;  %v596_v1 = vsel %vm579_vm4, %v587_v56, %v595_v57  ;;  %v747_v7 = vrot.slane %v1180_v4, 2  ;;  %v909_v14 = vsel %vm505_vm3, %v907_v12, %v908_v13 }
  0x1f   : > { %1275 = vmatprep.subr.bf16.mxu1 %v1329_v51  ;;  %v827_v63 = vor.u32 %v826_v60, %v823_v58  ;;  %v835_v0 = vor.u32 %v834_v62, %v831_v61 }
  0x20   : > { %v748_v9 = vsel %vm745_vm6, %v746_v6, %v747_v7 }
  0x21   : > { %v836_v5 = vsel %vm819_vm5, %v827_v63, %v835_v0 }
  0x23   : > { %1248 = vmatmul.mubr.msk.bf16.vlgmr.msra.gmra.mxu0 %vm305_vm0, %v429_v25 }
  0x24   : > { %1258 = vmatpush3.bf16.msra.mxu0 %v1323_v41  ;;  %1259 = vmatprep.mubr.msk.bf16.mxu0 %vm305_vm0, %v596_v1  ;;  %v1196_v1 = vld [vmem:[%s1530_s2] ss:$0 sm:$0xff] }
  0x25   : > { %1269 = vmatprep.subr.bf16.mxu0 %v1327_v2  ;;  %1266 = vmatmul.mubr.msk.bf16.vlgmr.msra.gmra.mxu1 %vm305_vm0, %v1173_v3 }
  0x26   : > { %1276 = vmatpush3.bf16.msra.mxu1 %v1329_v51  ;;  %1277 = vmatprep.mubr.msk.bf16.mxu1 %vm305_vm0, %v836_v5  ;;  %v1197_v5 = vld [vmem:[%s1531_s3] ss:$0 sm:$0xff] }
  0x2b   : > { %1260 = vmatmul.mubr.msk.bf16.vlgmr.msra.gmra.mxu0 %vm305_vm0, %v595_v57 }
  0x2c   : > { %1270 = vmatpush3.bf16.msra.mxu0 %v1327_v2  ;;  %1271 = vmatprep.mubr.msk.bf16.mxu0 %vm305_vm0, %v748_v9 }
  0x2d   : > { %1281 = vmatprep.subr.bf16.mxu0 %v1333_v10  ;;  %1278 = vmatmul.mubr.msk.bf16.vlgmr.msra.gmra.mxu1 %vm305_vm0, %v835_v0 }
  0x33   : > { %1272 = vmatmul.mubr.msk.bf16.vlgmr.msra.gmra.mxu0 %vm305_vm0, %v747_v7 }
  0x34   : > { %1282 = vmatpush3.bf16.msra.mxu0 %v1333_v10  ;;  %1283 = vmatprep.mubr.msk.bf16.mxu0 %vm305_vm0, %v909_v14 }
  0x3b   : > { %1284 = vmatmul.mubr.msk.bf16.vlgmr.msra.gmra.mxu0 %vm305_vm0, %v908_v13 }
  0xd4   : > { %v1243_v15 = vpop.f32.mrf.mxu1 }
  0xd6   : > { %v406_v16 = vpop.f32.mrf.mxu1 }
  0xd8   : > { %v1244_v17 = vpop.f32.mrf.mxu1 }
  0xda   : > { %v409_v18 = vpop.f32.mrf.mxu1 }
  0xdb   : > { %v1237_v19 = vpop.f32.mrf.mxu0 }
  0xdc   : > { %v415_v32 = vadd.f32 %v1243_v15, %v1237_v19 }
  0xdd   : > { %v346_v20 = vpop.f32.mrf.mxu0  ;;  %v1255_v21 = vpop.f32.mrf.mxu1 }
  0xde   : > { %v407_v35 = vadd.f32 %v406_v16, %v346_v20 }
  0xdf   : > { %v1238_v22 = vpop.f32.mrf.mxu0  ;;  %v555_v23 = vpop.f32.mrf.mxu1 }
  0xe1   : > { %v349_v24 = vpop.f32.mrf.mxu0  ;;  %v1256_v25 = vpop.f32.mrf.mxu1 }
  0xe2   : > { %v410_v42 = vadd.f32 %v409_v18, %v349_v24 }
  0xe3   : > { %v1249_v26 = vpop.f32.mrf.mxu0  ;;  %v558_v27 = vpop.f32.mrf.mxu1 }
  0xe4   : > { %v493_v36 = vadd.f32 %v1249_v26, %v415_v32 }
  0xe5   : > { %v477_v28 = vpop.f32.mrf.mxu0  ;;  %v1267_v29 = vpop.f32.mrf.mxu1 }
  0xe6   : > { %v491_v39 = vadd.f32 %v477_v28, %v407_v35  ;;  %v571_v43 = vadd.f32 %v1255_v21, %v493_v36 }
  0xe7   : > { %v1250_v30 = vpop.f32.mrf.mxu0  ;;  %v711_v31 = vpop.f32.mrf.mxu1 }
  0xe8   : > { %v569_v46 = vadd.f32 %v555_v23, %v491_v39 }
  0xe9   : > { %v480_v33 = vpop.f32.mrf.mxu0  ;;  %v1268_v34 = vpop.f32.mrf.mxu1 }
  0xea   : > { %v492_v47 = vadd.f32 %v480_v33, %v410_v42 }
  0xeb   : > { %v1261_v37 = vpop.f32.mrf.mxu0  ;;  %v714_v38 = vpop.f32.mrf.mxu1 }
  0xec   : > { %v659_v48 = vadd.f32 %v1261_v37, %v571_v43  ;;  %v570_v53 = vadd.f32 %v558_v27, %v492_v47 }
  0xed   : > { %v643_v40 = vpop.f32.mrf.mxu0  ;;  %v1279_v41 = vpop.f32.mrf.mxu1 }
  0xee   : > { %v657_v51 = vadd.f32 %v643_v40, %v569_v46  ;;  %v727_v54 = vadd.f32 %v1267_v29, %v659_v48 }
  0xef   : > { %v1262_v44 = vpop.f32.mrf.mxu0  ;;  %v883_v45 = vpop.f32.mrf.mxu1 }
  0xf0   : > { %v725_v56 = vadd.f32 %v711_v31, %v657_v51 }
  0xf1   : > { %v646_v49 = vpop.f32.mrf.mxu0  ;;  %v1280_v50 = vpop.f32.mrf.mxu1 }
  0xf2   : > { %v658_v57 = vadd.f32 %v646_v49, %v570_v53 }
  0xf3   : > { %v1273_v52 = vpop.f32.mrf.mxu0  ;;  %v886_v9 = vpop.f32.mrf.mxu1 }
  0xf4   : > { %v811_v58 = vadd.f32 %v1273_v52, %v727_v54  ;;  %v726_v62 = vadd.f32 %v714_v38, %v658_v57 }
  0xf5   : > { %v795_v55 = vpop.f32.mrf.mxu0 }
  0xf6   : > { %v809_v60 = vadd.f32 %v795_v55, %v725_v56  ;;  %v899_v63 = vadd.f32 %v1279_v41, %v811_v58 }
  0xf7   : > { %v1274_v59 = vpop.f32.mrf.mxu0 }
  0xf8   : > { %v897_v2 = vadd.f32 %v883_v45, %v809_v60 }
  0xf9   : > { %v798_v61 = vpop.f32.mrf.mxu0 }
  0xfa   : > { %v810_v3 = vadd.f32 %v798_v61, %v726_v62 }
  0xfb   : > { %v1285_v0 = vpop.f32.mrf.mxu0 }
  0xfc   : > { %v972_v4 = vadd.f32 %v1285_v0, %v899_v63  ;;  %v898_v11 = vadd.f32 %v886_v9, %v810_v3 }
  0xfd   : > { %v956_v6 = vpop.f32.mrf.mxu0 }
  0xfe   : > { %v982_v7 = vmul.f32 %v1196_v1, %v972_v4  ;;  %v970_v8 = vadd.f32 %v956_v6, %v897_v2 }
  0xff   : > { %v1286_v10 = vpop.f32.mrf.mxu0 }
 0x100   : > { %v992_v12 = vadd.f32 %v1197_v5, %v982_v7  ;;  %v980_v13 = vmul.f32 %v1196_v1, %v970_v8 }
 0x101   : > { %v959_v14 = vpop.f32.mrf.mxu0 }
 0x102   : > { %v995_v15 = vmax.f32 %v992_v12, 0.0  ;;  %v990_v16 = vadd.f32 %v1197_v5, %v980_v13  ;;  %v971_v17 = vadd.f32 %v959_v14, %v898_v11 }
 0x104   : > { %v1205_v18 = vpack.c.bf16 %v995_v15, %v995_v15  ;;  %v993_v19 = vmax.f32 %v990_v16, 0.0  ;;  %v981_v20 = vmul.f32 %v1196_v1, %v971_v17 }
 0x106   : > { %1012 = vst.msk [vmem:[%s262_s26 + $0x8] sm:$0xf] %vm1009_vm7, %v1205_v18  ;;  %v1203_v21 = vpack.c.bf16 %v993_v19, %v993_v19  ;;  %v991_v22 = vadd.f32 %v1197_v5, %v981_v20 }
 0x108   : > { %1010 = vst.msk [vmem:[%s262_s26] sm:$0xf] %vm1009_vm7, %v1203_v21  ;;  %v994_v23 = vmax.f32 %v991_v22, 0.0 }
 0x10a   : > { %v1204_v24 = vpack.c.bf16 %v994_v23, %v994_v23 }
 0x10c   : > { %1011 = vst.msk [vmem:[%s262_s26 + $0x4] sm:$0xf] %vm1009_vm7, %v1204_v24 }
 0x10d PF: > { %s14_s17 = sadd.s32 1, %s1357_s17   ;;  %s1533_s15 = smov %s1353_s16 }
 0x10e   : > { %p11_p5 = scmp.ge.s32.totalorder %s14_s17, 4   ;;  %s1534_s16 = smov %s1536_s18 }
 0x110   :  { %13 = sbr.rel (!%p11_p5) target bundleno = 2 (0x2), region = 83 }

// kernel: acdnet_forward.18
= control target key start
LH: loop header
LB: loop body
LE: loop exit
PB: predicated region body
PF: predicated region fallthrough
CT: control target
= control target key end

     0   :  { %s1332_s15 = smov 0   ;;  %s1334_s16 = smov 0   ;;  %s1486_s0 = inlined_call_operand.vmem [shape: bf16[2,42,8], index: 0, kind: input, shape index: {}]   ;;  %s1487_s1 = inlined_call_operand.vmem [shape: bf16[9,8,16], index: 1, kind: input, shape index: {}]   ;;  %s1488_s2 = inlined_call_operand.vmem [shape: f32[1,16], index: 2, kind: input, shape index: {}]   ;;  %s1489_s3 = inlined_call_operand.vmem [shape: f32[1,16], index: 3, kind: input, shape index: {}]   ;;  %s1490_s4 = inlined_call_operand.vmem [shape: bf16[2,24,16], index: 4, kind: output, shape index: {}]  }
   0x1   :  { %s1336_s17 = smov 0  }
   0x2 LB: > { %s26_s18 = sadd.s32 1, %s1301_s16  ;;  %p1102_p0 = scmp.ge.s32.totalorder %s1305_s17, 1  ;;  %s1305_s17 = sphi %s1336_s17, %s14_s17   ;;  %s1301_s16 = sphi %s1334_s16, %s1492_s16   ;;  %s1297_s15 = sphi %s1332_s15, %s1491_s15  }
   0x3   : > { %p28_p1 = scmp.ge.s32.totalorder %s26_s18, 2  ;;  %p201_p2 = scmp.lt.s32.totalorder %s1305_s17, 3 }
   0x5   : > { %s1494_s18 = smov (%p28_p1, %s26_s18), 0  ;;  %p202_p3 = pnand %p1102_p0, %p201_p2 }
   0x6   : > { %p240_p4 = scmp.lt.s32.totalorder (!%p202_p3), %s1297_s15, 1 }
   0x7   : > { %205 = sbr.rel (%p202_p3) target bundleno = 270 (0x10e), region = 36 }
   0xc   : > { %v1105_v0 = vld [vmem:[%s1487_s1 + $0x4] sm:$0xf]  ;;  %vm304_vm0 = vcmask 1043456   ;;  %v267_v1 = vld [vmem:[%s1487_s1] sm:$0xf]  ;;  %s1496_s15 = smov (!%p240_p4, %s1297_s15), 1 }
   0xd   : > { %1235 = vmatprep.subr.msk.bf16.mxu0 %vm304_vm0, %v1105_v0  ;;  %v306_v2 = vsel %vm304_vm0, %v1105_v0, 0  ;;  %1236 = vmatprep.subr.msk.bf16.mxu1 %vm304_vm0, %v267_v1  ;;  %v363_v3 = vsel %vm304_vm0, %v267_v1, 0  ;;  %v1113_v4 = vld [vmem:[%s1487_s1 + $0x8] sm:$0xf]  ;;  %v1117_v5 = vld [vmem:[%s1487_s1 + $0xc] sm:$0xf] }
   0xe   : > { %1182 = vmatpush3.bf16.msra.mxu0 %v306_v2  ;;  %1188 = vmatpush3.bf16.msra.mxu1 %v363_v3  ;;  %s1244_s27 = smul.u32 24, %s1496_s15  ;;  %vm281_vm1 = vsmask.f32 7424  ;;  %vm297_vm2 = vcmask 64512   ;;  %v504_v6 = vsel %vm304_vm0, %v1117_v5, 0  ;;  %vm419_vm3 = vcmask 1046528  }
   0xf   : > { %1237 = vmatprep.subr.msk.bf16.mxu0 %vm304_vm0, %v1113_v4  ;;  %1238 = vmatprep.subr.msk.bf16.mxu1 %vm304_vm0, %v1117_v5  ;;  %vm493_vm4 = vcmask 1044480   ;;  %v1126_v23 = vld [vmem:[%s1487_s1 + $0x14] sm:$0xf]  ;;  %v430_v39 = vsel %vm304_vm0, %v1113_v4, 0  ;;  %v1122_v52 = vld [vmem:[%s1487_s1 + $0x10] sm:$0xf] }
  0x10   : > { %s1374_s30 = scalar_lea.vmem %s1486_s0, %s1244_s27  ;;  %v652_v55 = vsel %vm304_vm0, %v1126_v23, 0  ;;  %v1136_v57 = vld [vmem:[%s1487_s1 + $0x1c] sm:$0xf]  ;;  %vm563_vm5 = vsmask.f32 4352  ;;  %vm721_vm7 = vcmask 1045504  }
  0x11   : > { %v264_v7 = vld [vmem:[%s1374_s30] sm:$0xf]  ;;  %v1379_v8 = vld [vmem:[%s1374_s30 + $0x4] sm:$0xf]  ;;  %v1382_v9 = vld [vmem:[%s1374_s30 + $0x8] sm:$0xf] }
  0x12   : > { %v268_v10 = vld [vmem:[%s1374_s30 + $0xc] sm:$0x1]  ;;  %v1106_v11 = vcombine.low %v264_v7, %v1379_v8  ;;  %v1110_v12 = vcombine.low %v1382_v9, %v1382_v9  ;;  %v413_v13 = vld [vmem:[%s1374_s30] sm:$0xe]  ;;  %v705_v33 = vld [vmem:[%s1374_s30 + $0x4] sm:$0xc]  ;;  %v1127_v53 = vcombine.low %v1379_v8, %v1382_v9 }
  0x13   : > { %v483_v14 = vld [vmem:[%s1374_s30] sm:$0x8]  ;;  %v1391_v15 = vcombine.low %v1382_v9, %v268_v10  ;;  %v1114_v16 = vcombine.low %v413_v13, %v1379_v8  ;;  %v484_v17 = vld [vmem:[%s1374_s30 + $0xc] sm:$0x7]  ;;  %v1413_v37 = vld [vmem:[%s1374_s30 + $0x8] sm:$0xf] }
  0x14   : > { %v1118_v18 = vcombine.low %v483_v14, %v1379_v8  ;;  %v1397_v19 = vld [vmem:[%s1374_s30 + $0xc] sm:$0xf]  ;;  %v283_v20 = vshrl.u32 %v1106_v11, 16  ;;  %v285_v21 = vshll.u32 %v1106_v11, 16  ;;  %1189 = vmatprep.mubr.msk.bf16.mxu1 %vm297_vm2, %v1106_v11  ;;  %v1119_v22 = vcombine.low %v1382_v9, %v484_v17  ;;  %v785_v43 = vld [vmem:[%s1374_s30 + $0x10] sm:$0x7] }
  0x15   : > { %v1123_v24 = vcombine.low %v1382_v9, %v1397_v19  ;;  %v290_v25 = vshll.u32 %v1391_v15, 16  ;;  %v294_v26 = vshrl.u32 %v1391_v15, 16  ;;  %1190 = vmatmul.mubr.msk.bf16.vlgmr.msra.gmra.mxu1 %vm297_vm2, %v1110_v12  ;;  %v420_v27 = vrot.slane %v1114_v16, 1  ;;  %v707_v42 = vld [vmem:[%s1374_s30 + $0xc] sm:$0xf]  ;;  %s1245_s23 = smul.u32 12, %s1496_s15 }
  0x16   : > { %v421_v28 = vrot.slane %v1391_v15, 1  ;;  %v287_v29 = vrot.slane %v285_v21, 1  ;;  %1200 = vmatpush3.bf16.msra.mxu1 %v504_v6  ;;  %v494_v30 = vrot.slane %v1118_v18, 3  ;;  %v495_v31 = vrot.slane %v1119_v22, 3  ;;  %v708_v0 = vld [vmem:[%s1374_s30 + $0x10] sm:$0x3] }
  0x17   : > { %v565_v32 = vshrl.u32 %v1118_v18, 16  ;;  %v292_v34 = vrot.slane %v290_v25, 1  ;;  %1240 = vmatprep.subr.msk.bf16.mxu1 %vm304_vm0, %v1126_v23  ;;  %v568_v35 = vshll.u32 %v1118_v18, 16  ;;  %v573_v36 = vshrl.u32 %v1123_v24, 16  ;;  %v1131_v10 = vld [vmem:[%s1487_s1 + $0x18] sm:$0xf]  ;;  %s262_s26 = scalar_lea.vmem %s1490_s4, %s1245_s23 }
  0x18   : > { %v288_v38 = vor.u32 %v287_v29, %v283_v20  ;;  %v496_v40 = vsel %vm493_vm4, %v494_v30, %v495_v31  ;;  %v576_v41 = vshll.u32 %v1123_v24, 16  ;;  %v422_v45 = vsel %vm419_vm3, %v420_v27, %v421_v28  ;;  %v869_v15 = vld [vmem:[%s1374_s30 + $0x4] sm:$0x8] }
  0x19   : > { %v296_v44 = vor.u32 %v294_v26, %v292_v34  ;;  %1201 = vmatprep.mubr.msk.bf16.mxu1 %vm297_vm2, %v496_v40  ;;  %v567_v46 = vrot.slane %v565_v32, 3  ;;  %v570_v47 = vrot.slane %v568_v35, 4  ;;  %v575_v49 = vrot.slane %v573_v36, 3 }
  0x1a   : > { %v293_v48 = vsel %vm281_vm1, %v288_v38, %v292_v34  ;;  %v578_v50 = vrot.slane %v576_v41, 4  ;;  %v1132_v51 = vcombine.low %v705_v33, %v1413_v37  ;;  %v1137_v54 = vcombine.low %v707_v42, %v785_v43 }
  0x1b   : > { %1183 = vmatprep.mubr.msk.bf16.mxu0 %vm297_vm2, %v293_v48  ;;  %v571_v61 = vor.u32 %v570_v47, %v567_v46  ;;  %vm791_vm6 = vsmask.f32 5376  ;;  %v588_v6 = vsel %vm304_vm0, %v1122_v52, 0  ;;  %v1128_v8 = vcombine.low %v1397_v19, %v1397_v19  ;;  %v1140_v19 = vld [vmem:[%s1487_s1 + $0x20] sm:$0xf] }
  0x1c   : > { %1184 = vmatmul.mubr.msk.bf16.vlgmr.msra.gmra.mxu0 %vm297_vm2, %v296_v44  ;;  %v793_v56 = vshrl.u32 %v1132_v51, 16  ;;  %v796_v58 = vshll.u32 %v1132_v51, 16  ;;  %v801_v59 = vshrl.u32 %v1137_v54, 16  ;;  %v804_v60 = vshll.u32 %v1137_v54, 16 }
  0x1d   : > { %1194 = vmatpush3.bf16.msra.mxu0 %v430_v39  ;;  %1195 = vmatprep.mubr.msk.bf16.mxu0 %vm297_vm2, %v422_v45  ;;  %v579_v62 = vor.u32 %v578_v50, %v575_v49  ;;  %v1133_v9 = vcombine.low %v707_v42, %v708_v0  ;;  %v816_v11 = vsel %vm304_vm0, %v1136_v57, 0  ;;  %v722_v13 = vrot.slane %v1132_v51, 2 }
  0x1e   : > { %1239 = vmatprep.subr.msk.bf16.mxu0 %vm304_vm0, %v1122_v52  ;;  %1202 = vmatmul.mubr.msk.bf16.vlgmr.msra.gmra.mxu1 %vm297_vm2, %v495_v31  ;;  %v795_v63 = vrot.slane %v793_v56, 2  ;;  %v798_v1 = vrot.slane %v796_v58, 3  ;;  %v803_v2 = vrot.slane %v801_v59, 2  ;;  %v806_v3 = vrot.slane %v804_v60, 3 }
  0x1f   : > { %1212 = vmatpush3.bf16.msra.mxu1 %v652_v55  ;;  %1213 = vmatprep.mubr.msk.bf16.mxu1 %vm297_vm2, %v1127_v53  ;;  %v580_v7 = vsel %vm563_vm5, %v571_v61, %v579_v62  ;;  %v723_v14 = vrot.slane %v1133_v9, 2  ;;  %v732_v16 = vsel %vm304_vm0, %v1131_v10, 0  ;;  %v1141_v18 = vcombine.low %v869_v15, %v1413_v37 }
  0x20   : > { %1242 = vmatprep.subr.msk.bf16.mxu1 %vm304_vm0, %v1136_v57  ;;  %v799_v4 = vor.u32 %v798_v1, %v795_v63  ;;  %v807_v5 = vor.u32 %v806_v3, %v803_v2  ;;  %v876_v21 = vrot.slane %v1137_v54, 3  ;;  %v885_v22 = vsel %vm304_vm0, %v1140_v19, 0 }
  0x21   : > { %v724_v17 = vsel %vm721_vm7, %v722_v13, %v723_v14  ;;  %v875_v20 = vrot.slane %v1141_v18, 3  ;;  %vm974_vm8 = vcmask 125952  }
  0x22   : > { %v808_v12 = vsel %vm791_vm6, %v799_v4, %v807_v5 }
  0x23   : > { %v877_v23 = vsel %vm493_vm4, %v875_v20, %v876_v21 }
  0x24   : > { %1196 = vmatmul.mubr.msk.bf16.vlgmr.msra.gmra.mxu0 %vm297_vm2, %v421_v28 }
  0x25   : > { %1206 = vmatpush3.bf16.msra.mxu0 %v588_v6  ;;  %1207 = vmatprep.mubr.msk.bf16.mxu0 %vm297_vm2, %v580_v7 }
  0x26   : > { %1241 = vmatprep.subr.msk.bf16.mxu0 %vm304_vm0, %v1131_v10  ;;  %1214 = vmatmul.mubr.msk.bf16.vlgmr.msra.gmra.mxu1 %vm297_vm2, %v1128_v8  ;;  %v1144_v10 = vld [vmem:[%s1488_s2] ss:$0 sm:$0xff] }
  0x27   : > { %1224 = vmatpush3.bf16.msra.mxu1 %v816_v11  ;;  %1225 = vmatprep.mubr.msk.bf16.mxu1 %vm297_vm2, %v808_v12 }
  0x2c   : > { %1208 = vmatmul.mubr.msk.bf16.vlgmr.msra.gmra.mxu0 %vm297_vm2, %v579_v62 }
  0x2d   : > { %1218 = vmatpush3.bf16.msra.mxu0 %v732_v16  ;;  %1219 = vmatprep.mubr.msk.bf16.mxu0 %vm297_vm2, %v724_v17 }
  0x2e   : > { %1243 = vmatprep.subr.msk.bf16.mxu0 %vm304_vm0, %v1140_v19  ;;  %1226 = vmatmul.mubr.msk.bf16.vlgmr.msra.gmra.mxu1 %vm297_vm2, %v807_v5 }
  0x34   : > { %1220 = vmatmul.mubr.msk.bf16.vlgmr.msra.gmra.mxu0 %vm297_vm2, %v723_v14  ;;  %v1145_v14 = vld [vmem:[%s1489_s3] ss:$0 sm:$0xff] }
  0x35   : > { %1230 = vmatpush3.bf16.msra.mxu0 %v885_v22  ;;  %1231 = vmatprep.mubr.msk.bf16.mxu0 %vm297_vm2, %v877_v23 }
  0x3c   : > { %1232 = vmatmul.mubr.msk.bf16.vlgmr.msra.gmra.mxu0 %vm297_vm2, %v876_v21 }
  0xd5   : > { %v1191_v24 = vpop.f32.mrf.mxu1 }
  0xd7   : > { %v399_v25 = vpop.f32.mrf.mxu1 }
  0xd9   : > { %v1192_v26 = vpop.f32.mrf.mxu1 }
  0xdb   : > { %v402_v27 = vpop.f32.mrf.mxu1 }
  0xdc   : > { %v1185_v28 = vpop.f32.mrf.mxu0 }
  0xdd   : > { %v408_v41 = vadd.f32 %v1191_v24, %v1185_v28 }
  0xde   : > { %v342_v29 = vpop.f32.mrf.mxu0  ;;  %v1203_v30 = vpop.f32.mrf.mxu1 }
  0xdf   : > { %v400_v44 = vadd.f32 %v399_v25, %v342_v29 }
  0xe0   : > { %v1186_v31 = vpop.f32.mrf.mxu0  ;;  %v540_v32 = vpop.f32.mrf.mxu1 }
  0xe2   : > { %v345_v33 = vpop.f32.mrf.mxu0  ;;  %v1204_v34 = vpop.f32.mrf.mxu1 }
  0xe3   : > { %v403_v51 = vadd.f32 %v402_v27, %v345_v33 }
  0xe4   : > { %v1197_v35 = vpop.f32.mrf.mxu0  ;;  %v543_v36 = vpop.f32.mrf.mxu1 }
  0xe5   : > { %v482_v45 = vadd.f32 %v1197_v35, %v408_v41 }
  0xe6   : > { %v466_v37 = vpop.f32.mrf.mxu0  ;;  %v1215_v38 = vpop.f32.mrf.mxu1 }
  0xe7   : > { %v480_v48 = vadd.f32 %v466_v37, %v400_v44  ;;  %v556_v52 = vadd.f32 %v1203_v30, %v482_v45 }
  0xe8   : > { %v1198_v39 = vpop.f32.mrf.mxu0  ;;  %v688_v40 = vpop.f32.mrf.mxu1 }
  0xe9   : > { %v554_v55 = vadd.f32 %v540_v32, %v480_v48 }
  0xea   : > { %v469_v42 = vpop.f32.mrf.mxu0  ;;  %v1216_v43 = vpop.f32.mrf.mxu1 }
  0xeb   : > { %v481_v56 = vadd.f32 %v469_v42, %v403_v51 }
  0xec   : > { %v1209_v46 = vpop.f32.mrf.mxu0  ;;  %v691_v47 = vpop.f32.mrf.mxu1 }
  0xed   : > { %v640_v57 = vadd.f32 %v1209_v46, %v556_v52  ;;  %v555_v62 = vadd.f32 %v543_v36, %v481_v56 }
  0xee   : > { %v624_v49 = vpop.f32.mrf.mxu0  ;;  %v1227_v50 = vpop.f32.mrf.mxu1 }
  0xef   : > { %v638_v60 = vadd.f32 %v624_v49, %v554_v55  ;;  %v704_v63 = vadd.f32 %v1215_v38, %v640_v57 }
  0xf0   : > { %v1210_v53 = vpop.f32.mrf.mxu0  ;;  %v852_v54 = vpop.f32.mrf.mxu1 }
  0xf1   : > { %v702_v1 = vadd.f32 %v688_v40, %v638_v60 }
  0xf2   : > { %v627_v58 = vpop.f32.mrf.mxu0  ;;  %v1228_v59 = vpop.f32.mrf.mxu1 }
  0xf3   : > { %v639_v2 = vadd.f32 %v627_v58, %v555_v62 }
  0xf4   : > { %v1221_v61 = vpop.f32.mrf.mxu0  ;;  %v855_v18 = vpop.f32.mrf.mxu1 }
  0xf5   : > { %v784_v3 = vadd.f32 %v1221_v61, %v704_v63  ;;  %v703_v7 = vadd.f32 %v691_v47, %v639_v2 }
  0xf6   : > { %v768_v0 = vpop.f32.mrf.mxu0 }
  0xf7   : > { %v782_v5 = vadd.f32 %v768_v0, %v702_v1  ;;  %v868_v8 = vadd.f32 %v1227_v50, %v784_v3 }
  0xf8   : > { %v1222_v4 = vpop.f32.mrf.mxu0 }
  0xf9   : > { %v866_v11 = vadd.f32 %v852_v54, %v782_v5 }
  0xfa   : > { %v771_v6 = vpop.f32.mrf.mxu0 }
  0xfb   : > { %v783_v12 = vadd.f32 %v771_v6, %v703_v7 }
  0xfc   : > { %v1233_v9 = vpop.f32.mrf.mxu0 }
  0xfd   : > { %v937_v13 = vadd.f32 %v1233_v9, %v868_v8  ;;  %v867_v20 = vadd.f32 %v855_v18, %v783_v12 }
  0xfe   : > { %v921_v15 = vpop.f32.mrf.mxu0 }
  0xff   : > { %v947_v16 = vmul.f32 %v1144_v10, %v937_v13  ;;  %v935_v17 = vadd.f32 %v921_v15, %v866_v11 }
 0x100   : > { %v1234_v19 = vpop.f32.mrf.mxu0 }
 0x101   : > { %v957_v21 = vadd.f32 %v1145_v14, %v947_v16  ;;  %v945_v22 = vmul.f32 %v1144_v10, %v935_v17 }
 0x102   : > { %v924_v23 = vpop.f32.mrf.mxu0 }
 0x103   : > { %v960_v24 = vmax.f32 %v957_v21, 0.0  ;;  %v955_v25 = vadd.f32 %v1145_v14, %v945_v22  ;;  %v936_v26 = vadd.f32 %v924_v23, %v867_v20 }
 0x105   : > { %v1153_v27 = vpack.c.bf16 %v960_v24, %v960_v24  ;;  %v958_v28 = vmax.f32 %v955_v25, 0.0  ;;  %v946_v29 = vmul.f32 %v1144_v10, %v936_v26 }
 0x107   : > { %977 = vst.msk [vmem:[%s262_s26 + $0x8] sm:$0xf] %vm974_vm8, %v1153_v27  ;;  %v1151_v30 = vpack.c.bf16 %v958_v28, %v958_v28  ;;  %v956_v31 = vadd.f32 %v1145_v14, %v946_v29 }
 0x109   : > { %975 = vst.msk [vmem:[%s262_s26] sm:$0xf] %vm974_vm8, %v1151_v30  ;;  %v959_v32 = vmax.f32 %v956_v31, 0.0 }
 0x10b   : > { %v1152_v33 = vpack.c.bf16 %v959_v32, %v959_v32 }
 0x10d   : > { %976 = vst.msk [vmem:[%s262_s26 + $0x4] sm:$0xf] %vm974_vm8, %v1152_v33 }
 0x10e PF: > { %s14_s17 = sadd.s32 1, %s1305_s17   ;;  %s1491_s15 = smov %s1301_s16 }
 0x10f   : > { %p11_p5 = scmp.ge.s32.totalorder %s14_s17, 4   ;;  %s1492_s16 = smov %s1494_s18 }
 0x111   :  { %13 = sbr.rel (!%p11_p5) target bundleno = 2 (0x2), region = 83 }

// kernel: acdnet_forward.20
= control target key start
LH: loop header
LB: loop body
LE: loop exit
PB: predicated region body
PF: predicated region fallthrough
CT: control target
= control target key end

     0   :  { %s1153_s15 = smov 0   ;;  %s1155_s16 = smov 0   ;;  %s1272_s0 = inlined_call_operand.vmem [shape: bf16[2,20,16], index: 0, kind: input, shape index: {}]   ;;  %s1273_s1 = inlined_call_operand.vmem [shape: bf16[9,16,16], index: 1, kind: input, shape index: {}]   ;;  %s1274_s2 = inlined_call_operand.vmem [shape: f32[1,16], index: 2, kind: input, shape index: {}]   ;;  %s1275_s3 = inlined_call_operand.vmem [shape: f32[1,16], index: 3, kind: input, shape index: {}]   ;;  %s1276_s4 = inlined_call_operand.vmem [shape: bf16[2,8,16], index: 4, kind: output, shape index: {}]  }
   0x1   :  { %s1157_s17 = smov 0  }
   0x2 LB: > { %s26_s18 = sadd.s32 1, %s1120_s16  ;;  %p939_p0 = scmp.ge.s32.totalorder %s1124_s17, 1  ;;  %s1124_s17 = sphi %s1157_s17, %s14_s17   ;;  %s1120_s16 = sphi %s1155_s16, %s1278_s16   ;;  %s1116_s15 = sphi %s1153_s15, %s1277_s15  }
   0x3   : > { %p28_p1 = scmp.ge.s32.totalorder %s26_s18, 2  ;;  %p201_p2 = scmp.lt.s32.totalorder %s1124_s17, 3 }
   0x5   : > { %s1280_s18 = smov (%p28_p1, %s26_s18), 0  ;;  %p202_p3 = pnand %p939_p0, %p201_p2 }
   0x6   : > { %p239_p4 = scmp.lt.s32.totalorder (!%p202_p3), %s1116_s15, 1 }
   0x7   : > { %205 = sbr.rel (%p202_p3) target bundleno = 261 (0x105), region = 36 }
   0xc   : > { %v1086_v0 = vld [vmem:[%s1273_s1 + $0x8] sm:$0xff]   ;;  %v1126_v1 = vmov 0.0   ;;  %v1087_v2 = vld [vmem:[%s1273_s1] sm:$0xff]   ;;  %vm1127_vm0 = vmmov 0   ;;  %s1282_s15 = smov (!%p239_p4, %s1116_s15), 1  ;;  %vm287_vm1 = vcmask 130048  }
   0xd   : > { %1005 = vmatprep.subr.bf16.mxu0 %v1126_v1  ;;  %1011 = vmatprep.subr.bf16.mxu1 %v1126_v1  ;;  %s1059_s23 = smul.u32 12, %s1282_s15  ;;  %v1090_v3 = vld [vmem:[%s1273_s1 + $0x18] sm:$0xff]   ;;  %v1089_v12 = vld [vmem:[%s1273_s1 + $0x10] sm:$0xff]   ;;  %v1095_v21 = vld [vmem:[%s1273_s1 + $0x28] sm:$0xff]   ;;  %vm819_vm2 = vcmask 125952  }
   0xe   : > { %1006 = vmatpush3.bf16.msra.mxu0 %v1086_v0  ;;  %1007 = vmatprep.mubr.msk.bf16.mxu0 %vm1127_vm0, %v1126_v1  ;;  %v1094_v31 = vld [vmem:[%s1273_s1 + $0x20] sm:$0xff]   ;;  %v1098_v32 = vld [vmem:[%s1273_s1 + $0x38] sm:$0xff]   ;;  %v1097_v39 = vld [vmem:[%s1273_s1 + $0x30] sm:$0xff]  }
   0xf   : > { %1012 = vmatpush3.bf16.msra.mxu1 %v1087_v2  ;;  %1013 = vmatprep.mubr.msk.bf16.mxu1 %vm1127_vm0, %v1126_v1  ;;  %s1194_s28 = scalar_lea.vmem %s1272_s0, %s1059_s23  ;;  %v1100_v41 = vld [vmem:[%s1273_s1 + $0x40] sm:$0xff]   ;;  %s941_s23 = sshll.u32 %s1282_s15, 2 }
  0x10   : > { %1017 = vmatprep.subr.bf16.mxu0 %v1126_v1  ;;  %1023 = vmatprep.subr.bf16.mxu1 %v1126_v1  ;;  %v262_v4 = vld [vmem:[%s1194_s28] sm:$0xf]  ;;  %v265_v5 = vld [vmem:[%s1194_s28 + $0x4] sm:$0x1]  ;;  %v677_v19 = vld [vmem:[%s1194_s28 + $0x8] sm:$0x1]  ;;  %s260_s26 = scalar_lea.vmem %s1276_s4, %s941_s23 }
  0x11   : > { %v944_v6 = vcombine.low %v262_v4, %v265_v5  ;;  %v438_v7 = vld [vmem:[%s1194_s28] sm:$0xc]  ;;  %v439_v8 = vld [vmem:[%s1194_s28 + $0x4] sm:$0x3] }
  0x12   : > { %1014 = vmatmul.mubr.msk.bf16.vlgmr.msra.gmra.mxu1 %vm287_vm1, %v262_v4  ;;  %v956_v9 = vcombine.low %v438_v7, %v439_v8  ;;  %v380_v14 = vld [vmem:[%s1194_s28] sm:$0xe]  ;;  %v499_v16 = vld [vmem:[%s1194_s28 + $0x4] sm:$0x7] }
  0x13   : > { %1024 = vmatpush3.bf16.msra.mxu1 %v1090_v3  ;;  %1025 = vmatprep.mubr.msk.bf16.mxu1 %vm1127_vm0, %v1126_v1  ;;  %v275_v10 = vshrl.u32 %v944_v6, 16  ;;  %v277_v11 = vshll.u32 %v944_v6, 16  ;;  %v564_v17 = vld [vmem:[%s1194_s28] sm:$0x8]  ;;  %v676_v18 = vld [vmem:[%s1194_s28 + $0x4] sm:$0xf]  ;;  %v951_v22 = vcombine.low %v380_v14, %v265_v5  ;;  %v961_v23 = vcombine.low %v438_v7, %v499_v16 }
  0x14   : > { %1035 = vmatprep.subr.bf16.mxu1 %v1126_v1  ;;  %v448_v15 = vrot.slane %v956_v9, 2  ;;  %v966_v24 = vcombine.low %v564_v17, %v499_v16  ;;  %v975_v25 = vcombine.low %v676_v18, %v677_v19  ;;  %v622_v40 = vld [vmem:[%s1194_s28 + $0x4] sm:$0xf] }
  0x15   : > { %v279_v13 = vrot.slane %v277_v11, 1  ;;  %v387_v26 = vrot.slane %v951_v22, 1  ;;  %v507_v27 = vshrl.u32 %v961_v23, 16  ;;  %v510_v28 = vshll.u32 %v961_v23, 16  ;;  %v743_v42 = vld [vmem:[%s1194_s28 + $0x4] sm:$0xe] }
  0x16   : > { %v571_v29 = vrot.slane %v966_v24, 3  ;;  %v689_v30 = vshll.u32 %v975_v25, 16  ;;  %v687_v35 = vshrl.u32 %v975_v25, 16  ;;  %v980_v43 = vcombine.low %v743_v42, %v677_v19  ;;  %v984_v23 = vld [vmem:[%s1275_s3] ss:$0 sm:$0xff] }
  0x17   : > { %v280_v20 = vor.u32 %v279_v13, %v275_v10  ;;  %v509_v33 = vrot.slane %v507_v27, 2  ;;  %v512_v34 = vrot.slane %v510_v28, 3 }
  0x18   : > { %v691_v36 = vrot.slane %v689_v30, 1  ;;  %v750_v44 = vrot.slane %v980_v43, 1 }
  0x19   : > { %1008 = vmatmul.mubr.msk.bf16.vlgmr.msra.gmra.mxu0 %vm287_vm1, %v280_v20  ;;  %v513_v37 = vor.u32 %v512_v34, %v509_v33 }
  0x1a   : > { %1026 = vmatmul.mubr.msk.bf16.vlgmr.msra.gmra.mxu1 %vm287_vm1, %v448_v15  ;;  %1018 = vmatpush3.bf16.msra.mxu0 %v1089_v12  ;;  %v692_v38 = vor.u32 %v691_v36, %v687_v35 }
  0x1b   : > { %1019 = vmatprep.mubr.msk.bf16.mxu0 %vm1127_vm0, %v1126_v1  ;;  %1029 = vmatprep.subr.bf16.mxu0 %v1126_v1 }
  0x1c   : > { %1036 = vmatpush3.bf16.msra.mxu1 %v1095_v21  ;;  %1037 = vmatprep.mubr.msk.bf16.mxu1 %vm1127_vm0, %v1126_v1  ;;  %v983_v21 = vld [vmem:[%s1274_s2] ss:$0 sm:$0xff] }
  0x1d   : > { %1047 = vmatprep.subr.bf16.mxu1 %v1126_v1 }
  0x21   : > { %1020 = vmatmul.mubr.msk.bf16.vlgmr.msra.gmra.mxu0 %vm287_vm1, %v387_v26 }
  0x22   : > { %1038 = vmatmul.mubr.msk.bf16.vlgmr.msra.gmra.mxu1 %vm287_vm1, %v571_v29  ;;  %1030 = vmatpush3.bf16.msra.mxu0 %v1094_v31 }
  0x23   : > { %1031 = vmatprep.mubr.msk.bf16.mxu0 %vm1127_vm0, %v1126_v1  ;;  %1041 = vmatprep.subr.bf16.mxu0 %v1126_v1 }
  0x24   : > { %1048 = vmatpush3.bf16.msra.mxu1 %v1098_v32  ;;  %1049 = vmatprep.mubr.msk.bf16.mxu1 %vm1127_vm0, %v1126_v1 }
  0x29   : > { %1032 = vmatmul.mubr.msk.bf16.vlgmr.msra.gmra.mxu0 %vm287_vm1, %v513_v37 }
  0x2a   : > { %1050 = vmatmul.mubr.msk.bf16.vlgmr.msra.gmra.mxu1 %vm287_vm1, %v692_v38  ;;  %1042 = vmatpush3.bf16.msra.mxu0 %v1097_v39 }
  0x2b   : > { %1043 = vmatprep.mubr.msk.bf16.mxu0 %vm1127_vm0, %v1126_v1  ;;  %1053 = vmatprep.subr.bf16.mxu0 %v1126_v1 }
  0x31   : > { %1044 = vmatmul.mubr.msk.bf16.vlgmr.msra.gmra.mxu0 %vm287_vm1, %v622_v40 }
  0x32   : > { %1054 = vmatpush3.bf16.msra.mxu0 %v1100_v41  ;;  %1055 = vmatprep.mubr.msk.bf16.mxu0 %vm1127_vm0, %v1126_v1 }
  0x39   : > { %1056 = vmatmul.mubr.msk.bf16.vlgmr.msra.gmra.mxu0 %vm287_vm1, %v750_v44 }
  0xd2   : > { %v374_v45 = vpop.f32.mrf.mxu1 }
  0xd4   : > { %v1015_v46 = vpop.f32.mrf.mxu1 }
  0xd6   : > { %v377_v47 = vpop.f32.mrf.mxu1 }
  0xd8   : > { %v1016_v48 = vpop.f32.mrf.mxu1 }
  0xd9   : > { %v325_v49 = vpop.f32.mrf.mxu0 }
  0xda   : > { %v492_v50 = vpop.f32.mrf.mxu1  ;;  %v375_v63 = vadd.f32 %v374_v45, %v325_v49 }
  0xdb   : > { %v1009_v51 = vpop.f32.mrf.mxu0 }
  0xdc   : > { %v1027_v52 = vpop.f32.mrf.mxu1 }
  0xdd   : > { %v328_v53 = vpop.f32.mrf.mxu0 }
  0xde   : > { %v495_v54 = vpop.f32.mrf.mxu1 }
  0xdf   : > { %v1010_v55 = vpop.f32.mrf.mxu0 }
  0xe0   : > { %v1028_v56 = vpop.f32.mrf.mxu1 }
  0xe1   : > { %v431_v57 = vpop.f32.mrf.mxu0 }
  0xe2   : > { %v615_v58 = vpop.f32.mrf.mxu1  ;;  %v437_v2 = vadd.f32 %v431_v57, %v375_v63 }
  0xe3   : > { %v1021_v59 = vpop.f32.mrf.mxu0 }
  0xe4   : > { %v1039_v60 = vpop.f32.mrf.mxu1  ;;  %v498_v7 = vadd.f32 %v492_v50, %v437_v2 }
  0xe5   : > { %v434_v61 = vpop.f32.mrf.mxu0 }
  0xe6   : > { %v618_v62 = vpop.f32.mrf.mxu1 }
  0xe7   : > { %v1022_v0 = vpop.f32.mrf.mxu0 }
  0xe8   : > { %v1040_v1 = vpop.f32.mrf.mxu1 }
  0xe9   : > { %v557_v3 = vpop.f32.mrf.mxu0 }
  0xea   : > { %v736_v4 = vpop.f32.mrf.mxu1  ;;  %v563_v10 = vadd.f32 %v557_v3, %v498_v7 }
  0xeb   : > { %v1033_v5 = vpop.f32.mrf.mxu0 }
  0xec   : > { %v1051_v6 = vpop.f32.mrf.mxu1  ;;  %v621_v14 = vadd.f32 %v615_v58, %v563_v10 }
  0xed   : > { %v560_v8 = vpop.f32.mrf.mxu0 }
  0xee   : > { %v739_v9 = vpop.f32.mrf.mxu1 }
  0xef   : > { %v1034_v11 = vpop.f32.mrf.mxu0 }
  0xf0   : > { %v1052_v12 = vpop.f32.mrf.mxu1 }
  0xf1   : > { %v669_v13 = vpop.f32.mrf.mxu0 }
  0xf2   : > { %v675_v16 = vadd.f32 %v669_v13, %v621_v14 }
  0xf3   : > { %v1045_v15 = vpop.f32.mrf.mxu0 }
  0xf4   : > { %v742_v19 = vadd.f32 %v736_v4, %v675_v16 }
  0xf5   : > { %v672_v17 = vpop.f32.mrf.mxu0 }
  0xf7   : > { %v1046_v18 = vpop.f32.mrf.mxu0 }
  0xf9   : > { %v794_v20 = vpop.f32.mrf.mxu0 }
  0xfa   : > { %v800_v22 = vadd.f32 %v794_v20, %v742_v19 }
  0xfb   : > { %v1057_v24 = vpop.f32.mrf.mxu0 }
  0xfc   : > { %v808_v25 = vmul.f32 %v983_v21, %v800_v22 }
  0xfd   : > { %v797_v26 = vpop.f32.mrf.mxu0 }
  0xfe   : > { %v816_v27 = vadd.f32 %v984_v23, %v808_v25 }
  0xff   : > { %v1058_v28 = vpop.f32.mrf.mxu0 }
 0x100   : > { %v817_v29 = vmax.f32 %v816_v27, 0.0 }
 0x102   : > { %v818_v30 = vpack.c.bf16 %v817_v29, %v817_v29 }
 0x104   : > { %820 = vst.msk [vmem:[%s260_s26] sm:$0xf] %vm819_vm2, %v818_v30 }
 0x105 PF: > { %s14_s17 = sadd.s32 1, %s1124_s17   ;;  %s1277_s15 = smov %s1120_s16 }
 0x106   : > { %p11_p5 = scmp.ge.s32.totalorder %s14_s17, 4   ;;  %s1278_s16 = smov %s1280_s18 }
 0x108   :  { %13 = sbr.rel (!%p11_p5) target bundleno = 2 (0x2), region = 83 }

// kernel: acdnet_forward.22
= control target key start
LH: loop header
LB: loop body
LE: loop exit
PB: predicated region body
PF: predicated region fallthrough
CT: control target
= control target key end

     0   :  { %s1142_s15 = smov 0   ;;  %s1144_s16 = smov 0   ;;  %s1255_s0 = inlined_call_operand.vmem [shape: bf16[2,12,16], index: 0, kind: input, shape index: {}]   ;;  %s1256_s1 = inlined_call_operand.vmem [shape: bf16[9,16,32], index: 1, kind: input, shape index: {}]   ;;  %s1257_s2 = inlined_call_operand.vmem [shape: f32[1,32], index: 2, kind: input, shape index: {}]   ;;  %s1258_s3 = inlined_call_operand.vmem [shape: f32[1,32], index: 3, kind: input, shape index: {}]   ;;  %s1259_s4 = inlined_call_operand.vmem [shape: bf16[2,3,32], index: 4, kind: output, shape index: {}]  }
   0x1   :  { %s1146_s17 = smov 0  }
   0x2 LB: > { %s26_s18 = sadd.s32 1, %s1109_s16  ;;  %p933_p0 = scmp.ge.s32.totalorder %s1113_s17, 1  ;;  %s1113_s17 = sphi %s1146_s17, %s14_s17   ;;  %s1109_s16 = sphi %s1144_s16, %s1261_s16   ;;  %s1105_s15 = sphi %s1142_s15, %s1260_s15  }
   0x3   : > { %p28_p1 = scmp.ge.s32.totalorder %s26_s18, 2  ;;  %p201_p2 = scmp.lt.s32.totalorder %s1113_s17, 3 }
   0x5   : > { %s1263_s18 = smov (%p28_p1, %s26_s18), 0  ;;  %p202_p3 = pnand %p933_p0, %p201_p2 }
   0x6   : > { %p239_p4 = scmp.lt.s32.totalorder (!%p202_p3), %s1105_s15, 1 }
   0x7   : > { %205 = sbr.rel (%p202_p3) target bundleno = 261 (0x105), region = 36 }
   0xc   : > { %v1078_v0 = vld [vmem:[%s1256_s1 + $0x8] sm:$0xff]   ;;  %v1115_v1 = vmov 0.0   ;;  %v1079_v2 = vld [vmem:[%s1256_s1] sm:$0xff]   ;;  %vm1116_vm0 = vmmov 0   ;;  %s1265_s15 = smov (!%p239_p4, %s1105_s15), 1  ;;  %vm284_vm1 = vcmask 130048  }
   0xd   : > { %998 = vmatprep.subr.bf16.mxu0 %v1115_v1  ;;  %1004 = vmatprep.subr.bf16.mxu1 %v1115_v1  ;;  %s979_s23 = sshll.u32 %s1265_s15, 3  ;;  %v1082_v3 = vld [vmem:[%s1256_s1 + $0x18] sm:$0xff]   ;;  %v1081_v14 = vld [vmem:[%s1256_s1 + $0x10] sm:$0xff]   ;;  %v1085_v20 = vld [vmem:[%s1256_s1 + $0x28] sm:$0xff]   ;;  %s936_s21 = sshll.u32 %s1265_s15, 1  ;;  %vm809_vm2 = vcmask 254976  }
   0xe   : > { %999 = vmatpush3.bf16.msra.mxu0 %v1078_v0  ;;  %1000 = vmatprep.mubr.msk.bf16.mxu0 %vm1116_vm0, %v1115_v1  ;;  %s1183_s28 = scalar_lea.vmem %s1255_s0, %s979_s23  ;;  %v1084_v25 = vld [vmem:[%s1256_s1 + $0x20] sm:$0xff]   ;;  %v1088_v29 = vld [vmem:[%s1256_s1 + $0x38] sm:$0xff]   ;;  %v1087_v33 = vld [vmem:[%s1256_s1 + $0x30] sm:$0xff]   ;;  %s260_s26 = scalar_lea.vmem %s1259_s4, %s936_s21  ;;  %vm810_vm3 = vsmask.f32 1280 }
   0xf   : > { %1005 = vmatpush3.bf16.msra.mxu1 %v1079_v2  ;;  %1006 = vmatprep.mubr.msk.bf16.mxu1 %vm1116_vm0, %v1115_v1  ;;  %v262_v4 = vld [vmem:[%s1183_s28] sm:$0x3]  ;;  %v1089_v23 = vld [vmem:[%s1183_s28] sm:$0x18]   ;;  %vm811_vm4 = vmand %vm809_vm2, %vm810_vm3 }
  0x10   : > { %1010 = vmatprep.subr.bf16.mxu0 %v1115_v1  ;;  %1016 = vmatprep.subr.bf16.mxu1 %v1115_v1  ;;  %v939_v5 = vcombine.low %v262_v4, %v262_v4  ;;  %v1083_v6 = vld [vmem:[%s1183_s28] ss:$0 sps:$4 sm:$0x66]   ;;  %v680_v27 = vshrl.u32 %v1089_v23, 16  ;;  %v683_v28 = vshll.u32 %v1089_v23, 16  ;;  %v625_v35 = vrot.slane %v1089_v23, 3 }
  0x11   : > { %v439_v9 = vshrl.u32 %v1083_v6, 16  ;;  %v1086_v10 = vld [vmem:[%s1183_s28] ss:$0 sps:$4 sm:$0xcc]   ;;  %v442_v11 = vshll.u32 %v1083_v6, 16  ;;  %v384_v24 = vrot.slane %v1083_v6, 1 }
  0x12   : > { %1007 = vmatmul.mubr.msk.bf16.vlgmr.msra.gmra.mxu1 %vm284_vm1, %v262_v4  ;;  %v272_v7 = vshrl.u32 %v939_v5, 16  ;;  %v274_v8 = vshll.u32 %v939_v5, 16  ;;  %v558_v17 = vshrl.u32 %v1086_v10, 16  ;;  %v561_v18 = vshll.u32 %v1086_v10, 16  ;;  %v1090_v36 = vld [vmem:[%s1256_s1 + $0x40] sm:$0xff]  }
  0x13   : > { %1017 = vmatpush3.bf16.msra.mxu1 %v1082_v3  ;;  %1018 = vmatprep.mubr.msk.bf16.mxu1 %vm1116_vm0, %v1115_v1  ;;  %v441_v13 = vrot.slane %v439_v9, 1  ;;  %v444_v15 = vrot.slane %v442_v11, 2  ;;  %v682_v30 = vrot.slane %v680_v27, 3  ;;  %v685_v31 = vrot.slane %v683_v28, 4  ;;  %v737_v37 = vld [vmem:[%s1183_s28 + $0x4] sm:$0x3] }
  0x14   : > { %1028 = vmatprep.subr.bf16.mxu1 %v1115_v1  ;;  %v276_v12 = vrot.slane %v274_v8, 1  ;;  %v560_v21 = vrot.slane %v558_v17, 2  ;;  %v563_v22 = vrot.slane %v561_v18, 3  ;;  %v503_v32 = vrot.slane %v1086_v10, 2  ;;  %v812_v23 = vld [vmem:[%s260_s26] sm:$0x3] }
  0x15   : > { %v445_v19 = vor.u32 %v444_v15, %v441_v13  ;;  %v686_v34 = vor.u32 %v685_v31, %v682_v30 }
  0x16   : > { %v277_v16 = vor.u32 %v276_v12, %v272_v7  ;;  %v564_v26 = vor.u32 %v563_v22, %v560_v21 }
  0x18   : > { %1001 = vmatmul.mubr.msk.bf16.vlgmr.msra.gmra.mxu0 %vm284_vm1, %v277_v16  ;;  %v976_v16 = vld [vmem:[%s1258_s3] ss:$0 sm:$0xff] }
  0x19   : > { %1011 = vmatpush3.bf16.msra.mxu0 %v1081_v14  ;;  %1012 = vmatprep.mubr.msk.bf16.mxu0 %vm1116_vm0, %v1115_v1  ;;  %v975_v14 = vld [vmem:[%s1257_s2] ss:$0 sm:$0xff] }
  0x1a   : > { %1022 = vmatprep.subr.bf16.mxu0 %v1115_v1  ;;  %1019 = vmatmul.mubr.msk.bf16.vlgmr.msra.gmra.mxu1 %vm284_vm1, %v445_v19 }
  0x1b   : > { %1029 = vmatpush3.bf16.msra.mxu1 %v1085_v20  ;;  %1030 = vmatprep.mubr.msk.bf16.mxu1 %vm1116_vm0, %v1115_v1 }
  0x1c   : > { %1040 = vmatprep.subr.bf16.mxu1 %v1115_v1 }
  0x20   : > { %1013 = vmatmul.mubr.msk.bf16.vlgmr.msra.gmra.mxu0 %vm284_vm1, %v384_v24 }
  0x21   : > { %1023 = vmatpush3.bf16.msra.mxu0 %v1084_v25  ;;  %1024 = vmatprep.mubr.msk.bf16.mxu0 %vm1116_vm0, %v1115_v1 }
  0x22   : > { %1034 = vmatprep.subr.bf16.mxu0 %v1115_v1  ;;  %1031 = vmatmul.mubr.msk.bf16.vlgmr.msra.gmra.mxu1 %vm284_vm1, %v564_v26 }
  0x23   : > { %1041 = vmatpush3.bf16.msra.mxu1 %v1088_v29  ;;  %1042 = vmatprep.mubr.msk.bf16.mxu1 %vm1116_vm0, %v1115_v1 }
  0x28   : > { %1025 = vmatmul.mubr.msk.bf16.vlgmr.msra.gmra.mxu0 %vm284_vm1, %v503_v32 }
  0x29   : > { %1035 = vmatpush3.bf16.msra.mxu0 %v1087_v33  ;;  %1036 = vmatprep.mubr.msk.bf16.mxu0 %vm1116_vm0, %v1115_v1 }
  0x2a   : > { %1046 = vmatprep.subr.bf16.mxu0 %v1115_v1  ;;  %1043 = vmatmul.mubr.msk.bf16.vlgmr.msra.gmra.mxu1 %vm284_vm1, %v686_v34 }
  0x30   : > { %1037 = vmatmul.mubr.msk.bf16.vlgmr.msra.gmra.mxu0 %vm284_vm1, %v625_v35 }
  0x31   : > { %1047 = vmatpush3.bf16.msra.mxu0 %v1090_v36  ;;  %1048 = vmatprep.mubr.msk.bf16.mxu0 %vm1116_vm0, %v1115_v1 }
  0x38   : > { %1049 = vmatmul.mubr.msk.bf16.vlgmr.msra.gmra.mxu0 %vm284_vm1, %v737_v37 }
  0xd2   : > { %v371_v38 = vpop.f32.mrf.mxu1 }
  0xd4   : > { %v1008_v39 = vpop.f32.mrf.mxu1 }
  0xd6   : > { %v374_v40 = vpop.f32.mrf.mxu1 }
  0xd8   : > { %v1009_v41 = vpop.f32.mrf.mxu1  ;;  %v322_v42 = vpop.f32.mrf.mxu0 }
  0xd9   : > { %v372_v55 = vadd.f32 %v371_v38, %v322_v42 }
  0xda   : > { %v1002_v43 = vpop.f32.mrf.mxu0  ;;  %v489_v44 = vpop.f32.mrf.mxu1 }
  0xdc   : > { %v325_v45 = vpop.f32.mrf.mxu0  ;;  %v1020_v46 = vpop.f32.mrf.mxu1 }
  0xde   : > { %v1003_v47 = vpop.f32.mrf.mxu0  ;;  %v492_v48 = vpop.f32.mrf.mxu1 }
  0xe0   : > { %v428_v49 = vpop.f32.mrf.mxu0  ;;  %v1021_v50 = vpop.f32.mrf.mxu1 }
  0xe1   : > { %v434_v58 = vadd.f32 %v428_v49, %v372_v55 }
  0xe2   : > { %v1014_v51 = vpop.f32.mrf.mxu0  ;;  %v608_v52 = vpop.f32.mrf.mxu1 }
  0xe3   : > { %v495_v63 = vadd.f32 %v489_v44, %v434_v58 }
  0xe4   : > { %v431_v53 = vpop.f32.mrf.mxu0  ;;  %v1032_v54 = vpop.f32.mrf.mxu1 }
  0xe6   : > { %v1015_v56 = vpop.f32.mrf.mxu0  ;;  %v611_v57 = vpop.f32.mrf.mxu1 }
  0xe8   : > { %v547_v59 = vpop.f32.mrf.mxu0  ;;  %v1033_v60 = vpop.f32.mrf.mxu1 }
  0xe9   : > { %v553_v2 = vadd.f32 %v547_v59, %v495_v63 }
  0xea   : > { %v1026_v61 = vpop.f32.mrf.mxu0  ;;  %v730_v62 = vpop.f32.mrf.mxu1 }
  0xeb   : > { %v614_v7 = vadd.f32 %v608_v52, %v553_v2 }
  0xec   : > { %v550_v0 = vpop.f32.mrf.mxu0  ;;  %v1044_v1 = vpop.f32.mrf.mxu1 }
  0xee   : > { %v1027_v3 = vpop.f32.mrf.mxu0  ;;  %v733_v4 = vpop.f32.mrf.mxu1 }
  0xf0   : > { %v669_v5 = vpop.f32.mrf.mxu0  ;;  %v1045_v6 = vpop.f32.mrf.mxu1 }
  0xf1   : > { %v675_v9 = vadd.f32 %v669_v5, %v614_v7 }
  0xf2   : > { %v1038_v8 = vpop.f32.mrf.mxu0 }
  0xf3   : > { %v736_v12 = vadd.f32 %v730_v62, %v675_v9 }
  0xf4   : > { %v672_v10 = vpop.f32.mrf.mxu0 }
  0xf6   : > { %v1039_v11 = vpop.f32.mrf.mxu0 }
  0xf8   : > { %v784_v13 = vpop.f32.mrf.mxu0 }
  0xf9   : > { %v790_v15 = vadd.f32 %v784_v13, %v736_v12 }
  0xfa   : > { %v1050_v17 = vpop.f32.mrf.mxu0 }
  0xfb   : > { %v798_v18 = vmul.f32 %v975_v14, %v790_v15 }
  0xfc   : > { %v787_v19 = vpop.f32.mrf.mxu0 }
  0xfd   : > { %v806_v20 = vadd.f32 %v976_v16, %v798_v18 }
  0xfe   : > { %v1051_v21 = vpop.f32.mrf.mxu0 }
  0xff   : > { %v807_v22 = vmax.f32 %v806_v20, 0.0 }
 0x101   : > { %v808_v24 = vpack.c.bf16 %v807_v22, %v807_v22 }
 0x103   : > { %v813_v25 = vsel %vm811_vm4, %v808_v24, %v812_v23 }
 0x104   : > { %814 = vst [vmem:[%s260_s26] sm:$0x3] %v813_v25 }
 0x105 PF: > { %s14_s17 = sadd.s32 1, %s1113_s17   ;;  %s1260_s15 = smov %s1109_s16 }
 0x106   : > { %p11_p5 = scmp.ge.s32.totalorder %s14_s17, 4   ;;  %s1261_s16 = smov %s1263_s18 }
 0x108   :  { %13 = sbr.rel (!%p11_p5) target bundleno = 2 (0x2), region = 83 }

// kernel: acdnet_forward.24
= control target key start
LH: loop header
LB: loop body
LE: loop exit
PB: predicated region body
PF: predicated region fallthrough
CT: control target
= control target key end

     0   :  { %s532_s15 = smov 0   ;;  %s534_s16 = smov 0   ;;  %s577_s0 = inlined_call_operand.vmem [shape: bf16[2,1,32], index: 0, kind: input, shape index: {}]   ;;  %s578_s1 = inlined_call_operand.vmem [shape: bf16[1,32,10], index: 1, kind: input, shape index: {}]   ;;  %s579_s2 = inlined_call_operand.vmem [shape: f32[1,10], index: 2, kind: input, shape index: {}]   ;;  %s580_s3 = inlined_call_operand.vmem [shape: f32[1,10], index: 3, kind: input, shape index: {}]   ;;  %s581_s4 = inlined_call_operand.vmem [shape: bf16[2,1,10], index: 4, kind: output, shape index: {}]  }
   0x1   :  { %s536_s17 = smov 0  }
   0x2 LB: > { %s26_s18 = sadd.s32 1, %s499_s16  ;;  %p436_p0 = scmp.ge.s32.totalorder %s503_s17, 1  ;;  %s503_s17 = sphi %s536_s17, %s14_s17   ;;  %s499_s16 = sphi %s534_s16, %s583_s16   ;;  %s495_s15 = sphi %s532_s15, %s582_s15  }
   0x3   : > { %p28_p1 = scmp.ge.s32.totalorder %s26_s18, 2  ;;  %p199_p2 = scmp.lt.s32.totalorder %s503_s17, 3 }
   0x5   : > { %s585_s18 = smov (%p28_p1, %s26_s18), 0  ;;  %p200_p3 = pnand %p436_p0, %p199_p2 }
   0x6   : > { %p234_p4 = scmp.lt.s32.totalorder (!%p200_p3), %s495_s15, 1 }
   0x7   : > { %203 = sbr.rel (%p200_p3) target bundleno = 224 (0xe0), region = 36 }
   0xc   : > { %v479_v0 = vld [vmem:[%s578_s1 + $0x8] sm:$0xff]   ;;  %v505_v1 = vmov 0.0   ;;  %v480_v2 = vld [vmem:[%s578_s1] sm:$0xff]   ;;  %vm506_vm0 = vmmov 0   ;;  %s587_s15 = smov (!%p234_p4, %s495_s15), 1  ;;  %vm271_vm1 = vcmask 261120  }
   0xd   : > { %445 = vmatprep.subr.bf16.mxu0 %v505_v1  ;;  %449 = vmatprep.mubr.msk.bf16.mxu0 %vm506_vm0, %v505_v1  ;;  %s236_s25 = scalar_lea.vmem %s577_s0, %s587_s15  ;;  %v315_v4 = vld [vmem:[%s579_s2] sm:$0x1]  ;;  %s252_s6 = scalar_lea.vmem %s581_s4, %s587_s15  ;;  %vm321_vm2 = vcmask 73728   ;;  %vm322_vm3 = vsmask.f32 256 }
   0xe   : > { %446 = vmatpush3.bf16.msra.mxu0 %v479_v0  ;;  %v254_v3 = vld [vmem:[%s236_s25] sm:$0x1]  ;;  %vm323_vm4 = vmand %vm321_vm2, %vm322_vm3 }
   0xf   : > { %447 = vmatprep.subr.bf16.mxu0 %v505_v1  ;;  %v317_v6 = vld [vmem:[%s580_s3] sm:$0x1] }
  0x10   : > { %v324_v12 = vld [vmem:[%s252_s6] sm:$0x1] }
  0x12   : > { %448 = vmatpush3.bf16.msra.mxu0 %v480_v2 }
  0x15   : > { %450 = vmatmul.mubr.msk.bf16.vlgmr.msra.gmra.mxu0 %vm271_vm1, %v254_v3 }
  0xd5   : > { %v309_v5 = vpop.f32.mrf.mxu0 }
  0xd6   : > { %v316_v7 = vmul.f32 %v315_v4, %v309_v5 }
  0xd7   : > { %v451_v8 = vpop.f32.mrf.mxu0 }
  0xd8   : > { %v318_v9 = vadd.f32 %v317_v6, %v316_v7 }
  0xd9   : > { %v312_v10 = vpop.f32.mrf.mxu0 }
  0xda   : > { %v319_v11 = vmax.f32 %v318_v9, 0.0 }
  0xdb   : > { %v452_v13 = vpop.f32.mrf.mxu0 }
  0xdc   : > { %v320_v14 = vpack.c.bf16 %v319_v11, %v319_v11 }
  0xde   : > { %v325_v15 = vsel %vm323_vm4, %v320_v14, %v324_v12 }
  0xdf   : > { %326 = vst [vmem:[%s252_s6] sm:$0x1] %v325_v15 }
  0xe0 PF: > { %s14_s17 = sadd.s32 1, %s503_s17   ;;  %s582_s15 = smov %s499_s16 }
  0xe1   : > { %p11_p5 = scmp.ge.s32.totalorder %s14_s17, 4   ;;  %s583_s16 = smov %s585_s18 }
  0xe3   :  { %13 = sbr.rel (!%p11_p5) target bundleno = 2 (0x2), region = 75 }

// kernel: acdnet_forward.25
= control target key start
LH: loop header
LB: loop body
LE: loop exit
PB: predicated region body
PF: predicated region fallthrough
CT: control target
= control target key end

     0   :  { %vm28_vm0 = vcmask 1041408   ;;  %v140_v0 = vmov 0.0   ;;  %vm141_vm1 = vmmov 0   ;;  %vm24_vm2 = vcmask 80896   ;;  %s177_s1 = inlined_call_operand.vmem [shape: f32[10,128], index: 1, kind: input, shape index: {}]   ;;  %s178_s0 = inlined_call_operand.vmem [shape: f32[8,10], index: 0, kind: input, shape index: {}]   ;;  %s179_s2 = inlined_call_operand.vmem [shape: f32[1,128], index: 2, kind: input, shape index: {}]   ;;  %s180_s3 = inlined_call_operand.vmem [shape: f32[8,128], index: 3, kind: output, shape index: {}]  }
   0x1   :  { %127 = vmatprep.subr.mxu0 %v140_v0  ;;  %v16_v1 = vld [vmem:[%s177_s1 + $0x8] sm:$0x3]  ;;  %v15_v2 = vld [vmem:[%s177_s1] sm:$0xff]  ;;  %131 = vmatprep.mubr.msk.f32.mxu0 %vm141_vm1, %v140_v0  ;;  %v102_v4 = vlaneseq }
   0x2   :  { %128 = vmatpush3.msk.msra.mxu0 %vm28_vm0, %v16_v1  ;;  %v14_v3 = vld [vmem:[%s178_s0] sm:$0xff] }
   0x3   :  { %129 = vmatprep.subr.mxu0 %v140_v0  ;;  %v103_v5 = vand.u32 127, %v102_v4  ;;  %v121_v6 = vld [vmem:[%s179_s2] ss:$0 sm:$0xff] }
   0x4   :  { %130 = vmatpush3.msra.mxu0 %v15_v2 }
   0x5   :  { %132 = vmatmul.mubr.msk.f32.vlgmr.msra.gmra.mxu0 %vm24_vm2, %v14_v3  ;;  %vm104_vm3 = vcmp.lt.s32.totalorder %v103_v5, 10 }
  0xc5   :  { %v98_v7 = vpop.f32.mrf.mxu0 }
  0xc6   :  { %v99_v8 = vadd.f32 %v121_v6, %v98_v7 }
  0xc7   :  { %v133_v9 = vpop.f32.mrf.mxu0 }
  0xc8   :  { %v105_v10 = vsel %vm104_vm3, %v99_v8, -inf }
  0xc9   :  { %106 = vmax.xlane.f32.xlu0 %v105_v10 }
 0x152   :  { %v107_v11 = vpop.xlane.xlu0 %106 }
 0x153   :  { %v108_v12 = vsub.f32 %v105_v10, %v107_v11 }
 0x155   :  { %v109_v13 = vmul.f32 1.442695, %v108_v12 }
 0x157   :  { %136 = vpow2.f32 %v109_v13 }
 0x164   :  { %v137_v14 = vpop.eup %136 }
 0x165   :  { %v111_v15 = vsel %vm104_vm3, %v137_v14, 0.0 }
 0x166   :  { %112 = vadd.xlane.f32.xlu0 %v111_v15 }
 0x1ef   :  { %v113_v16 = vpop.xlane.xlu0 %112 }
 0x1f0   :  { %138 = vrcp.f32 %v113_v16 }
 0x1fd   :  { %v139_v17 = vpop.eup %138 }
 0x1fe   :  { %v115_v18 = vmul.f32 %v139_v17, %v111_v15 }
 0x200   :  { %116 = vst [vmem:[%s180_s3] sm:$0xff] %v115_v18 }

// kernel: acdnet_forward.23
= control target key start
LH: loop header
LB: loop body
LE: loop exit
PB: predicated region body
PF: predicated region fallthrough
CT: control target
= control target key end

     0   :  { %s1275_s15 = smov 0   ;;  %s1277_s16 = smov 0   ;;  %s1424_s0 = inlined_call_operand.vmem [shape: bf16[2,12,32], index: 0, kind: input, shape index: {}]   ;;  %s1425_s1 = inlined_call_operand.vmem [shape: bf16[9,32,32], index: 1, kind: input, shape index: {}]   ;;  %s1426_s2 = inlined_call_operand.vmem [shape: f32[1,32], index: 2, kind: input, shape index: {}]   ;;  %s1427_s3 = inlined_call_operand.vmem [shape: f32[1,32], index: 3, kind: input, shape index: {}]   ;;  %s1428_s4 = inlined_call_operand.vmem [shape: bf16[2,3,32], index: 4, kind: output, shape index: {}]  }
   0x1   :  { %s1279_s17 = smov 0  }
   0x2 LB: > { %s26_s18 = sadd.s32 1, %s1242_s16  ;;  %p1005_p0 = scmp.ge.s32.totalorder %s1246_s17, 1  ;;  %s1246_s17 = sphi %s1279_s17, %s14_s17   ;;  %s1242_s16 = sphi %s1277_s16, %s1430_s16   ;;  %s1238_s15 = sphi %s1275_s15, %s1429_s15  }
   0x3   : > { %p28_p1 = scmp.ge.s32.totalorder %s26_s18, 2  ;;  %p201_p2 = scmp.lt.s32.totalorder %s1246_s17, 3 }
   0x5   : > { %s1432_s18 = smov (%p28_p1, %s26_s18), 0  ;;  %p202_p3 = pnand %p1005_p0, %p201_p2 }
   0x6   : > { %p239_p4 = scmp.lt.s32.totalorder (!%p202_p3), %s1238_s15, 1 }
   0x7   : > { %205 = sbr.rel (%p202_p3) target bundleno = 261 (0x105), region = 36 }
   0xc   : > { %v1202_v0 = vld [vmem:[%s1425_s1 + $0x18] sm:$0xff]   ;;  %v1248_v1 = vmov 0.0   ;;  %v1203_v2 = vld [vmem:[%s1425_s1 + $0x8] sm:$0xff]   ;;  %v1204_v3 = vld [vmem:[%s1425_s1 + $0x10] sm:$0xff]   ;;  %vm1249_vm0 = vmmov 0   ;;  %s1434_s15 = smov (!%p239_p4, %s1238_s15), 1 }
   0xd   : > { %1104 = vmatprep.subr.bf16.mxu0 %v1248_v1  ;;  %1112 = vmatprep.subr.bf16.mxu1 %v1248_v1  ;;  %v1205_v4 = vld [vmem:[%s1425_s1] sm:$0xff]   ;;  %s1076_s27 = sshll.u32 %s1434_s15, 3  ;;  %vm294_vm1 = vcmask 261120   ;;  %v1208_v5 = vld [vmem:[%s1425_s1 + $0x38] sm:$0xff]   ;;  %v1210_v11 = vld [vmem:[%s1425_s1 + $0x30] sm:$0xff]   ;;  %s1008_s13 = sshll.u32 %s1434_s15, 1 }
   0xe   : > { %1105 = vmatpush3.bf16.msra.mxu0 %v1202_v0  ;;  %1108 = vmatprep.mubr.msk.bf16.mxu0 %vm1249_vm0, %v1248_v1  ;;  %s1320_s30 = scalar_lea.vmem %s1424_s0, %s1076_s27  ;;  %v1207_v15 = vld [vmem:[%s1425_s1 + $0x28] sm:$0xff]   ;;  %v1213_v21 = vld [vmem:[%s1425_s1 + $0x58] sm:$0xff]   ;;  %v1209_v24 = vld [vmem:[%s1425_s1 + $0x20] sm:$0xff]   ;;  %s260_s22 = scalar_lea.vmem %s1428_s4, %s1008_s13  ;;  %vm881_vm2 = vcmask 254976   ;;  %vm882_vm3 = vsmask.f32 1280 }
   0xf   : > { %1113 = vmatpush3.bf16.msra.mxu1 %v1203_v2  ;;  %1106 = vmatprep.subr.bf16.mxu0 %v1248_v1  ;;  %v262_v6 = vld [vmem:[%s1320_s30] sm:$0x3]  ;;  %v1215_v25 = vld [vmem:[%s1425_s1 + $0x50] sm:$0xff]   ;;  %v1221_v28 = vld [vmem:[%s1320_s30] sm:$0x18]  }
  0x10   : > { %1114 = vmatprep.subr.bf16.mxu1 %v1248_v1  ;;  %1116 = vmatprep.mubr.msk.bf16.mxu1 %vm1249_vm0, %v1248_v1  ;;  %v1013_v7 = vcombine.low %v262_v6, %v262_v6  ;;  %v1211_v8 = vld [vmem:[%s1320_s30] ss:$0 sps:$4 sm:$0x66]   ;;  %v1212_v30 = vld [vmem:[%s1425_s1 + $0x48] sm:$0xff]   ;;  %v738_v32 = vshrl.u32 %v1221_v28, 16  ;;  %v741_v33 = vshll.u32 %v1221_v28, 16  ;;  %vm883_vm4 = vmand %vm881_vm2, %vm882_vm3 }
  0x11   : > { %v465_v12 = vshrl.u32 %v1211_v8, 16  ;;  %v468_v13 = vshll.u32 %v1211_v8, 16  ;;  %v1216_v18 = vld [vmem:[%s1320_s30] ss:$0 sps:$4 sm:$0xcc]   ;;  %v402_v29 = vrot.slane %v1211_v8, 1 }
  0x12   : > { %1107 = vmatpush3.bf16.msra.mxu0 %v1204_v3  ;;  %v276_v9 = vshrl.u32 %v1013_v7, 16  ;;  %v278_v10 = vshll.u32 %v1013_v7, 16  ;;  %v600_v22 = vshrl.u32 %v1216_v18, 16  ;;  %v603_v23 = vshll.u32 %v1216_v18, 16  ;;  %v1218_v34 = vld [vmem:[%s1425_s1 + $0x78] sm:$0xff]   ;;  %v1214_v35 = vld [vmem:[%s1425_s1 + $0x40] sm:$0xff]  }
  0x13   : > { %1115 = vmatpush3.bf16.msra.mxu1 %v1205_v4  ;;  %1120 = vmatprep.subr.bf16.mxu0 %v1248_v1  ;;  %v467_v16 = vrot.slane %v465_v12, 1  ;;  %v470_v17 = vrot.slane %v468_v13, 2  ;;  %v740_v36 = vrot.slane %v738_v32, 3  ;;  %v743_v37 = vrot.slane %v741_v33, 4  ;;  %v1220_v38 = vld [vmem:[%s1425_s1 + $0x70] sm:$0xff]   ;;  %v1217_v40 = vld [vmem:[%s1425_s1 + $0x68] sm:$0xff]  }
  0x14   : > { %1128 = vmatprep.subr.bf16.mxu1 %v1248_v1  ;;  %v280_v14 = vrot.slane %v278_v10, 1  ;;  %v602_v26 = vrot.slane %v600_v22, 2  ;;  %v605_v27 = vrot.slane %v603_v23, 3  ;;  %v537_v39 = vrot.slane %v1216_v18, 2  ;;  %v1219_v42 = vld [vmem:[%s1425_s1 + $0x60] sm:$0xff]   ;;  %v1222_v44 = vld [vmem:[%s1425_s1 + $0x88] sm:$0xff]  }
  0x15   : > { %v471_v20 = vor.u32 %v470_v17, %v467_v16  ;;  %v744_v41 = vor.u32 %v743_v37, %v740_v36  ;;  %v675_v43 = vrot.slane %v1221_v28, 3  ;;  %v1223_v45 = vld [vmem:[%s1425_s1 + $0x80] sm:$0xff]  }
  0x16   : > { %1117 = vmatmul.mubr.msk.bf16.vlgmr.msra.gmra.mxu1 %vm294_vm1, %v262_v6  ;;  %v281_v19 = vor.u32 %v280_v14, %v276_v9  ;;  %v606_v31 = vor.u32 %v605_v27, %v602_v26  ;;  %v801_v46 = vld [vmem:[%s1320_s30 + $0x4] sm:$0x3]  ;;  %v1072_v23 = vld [vmem:[%s1426_s2] ss:$0 sm:$0xff] }
  0x17   : > { %1129 = vmatpush3.bf16.msra.mxu1 %v1208_v5  ;;  %1132 = vmatprep.mubr.msk.bf16.mxu1 %vm1249_vm0, %v1248_v1  ;;  %v884_v32 = vld [vmem:[%s260_s22] sm:$0x3] }
  0x18   : > { %1130 = vmatprep.subr.bf16.mxu1 %v1248_v1  ;;  %1109 = vmatmul.mubr.msk.bf16.vlgmr.msra.gmra.mxu0 %vm294_vm1, %v281_v19 }
  0x19   : > { %1121 = vmatpush3.bf16.msra.mxu0 %v1207_v15  ;;  %1124 = vmatprep.mubr.msk.bf16.mxu0 %vm1249_vm0, %v1248_v1 }
  0x1a   : > { %1122 = vmatprep.subr.bf16.mxu0 %v1248_v1 }
  0x1b   : > { %1131 = vmatpush3.bf16.msra.mxu1 %v1210_v11 }
  0x1c   : > { %1144 = vmatprep.subr.bf16.mxu1 %v1248_v1 }
  0x1d   : > { %1123 = vmatpush3.bf16.msra.mxu0 %v1209_v24 }
  0x1e   : > { %1133 = vmatmul.mubr.msk.bf16.vlgmr.msra.gmra.mxu1 %vm294_vm1, %v471_v20  ;;  %1136 = vmatprep.subr.bf16.mxu0 %v1248_v1 }
  0x1f   : > { %1145 = vmatpush3.bf16.msra.mxu1 %v1213_v21  ;;  %1148 = vmatprep.mubr.msk.bf16.mxu1 %vm1249_vm0, %v1248_v1 }
  0x20   : > { %1146 = vmatprep.subr.bf16.mxu1 %v1248_v1  ;;  %1125 = vmatmul.mubr.msk.bf16.vlgmr.msra.gmra.mxu0 %vm294_vm1, %v402_v29 }
  0x21   : > { %1137 = vmatpush3.bf16.msra.mxu0 %v1212_v30  ;;  %1140 = vmatprep.mubr.msk.bf16.mxu0 %vm1249_vm0, %v1248_v1 }
  0x22   : > { %1138 = vmatprep.subr.bf16.mxu0 %v1248_v1 }
  0x23   : > { %1147 = vmatpush3.bf16.msra.mxu1 %v1215_v25  ;;  %v1073_v25 = vld [vmem:[%s1427_s3] ss:$0 sm:$0xff] }
  0x24   : > { %1160 = vmatprep.subr.bf16.mxu1 %v1248_v1 }
  0x25   : > { %1139 = vmatpush3.bf16.msra.mxu0 %v1214_v35 }
  0x26   : > { %1149 = vmatmul.mubr.msk.bf16.vlgmr.msra.gmra.mxu1 %vm294_vm1, %v606_v31  ;;  %1152 = vmatprep.subr.bf16.mxu0 %v1248_v1 }
  0x27   : > { %1161 = vmatpush3.bf16.msra.mxu1 %v1218_v34  ;;  %1164 = vmatprep.mubr.msk.bf16.mxu1 %vm1249_vm0, %v1248_v1 }
  0x28   : > { %1162 = vmatprep.subr.bf16.mxu1 %v1248_v1  ;;  %1141 = vmatmul.mubr.msk.bf16.vlgmr.msra.gmra.mxu0 %vm294_vm1, %v537_v39 }
  0x29   : > { %1153 = vmatpush3.bf16.msra.mxu0 %v1217_v40  ;;  %1156 = vmatprep.mubr.msk.bf16.mxu0 %vm1249_vm0, %v1248_v1 }
  0x2a   : > { %1154 = vmatprep.subr.bf16.mxu0 %v1248_v1 }
  0x2b   : > { %1163 = vmatpush3.bf16.msra.mxu1 %v1220_v38 }
  0x2d   : > { %1155 = vmatpush3.bf16.msra.mxu0 %v1219_v42 }
  0x2e   : > { %1165 = vmatmul.mubr.msk.bf16.vlgmr.msra.gmra.mxu1 %vm294_vm1, %v744_v41  ;;  %1168 = vmatprep.subr.bf16.mxu0 %v1248_v1 }
  0x30   : > { %1157 = vmatmul.mubr.msk.bf16.vlgmr.msra.gmra.mxu0 %vm294_vm1, %v675_v43 }
  0x31   : > { %1169 = vmatpush3.bf16.msra.mxu0 %v1222_v44  ;;  %1172 = vmatprep.mubr.msk.bf16.mxu0 %vm1249_vm0, %v1248_v1 }
  0x32   : > { %1170 = vmatprep.subr.bf16.mxu0 %v1248_v1 }
  0x35   : > { %1171 = vmatpush3.bf16.msra.mxu0 %v1223_v45 }
  0x38   : > { %1173 = vmatmul.mubr.msk.bf16.vlgmr.msra.gmra.mxu0 %vm294_vm1, %v801_v46 }
  0xd6   : > { %v387_v47 = vpop.f32.mrf.mxu1 }
  0xd8   : > { %v1118_v48 = vpop.f32.mrf.mxu1  ;;  %v332_v51 = vpop.f32.mrf.mxu0 }
  0xd9   : > { %v388_v0 = vadd.f32 %v387_v47, %v332_v51 }
  0xda   : > { %v390_v49 = vpop.f32.mrf.mxu1  ;;  %v1110_v52 = vpop.f32.mrf.mxu0 }
  0xdc   : > { %v1119_v50 = vpop.f32.mrf.mxu1  ;;  %v335_v54 = vpop.f32.mrf.mxu0 }
  0xde   : > { %v521_v53 = vpop.f32.mrf.mxu1  ;;  %v1111_v56 = vpop.f32.mrf.mxu0 }
  0xe0   : > { %v1134_v55 = vpop.f32.mrf.mxu1  ;;  %v452_v58 = vpop.f32.mrf.mxu0 }
  0xe1   : > { %v458_v3 = vadd.f32 %v452_v58, %v388_v0 }
  0xe2   : > { %v524_v57 = vpop.f32.mrf.mxu1  ;;  %v1126_v60 = vpop.f32.mrf.mxu0 }
  0xe3   : > { %v527_v8 = vadd.f32 %v521_v53, %v458_v3 }
  0xe4   : > { %v1135_v59 = vpop.f32.mrf.mxu1  ;;  %v455_v62 = vpop.f32.mrf.mxu0 }
  0xe6   : > { %v656_v61 = vpop.f32.mrf.mxu1  ;;  %v1127_v1 = vpop.f32.mrf.mxu0 }
  0xe8   : > { %v1150_v63 = vpop.f32.mrf.mxu1  ;;  %v587_v4 = vpop.f32.mrf.mxu0 }
  0xe9   : > { %v593_v11 = vadd.f32 %v587_v4, %v527_v8 }
  0xea   : > { %v659_v2 = vpop.f32.mrf.mxu1  ;;  %v1142_v6 = vpop.f32.mrf.mxu0 }
  0xeb   : > { %v662_v16 = vadd.f32 %v656_v61, %v593_v11 }
  0xec   : > { %v1151_v5 = vpop.f32.mrf.mxu1  ;;  %v590_v9 = vpop.f32.mrf.mxu0 }
  0xee   : > { %v794_v7 = vpop.f32.mrf.mxu1  ;;  %v1143_v12 = vpop.f32.mrf.mxu0 }
  0xf0   : > { %v1166_v10 = vpop.f32.mrf.mxu1  ;;  %v725_v14 = vpop.f32.mrf.mxu0 }
  0xf1   : > { %v731_v18 = vadd.f32 %v725_v14, %v662_v16 }
  0xf2   : > { %v797_v13 = vpop.f32.mrf.mxu1  ;;  %v1158_v17 = vpop.f32.mrf.mxu0 }
  0xf3   : > { %v800_v21 = vadd.f32 %v794_v7, %v731_v18 }
  0xf4   : > { %v1167_v15 = vpop.f32.mrf.mxu1  ;;  %v728_v19 = vpop.f32.mrf.mxu0 }
  0xf6   : > { %v1159_v20 = vpop.f32.mrf.mxu0 }
  0xf8   : > { %v856_v22 = vpop.f32.mrf.mxu0 }
  0xf9   : > { %v862_v24 = vadd.f32 %v856_v22, %v800_v21 }
  0xfa   : > { %v1174_v26 = vpop.f32.mrf.mxu0 }
  0xfb   : > { %v870_v27 = vmul.f32 %v1072_v23, %v862_v24 }
  0xfc   : > { %v859_v28 = vpop.f32.mrf.mxu0 }
  0xfd   : > { %v878_v29 = vadd.f32 %v1073_v25, %v870_v27 }
  0xfe   : > { %v1175_v30 = vpop.f32.mrf.mxu0 }
  0xff   : > { %v879_v31 = vmax.f32 %v878_v29, 0.0 }
 0x101   : > { %v880_v33 = vpack.c.bf16 %v879_v31, %v879_v31 }
 0x103   : > { %v885_v34 = vsel %vm883_vm4, %v880_v33, %v884_v32 }
 0x104   : > { %886 = vst [vmem:[%s260_s22] sm:$0x3] %v885_v34 }
 0x105 PF: > { %s14_s17 = sadd.s32 1, %s1246_s17   ;;  %s1429_s15 = smov %s1242_s16 }
 0x106   : > { %p11_p5 = scmp.ge.s32.totalorder %s14_s17, 4   ;;  %s1430_s16 = smov %s1432_s18 }
 0x108   :  { %13 = sbr.rel (!%p11_p5) target bundleno = 2 (0x2), region = 83 }

</bundles_post_ra>
